<compile_context>
chip_gen: v5e
topology: v5e:2x2
jax: 0.10.0
libtpu: 0.0.40
codegen_flags: <defaults>
</compile_context>

<pallas_src>
import functools

import jax
import jax.numpy as jnp
from jax import lax
from jax.experimental import pallas as pl
from jax.experimental.pallas import tpu as pltpu

H = 64  # GRU hidden size / conv out channels


# ----------------------------------------------------------------------------
# Kernel A: conv1d + ReLU + hoisted GRU input projections (per branch)
# ----------------------------------------------------------------------------
def _conv_proj_kernel(xw_ref, wc_ref, bc_ref,
                      wihf_ref, bihf_ref, wihb_ref, bihb_ref,
                      gif_ref, gib_ref):
    # xw_ref: (R, KEpad) im2col rows (t-major, then batch); wc_ref: (KEpad, 64)
    c = jnp.dot(xw_ref[...], wc_ref[...], preferred_element_type=jnp.float32)
    c = jnp.maximum(c + bc_ref[...], 0.0)                       # conv + ReLU
    gif_ref[...] = jnp.dot(c, wihf_ref[...],
                           preferred_element_type=jnp.float32) + bihf_ref[...]
    gib_ref[...] = jnp.dot(c, wihb_ref[...],
                           preferred_element_type=jnp.float32) + bihb_ref[...]


# ----------------------------------------------------------------------------
# Kernel B: batched bidirectional GRU (M = 3*B rows) + fused max-pool + flatten
# ----------------------------------------------------------------------------
def _bigru_pool_kernel(gif_ref, gib_ref,
                       whhf_ref, bhhf_ref, whhb_ref, bhhb_ref,
                       y_ref, hf_hist, hb_hist,
                       *, B, T_lens, OLs, pool_ks, pool_offs):
    T_pad, M, _ = gif_ref.shape

    whhf = whhf_ref[...]; bhhf = bhhf_ref[...]
    whhb = whhb_ref[...]; bhhb = bhhb_ref[...]

    # Slot 0 is the left MaxPool1d(padding=1) pad -> -inf so it never wins the
    # max.  All other slots (1..T_pad) are written during the recurrence
    # before being read by the pooling epilogue.
    pad = jnp.full((M, H), -jnp.inf, dtype=jnp.float32)
    hf_hist[0] = pad
    hb_hist[0] = pad

    # Per-row valid length (rows 0:B -> branch1, B:2B -> branch2, 2B:3B -> branch3)
    rid = lax.broadcasted_iota(jnp.int32, (M, 1), 0)
    tlen = jnp.where(rid < B, T_lens[0],
                     jnp.where(rid < 2 * B, T_lens[1], T_lens[2]))

    def cell(gi, h, whh, bhh):
        # PyTorch GRU, gate order (r, z, n); gi already contains x@W_ih + b_ih.
        gh = jnp.dot(h, whh, preferred_element_type=jnp.float32) + bhh
        r = jax.nn.sigmoid(gi[:, 0:H] + gh[:, 0:H])
        z = jax.nn.sigmoid(gi[:, H:2 * H] + gh[:, H:2 * H])
        n = jnp.tanh(gi[:, 2 * H:3 * H] + r * gh[:, 2 * H:3 * H])
        return (1.0 - z) * n + z * h

    def body(t, carry):
        h_f, h_b = carry
        tb = T_pad - 1 - t
        hf_new = cell(gif_ref[t], h_f, whhf, bhhf)
        hb_new = cell(gib_ref[tb], h_b, whhb, bhhb)
        h_f = jnp.where(t < tlen, hf_new, h_f)     # mask padded timesteps
        h_b = jnp.where(tb < tlen, hb_new, h_b)
        hf_hist[t + 1] = h_f                       # slot 0 is the -inf left pad
        hb_hist[tb + 1] = h_b
        return h_f, h_b

    h0 = jnp.zeros((M, H), jnp.float32)
    lax.fori_loop(0, T_pad, body, (h0, h0))

    # Fused MaxPool1d (stride = kernel) + flatten, written lane-dense (B, F).
    # Flatten order is time-major (w, c); W1 rows were permuted at init to match.
    col = 0
    for br in range(3):
        pk, off, OL = pool_ks[br], pool_offs[br], OLs[br]
        r0 = br * B
        for w in range(OL):
            s0 = off + w * pk
            mf = hf_hist[s0]
            mb = hb_hist[s0]
            for j in range(1, pk):
                mf = jnp.maximum(mf, hf_hist[s0 + j])
                mb = jnp.maximum(mb, hb_hist[s0 + j])
            m = jnp.concatenate([mf[r0:r0 + B, :], mb[r0:r0 + B, :]], axis=1)
            y_ref[:, col:col + 2 * H] = m
            col += 2 * H


# ----------------------------------------------------------------------------
# Kernel C: fused 4-layer MLP head (W1 K-tiled, W2/W3/W4 VMEM-resident)
# ----------------------------------------------------------------------------
def _mlp_kernel(x_ref, w1_ref, b1_ref, w2_ref, b2_ref, w3_ref, b3_ref,
                w4_ref, b4_ref, o_ref, acc_ref):
    k = pl.program_id(0)

    @pl.when(k == 0)
    def _():
        acc_ref[...] = jnp.zeros_like(acc_ref)

    acc_ref[...] += jnp.dot(x_ref[...], w1_ref[...],
                            preferred_element_type=jnp.float32)

    @pl.when(k == pl.num_programs(0) - 1)
    def _():
        h = jnp.maximum(acc_ref[...] + b1_ref[...], 0.0)
        h = jnp.maximum(jnp.dot(h, w2_ref[...],
                                preferred_element_type=jnp.float32) + b2_ref[...], 0.0)
        h = jnp.maximum(jnp.dot(h, w3_ref[...],
                                preferred_element_type=jnp.float32) + b3_ref[...], 0.0)
        o_ref[...] = jnp.dot(h, w4_ref[...],
                             preferred_element_type=jnp.float32) + b4_ref[...]


def mlp_head(y, params):
    Bm, F = y.shape
    N1 = params["W1"].shape[1]
    N2 = params["W2"].shape[1]
    N3 = params["W3"].shape[1]
    O = params["W4"].shape[1]
    tk = F
    for cand in range(1024, 127, -128):   # largest 128-multiple divisor <= 1024
        if F % cand == 0:
            tk = cand
            break
    return pl.pallas_call(
        _mlp_kernel,
        out_shape=jax.ShapeDtypeStruct((Bm, O), jnp.float32),
        grid=(F // tk,),
        in_specs=[
            pl.BlockSpec((Bm, tk), lambda k: (0, k)),
            pl.BlockSpec((tk, N1), lambda k: (k, 0)),
            pl.BlockSpec((1, N1), lambda k: (0, 0)),
            pl.BlockSpec((N1, N2), lambda k: (0, 0)),
            pl.BlockSpec((1, N2), lambda k: (0, 0)),
            pl.BlockSpec((N2, N3), lambda k: (0, 0)),
            pl.BlockSpec((1, N3), lambda k: (0, 0)),
            pl.BlockSpec((N3, O), lambda k: (0, 0)),
            pl.BlockSpec((1, O), lambda k: (0, 0)),
        ],
        out_specs=pl.BlockSpec((Bm, O), lambda k: (0, 0)),
        scratch_shapes=[pltpu.VMEM((Bm, N1), jnp.float32)],
        compiler_params=pltpu.CompilerParams(
            dimension_semantics=("arbitrary",),
            vmem_limit_bytes=48 * 1024 * 1024),
    )(y, params["W1"], params["b1"], params["W2"], params["b2"],
      params["W3"], params["b3"], params["W4"], params["b4"])


# ----------------------------------------------------------------------------
# Full MLTP forward (dropout layers are eval-mode identities)
# ----------------------------------------------------------------------------
def mltp_forward(params, cnn_pssm, valid_lens):
    del valid_lens  # unused in reference forward()
    emb = jnp.take(params["embed"], cnn_pssm, axis=0)        # (B, L, E)
    B, L, E = emb.shape
    Ks = (2, 3, 4)
    Ts = tuple(L - k + 1 for k in Ks)
    T_pad = max(Ts)
    KEpad = max(Ks) * E
    R = T_pad * B
    M = 3 * B

    # im2col (time-major rows), zero-padded in taps and time; zeros are masked
    # downstream so they never affect results.
    def im2col(Kb, Tb):
        cols = [emb[:, j:j + Tb, :] for j in range(Kb)]
        xw = jnp.concatenate(cols, axis=-1)                   # (B, Tb, Kb*E)
        xw = jnp.pad(xw, ((0, 0), (0, T_pad - Tb), (0, KEpad - Kb * E)))
        return jnp.transpose(xw, (1, 0, 2)).reshape(R, KEpad)  # (T_pad*B, KEpad)

    XW = jnp.stack([im2col(k, t) for k, t in zip(Ks, Ts)], axis=0)  # (3, R, KEpad)

    # --- Kernel A: conv + ReLU + hoisted GRU input projections ---------------
    gif3, gib3 = pl.pallas_call(
        _conv_proj_kernel,
        out_shape=(jax.ShapeDtypeStruct((3, R, 3 * H), jnp.float32),
                   jax.ShapeDtypeStruct((3, R, 3 * H), jnp.float32)),
        grid=(3,),
        in_specs=[
            pl.BlockSpec((None, R, KEpad), lambda b: (b, 0, 0)),
            pl.BlockSpec((None, KEpad, H), lambda b: (b, 0, 0)),
            pl.BlockSpec((None, 1, H), lambda b: (b, 0, 0)),
            pl.BlockSpec((H, 3 * H), lambda b: (0, 0)),
            pl.BlockSpec((1, 3 * H), lambda b: (0, 0)),
            pl.BlockSpec((H, 3 * H), lambda b: (0, 0)),
            pl.BlockSpec((1, 3 * H), lambda b: (0, 0)),
        ],
        out_specs=(
            pl.BlockSpec((None, R, 3 * H), lambda b: (b, 0, 0)),
            pl.BlockSpec((None, R, 3 * H), lambda b: (b, 0, 0)),
        ),
        compiler_params=pltpu.CompilerParams(dimension_semantics=("parallel",)),
    )(XW, params["wconv"], params["bconv"],
      params["gru_wih_f"], params["gru_bih_f"],
      params["gru_wih_b"], params["gru_bih_b"])

    # tiny layout glue: (3, T_pad*B, 192) -> (T_pad, 3*B, 192), branch-major rows
    def to_time_major(g3):
        return g3.reshape(3, T_pad, B, 3 * H).transpose(1, 0, 2, 3).reshape(T_pad, M, 3 * H)

    gif = to_time_major(gif3)
    gib = to_time_major(gib3)

    # --- Kernel B: batched BiGRU + fused max-pool + flatten ------------------
    T1, T2, T3 = Ts
    OL1 = (T1 + 2 * 1 - 2) // 2 + 1     # MaxPool1d(k=2, stride=2, padding=1)
    OL2 = (T2 - 3) // 3 + 1             # MaxPool1d(k=3, stride=3)
    OL3 = T3                            # MaxPool1d(k=1) == identity
    OLs = (OL1, OL2, OL3)
    pool_ks = (2, 3, 1)
    pool_offs = (0, 1, 1)               # scratch slot = t + 1; slot 0 = -inf pad
    F = 2 * H * sum(OLs)

    y = pl.pallas_call(
        functools.partial(_bigru_pool_kernel, B=B, T_lens=Ts, OLs=OLs,
                          pool_ks=pool_ks, pool_offs=pool_offs),
        out_shape=jax.ShapeDtypeStruct((B, F), jnp.float32),
        grid=(1,),
        in_specs=[
            pl.BlockSpec((T_pad, M, 3 * H), lambda i: (0, 0, 0)),
            pl.BlockSpec((T_pad, M, 3 * H), lambda i: (0, 0, 0)),
            pl.BlockSpec((H, 3 * H), lambda i: (0, 0)),
            pl.BlockSpec((1, 3 * H), lambda i: (0, 0)),
            pl.BlockSpec((H, 3 * H), lambda i: (0, 0)),
            pl.BlockSpec((1, 3 * H), lambda i: (0, 0)),
        ],
        out_specs=pl.BlockSpec((B, F), lambda i: (0, 0)),
        scratch_shapes=[pltpu.VMEM((T_pad + 1, M, H), jnp.float32),
                        pltpu.VMEM((T_pad + 1, M, H), jnp.float32)],
        compiler_params=pltpu.CompilerParams(dimension_semantics=("arbitrary",)),
    )(gif, gib,
      params["gru_whh_f"], params["gru_bhh_f"],
      params["gru_whh_b"], params["gru_bhh_b"])

    # TODO(synk): training-mode dropout not implemented (inference / eval identity).

    # --- Kernel C: fused MLP head --------------------------------------------
    return mlp_head(y, params)


# ----------------------------------------------------------------------------
# Deterministic parameter construction (all layout fixups hoisted to init)
# ----------------------------------------------------------------------------
def init_params(vocab_size, embedding_size, output_size, seq_len):
    key = jax.random.PRNGKey(0)
    ks = jax.random.split(key, 32)
    E = embedding_size
    Ks = (2, 3, 4)
    Ts = tuple(seq_len - k + 1 for k in Ks)
    T1, T2, T3 = Ts
    OL1 = (T1 + 2 * 1 - 2) // 2 + 1
    OL2 = (T2 - 3) // 3 + 1
    OL3 = T3
    OLs = (OL1, OL2, OL3)
    F = 2 * H * sum(OLs)
    KEpad = max(Ks) * E

    def nrm(k, shape, scale):
        return jax.random.normal(k, shape, jnp.float32) * scale

    # Conv weights generated in PyTorch layout (C_out, E, K), converted once to
    # padded im2col-matmul layout (KEpad, C_out).
    conv_ws, conv_bs = [], []
    for i, Kb in enumerate(Ks):
        w_pt = nrm(ks[1 + 2 * i], (H, E, Kb), 0.1)
        b_pt = nrm(ks[2 + 2 * i], (1, H), 0.01)
        wm = jnp.transpose(w_pt, (2, 1, 0)).reshape(Kb * E, H)
        wm = jnp.pad(wm, ((0, KEpad - Kb * E), (0, 0)))
        conv_ws.append(wm)
        conv_bs.append(b_pt)

    # W1 generated in PyTorch (B, C, OL).view(B,-1) row order, then permuted so
    # the runtime time-major (w, c) flatten produces identical results.
    W1_pt = nrm(ks[15], (F, 2000), 1.0 / jnp.sqrt(F))
    perm, base = [], 0
    for OL in OLs:
        for w in range(OL):
            for c in range(2 * H):
                perm.append(base + c * OL + w)
        base += 2 * H * OL
    W1 = jnp.take(W1_pt, jnp.array(perm, jnp.int32), axis=0)

    p = {
        "embed": nrm(ks[0], (vocab_size, E), 0.1),
        "wconv": jnp.stack(conv_ws, axis=0),      # (3, KEpad, 64)
        "bconv": jnp.stack(conv_bs, axis=0),      # (3, 1, 64)
        # GRU weights stored transposed for x @ W form; gate order (r, z, n)
        "gru_wih_f": nrm(ks[7], (H, 3 * H), 0.1),
        "gru_whh_f": nrm(ks[8], (H, 3 * H), 0.1),
        "gru_bih_f": nrm(ks[9], (1, 3 * H), 0.01),
        "gru_bhh_f": nrm(ks[10], (1, 3 * H), 0.01),
        "gru_wih_b": nrm(ks[11], (H, 3 * H), 0.1),
        "gru_whh_b": nrm(ks[12], (H, 3 * H), 0.1),
        "gru_bih_b": nrm(ks[13], (1, 3 * H), 0.01),
        "gru_bhh_b": nrm(ks[14], (1, 3 * H), 0.01),
        # MLP head: F -> 2000 -> 500 -> 100 -> output_size
        "W1": W1, "b1": nrm(ks[16], (1, 2000), 0.01),
        "W2": nrm(ks[17], (2000, 500), 1.0 / jnp.sqrt(2000.0)), "b2": nrm(ks[18], (1, 500), 0.01),
        "W3": nrm(ks[19], (500, 100), 1.0 / jnp.sqrt(500.0)), "b3": nrm(ks[20], (1, 100), 0.01),
        "W4": nrm(ks[21], (100, output_size), 0.1), "b4": nrm(ks[22], (1, output_size), 0.01),
    }
    return p


if __name__ == "__main__":
    # small config: vocab=20, embedding=32, output=2, batch=2, seq_len=16
    VOCAB, E, OUT, B, L = 20, 32, 2, 2, 16

    params = init_params(VOCAB, E, OUT, L)

    key = jax.random.PRNGKey(0)
    k_tok, _ = jax.random.split(key)
    cnn_pssm = jax.random.randint(k_tok, (B, L), 0, VOCAB, dtype=jnp.int32)
    valid_lens = jnp.full((B,), L, dtype=jnp.int32)

    fwd = jax.jit(mltp_forward)
    out = fwd(params, cnn_pssm, valid_lens)
    out = jax.block_until_ready(out)
    assert out.shape == (B, OUT)
    print("KERNEL_OK")
</pallas_src>

<mosaic_0001>
module attributes {stable_mosaic.version = 11 : i64} {
  func.func @_bigru_pool_kernel(%arg0: i32, %arg1: memref<15x6x192xf32, #tpu.memory_space<vmem>>, %arg2: memref<15x6x192xf32, #tpu.memory_space<vmem>>, %arg3: memref<64x192xf32, #tpu.memory_space<vmem>>, %arg4: memref<1x192xf32, #tpu.memory_space<vmem>>, %arg5: memref<64x192xf32, #tpu.memory_space<vmem>>, %arg6: memref<1x192xf32, #tpu.memory_space<vmem>>, %arg7: memref<2x3200xf32, #tpu.memory_space<vmem>>, %arg8: memref<16x6x64xf32, #tpu.memory_space<vmem>>, %arg9: memref<16x6x64xf32, #tpu.memory_space<vmem>>) attributes {dimension_semantics = [#tpu.dimension_semantics<arbitrary>], iteration_bounds = array<i64: 1>, scalar_prefetch = 0 : i64, scratch_operands = 2 : i64, tpu.core_type = #tpu.core_type<tc>, window_params = [{pipeline_mode = #tpu.pipeline_mode<synchronous>, transform_indices = @transform_0, window_bounds = array<i64: 15, 6, 192>}, {pipeline_mode = #tpu.pipeline_mode<synchronous>, transform_indices = @transform_1, window_bounds = array<i64: 15, 6, 192>}, {pipeline_mode = #tpu.pipeline_mode<synchronous>, transform_indices = @transform_2, window_bounds = array<i64: 64, 192>}, {pipeline_mode = #tpu.pipeline_mode<synchronous>, transform_indices = @transform_3, window_bounds = array<i64: 1, 192>}, {pipeline_mode = #tpu.pipeline_mode<synchronous>, transform_indices = @transform_4, window_bounds = array<i64: 64, 192>}, {pipeline_mode = #tpu.pipeline_mode<synchronous>, transform_indices = @transform_5, window_bounds = array<i64: 1, 192>}, {pipeline_mode = #tpu.pipeline_mode<synchronous>, transform_indices = @transform_6, window_bounds = array<i64: 2, 3200>}]} {
    %c0 = arith.constant 0 : index
    %c0_0 = arith.constant 0 : index
    %0 = vector.load %arg3[%c0, %c0_0] : memref<64x192xf32, #tpu.memory_space<vmem>>, vector<64x192xf32>
    %c0_1 = arith.constant 0 : index
    %c0_2 = arith.constant 0 : index
    %1 = vector.load %arg4[%c0_1, %c0_2] : memref<1x192xf32, #tpu.memory_space<vmem>>, vector<1x192xf32>
    %c0_3 = arith.constant 0 : index
    %c0_4 = arith.constant 0 : index
    %2 = vector.load %arg5[%c0_3, %c0_4] : memref<64x192xf32, #tpu.memory_space<vmem>>, vector<64x192xf32>
    %c0_5 = arith.constant 0 : index
    %c0_6 = arith.constant 0 : index
    %3 = vector.load %arg6[%c0_5, %c0_6] : memref<1x192xf32, #tpu.memory_space<vmem>>, vector<1x192xf32>
    %cst = arith.constant 0xFF800000 : f32
    %4 = vector.broadcast %cst : f32 to vector<6x64xf32>
    %c0_7 = arith.constant 0 : index
    %c0_8 = arith.constant 0 : index
    %c0_9 = arith.constant 0 : index
    %5 = vector.load %arg8[%c0_7, %c0_8, %c0_9] : memref<16x6x64xf32, #tpu.memory_space<vmem>>, vector<1x6x64xf32>
    %6 = vector.shape_cast %5 : vector<1x6x64xf32> to vector<6x64xf32>
    %7 = vector.shape_cast %4 : vector<6x64xf32> to vector<1x6x64xf32>
    tpu.vector_store %arg8[%c0_7, %c0_8, %c0_9], %7 {strides = array<i32>} : memref<16x6x64xf32, #tpu.memory_space<vmem>>, vector<1x6x64xf32>,
    %c0_10 = arith.constant 0 : index
    %c0_11 = arith.constant 0 : index
    %c0_12 = arith.constant 0 : index
    %8 = vector.load %arg9[%c0_10, %c0_11, %c0_12] : memref<16x6x64xf32, #tpu.memory_space<vmem>>, vector<1x6x64xf32>
    %9 = vector.shape_cast %8 : vector<1x6x64xf32> to vector<6x64xf32>
    %10 = vector.shape_cast %4 : vector<6x64xf32> to vector<1x6x64xf32>
    tpu.vector_store %arg9[%c0_10, %c0_11, %c0_12], %10 {strides = array<i32>} : memref<16x6x64xf32, #tpu.memory_space<vmem>>, vector<1x6x64xf32>,
    %11 = tpu.iota {dimensions = array<i32: 0>} : vector<6x1xi32>
    %c2_i32 = arith.constant 2 : i32
    %12 = vector.broadcast %c2_i32 : i32 to vector<6x1xi32>
    %13 = arith.cmpi slt, %11, %12 : vector<6x1xi32>
    %c4_i32 = arith.constant 4 : i32
    %14 = vector.broadcast %c4_i32 : i32 to vector<6x1xi32>
    %15 = arith.cmpi slt, %11, %14 : vector<6x1xi32>
    %c14_i32 = arith.constant 14 : i32
    %c13_i32 = arith.constant 13 : i32
    %16 = vector.broadcast %c14_i32 : i32 to vector<6x1xi32>
    %17 = vector.broadcast %c13_i32 : i32 to vector<6x1xi32>
    %18 = arith.select %15, %16, %17 : vector<6x1xi1>, vector<6x1xi32>
    %c15_i32 = arith.constant 15 : i32
    %19 = vector.broadcast %c15_i32 : i32 to vector<6x1xi32>
    %20 = arith.select %13, %19, %18 : vector<6x1xi1>, vector<6x1xi32>
    %cst_13 = arith.constant 0.000000e+00 : f32
    %21 = vector.broadcast %cst_13 : f32 to vector<6x64xf32>
    %c0_i32 = arith.constant 0 : i32
    %c15_i32_14 = arith.constant 15 : i32
    %22 = arith.addi %c0_i32, %c15_i32_14 : i32
    %c1_i32 = arith.constant 1 : i32
    %23:2 = scf.for %arg10 = %c0_i32 to %22 step %c1_i32 iter_args(%arg11 = %21, %arg12 = %21) -> (vector<6x64xf32>, vector<6x64xf32>)  : i32 {
      %c14_i32_273 = arith.constant 14 : i32
      %320 = arith.subi %c14_i32_273, %arg10 : i32
      %321 = arith.index_cast %arg10 : i32 to index
      %c0_274 = arith.constant 0 : index
      %c0_275 = arith.constant 0 : index
      %322 = vector.load %arg1[%321, %c0_274, %c0_275] : memref<15x6x192xf32, #tpu.memory_space<vmem>>, vector<1x6x192xf32>
      %323 = vector.shape_cast %322 : vector<1x6x192xf32> to vector<6x192xf32>
      %cst_276 = arith.constant dense<0.000000e+00> : vector<6x192xf32>
      %324 = tpu.matmul %arg11, %0, %cst_276 {dimension_numbers = #tpu.dot_dimension_numbers<[1], [0], [0], [1], [0, 0, 1, 1], [], []>} : vector<6x64xf32>, vector<64x192xf32>, vector<6x192xf32> -> vector<6x192xf32>
      %325 = vector.broadcast %1 : vector<1x192xf32> to vector<6x192xf32>
      %326 = arith.addf %324, %325 : vector<6x192xf32>
      %327 = vector.extract_strided_slice %323 {offsets = [0, 0], sizes = [6, 64], strides = [1, 1]} : vector<6x192xf32> to vector<6x64xf32>
      %328 = vector.extract_strided_slice %326 {offsets = [0, 0], sizes = [6, 64], strides = [1, 1]} : vector<6x192xf32> to vector<6x64xf32>
      %329 = arith.addf %327, %328 : vector<6x64xf32>
      %330 = arith.negf %329 : vector<6x64xf32>
      %331 = math.exp %330 : vector<6x64xf32>
      %cst_277 = arith.constant 1.000000e+00 : f32
      %332 = vector.broadcast %cst_277 : f32 to vector<6x64xf32>
      %333 = arith.addf %332, %331 : vector<6x64xf32>
      %334 = arith.divf %332, %333 : vector<6x64xf32>
      %335 = vector.extract_strided_slice %323 {offsets = [0, 64], sizes = [6, 64], strides = [1, 1]} : vector<6x192xf32> to vector<6x64xf32>
      %336 = vector.extract_strided_slice %326 {offsets = [0, 64], sizes = [6, 64], strides = [1, 1]} : vector<6x192xf32> to vector<6x64xf32>
      %337 = arith.addf %335, %336 : vector<6x64xf32>
      %338 = arith.negf %337 : vector<6x64xf32>
      %339 = math.exp %338 : vector<6x64xf32>
      %cst_278 = arith.constant 1.000000e+00 : f32
      %340 = vector.broadcast %cst_278 : f32 to vector<6x64xf32>
      %341 = arith.addf %340, %339 : vector<6x64xf32>
      %342 = arith.divf %340, %341 : vector<6x64xf32>
      %343 = vector.extract_strided_slice %323 {offsets = [0, 128], sizes = [6, 64], strides = [1, 1]} : vector<6x192xf32> to vector<6x64xf32>
      %344 = vector.extract_strided_slice %326 {offsets = [0, 128], sizes = [6, 64], strides = [1, 1]} : vector<6x192xf32> to vector<6x64xf32>
      %345 = arith.mulf %334, %344 : vector<6x64xf32>
      %346 = arith.addf %343, %345 : vector<6x64xf32>
      %347 = math.tanh %346 : vector<6x64xf32>
      %cst_279 = arith.constant 1.000000e+00 : f32
      %348 = vector.broadcast %cst_279 : f32 to vector<6x64xf32>
      %349 = arith.subf %348, %342 : vector<6x64xf32>
      %350 = arith.mulf %349, %347 : vector<6x64xf32>
      %351 = arith.mulf %342, %arg11 : vector<6x64xf32>
      %352 = arith.addf %350, %351 : vector<6x64xf32>
      %353 = arith.index_cast %320 : i32 to index
      %c0_280 = arith.constant 0 : index
      %c0_281 = arith.constant 0 : index
      %354 = vector.load %arg2[%353, %c0_280, %c0_281] : memref<15x6x192xf32, #tpu.memory_space<vmem>>, vector<1x6x192xf32>
      %355 = vector.shape_cast %354 : vector<1x6x192xf32> to vector<6x192xf32>
      %cst_282 = arith.constant dense<0.000000e+00> : vector<6x192xf32>
      %356 = tpu.matmul %arg12, %2, %cst_282 {dimension_numbers = #tpu.dot_dimension_numbers<[1], [0], [0], [1], [0, 0, 1, 1], [], []>} : vector<6x64xf32>, vector<64x192xf32>, vector<6x192xf32> -> vector<6x192xf32>
      %357 = vector.broadcast %3 : vector<1x192xf32> to vector<6x192xf32>
      %358 = arith.addf %356, %357 : vector<6x192xf32>
      %359 = vector.extract_strided_slice %355 {offsets = [0, 0], sizes = [6, 64], strides = [1, 1]} : vector<6x192xf32> to vector<6x64xf32>
      %360 = vector.extract_strided_slice %358 {offsets = [0, 0], sizes = [6, 64], strides = [1, 1]} : vector<6x192xf32> to vector<6x64xf32>
      %361 = arith.addf %359, %360 : vector<6x64xf32>
      %362 = arith.negf %361 : vector<6x64xf32>
      %363 = math.exp %362 : vector<6x64xf32>
      %cst_283 = arith.constant 1.000000e+00 : f32
      %364 = vector.broadcast %cst_283 : f32 to vector<6x64xf32>
      %365 = arith.addf %364, %363 : vector<6x64xf32>
      %366 = arith.divf %364, %365 : vector<6x64xf32>
      %367 = vector.extract_strided_slice %355 {offsets = [0, 64], sizes = [6, 64], strides = [1, 1]} : vector<6x192xf32> to vector<6x64xf32>
      %368 = vector.extract_strided_slice %358 {offsets = [0, 64], sizes = [6, 64], strides = [1, 1]} : vector<6x192xf32> to vector<6x64xf32>
      %369 = arith.addf %367, %368 : vector<6x64xf32>
      %370 = arith.negf %369 : vector<6x64xf32>
      %371 = math.exp %370 : vector<6x64xf32>
      %cst_284 = arith.constant 1.000000e+00 : f32
      %372 = vector.broadcast %cst_284 : f32 to vector<6x64xf32>
      %373 = arith.addf %372, %371 : vector<6x64xf32>
      %374 = arith.divf %372, %373 : vector<6x64xf32>
      %375 = vector.extract_strided_slice %355 {offsets = [0, 128], sizes = [6, 64], strides = [1, 1]} : vector<6x192xf32> to vector<6x64xf32>
      %376 = vector.extract_strided_slice %358 {offsets = [0, 128], sizes = [6, 64], strides = [1, 1]} : vector<6x192xf32> to vector<6x64xf32>
      %377 = arith.mulf %366, %376 : vector<6x64xf32>
      %378 = arith.addf %375, %377 : vector<6x64xf32>
      %379 = math.tanh %378 : vector<6x64xf32>
      %cst_285 = arith.constant 1.000000e+00 : f32
      %380 = vector.broadcast %cst_285 : f32 to vector<6x64xf32>
      %381 = arith.subf %380, %374 : vector<6x64xf32>
      %382 = arith.mulf %381, %379 : vector<6x64xf32>
      %383 = arith.mulf %374, %arg12 : vector<6x64xf32>
      %384 = arith.addf %382, %383 : vector<6x64xf32>
      %385 = vector.broadcast %arg10 : i32 to vector<6x1xi32>
      %386 = arith.cmpi slt, %385, %20 : vector<6x1xi32>
      %387 = vector.shape_cast %386 : vector<6x1xi1> to vector<6x1xi1>
      %388 = vector.broadcast %387 : vector<6x1xi1> to vector<6x64xi1>
      %389 = arith.select %388, %352, %arg11 : vector<6x64xi1>, vector<6x64xf32>
      %390 = vector.broadcast %320 : i32 to vector<6x1xi32>
      %391 = arith.cmpi slt, %390, %20 : vector<6x1xi32>
      %392 = vector.shape_cast %391 : vector<6x1xi1> to vector<6x1xi1>
      %393 = vector.broadcast %392 : vector<6x1xi1> to vector<6x64xi1>
      %394 = arith.select %393, %384, %arg12 : vector<6x64xi1>, vector<6x64xf32>
      %c1_i32_286 = arith.constant 1 : i32
      %395 = arith.addi %arg10, %c1_i32_286 : i32
      %396 = arith.index_cast %395 : i32 to index
      %c0_287 = arith.constant 0 : index
      %c0_288 = arith.constant 0 : index
      %397 = vector.load %arg8[%396, %c0_287, %c0_288] : memref<16x6x64xf32, #tpu.memory_space<vmem>>, vector<1x6x64xf32>
      %398 = vector.shape_cast %397 : vector<1x6x64xf32> to vector<6x64xf32>
      %399 = vector.shape_cast %389 : vector<6x64xf32> to vector<1x6x64xf32>
      tpu.vector_store %arg8[%396, %c0_287, %c0_288], %399 {strides = array<i32>} : memref<16x6x64xf32, #tpu.memory_space<vmem>>, vector<1x6x64xf32>,
      %c1_i32_289 = arith.constant 1 : i32
      %400 = arith.addi %320, %c1_i32_289 : i32
      %401 = arith.index_cast %400 : i32 to index
      %c0_290 = arith.constant 0 : index
      %c0_291 = arith.constant 0 : index
      %402 = vector.load %arg9[%401, %c0_290, %c0_291] : memref<16x6x64xf32, #tpu.memory_space<vmem>>, vector<1x6x64xf32>
      %403 = vector.shape_cast %402 : vector<1x6x64xf32> to vector<6x64xf32>
      %404 = vector.shape_cast %394 : vector<6x64xf32> to vector<1x6x64xf32>
      tpu.vector_store %arg9[%401, %c0_290, %c0_291], %404 {strides = array<i32>} : memref<16x6x64xf32, #tpu.memory_space<vmem>>, vector<1x6x64xf32>,
      scf.yield %389, %394 : vector<6x64xf32>, vector<6x64xf32>
    }
    %c15_i32_15 = arith.constant 15 : i32
    %c0_16 = arith.constant 0 : index
    %c0_17 = arith.constant 0 : index
    %c0_18 = arith.constant 0 : index
    %24 = vector.load %arg8[%c0_16, %c0_17, %c0_18] : memref<16x6x64xf32, #tpu.memory_space<vmem>>, vector<1x6x64xf32>
    %25 = vector.shape_cast %24 : vector<1x6x64xf32> to vector<6x64xf32>
    %c0_19 = arith.constant 0 : index
    %c0_20 = arith.constant 0 : index
    %c0_21 = arith.constant 0 : index
    %26 = vector.load %arg9[%c0_19, %c0_20, %c0_21] : memref<16x6x64xf32, #tpu.memory_space<vmem>>, vector<1x6x64xf32>
    %27 = vector.shape_cast %26 : vector<1x6x64xf32> to vector<6x64xf32>
    %c1 = arith.constant 1 : index
    %c0_22 = arith.constant 0 : index
    %c0_23 = arith.constant 0 : index
    %28 = vector.load %arg8[%c1, %c0_22, %c0_23] : memref<16x6x64xf32, #tpu.memory_space<vmem>>, vector<1x6x64xf32>
    %29 = vector.shape_cast %28 : vector<1x6x64xf32> to vector<6x64xf32>
    %30 = arith.maximumf %25, %29 : vector<6x64xf32>
    %c1_24 = arith.constant 1 : index
    %c0_25 = arith.constant 0 : index
    %c0_26 = arith.constant 0 : index
    %31 = vector.load %arg9[%c1_24, %c0_25, %c0_26] : memref<16x6x64xf32, #tpu.memory_space<vmem>>, vector<1x6x64xf32>
    %32 = vector.shape_cast %31 : vector<1x6x64xf32> to vector<6x64xf32>
    %33 = arith.maximumf %27, %32 : vector<6x64xf32>
    %34 = vector.extract_strided_slice %30 {offsets = [0, 0], sizes = [2, 64], strides = [1, 1]} : vector<6x64xf32> to vector<2x64xf32>
    %35 = vector.extract_strided_slice %33 {offsets = [0, 0], sizes = [2, 64], strides = [1, 1]} : vector<6x64xf32> to vector<2x64xf32>
    %36 = tpu.concatenate %34, %35 in 1 : vector<2x64xf32>, vector<2x64xf32> -> vector<2x128xf32>
    %c0_27 = arith.constant 0 : index
    %c0_28 = arith.constant 0 : index
    %37 = vector.load %arg7[%c0_27, %c0_28] : memref<2x3200xf32, #tpu.memory_space<vmem>>, vector<2x128xf32>
    tpu.vector_store %arg7[%c0_27, %c0_28], %36 {strides = array<i32>} : memref<2x3200xf32, #tpu.memory_space<vmem>>, vector<2x128xf32>,
    %c2 = arith.constant 2 : index
    %c0_29 = arith.constant 0 : index
    %c0_30 = arith.constant 0 : index
    %38 = vector.load %arg8[%c2, %c0_29, %c0_30] : memref<16x6x64xf32, #tpu.memory_space<vmem>>, vector<1x6x64xf32>
    %39 = vector.shape_cast %38 : vector<1x6x64xf32> to vector<6x64xf32>
    %c2_31 = arith.constant 2 : index
    %c0_32 = arith.constant 0 : index
    %c0_33 = arith.constant 0 : index
    %40 = vector.load %arg9[%c2_31, %c0_32, %c0_33] : memref<16x6x64xf32, #tpu.memory_space<vmem>>, vector<1x6x64xf32>
    %41 = vector.shape_cast %40 : vector<1x6x64xf32> to vector<6x64xf32>
    %c3 = arith.constant 3 : index
    %c0_34 = arith.constant 0 : index
    %c0_35 = arith.constant 0 : index
    %42 = vector.load %arg8[%c3, %c0_34, %c0_35] : memref<16x6x64xf32, #tpu.memory_space<vmem>>, vector<1x6x64xf32>
    %43 = vector.shape_cast %42 : vector<1x6x64xf32> to vector<6x64xf32>
    %44 = arith.maximumf %39, %43 : vector<6x64xf32>
    %c3_36 = arith.constant 3 : index
    %c0_37 = arith.constant 0 : index
    %c0_38 = arith.constant 0 : index
    %45 = vector.load %arg9[%c3_36, %c0_37, %c0_38] : memref<16x6x64xf32, #tpu.memory_space<vmem>>, vector<1x6x64xf32>
    %46 = vector.shape_cast %45 : vector<1x6x64xf32> to vector<6x64xf32>
    %47 = arith.maximumf %41, %46 : vector<6x64xf32>
    %48 = vector.extract_strided_slice %44 {offsets = [0, 0], sizes = [2, 64], strides = [1, 1]} : vector<6x64xf32> to vector<2x64xf32>
    %49 = vector.extract_strided_slice %47 {offsets = [0, 0], sizes = [2, 64], strides = [1, 1]} : vector<6x64xf32> to vector<2x64xf32>
    %50 = tpu.concatenate %48, %49 in 1 : vector<2x64xf32>, vector<2x64xf32> -> vector<2x128xf32>
    %c0_39 = arith.constant 0 : index
    %c128 = arith.constant 128 : index
    %51 = vector.load %arg7[%c0_39, %c128] : memref<2x3200xf32, #tpu.memory_space<vmem>>, vector<2x128xf32>
    tpu.vector_store %arg7[%c0_39, %c128], %50 {strides = array<i32>} : memref<2x3200xf32, #tpu.memory_space<vmem>>, vector<2x128xf32>,
    %c4 = arith.constant 4 : index
    %c0_40 = arith.constant 0 : index
    %c0_41 = arith.constant 0 : index
    %52 = vector.load %arg8[%c4, %c0_40, %c0_41] : memref<16x6x64xf32, #tpu.memory_space<vmem>>, vector<1x6x64xf32>
    %53 = vector.shape_cast %52 : vector<1x6x64xf32> to vector<6x64xf32>
    %c4_42 = arith.constant 4 : index
    %c0_43 = arith.constant 0 : index
    %c0_44 = arith.constant 0 : index
    %54 = vector.load %arg9[%c4_42, %c0_43, %c0_44] : memref<16x6x64xf32, #tpu.memory_space<vmem>>, vector<1x6x64xf32>
    %55 = vector.shape_cast %54 : vector<1x6x64xf32> to vector<6x64xf32>
    %c5 = arith.constant 5 : index
    %c0_45 = arith.constant 0 : index
    %c0_46 = arith.constant 0 : index
    %56 = vector.load %arg8[%c5, %c0_45, %c0_46] : memref<16x6x64xf32, #tpu.memory_space<vmem>>, vector<1x6x64xf32>
    %57 = vector.shape_cast %56 : vector<1x6x64xf32> to vector<6x64xf32>
    %58 = arith.maximumf %53, %57 : vector<6x64xf32>
    %c5_47 = arith.constant 5 : index
    %c0_48 = arith.constant 0 : index
    %c0_49 = arith.constant 0 : index
    %59 = vector.load %arg9[%c5_47, %c0_48, %c0_49] : memref<16x6x64xf32, #tpu.memory_space<vmem>>, vector<1x6x64xf32>
    %60 = vector.shape_cast %59 : vector<1x6x64xf32> to vector<6x64xf32>
    %61 = arith.maximumf %55, %60 : vector<6x64xf32>
    %62 = vector.extract_strided_slice %58 {offsets = [0, 0], sizes = [2, 64], strides = [1, 1]} : vector<6x64xf32> to vector<2x64xf32>
    %63 = vector.extract_strided_slice %61 {offsets = [0, 0], sizes = [2, 64], strides = [1, 1]} : vector<6x64xf32> to vector<2x64xf32>
    %64 = tpu.concatenate %62, %63 in 1 : vector<2x64xf32>, vector<2x64xf32> -> vector<2x128xf32>
    %c0_50 = arith.constant 0 : index
    %c256 = arith.constant 256 : index
    %65 = vector.load %arg7[%c0_50, %c256] : memref<2x3200xf32, #tpu.memory_space<vmem>>, vector<2x128xf32>
    tpu.vector_store %arg7[%c0_50, %c256], %64 {strides = array<i32>} : memref<2x3200xf32, #tpu.memory_space<vmem>>, vector<2x128xf32>,
    %c6 = arith.constant 6 : index
    %c0_51 = arith.constant 0 : index
    %c0_52 = arith.constant 0 : index
    %66 = vector.load %arg8[%c6, %c0_51, %c0_52] : memref<16x6x64xf32, #tpu.memory_space<vmem>>, vector<1x6x64xf32>
    %67 = vector.shape_cast %66 : vector<1x6x64xf32> to vector<6x64xf32>
    %c6_53 = arith.constant 6 : index
    %c0_54 = arith.constant 0 : index
    %c0_55 = arith.constant 0 : index
    %68 = vector.load %arg9[%c6_53, %c0_54, %c0_55] : memref<16x6x64xf32, #tpu.memory_space<vmem>>, vector<1x6x64xf32>
    %69 = vector.shape_cast %68 : vector<1x6x64xf32> to vector<6x64xf32>
    %c7 = arith.constant 7 : index
    %c0_56 = arith.constant 0 : index
    %c0_57 = arith.constant 0 : index
    %70 = vector.load %arg8[%c7, %c0_56, %c0_57] : memref<16x6x64xf32, #tpu.memory_space<vmem>>, vector<1x6x64xf32>
    %71 = vector.shape_cast %70 : vector<1x6x64xf32> to vector<6x64xf32>
    %72 = arith.maximumf %67, %71 : vector<6x64xf32>
    %c7_58 = arith.constant 7 : index
    %c0_59 = arith.constant 0 : index
    %c0_60 = arith.constant 0 : index
    %73 = vector.load %arg9[%c7_58, %c0_59, %c0_60] : memref<16x6x64xf32, #tpu.memory_space<vmem>>, vector<1x6x64xf32>
    %74 = vector.shape_cast %73 : vector<1x6x64xf32> to vector<6x64xf32>
    %75 = arith.maximumf %69, %74 : vector<6x64xf32>
    %76 = vector.extract_strided_slice %72 {offsets = [0, 0], sizes = [2, 64], strides = [1, 1]} : vector<6x64xf32> to vector<2x64xf32>
    %77 = vector.extract_strided_slice %75 {offsets = [0, 0], sizes = [2, 64], strides = [1, 1]} : vector<6x64xf32> to vector<2x64xf32>
    %78 = tpu.concatenate %76, %77 in 1 : vector<2x64xf32>, vector<2x64xf32> -> vector<2x128xf32>
    %c0_61 = arith.constant 0 : index
    %c384 = arith.constant 384 : index
    %79 = vector.load %arg7[%c0_61, %c384] : memref<2x3200xf32, #tpu.memory_space<vmem>>, vector<2x128xf32>
    tpu.vector_store %arg7[%c0_61, %c384], %78 {strides = array<i32>} : memref<2x3200xf32, #tpu.memory_space<vmem>>, vector<2x128xf32>,
    %c8 = arith.constant 8 : index
    %c0_62 = arith.constant 0 : index
    %c0_63 = arith.constant 0 : index
    %80 = vector.load %arg8[%c8, %c0_62, %c0_63] : memref<16x6x64xf32, #tpu.memory_space<vmem>>, vector<1x6x64xf32>
    %81 = vector.shape_cast %80 : vector<1x6x64xf32> to vector<6x64xf32>
    %c8_64 = arith.constant 8 : index
    %c0_65 = arith.constant 0 : index
    %c0_66 = arith.constant 0 : index
    %82 = vector.load %arg9[%c8_64, %c0_65, %c0_66] : memref<16x6x64xf32, #tpu.memory_space<vmem>>, vector<1x6x64xf32>
    %83 = vector.shape_cast %82 : vector<1x6x64xf32> to vector<6x64xf32>
    %c9 = arith.constant 9 : index
    %c0_67 = arith.constant 0 : index
    %c0_68 = arith.constant 0 : index
    %84 = vector.load %arg8[%c9, %c0_67, %c0_68] : memref<16x6x64xf32, #tpu.memory_space<vmem>>, vector<1x6x64xf32>
    %85 = vector.shape_cast %84 : vector<1x6x64xf32> to vector<6x64xf32>
    %86 = arith.maximumf %81, %85 : vector<6x64xf32>
    %c9_69 = arith.constant 9 : index
    %c0_70 = arith.constant 0 : index
    %c0_71 = arith.constant 0 : index
    %87 = vector.load %arg9[%c9_69, %c0_70, %c0_71] : memref<16x6x64xf32, #tpu.memory_space<vmem>>, vector<1x6x64xf32>
    %88 = vector.shape_cast %87 : vector<1x6x64xf32> to vector<6x64xf32>
    %89 = arith.maximumf %83, %88 : vector<6x64xf32>
    %90 = vector.extract_strided_slice %86 {offsets = [0, 0], sizes = [2, 64], strides = [1, 1]} : vector<6x64xf32> to vector<2x64xf32>
    %91 = vector.extract_strided_slice %89 {offsets = [0, 0], sizes = [2, 64], strides = [1, 1]} : vector<6x64xf32> to vector<2x64xf32>
    %92 = tpu.concatenate %90, %91 in 1 : vector<2x64xf32>, vector<2x64xf32> -> vector<2x128xf32>
    %c0_72 = arith.constant 0 : index
    %c512 = arith.constant 512 : index
    %93 = vector.load %arg7[%c0_72, %c512] : memref<2x3200xf32, #tpu.memory_space<vmem>>, vector<2x128xf32>
    tpu.vector_store %arg7[%c0_72, %c512], %92 {strides = array<i32>} : memref<2x3200xf32, #tpu.memory_space<vmem>>, vector<2x128xf32>,
    %c10 = arith.constant 10 : index
    %c0_73 = arith.constant 0 : index
    %c0_74 = arith.constant 0 : index
    %94 = vector.load %arg8[%c10, %c0_73, %c0_74] : memref<16x6x64xf32, #tpu.memory_space<vmem>>, vector<1x6x64xf32>
    %95 = vector.shape_cast %94 : vector<1x6x64xf32> to vector<6x64xf32>
    %c10_75 = arith.constant 10 : index
    %c0_76 = arith.constant 0 : index
    %c0_77 = arith.constant 0 : index
    %96 = vector.load %arg9[%c10_75, %c0_76, %c0_77] : memref<16x6x64xf32, #tpu.memory_space<vmem>>, vector<1x6x64xf32>
    %97 = vector.shape_cast %96 : vector<1x6x64xf32> to vector<6x64xf32>
    %c11 = arith.constant 11 : index
    %c0_78 = arith.constant 0 : index
    %c0_79 = arith.constant 0 : index
    %98 = vector.load %arg8[%c11, %c0_78, %c0_79] : memref<16x6x64xf32, #tpu.memory_space<vmem>>, vector<1x6x64xf32>
    %99 = vector.shape_cast %98 : vector<1x6x64xf32> to vector<6x64xf32>
    %100 = arith.maximumf %95, %99 : vector<6x64xf32>
    %c11_80 = arith.constant 11 : index
    %c0_81 = arith.constant 0 : index
    %c0_82 = arith.constant 0 : index
    %101 = vector.load %arg9[%c11_80, %c0_81, %c0_82] : memref<16x6x64xf32, #tpu.memory_space<vmem>>, vector<1x6x64xf32>
    %102 = vector.shape_cast %101 : vector<1x6x64xf32> to vector<6x64xf32>
    %103 = arith.maximumf %97, %102 : vector<6x64xf32>
    %104 = vector.extract_strided_slice %100 {offsets = [0, 0], sizes = [2, 64], strides = [1, 1]} : vector<6x64xf32> to vector<2x64xf32>
    %105 = vector.extract_strided_slice %103 {offsets = [0, 0], sizes = [2, 64], strides = [1, 1]} : vector<6x64xf32> to vector<2x64xf32>
    %106 = tpu.concatenate %104, %105 in 1 : vector<2x64xf32>, vector<2x64xf32> -> vector<2x128xf32>
    %c0_83 = arith.constant 0 : index
    %c640 = arith.constant 640 : index
    %107 = vector.load %arg7[%c0_83, %c640] : memref<2x3200xf32, #tpu.memory_space<vmem>>, vector<2x128xf32>
    tpu.vector_store %arg7[%c0_83, %c640], %106 {strides = array<i32>} : memref<2x3200xf32, #tpu.memory_space<vmem>>, vector<2x128xf32>,
    %c12 = arith.constant 12 : index
    %c0_84 = arith.constant 0 : index
    %c0_85 = arith.constant 0 : index
    %108 = vector.load %arg8[%c12, %c0_84, %c0_85] : memref<16x6x64xf32, #tpu.memory_space<vmem>>, vector<1x6x64xf32>
    %109 = vector.shape_cast %108 : vector<1x6x64xf32> to vector<6x64xf32>
    %c12_86 = arith.constant 12 : index
    %c0_87 = arith.constant 0 : index
    %c0_88 = arith.constant 0 : index
    %110 = vector.load %arg9[%c12_86, %c0_87, %c0_88] : memref<16x6x64xf32, #tpu.memory_space<vmem>>, vector<1x6x64xf32>
    %111 = vector.shape_cast %110 : vector<1x6x64xf32> to vector<6x64xf32>
    %c13 = arith.constant 13 : index
    %c0_89 = arith.constant 0 : index
    %c0_90 = arith.constant 0 : index
    %112 = vector.load %arg8[%c13, %c0_89, %c0_90] : memref<16x6x64xf32, #tpu.memory_space<vmem>>, vector<1x6x64xf32>
    %113 = vector.shape_cast %112 : vector<1x6x64xf32> to vector<6x64xf32>
    %114 = arith.maximumf %109, %113 : vector<6x64xf32>
    %c13_91 = arith.constant 13 : index
    %c0_92 = arith.constant 0 : index
    %c0_93 = arith.constant 0 : index
    %115 = vector.load %arg9[%c13_91, %c0_92, %c0_93] : memref<16x6x64xf32, #tpu.memory_space<vmem>>, vector<1x6x64xf32>
    %116 = vector.shape_cast %115 : vector<1x6x64xf32> to vector<6x64xf32>
    %117 = arith.maximumf %111, %116 : vector<6x64xf32>
    %118 = vector.extract_strided_slice %114 {offsets = [0, 0], sizes = [2, 64], strides = [1, 1]} : vector<6x64xf32> to vector<2x64xf32>
    %119 = vector.extract_strided_slice %117 {offsets = [0, 0], sizes = [2, 64], strides = [1, 1]} : vector<6x64xf32> to vector<2x64xf32>
    %120 = tpu.concatenate %118, %119 in 1 : vector<2x64xf32>, vector<2x64xf32> -> vector<2x128xf32>
    %c0_94 = arith.constant 0 : index
    %c768 = arith.constant 768 : index
    %121 = vector.load %arg7[%c0_94, %c768] : memref<2x3200xf32, #tpu.memory_space<vmem>>, vector<2x128xf32>
    tpu.vector_store %arg7[%c0_94, %c768], %120 {strides = array<i32>} : memref<2x3200xf32, #tpu.memory_space<vmem>>, vector<2x128xf32>,
    %c14 = arith.constant 14 : index
    %c0_95 = arith.constant 0 : index
    %c0_96 = arith.constant 0 : index
    %122 = vector.load %arg8[%c14, %c0_95, %c0_96] : memref<16x6x64xf32, #tpu.memory_space<vmem>>, vector<1x6x64xf32>
    %123 = vector.shape_cast %122 : vector<1x6x64xf32> to vector<6x64xf32>
    %c14_97 = arith.constant 14 : index
    %c0_98 = arith.constant 0 : index
    %c0_99 = arith.constant 0 : index
    %124 = vector.load %arg9[%c14_97, %c0_98, %c0_99] : memref<16x6x64xf32, #tpu.memory_space<vmem>>, vector<1x6x64xf32>
    %125 = vector.shape_cast %124 : vector<1x6x64xf32> to vector<6x64xf32>
    %c15 = arith.constant 15 : index
    %c0_100 = arith.constant 0 : index
    %c0_101 = arith.constant 0 : index
    %126 = vector.load %arg8[%c15, %c0_100, %c0_101] : memref<16x6x64xf32, #tpu.memory_space<vmem>>, vector<1x6x64xf32>
    %127 = vector.shape_cast %126 : vector<1x6x64xf32> to vector<6x64xf32>
    %128 = arith.maximumf %123, %127 : vector<6x64xf32>
    %c15_102 = arith.constant 15 : index
    %c0_103 = arith.constant 0 : index
    %c0_104 = arith.constant 0 : index
    %129 = vector.load %arg9[%c15_102, %c0_103, %c0_104] : memref<16x6x64xf32, #tpu.memory_space<vmem>>, vector<1x6x64xf32>
    %130 = vector.shape_cast %129 : vector<1x6x64xf32> to vector<6x64xf32>
    %131 = arith.maximumf %125, %130 : vector<6x64xf32>
    %132 = vector.extract_strided_slice %128 {offsets = [0, 0], sizes = [2, 64], strides = [1, 1]} : vector<6x64xf32> to vector<2x64xf32>
    %133 = vector.extract_strided_slice %131 {offsets = [0, 0], sizes = [2, 64], strides = [1, 1]} : vector<6x64xf32> to vector<2x64xf32>
    %134 = tpu.concatenate %132, %133 in 1 : vector<2x64xf32>, vector<2x64xf32> -> vector<2x128xf32>
    %c0_105 = arith.constant 0 : index
    %c896 = arith.constant 896 : index
    %135 = vector.load %arg7[%c0_105, %c896] : memref<2x3200xf32, #tpu.memory_space<vmem>>, vector<2x128xf32>
    tpu.vector_store %arg7[%c0_105, %c896], %134 {strides = array<i32>} : memref<2x3200xf32, #tpu.memory_space<vmem>>, vector<2x128xf32>,
    %c1_106 = arith.constant 1 : index
    %c0_107 = arith.constant 0 : index
    %c0_108 = arith.constant 0 : index
    %136 = vector.load %arg8[%c1_106, %c0_107, %c0_108] : memref<16x6x64xf32, #tpu.memory_space<vmem>>, vector<1x6x64xf32>
    %137 = vector.shape_cast %136 : vector<1x6x64xf32> to vector<6x64xf32>
    %c1_109 = arith.constant 1 : index
    %c0_110 = arith.constant 0 : index
    %c0_111 = arith.constant 0 : index
    %138 = vector.load %arg9[%c1_109, %c0_110, %c0_111] : memref<16x6x64xf32, #tpu.memory_space<vmem>>, vector<1x6x64xf32>
    %139 = vector.shape_cast %138 : vector<1x6x64xf32> to vector<6x64xf32>
    %c2_112 = arith.constant 2 : index
    %c0_113 = arith.constant 0 : index
    %c0_114 = arith.constant 0 : index
    %140 = vector.load %arg8[%c2_112, %c0_113, %c0_114] : memref<16x6x64xf32, #tpu.memory_space<vmem>>, vector<1x6x64xf32>
    %141 = vector.shape_cast %140 : vector<1x6x64xf32> to vector<6x64xf32>
    %142 = arith.maximumf %137, %141 : vector<6x64xf32>
    %c2_115 = arith.constant 2 : index
    %c0_116 = arith.constant 0 : index
    %c0_117 = arith.constant 0 : index
    %143 = vector.load %arg9[%c2_115, %c0_116, %c0_117] : memref<16x6x64xf32, #tpu.memory_space<vmem>>, vector<1x6x64xf32>
    %144 = vector.shape_cast %143 : vector<1x6x64xf32> to vector<6x64xf32>
    %145 = arith.maximumf %139, %144 : vector<6x64xf32>
    %c3_118 = arith.constant 3 : index
    %c0_119 = arith.constant 0 : index
    %c0_120 = arith.constant 0 : index
    %146 = vector.load %arg8[%c3_118, %c0_119, %c0_120] : memref<16x6x64xf32, #tpu.memory_space<vmem>>, vector<1x6x64xf32>
    %147 = vector.shape_cast %146 : vector<1x6x64xf32> to vector<6x64xf32>
    %148 = arith.maximumf %142, %147 : vector<6x64xf32>
    %c3_121 = arith.constant 3 : index
    %c0_122 = arith.constant 0 : index
    %c0_123 = arith.constant 0 : index
    %149 = vector.load %arg9[%c3_121, %c0_122, %c0_123] : memref<16x6x64xf32, #tpu.memory_space<vmem>>, vector<1x6x64xf32>
    %150 = vector.shape_cast %149 : vector<1x6x64xf32> to vector<6x64xf32>
    %151 = arith.maximumf %145, %150 : vector<6x64xf32>
    %152 = vector.extract_strided_slice %148 {offsets = [2, 0], sizes = [2, 64], strides = [1, 1]} : vector<6x64xf32> to vector<2x64xf32>
    %153 = vector.extract_strided_slice %151 {offsets = [2, 0], sizes = [2, 64], strides = [1, 1]} : vector<6x64xf32> to vector<2x64xf32>
    %154 = tpu.concatenate %152, %153 in 1 : vector<2x64xf32>, vector<2x64xf32> -> vector<2x128xf32>
    %c0_124 = arith.constant 0 : index
    %c1024 = arith.constant 1024 : index
    %155 = vector.load %arg7[%c0_124, %c1024] : memref<2x3200xf32, #tpu.memory_space<vmem>>, vector<2x128xf32>
    tpu.vector_store %arg7[%c0_124, %c1024], %154 {strides = array<i32>} : memref<2x3200xf32, #tpu.memory_space<vmem>>, vector<2x128xf32>,
    %c4_125 = arith.constant 4 : index
    %c0_126 = arith.constant 0 : index
    %c0_127 = arith.constant 0 : index
    %156 = vector.load %arg8[%c4_125, %c0_126, %c0_127] : memref<16x6x64xf32, #tpu.memory_space<vmem>>, vector<1x6x64xf32>
    %157 = vector.shape_cast %156 : vector<1x6x64xf32> to vector<6x64xf32>
    %c4_128 = arith.constant 4 : index
    %c0_129 = arith.constant 0 : index
    %c0_130 = arith.constant 0 : index
    %158 = vector.load %arg9[%c4_128, %c0_129, %c0_130] : memref<16x6x64xf32, #tpu.memory_space<vmem>>, vector<1x6x64xf32>
    %159 = vector.shape_cast %158 : vector<1x6x64xf32> to vector<6x64xf32>
    %c5_131 = arith.constant 5 : index
    %c0_132 = arith.constant 0 : index
    %c0_133 = arith.constant 0 : index
    %160 = vector.load %arg8[%c5_131, %c0_132, %c0_133] : memref<16x6x64xf32, #tpu.memory_space<vmem>>, vector<1x6x64xf32>
    %161 = vector.shape_cast %160 : vector<1x6x64xf32> to vector<6x64xf32>
    %162 = arith.maximumf %157, %161 : vector<6x64xf32>
    %c5_134 = arith.constant 5 : index
    %c0_135 = arith.constant 0 : index
    %c0_136 = arith.constant 0 : index
    %163 = vector.load %arg9[%c5_134, %c0_135, %c0_136] : memref<16x6x64xf32, #tpu.memory_space<vmem>>, vector<1x6x64xf32>
    %164 = vector.shape_cast %163 : vector<1x6x64xf32> to vector<6x64xf32>
    %165 = arith.maximumf %159, %164 : vector<6x64xf32>
    %c6_137 = arith.constant 6 : index
    %c0_138 = arith.constant 0 : index
    %c0_139 = arith.constant 0 : index
    %166 = vector.load %arg8[%c6_137, %c0_138, %c0_139] : memref<16x6x64xf32, #tpu.memory_space<vmem>>, vector<1x6x64xf32>
    %167 = vector.shape_cast %166 : vector<1x6x64xf32> to vector<6x64xf32>
    %168 = arith.maximumf %162, %167 : vector<6x64xf32>
    %c6_140 = arith.constant 6 : index
    %c0_141 = arith.constant 0 : index
    %c0_142 = arith.constant 0 : index
    %169 = vector.load %arg9[%c6_140, %c0_141, %c0_142] : memref<16x6x64xf32, #tpu.memory_space<vmem>>, vector<1x6x64xf32>
    %170 = vector.shape_cast %169 : vector<1x6x64xf32> to vector<6x64xf32>
    %171 = arith.maximumf %165, %170 : vector<6x64xf32>
    %172 = vector.extract_strided_slice %168 {offsets = [2, 0], sizes = [2, 64], strides = [1, 1]} : vector<6x64xf32> to vector<2x64xf32>
    %173 = vector.extract_strided_slice %171 {offsets = [2, 0], sizes = [2, 64], strides = [1, 1]} : vector<6x64xf32> to vector<2x64xf32>
    %174 = tpu.concatenate %172, %173 in 1 : vector<2x64xf32>, vector<2x64xf32> -> vector<2x128xf32>
    %c0_143 = arith.constant 0 : index
    %c1152 = arith.constant 1152 : index
    %175 = vector.load %arg7[%c0_143, %c1152] : memref<2x3200xf32, #tpu.memory_space<vmem>>, vector<2x128xf32>
    tpu.vector_store %arg7[%c0_143, %c1152], %174 {strides = array<i32>} : memref<2x3200xf32, #tpu.memory_space<vmem>>, vector<2x128xf32>,
    %c7_144 = arith.constant 7 : index
    %c0_145 = arith.constant 0 : index
    %c0_146 = arith.constant 0 : index
    %176 = vector.load %arg8[%c7_144, %c0_145, %c0_146] : memref<16x6x64xf32, #tpu.memory_space<vmem>>, vector<1x6x64xf32>
    %177 = vector.shape_cast %176 : vector<1x6x64xf32> to vector<6x64xf32>
    %c7_147 = arith.constant 7 : index
    %c0_148 = arith.constant 0 : index
    %c0_149 = arith.constant 0 : index
    %178 = vector.load %arg9[%c7_147, %c0_148, %c0_149] : memref<16x6x64xf32, #tpu.memory_space<vmem>>, vector<1x6x64xf32>
    %179 = vector.shape_cast %178 : vector<1x6x64xf32> to vector<6x64xf32>
    %c8_150 = arith.constant 8 : index
    %c0_151 = arith.constant 0 : index
    %c0_152 = arith.constant 0 : index
    %180 = vector.load %arg8[%c8_150, %c0_151, %c0_152] : memref<16x6x64xf32, #tpu.memory_space<vmem>>, vector<1x6x64xf32>
    %181 = vector.shape_cast %180 : vector<1x6x64xf32> to vector<6x64xf32>
    %182 = arith.maximumf %177, %181 : vector<6x64xf32>
    %c8_153 = arith.constant 8 : index
    %c0_154 = arith.constant 0 : index
    %c0_155 = arith.constant 0 : index
    %183 = vector.load %arg9[%c8_153, %c0_154, %c0_155] : memref<16x6x64xf32, #tpu.memory_space<vmem>>, vector<1x6x64xf32>
    %184 = vector.shape_cast %183 : vector<1x6x64xf32> to vector<6x64xf32>
    %185 = arith.maximumf %179, %184 : vector<6x64xf32>
    %c9_156 = arith.constant 9 : index
    %c0_157 = arith.constant 0 : index
    %c0_158 = arith.constant 0 : index
    %186 = vector.load %arg8[%c9_156, %c0_157, %c0_158] : memref<16x6x64xf32, #tpu.memory_space<vmem>>, vector<1x6x64xf32>
    %187 = vector.shape_cast %186 : vector<1x6x64xf32> to vector<6x64xf32>
    %188 = arith.maximumf %182, %187 : vector<6x64xf32>
    %c9_159 = arith.constant 9 : index
    %c0_160 = arith.constant 0 : index
    %c0_161 = arith.constant 0 : index
    %189 = vector.load %arg9[%c9_159, %c0_160, %c0_161] : memref<16x6x64xf32, #tpu.memory_space<vmem>>, vector<1x6x64xf32>
    %190 = vector.shape_cast %189 : vector<1x6x64xf32> to vector<6x64xf32>
    %191 = arith.maximumf %185, %190 : vector<6x64xf32>
    %192 = vector.extract_strided_slice %188 {offsets = [2, 0], sizes = [2, 64], strides = [1, 1]} : vector<6x64xf32> to vector<2x64xf32>
    %193 = vector.extract_strided_slice %191 {offsets = [2, 0], sizes = [2, 64], strides = [1, 1]} : vector<6x64xf32> to vector<2x64xf32>
    %194 = tpu.concatenate %192, %193 in 1 : vector<2x64xf32>, vector<2x64xf32> -> vector<2x128xf32>
    %c0_162 = arith.constant 0 : index
    %c1280 = arith.constant 1280 : index
    %195 = vector.load %arg7[%c0_162, %c1280] : memref<2x3200xf32, #tpu.memory_space<vmem>>, vector<2x128xf32>
    tpu.vector_store %arg7[%c0_162, %c1280], %194 {strides = array<i32>} : memref<2x3200xf32, #tpu.memory_space<vmem>>, vector<2x128xf32>,
    %c10_163 = arith.constant 10 : index
    %c0_164 = arith.constant 0 : index
    %c0_165 = arith.constant 0 : index
    %196 = vector.load %arg8[%c10_163, %c0_164, %c0_165] : memref<16x6x64xf32, #tpu.memory_space<vmem>>, vector<1x6x64xf32>
    %197 = vector.shape_cast %196 : vector<1x6x64xf32> to vector<6x64xf32>
    %c10_166 = arith.constant 10 : index
    %c0_167 = arith.constant 0 : index
    %c0_168 = arith.constant 0 : index
    %198 = vector.load %arg9[%c10_166, %c0_167, %c0_168] : memref<16x6x64xf32, #tpu.memory_space<vmem>>, vector<1x6x64xf32>
    %199 = vector.shape_cast %198 : vector<1x6x64xf32> to vector<6x64xf32>
    %c11_169 = arith.constant 11 : index
    %c0_170 = arith.constant 0 : index
    %c0_171 = arith.constant 0 : index
    %200 = vector.load %arg8[%c11_169, %c0_170, %c0_171] : memref<16x6x64xf32, #tpu.memory_space<vmem>>, vector<1x6x64xf32>
    %201 = vector.shape_cast %200 : vector<1x6x64xf32> to vector<6x64xf32>
    %202 = arith.maximumf %197, %201 : vector<6x64xf32>
    %c11_172 = arith.constant 11 : index
    %c0_173 = arith.constant 0 : index
    %c0_174 = arith.constant 0 : index
    %203 = vector.load %arg9[%c11_172, %c0_173, %c0_174] : memref<16x6x64xf32, #tpu.memory_space<vmem>>, vector<1x6x64xf32>
    %204 = vector.shape_cast %203 : vector<1x6x64xf32> to vector<6x64xf32>
    %205 = arith.maximumf %199, %204 : vector<6x64xf32>
    %c12_175 = arith.constant 12 : index
    %c0_176 = arith.constant 0 : index
    %c0_177 = arith.constant 0 : index
    %206 = vector.load %arg8[%c12_175, %c0_176, %c0_177] : memref<16x6x64xf32, #tpu.memory_space<vmem>>, vector<1x6x64xf32>
    %207 = vector.shape_cast %206 : vector<1x6x64xf32> to vector<6x64xf32>
    %208 = arith.maximumf %202, %207 : vector<6x64xf32>
    %c12_178 = arith.constant 12 : index
    %c0_179 = arith.constant 0 : index
    %c0_180 = arith.constant 0 : index
    %209 = vector.load %arg9[%c12_178, %c0_179, %c0_180] : memref<16x6x64xf32, #tpu.memory_space<vmem>>, vector<1x6x64xf32>
    %210 = vector.shape_cast %209 : vector<1x6x64xf32> to vector<6x64xf32>
    %211 = arith.maximumf %205, %210 : vector<6x64xf32>
    %212 = vector.extract_strided_slice %208 {offsets = [2, 0], sizes = [2, 64], strides = [1, 1]} : vector<6x64xf32> to vector<2x64xf32>
    %213 = vector.extract_strided_slice %211 {offsets = [2, 0], sizes = [2, 64], strides = [1, 1]} : vector<6x64xf32> to vector<2x64xf32>
    %214 = tpu.concatenate %212, %213 in 1 : vector<2x64xf32>, vector<2x64xf32> -> vector<2x128xf32>
    %c0_181 = arith.constant 0 : index
    %c1408 = arith.constant 1408 : index
    %215 = vector.load %arg7[%c0_181, %c1408] : memref<2x3200xf32, #tpu.memory_space<vmem>>, vector<2x128xf32>
    tpu.vector_store %arg7[%c0_181, %c1408], %214 {strides = array<i32>} : memref<2x3200xf32, #tpu.memory_space<vmem>>, vector<2x128xf32>,
    %c1_182 = arith.constant 1 : index
    %c0_183 = arith.constant 0 : index
    %c0_184 = arith.constant 0 : index
    %216 = vector.load %arg8[%c1_182, %c0_183, %c0_184] : memref<16x6x64xf32, #tpu.memory_space<vmem>>, vector<1x6x64xf32>
    %217 = vector.shape_cast %216 : vector<1x6x64xf32> to vector<6x64xf32>
    %c1_185 = arith.constant 1 : index
    %c0_186 = arith.constant 0 : index
    %c0_187 = arith.constant 0 : index
    %218 = vector.load %arg9[%c1_185, %c0_186, %c0_187] : memref<16x6x64xf32, #tpu.memory_space<vmem>>, vector<1x6x64xf32>
    %219 = vector.shape_cast %218 : vector<1x6x64xf32> to vector<6x64xf32>
    %220 = vector.extract_strided_slice %217 {offsets = [4, 0], sizes = [2, 64], strides = [1, 1]} : vector<6x64xf32> to vector<2x64xf32>
    %221 = vector.extract_strided_slice %219 {offsets = [4, 0], sizes = [2, 64], strides = [1, 1]} : vector<6x64xf32> to vector<2x64xf32>
    %222 = tpu.concatenate %220, %221 in 1 : vector<2x64xf32>, vector<2x64xf32> -> vector<2x128xf32>
    %c0_188 = arith.constant 0 : index
    %c1536 = arith.constant 1536 : index
    %223 = vector.load %arg7[%c0_188, %c1536] : memref<2x3200xf32, #tpu.memory_space<vmem>>, vector<2x128xf32>
    tpu.vector_store %arg7[%c0_188, %c1536], %222 {strides = array<i32>} : memref<2x3200xf32, #tpu.memory_space<vmem>>, vector<2x128xf32>,
    %c2_189 = arith.constant 2 : index
    %c0_190 = arith.constant 0 : index
    %c0_191 = arith.constant 0 : index
    %224 = vector.load %arg8[%c2_189, %c0_190, %c0_191] : memref<16x6x64xf32, #tpu.memory_space<vmem>>, vector<1x6x64xf32>
    %225 = vector.shape_cast %224 : vector<1x6x64xf32> to vector<6x64xf32>
    %c2_192 = arith.constant 2 : index
    %c0_193 = arith.constant 0 : index
    %c0_194 = arith.constant 0 : index
    %226 = vector.load %arg9[%c2_192, %c0_193, %c0_194] : memref<16x6x64xf32, #tpu.memory_space<vmem>>, vector<1x6x64xf32>
    %227 = vector.shape_cast %226 : vector<1x6x64xf32> to vector<6x64xf32>
    %228 = vector.extract_strided_slice %225 {offsets = [4, 0], sizes = [2, 64], strides = [1, 1]} : vector<6x64xf32> to vector<2x64xf32>
    %229 = vector.extract_strided_slice %227 {offsets = [4, 0], sizes = [2, 64], strides = [1, 1]} : vector<6x64xf32> to vector<2x64xf32>
    %230 = tpu.concatenate %228, %229 in 1 : vector<2x64xf32>, vector<2x64xf32> -> vector<2x128xf32>
    %c0_195 = arith.constant 0 : index
    %c1664 = arith.constant 1664 : index
    %231 = vector.load %arg7[%c0_195, %c1664] : memref<2x3200xf32, #tpu.memory_space<vmem>>, vector<2x128xf32>
    tpu.vector_store %arg7[%c0_195, %c1664], %230 {strides = array<i32>} : memref<2x3200xf32, #tpu.memory_space<vmem>>, vector<2x128xf32>,
    %c3_196 = arith.constant 3 : index
    %c0_197 = arith.constant 0 : index
    %c0_198 = arith.constant 0 : index
    %232 = vector.load %arg8[%c3_196, %c0_197, %c0_198] : memref<16x6x64xf32, #tpu.memory_space<vmem>>, vector<1x6x64xf32>
    %233 = vector.shape_cast %232 : vector<1x6x64xf32> to vector<6x64xf32>
    %c3_199 = arith.constant 3 : index
    %c0_200 = arith.constant 0 : index
    %c0_201 = arith.constant 0 : index
    %234 = vector.load %arg9[%c3_199, %c0_200, %c0_201] : memref<16x6x64xf32, #tpu.memory_space<vmem>>, vector<1x6x64xf32>
    %235 = vector.shape_cast %234 : vector<1x6x64xf32> to vector<6x64xf32>
    %236 = vector.extract_strided_slice %233 {offsets = [4, 0], sizes = [2, 64], strides = [1, 1]} : vector<6x64xf32> to vector<2x64xf32>
    %237 = vector.extract_strided_slice %235 {offsets = [4, 0], sizes = [2, 64], strides = [1, 1]} : vector<6x64xf32> to vector<2x64xf32>
    %238 = tpu.concatenate %236, %237 in 1 : vector<2x64xf32>, vector<2x64xf32> -> vector<2x128xf32>
    %c0_202 = arith.constant 0 : index
    %c1792 = arith.constant 1792 : index
    %239 = vector.load %arg7[%c0_202, %c1792] : memref<2x3200xf32, #tpu.memory_space<vmem>>, vector<2x128xf32>
    tpu.vector_store %arg7[%c0_202, %c1792], %238 {strides = array<i32>} : memref<2x3200xf32, #tpu.memory_space<vmem>>, vector<2x128xf32>,
    %c4_203 = arith.constant 4 : index
    %c0_204 = arith.constant 0 : index
    %c0_205 = arith.constant 0 : index
    %240 = vector.load %arg8[%c4_203, %c0_204, %c0_205] : memref<16x6x64xf32, #tpu.memory_space<vmem>>, vector<1x6x64xf32>
    %241 = vector.shape_cast %240 : vector<1x6x64xf32> to vector<6x64xf32>
    %c4_206 = arith.constant 4 : index
    %c0_207 = arith.constant 0 : index
    %c0_208 = arith.constant 0 : index
    %242 = vector.load %arg9[%c4_206, %c0_207, %c0_208] : memref<16x6x64xf32, #tpu.memory_space<vmem>>, vector<1x6x64xf32>
    %243 = vector.shape_cast %242 : vector<1x6x64xf32> to vector<6x64xf32>
    %244 = vector.extract_strided_slice %241 {offsets = [4, 0], sizes = [2, 64], strides = [1, 1]} : vector<6x64xf32> to vector<2x64xf32>
    %245 = vector.extract_strided_slice %243 {offsets = [4, 0], sizes = [2, 64], strides = [1, 1]} : vector<6x64xf32> to vector<2x64xf32>
    %246 = tpu.concatenate %244, %245 in 1 : vector<2x64xf32>, vector<2x64xf32> -> vector<2x128xf32>
    %c0_209 = arith.constant 0 : index
    %c1920 = arith.constant 1920 : index
    %247 = vector.load %arg7[%c0_209, %c1920] : memref<2x3200xf32, #tpu.memory_space<vmem>>, vector<2x128xf32>
    tpu.vector_store %arg7[%c0_209, %c1920], %246 {strides = array<i32>} : memref<2x3200xf32, #tpu.memory_space<vmem>>, vector<2x128xf32>,
    %c5_210 = arith.constant 5 : index
    %c0_211 = arith.constant 0 : index
    %c0_212 = arith.constant 0 : index
    %248 = vector.load %arg8[%c5_210, %c0_211, %c0_212] : memref<16x6x64xf32, #tpu.memory_space<vmem>>, vector<1x6x64xf32>
    %249 = vector.shape_cast %248 : vector<1x6x64xf32> to vector<6x64xf32>
    %c5_213 = arith.constant 5 : index
    %c0_214 = arith.constant 0 : index
    %c0_215 = arith.constant 0 : index
    %250 = vector.load %arg9[%c5_213, %c0_214, %c0_215] : memref<16x6x64xf32, #tpu.memory_space<vmem>>, vector<1x6x64xf32>
    %251 = vector.shape_cast %250 : vector<1x6x64xf32> to vector<6x64xf32>
    %252 = vector.extract_strided_slice %249 {offsets = [4, 0], sizes = [2, 64], strides = [1, 1]} : vector<6x64xf32> to vector<2x64xf32>
    %253 = vector.extract_strided_slice %251 {offsets = [4, 0], sizes = [2, 64], strides = [1, 1]} : vector<6x64xf32> to vector<2x64xf32>
    %254 = tpu.concatenate %252, %253 in 1 : vector<2x64xf32>, vector<2x64xf32> -> vector<2x128xf32>
    %c0_216 = arith.constant 0 : index
    %c2048 = arith.constant 2048 : index
    %255 = vector.load %arg7[%c0_216, %c2048] : memref<2x3200xf32, #tpu.memory_space<vmem>>, vector<2x128xf32>
    tpu.vector_store %arg7[%c0_216, %c2048], %254 {strides = array<i32>} : memref<2x3200xf32, #tpu.memory_space<vmem>>, vector<2x128xf32>,
    %c6_217 = arith.constant 6 : index
    %c0_218 = arith.constant 0 : index
    %c0_219 = arith.constant 0 : index
    %256 = vector.load %arg8[%c6_217, %c0_218, %c0_219] : memref<16x6x64xf32, #tpu.memory_space<vmem>>, vector<1x6x64xf32>
    %257 = vector.shape_cast %256 : vector<1x6x64xf32> to vector<6x64xf32>
    %c6_220 = arith.constant 6 : index
    %c0_221 = arith.constant 0 : index
    %c0_222 = arith.constant 0 : index
    %258 = vector.load %arg9[%c6_220, %c0_221, %c0_222] : memref<16x6x64xf32, #tpu.memory_space<vmem>>, vector<1x6x64xf32>
    %259 = vector.shape_cast %258 : vector<1x6x64xf32> to vector<6x64xf32>
    %260 = vector.extract_strided_slice %257 {offsets = [4, 0], sizes = [2, 64], strides = [1, 1]} : vector<6x64xf32> to vector<2x64xf32>
    %261 = vector.extract_strided_slice %259 {offsets = [4, 0], sizes = [2, 64], strides = [1, 1]} : vector<6x64xf32> to vector<2x64xf32>
    %262 = tpu.concatenate %260, %261 in 1 : vector<2x64xf32>, vector<2x64xf32> -> vector<2x128xf32>
    %c0_223 = arith.constant 0 : index
    %c2176 = arith.constant 2176 : index
    %263 = vector.load %arg7[%c0_223, %c2176] : memref<2x3200xf32, #tpu.memory_space<vmem>>, vector<2x128xf32>
    tpu.vector_store %arg7[%c0_223, %c2176], %262 {strides = array<i32>} : memref<2x3200xf32, #tpu.memory_space<vmem>>, vector<2x128xf32>,
    %c7_224 = arith.constant 7 : index
    %c0_225 = arith.constant 0 : index
    %c0_226 = arith.constant 0 : index
    %264 = vector.load %arg8[%c7_224, %c0_225, %c0_226] : memref<16x6x64xf32, #tpu.memory_space<vmem>>, vector<1x6x64xf32>
    %265 = vector.shape_cast %264 : vector<1x6x64xf32> to vector<6x64xf32>
    %c7_227 = arith.constant 7 : index
    %c0_228 = arith.constant 0 : index
    %c0_229 = arith.constant 0 : index
    %266 = vector.load %arg9[%c7_227, %c0_228, %c0_229] : memref<16x6x64xf32, #tpu.memory_space<vmem>>, vector<1x6x64xf32>
    %267 = vector.shape_cast %266 : vector<1x6x64xf32> to vector<6x64xf32>
    %268 = vector.extract_strided_slice %265 {offsets = [4, 0], sizes = [2, 64], strides = [1, 1]} : vector<6x64xf32> to vector<2x64xf32>
    %269 = vector.extract_strided_slice %267 {offsets = [4, 0], sizes = [2, 64], strides = [1, 1]} : vector<6x64xf32> to vector<2x64xf32>
    %270 = tpu.concatenate %268, %269 in 1 : vector<2x64xf32>, vector<2x64xf32> -> vector<2x128xf32>
    %c0_230 = arith.constant 0 : index
    %c2304 = arith.constant 2304 : index
    %271 = vector.load %arg7[%c0_230, %c2304] : memref<2x3200xf32, #tpu.memory_space<vmem>>, vector<2x128xf32>
    tpu.vector_store %arg7[%c0_230, %c2304], %270 {strides = array<i32>} : memref<2x3200xf32, #tpu.memory_space<vmem>>, vector<2x128xf32>,
    %c8_231 = arith.constant 8 : index
    %c0_232 = arith.constant 0 : index
    %c0_233 = arith.constant 0 : index
    %272 = vector.load %arg8[%c8_231, %c0_232, %c0_233] : memref<16x6x64xf32, #tpu.memory_space<vmem>>, vector<1x6x64xf32>
    %273 = vector.shape_cast %272 : vector<1x6x64xf32> to vector<6x64xf32>
    %c8_234 = arith.constant 8 : index
    %c0_235 = arith.constant 0 : index
    %c0_236 = arith.constant 0 : index
    %274 = vector.load %arg9[%c8_234, %c0_235, %c0_236] : memref<16x6x64xf32, #tpu.memory_space<vmem>>, vector<1x6x64xf32>
    %275 = vector.shape_cast %274 : vector<1x6x64xf32> to vector<6x64xf32>
    %276 = vector.extract_strided_slice %273 {offsets = [4, 0], sizes = [2, 64], strides = [1, 1]} : vector<6x64xf32> to vector<2x64xf32>
    %277 = vector.extract_strided_slice %275 {offsets = [4, 0], sizes = [2, 64], strides = [1, 1]} : vector<6x64xf32> to vector<2x64xf32>
    %278 = tpu.concatenate %276, %277 in 1 : vector<2x64xf32>, vector<2x64xf32> -> vector<2x128xf32>
    %c0_237 = arith.constant 0 : index
    %c2432 = arith.constant 2432 : index
    %279 = vector.load %arg7[%c0_237, %c2432] : memref<2x3200xf32, #tpu.memory_space<vmem>>, vector<2x128xf32>
    tpu.vector_store %arg7[%c0_237, %c2432], %278 {strides = array<i32>} : memref<2x3200xf32, #tpu.memory_space<vmem>>, vector<2x128xf32>,
    %c9_238 = arith.constant 9 : index
    %c0_239 = arith.constant 0 : index
    %c0_240 = arith.constant 0 : index
    %280 = vector.load %arg8[%c9_238, %c0_239, %c0_240] : memref<16x6x64xf32, #tpu.memory_space<vmem>>, vector<1x6x64xf32>
    %281 = vector.shape_cast %280 : vector<1x6x64xf32> to vector<6x64xf32>
    %c9_241 = arith.constant 9 : index
    %c0_242 = arith.constant 0 : index
    %c0_243 = arith.constant 0 : index
    %282 = vector.load %arg9[%c9_241, %c0_242, %c0_243] : memref<16x6x64xf32, #tpu.memory_space<vmem>>, vector<1x6x64xf32>
    %283 = vector.shape_cast %282 : vector<1x6x64xf32> to vector<6x64xf32>
    %284 = vector.extract_strided_slice %281 {offsets = [4, 0], sizes = [2, 64], strides = [1, 1]} : vector<6x64xf32> to vector<2x64xf32>
    %285 = vector.extract_strided_slice %283 {offsets = [4, 0], sizes = [2, 64], strides = [1, 1]} : vector<6x64xf32> to vector<2x64xf32>
    %286 = tpu.concatenate %284, %285 in 1 : vector<2x64xf32>, vector<2x64xf32> -> vector<2x128xf32>
    %c0_244 = arith.constant 0 : index
    %c2560 = arith.constant 2560 : index
    %287 = vector.load %arg7[%c0_244, %c2560] : memref<2x3200xf32, #tpu.memory_space<vmem>>, vector<2x128xf32>
    tpu.vector_store %arg7[%c0_244, %c2560], %286 {strides = array<i32>} : memref<2x3200xf32, #tpu.memory_space<vmem>>, vector<2x128xf32>,
    %c10_245 = arith.constant 10 : index
    %c0_246 = arith.constant 0 : index
    %c0_247 = arith.constant 0 : index
    %288 = vector.load %arg8[%c10_245, %c0_246, %c0_247] : memref<16x6x64xf32, #tpu.memory_space<vmem>>, vector<1x6x64xf32>
    %289 = vector.shape_cast %288 : vector<1x6x64xf32> to vector<6x64xf32>
    %c10_248 = arith.constant 10 : index
    %c0_249 = arith.constant 0 : index
    %c0_250 = arith.constant 0 : index
    %290 = vector.load %arg9[%c10_248, %c0_249, %c0_250] : memref<16x6x64xf32, #tpu.memory_space<vmem>>, vector<1x6x64xf32>
    %291 = vector.shape_cast %290 : vector<1x6x64xf32> to vector<6x64xf32>
    %292 = vector.extract_strided_slice %289 {offsets = [4, 0], sizes = [2, 64], strides = [1, 1]} : vector<6x64xf32> to vector<2x64xf32>
    %293 = vector.extract_strided_slice %291 {offsets = [4, 0], sizes = [2, 64], strides = [1, 1]} : vector<6x64xf32> to vector<2x64xf32>
    %294 = tpu.concatenate %292, %293 in 1 : vector<2x64xf32>, vector<2x64xf32> -> vector<2x128xf32>
    %c0_251 = arith.constant 0 : index
    %c2688 = arith.constant 2688 : index
    %295 = vector.load %arg7[%c0_251, %c2688] : memref<2x3200xf32, #tpu.memory_space<vmem>>, vector<2x128xf32>
    tpu.vector_store %arg7[%c0_251, %c2688], %294 {strides = array<i32>} : memref<2x3200xf32, #tpu.memory_space<vmem>>, vector<2x128xf32>,
    %c11_252 = arith.constant 11 : index
    %c0_253 = arith.constant 0 : index
    %c0_254 = arith.constant 0 : index
    %296 = vector.load %arg8[%c11_252, %c0_253, %c0_254] : memref<16x6x64xf32, #tpu.memory_space<vmem>>, vector<1x6x64xf32>
    %297 = vector.shape_cast %296 : vector<1x6x64xf32> to vector<6x64xf32>
    %c11_255 = arith.constant 11 : index
    %c0_256 = arith.constant 0 : index
    %c0_257 = arith.constant 0 : index
    %298 = vector.load %arg9[%c11_255, %c0_256, %c0_257] : memref<16x6x64xf32, #tpu.memory_space<vmem>>, vector<1x6x64xf32>
    %299 = vector.shape_cast %298 : vector<1x6x64xf32> to vector<6x64xf32>
    %300 = vector.extract_strided_slice %297 {offsets = [4, 0], sizes = [2, 64], strides = [1, 1]} : vector<6x64xf32> to vector<2x64xf32>
    %301 = vector.extract_strided_slice %299 {offsets = [4, 0], sizes = [2, 64], strides = [1, 1]} : vector<6x64xf32> to vector<2x64xf32>
    %302 = tpu.concatenate %300, %301 in 1 : vector<2x64xf32>, vector<2x64xf32> -> vector<2x128xf32>
    %c0_258 = arith.constant 0 : index
    %c2816 = arith.constant 2816 : index
    %303 = vector.load %arg7[%c0_258, %c2816] : memref<2x3200xf32, #tpu.memory_space<vmem>>, vector<2x128xf32>
    tpu.vector_store %arg7[%c0_258, %c2816], %302 {strides = array<i32>} : memref<2x3200xf32, #tpu.memory_space<vmem>>, vector<2x128xf32>,
    %c12_259 = arith.constant 12 : index
    %c0_260 = arith.constant 0 : index
    %c0_261 = arith.constant 0 : index
    %304 = vector.load %arg8[%c12_259, %c0_260, %c0_261] : memref<16x6x64xf32, #tpu.memory_space<vmem>>, vector<1x6x64xf32>
    %305 = vector.shape_cast %304 : vector<1x6x64xf32> to vector<6x64xf32>
    %c12_262 = arith.constant 12 : index
    %c0_263 = arith.constant 0 : index
    %c0_264 = arith.constant 0 : index
    %306 = vector.load %arg9[%c12_262, %c0_263, %c0_264] : memref<16x6x64xf32, #tpu.memory_space<vmem>>, vector<1x6x64xf32>
    %307 = vector.shape_cast %306 : vector<1x6x64xf32> to vector<6x64xf32>
    %308 = vector.extract_strided_slice %305 {offsets = [4, 0], sizes = [2, 64], strides = [1, 1]} : vector<6x64xf32> to vector<2x64xf32>
    %309 = vector.extract_strided_slice %307 {offsets = [4, 0], sizes = [2, 64], strides = [1, 1]} : vector<6x64xf32> to vector<2x64xf32>
    %310 = tpu.concatenate %308, %309 in 1 : vector<2x64xf32>, vector<2x64xf32> -> vector<2x128xf32>
    %c0_265 = arith.constant 0 : index
    %c2944 = arith.constant 2944 : index
    %311 = vector.load %arg7[%c0_265, %c2944] : memref<2x3200xf32, #tpu.memory_space<vmem>>, vector<2x128xf32>
    tpu.vector_store %arg7[%c0_265, %c2944], %310 {strides = array<i32>} : memref<2x3200xf32, #tpu.memory_space<vmem>>, vector<2x128xf32>,
    %c13_266 = arith.constant 13 : index
    %c0_267 = arith.constant 0 : index
    %c0_268 = arith.constant 0 : index
    %312 = vector.load %arg8[%c13_266, %c0_267, %c0_268] : memref<16x6x64xf32, #tpu.memory_space<vmem>>, vector<1x6x64xf32>
    %313 = vector.shape_cast %312 : vector<1x6x64xf32> to vector<6x64xf32>
    %c13_269 = arith.constant 13 : index
    %c0_270 = arith.constant 0 : index
    %c0_271 = arith.constant 0 : index
    %314 = vector.load %arg9[%c13_269, %c0_270, %c0_271] : memref<16x6x64xf32, #tpu.memory_space<vmem>>, vector<1x6x64xf32>
    %315 = vector.shape_cast %314 : vector<1x6x64xf32> to vector<6x64xf32>
    %316 = vector.extract_strided_slice %313 {offsets = [4, 0], sizes = [2, 64], strides = [1, 1]} : vector<6x64xf32> to vector<2x64xf32>
    %317 = vector.extract_strided_slice %315 {offsets = [4, 0], sizes = [2, 64], strides = [1, 1]} : vector<6x64xf32> to vector<2x64xf32>
    %318 = tpu.concatenate %316, %317 in 1 : vector<2x64xf32>, vector<2x64xf32> -> vector<2x128xf32>
    %c0_272 = arith.constant 0 : index
    %c3072 = arith.constant 3072 : index
    %319 = vector.load %arg7[%c0_272, %c3072] : memref<2x3200xf32, #tpu.memory_space<vmem>>, vector<2x128xf32>
    tpu.vector_store %arg7[%c0_272, %c3072], %318 {strides = array<i32>} : memref<2x3200xf32, #tpu.memory_space<vmem>>, vector<2x128xf32>,
    return
  }
  func.func @transform_0(%arg0: i32) -> (i32, i32, i32) {
    %c0_i32 = arith.constant 0 : i32
    %c0_i32_0 = arith.constant 0 : i32
    %c0_i32_1 = arith.constant 0 : i32
    %c0_i32_2 = arith.constant 0 : i32
    return %c0_i32, %c0_i32_0, %c0_i32_1 : i32, i32, i32
  }
  func.func @transform_1(%arg0: i32) -> (i32, i32, i32) {
    %c0_i32 = arith.constant 0 : i32
    %c0_i32_0 = arith.constant 0 : i32
    %c0_i32_1 = arith.constant 0 : i32
    %c0_i32_2 = arith.constant 0 : i32
    return %c0_i32, %c0_i32_0, %c0_i32_1 : i32, i32, i32
  }
  func.func @transform_2(%arg0: i32) -> (i32, i32) {
    %c0_i32 = arith.constant 0 : i32
    %c0_i32_0 = arith.constant 0 : i32
    %c0_i32_1 = arith.constant 0 : i32
    return %c0_i32, %c0_i32_0 : i32, i32
  }
  func.func @transform_3(%arg0: i32) -> (i32, i32) {
    %c0_i32 = arith.constant 0 : i32
    %c0_i32_0 = arith.constant 0 : i32
    %c0_i32_1 = arith.constant 0 : i32
    return %c0_i32, %c0_i32_0 : i32, i32
  }
  func.func @transform_4(%arg0: i32) -> (i32, i32) {
    %c0_i32 = arith.constant 0 : i32
    %c0_i32_0 = arith.constant 0 : i32
    %c0_i32_1 = arith.constant 0 : i32
    return %c0_i32, %c0_i32_0 : i32, i32
  }
  func.func @transform_5(%arg0: i32) -> (i32, i32) {
    %c0_i32 = arith.constant 0 : i32
    %c0_i32_0 = arith.constant 0 : i32
    %c0_i32_1 = arith.constant 0 : i32
    return %c0_i32, %c0_i32_0 : i32, i32
  }
  func.func @transform_6(%arg0: i32) -> (i32, i32) {
    %c0_i32 = arith.constant 0 : i32
    %c0_i32_0 = arith.constant 0 : i32
    %c0_i32_1 = arith.constant 0 : i32
    return %c0_i32, %c0_i32_0 : i32, i32
  }
}

module attributes {stable_mosaic.version = 11 : i64} {
  func.func @_conv_proj_kernel(%arg0: i32, %arg1: memref<1x30x128xf32, #tpu.memory_space<vmem>>, %arg2: memref<1x128x64xf32, #tpu.memory_space<vmem>>, %arg3: memref<1x1x64xf32, #tpu.memory_space<vmem>>, %arg4: memref<64x192xf32, #tpu.memory_space<vmem>>, %arg5: memref<1x192xf32, #tpu.memory_space<vmem>>, %arg6: memref<64x192xf32, #tpu.memory_space<vmem>>, %arg7: memref<1x192xf32, #tpu.memory_space<vmem>>, %arg8: memref<1x30x192xf32, #tpu.memory_space<vmem>>, %arg9: memref<1x30x192xf32, #tpu.memory_space<vmem>>) attributes {dimension_semantics = [#tpu.dimension_semantics<parallel>], iteration_bounds = array<i64: 3>, scalar_prefetch = 0 : i64, scratch_operands = 0 : i64, tpu.core_type = #tpu.core_type<tc>, window_params = [{transform_indices = @transform_0, window_bounds = array<i64: 1, 30, 128>}, {transform_indices = @transform_1, window_bounds = array<i64: 1, 128, 64>}, {transform_indices = @transform_2, window_bounds = array<i64: 1, 1, 64>}, {pipeline_mode = #tpu.pipeline_mode<synchronous>, transform_indices = @transform_3, window_bounds = array<i64: 64, 192>}, {pipeline_mode = #tpu.pipeline_mode<synchronous>, transform_indices = @transform_4, window_bounds = array<i64: 1, 192>}, {pipeline_mode = #tpu.pipeline_mode<synchronous>, transform_indices = @transform_5, window_bounds = array<i64: 64, 192>}, {pipeline_mode = #tpu.pipeline_mode<synchronous>, transform_indices = @transform_6, window_bounds = array<i64: 1, 192>}, {transform_indices = @transform_7, window_bounds = array<i64: 1, 30, 192>}, {transform_indices = @transform_8, window_bounds = array<i64: 1, 30, 192>}]} {
    %c0 = arith.constant 0 : index
    %c0_0 = arith.constant 0 : index
    %c0_1 = arith.constant 0 : index
    %0 = vector.load %arg1[%c0, %c0_0, %c0_1] : memref<1x30x128xf32, #tpu.memory_space<vmem>>, vector<1x30x128xf32>
    %1 = vector.shape_cast %0 : vector<1x30x128xf32> to vector<30x128xf32>
    %c0_2 = arith.constant 0 : index
    %c0_3 = arith.constant 0 : index
    %c0_4 = arith.constant 0 : index
    %2 = vector.load %arg2[%c0_2, %c0_3, %c0_4] : memref<1x128x64xf32, #tpu.memory_space<vmem>>, vector<1x128x64xf32>
    %3 = vector.shape_cast %2 : vector<1x128x64xf32> to vector<128x64xf32>
    %cst = arith.constant dense<0.000000e+00> : vector<30x64xf32>
    %4 = tpu.matmul %1, %3, %cst {dimension_numbers = #tpu.dot_dimension_numbers<[1], [0], [0], [1], [0, 0, 1, 1], [], []>} : vector<30x128xf32>, vector<128x64xf32>, vector<30x64xf32> -> vector<30x64xf32>
    %c0_5 = arith.constant 0 : index
    %c0_6 = arith.constant 0 : index
    %c0_7 = arith.constant 0 : index
    %5 = vector.load %arg3[%c0_5, %c0_6, %c0_7] : memref<1x1x64xf32, #tpu.memory_space<vmem>>, vector<1x1x64xf32>
    %6 = vector.shape_cast %5 : vector<1x1x64xf32> to vector<1x64xf32>
    %7 = vector.broadcast %6 : vector<1x64xf32> to vector<30x64xf32>
    %8 = arith.addf %4, %7 : vector<30x64xf32>
    %cst_8 = arith.constant 0.000000e+00 : f32
    %9 = vector.broadcast %cst_8 : f32 to vector<30x64xf32>
    %10 = arith.maximumf %8, %9 : vector<30x64xf32>
    %c0_9 = arith.constant 0 : index
    %c0_10 = arith.constant 0 : index
    %11 = vector.load %arg4[%c0_9, %c0_10] : memref<64x192xf32, #tpu.memory_space<vmem>>, vector<64x192xf32>
    %cst_11 = arith.constant dense<0.000000e+00> : vector<30x192xf32>
    %12 = tpu.matmul %10, %11, %cst_11 {dimension_numbers = #tpu.dot_dimension_numbers<[1], [0], [0], [1], [0, 0, 1, 1], [], []>} : vector<30x64xf32>, vector<64x192xf32>, vector<30x192xf32> -> vector<30x192xf32>
    %c0_12 = arith.constant 0 : index
    %c0_13 = arith.constant 0 : index
    %13 = vector.load %arg5[%c0_12, %c0_13] : memref<1x192xf32, #tpu.memory_space<vmem>>, vector<1x192xf32>
    %14 = vector.broadcast %13 : vector<1x192xf32> to vector<30x192xf32>
    %15 = arith.addf %12, %14 : vector<30x192xf32>
    %c0_14 = arith.constant 0 : index
    %c0_15 = arith.constant 0 : index
    %c0_16 = arith.constant 0 : index
    %16 = vector.load %arg8[%c0_14, %c0_15, %c0_16] : memref<1x30x192xf32, #tpu.memory_space<vmem>>, vector<1x30x192xf32>
    %17 = vector.shape_cast %16 : vector<1x30x192xf32> to vector<30x192xf32>
    %18 = vector.shape_cast %15 : vector<30x192xf32> to vector<1x30x192xf32>
    tpu.vector_store %arg8[%c0_14, %c0_15, %c0_16], %18 {strides = array<i32>} : memref<1x30x192xf32, #tpu.memory_space<vmem>>, vector<1x30x192xf32>,
    %c0_17 = arith.constant 0 : index
    %c0_18 = arith.constant 0 : index
    %19 = vector.load %arg6[%c0_17, %c0_18] : memref<64x192xf32, #tpu.memory_space<vmem>>, vector<64x192xf32>
    %cst_19 = arith.constant dense<0.000000e+00> : vector<30x192xf32>
    %20 = tpu.matmul %10, %19, %cst_19 {dimension_numbers = #tpu.dot_dimension_numbers<[1], [0], [0], [1], [0, 0, 1, 1], [], []>} : vector<30x64xf32>, vector<64x192xf32>, vector<30x192xf32> -> vector<30x192xf32>
    %c0_20 = arith.constant 0 : index
    %c0_21 = arith.constant 0 : index
    %21 = vector.load %arg7[%c0_20, %c0_21] : memref<1x192xf32, #tpu.memory_space<vmem>>, vector<1x192xf32>
    %22 = vector.broadcast %21 : vector<1x192xf32> to vector<30x192xf32>
    %23 = arith.addf %20, %22 : vector<30x192xf32>
    %c0_22 = arith.constant 0 : index
    %c0_23 = arith.constant 0 : index
    %c0_24 = arith.constant 0 : index
    %24 = vector.load %arg9[%c0_22, %c0_23, %c0_24] : memref<1x30x192xf32, #tpu.memory_space<vmem>>, vector<1x30x192xf32>
    %25 = vector.shape_cast %24 : vector<1x30x192xf32> to vector<30x192xf32>
    %26 = vector.shape_cast %23 : vector<30x192xf32> to vector<1x30x192xf32>
    tpu.vector_store %arg9[%c0_22, %c0_23, %c0_24], %26 {strides = array<i32>} : memref<1x30x192xf32, #tpu.memory_space<vmem>>, vector<1x30x192xf32>,
    return
  }
  func.func @transform_0(%arg0: i32) -> (i32, i32, i32) {
    %c0_i32 = arith.constant 0 : i32
    %c0_i32_0 = arith.constant 0 : i32
    %c0_i32_1 = arith.constant 0 : i32
    return %arg0, %c0_i32, %c0_i32_0 : i32, i32, i32
  }
  func.func @transform_1(%arg0: i32) -> (i32, i32, i32) {
    %c0_i32 = arith.constant 0 : i32
    %c0_i32_0 = arith.constant 0 : i32
    %c0_i32_1 = arith.constant 0 : i32
    return %arg0, %c0_i32, %c0_i32_0 : i32, i32, i32
  }
  func.func @transform_2(%arg0: i32) -> (i32, i32, i32) {
    %c0_i32 = arith.constant 0 : i32
    %c0_i32_0 = arith.constant 0 : i32
    %c0_i32_1 = arith.constant 0 : i32
    return %arg0, %c0_i32, %c0_i32_0 : i32, i32, i32
  }
  func.func @transform_3(%arg0: i32) -> (i32, i32) {
    %c0_i32 = arith.constant 0 : i32
    %c0_i32_0 = arith.constant 0 : i32
    %c0_i32_1 = arith.constant 0 : i32
    return %c0_i32, %c0_i32_0 : i32, i32
  }
  func.func @transform_4(%arg0: i32) -> (i32, i32) {
    %c0_i32 = arith.constant 0 : i32
    %c0_i32_0 = arith.constant 0 : i32
    %c0_i32_1 = arith.constant 0 : i32
    return %c0_i32, %c0_i32_0 : i32, i32
  }
  func.func @transform_5(%arg0: i32) -> (i32, i32) {
    %c0_i32 = arith.constant 0 : i32
    %c0_i32_0 = arith.constant 0 : i32
    %c0_i32_1 = arith.constant 0 : i32
    return %c0_i32, %c0_i32_0 : i32, i32
  }
  func.func @transform_6(%arg0: i32) -> (i32, i32) {
    %c0_i32 = arith.constant 0 : i32
    %c0_i32_0 = arith.constant 0 : i32
    %c0_i32_1 = arith.constant 0 : i32
    return %c0_i32, %c0_i32_0 : i32, i32
  }
  func.func @transform_7(%arg0: i32) -> (i32, i32, i32) {
    %c0_i32 = arith.constant 0 : i32
    %c0_i32_0 = arith.constant 0 : i32
    %c0_i32_1 = arith.constant 0 : i32
    return %arg0, %c0_i32, %c0_i32_0 : i32, i32, i32
  }
  func.func @transform_8(%arg0: i32) -> (i32, i32, i32) {
    %c0_i32 = arith.constant 0 : i32
    %c0_i32_0 = arith.constant 0 : i32
    %c0_i32_1 = arith.constant 0 : i32
    return %arg0, %c0_i32, %c0_i32_0 : i32, i32, i32
  }
}

module attributes {stable_mosaic.version = 11 : i64} {
  func.func @_mlp_kernel(%arg0: i32, %arg1: memref<2x640xf32, #tpu.memory_space<vmem>>, %arg2: memref<640x2000xf32, #tpu.memory_space<vmem>>, %arg3: memref<1x2000xf32, #tpu.memory_space<vmem>>, %arg4: memref<2000x500xf32, #tpu.memory_space<vmem>>, %arg5: memref<1x500xf32, #tpu.memory_space<vmem>>, %arg6: memref<500x100xf32, #tpu.memory_space<vmem>>, %arg7: memref<1x100xf32, #tpu.memory_space<vmem>>, %arg8: memref<100x2xf32, #tpu.memory_space<vmem>>, %arg9: memref<1x2xf32, #tpu.memory_space<vmem>>, %arg10: memref<2x2xf32, #tpu.memory_space<vmem>>, %arg11: memref<2x2000xf32, #tpu.memory_space<vmem>>) attributes {dimension_semantics = [#tpu.dimension_semantics<arbitrary>], iteration_bounds = array<i64: 5>, scalar_prefetch = 0 : i64, scratch_operands = 1 : i64, tpu.core_type = #tpu.core_type<tc>, window_params = [{transform_indices = @transform_0, window_bounds = array<i64: 2, 640>}, {transform_indices = @transform_1, window_bounds = array<i64: 640, 2000>}, {pipeline_mode = #tpu.pipeline_mode<synchronous>, transform_indices = @transform_2, window_bounds = array<i64: 1, 2000>}, {pipeline_mode = #tpu.pipeline_mode<synchronous>, transform_indices = @transform_3, window_bounds = array<i64: 2000, 500>}, {pipeline_mode = #tpu.pipeline_mode<synchronous>, transform_indices = @transform_4, window_bounds = array<i64: 1, 500>}, {pipeline_mode = #tpu.pipeline_mode<synchronous>, transform_indices = @transform_5, window_bounds = array<i64: 500, 100>}, {pipeline_mode = #tpu.pipeline_mode<synchronous>, transform_indices = @transform_6, window_bounds = array<i64: 1, 100>}, {pipeline_mode = #tpu.pipeline_mode<synchronous>, transform_indices = @transform_7, window_bounds = array<i64: 100, 2>}, {pipeline_mode = #tpu.pipeline_mode<synchronous>, transform_indices = @transform_8, window_bounds = array<i64: 1, 2>}, {pipeline_mode = #tpu.pipeline_mode<synchronous>, transform_indices = @transform_9, window_bounds = array<i64: 2, 2>}]} {
    %c0_i32 = arith.constant 0 : i32
    %0 = arith.cmpi eq, %arg0, %c0_i32 : i32
    %1 = arith.extui %0 : i1 to i32
    %c0_i32_0 = arith.constant 0 : i32
    %2 = arith.cmpi ne, %1, %c0_i32_0 : i32
    scf.if %2 {
      %cst_9 = arith.constant 0.000000e+00 : f32
      %12 = vector.broadcast %cst_9 : f32 to vector<2x2000xf32>
      %c0_10 = arith.constant 0 : index
      %c0_11 = arith.constant 0 : index
      %13 = vector.load %arg11[%c0_10, %c0_11] : memref<2x2000xf32, #tpu.memory_space<vmem>>, vector<2x2000xf32>
      tpu.vector_store %arg11[%c0_10, %c0_11], %12 {strides = array<i32>} : memref<2x2000xf32, #tpu.memory_space<vmem>>, vector<2x2000xf32>,
    } else {
    }
    %c0 = arith.constant 0 : index
    %c0_1 = arith.constant 0 : index
    %3 = vector.load %arg11[%c0, %c0_1] : memref<2x2000xf32, #tpu.memory_space<vmem>>, vector<2x2000xf32>
    %c0_2 = arith.constant 0 : index
    %c0_3 = arith.constant 0 : index
    %4 = vector.load %arg1[%c0_2, %c0_3] : memref<2x640xf32, #tpu.memory_space<vmem>>, vector<2x640xf32>
    %c0_4 = arith.constant 0 : index
    %c0_5 = arith.constant 0 : index
    %5 = vector.load %arg2[%c0_4, %c0_5] : memref<640x2000xf32, #tpu.memory_space<vmem>>, vector<640x2000xf32>
    %cst = arith.constant dense<0.000000e+00> : vector<2x2000xf32>
    %6 = tpu.matmul %4, %5, %cst {dimension_numbers = #tpu.dot_dimension_numbers<[1], [0], [0], [1], [0, 0, 1, 1], [], []>} : vector<2x640xf32>, vector<640x2000xf32>, vector<2x2000xf32> -> vector<2x2000xf32>
    %7 = arith.addf %3, %6 : vector<2x2000xf32>
    %c0_6 = arith.constant 0 : index
    %c0_7 = arith.constant 0 : index
    %8 = vector.load %arg11[%c0_6, %c0_7] : memref<2x2000xf32, #tpu.memory_space<vmem>>, vector<2x2000xf32>
    tpu.vector_store %arg11[%c0_6, %c0_7], %7 {strides = array<i32>} : memref<2x2000xf32, #tpu.memory_space<vmem>>, vector<2x2000xf32>,
    %c4_i32 = arith.constant 4 : i32
    %9 = arith.cmpi eq, %arg0, %c4_i32 : i32
    %10 = arith.extui %9 : i1 to i32
    %c0_i32_8 = arith.constant 0 : i32
    %11 = arith.cmpi ne, %10, %c0_i32_8 : i32
    scf.if %11 {
      %c0_9 = arith.constant 0 : index
      %c0_10 = arith.constant 0 : index
      %12 = vector.load %arg11[%c0_9, %c0_10] : memref<2x2000xf32, #tpu.memory_space<vmem>>, vector<2x2000xf32>
      %c0_11 = arith.constant 0 : index
      %c0_12 = arith.constant 0 : index
      %13 = vector.load %arg3[%c0_11, %c0_12] : memref<1x2000xf32, #tpu.memory_space<vmem>>, vector<1x2000xf32>
      %14 = vector.broadcast %13 : vector<1x2000xf32> to vector<2x2000xf32>
      %15 = arith.addf %12, %14 : vector<2x2000xf32>
      %cst_13 = arith.constant 0.000000e+00 : f32
      %16 = vector.broadcast %cst_13 : f32 to vector<2x2000xf32>
      %17 = arith.maximumf %15, %16 : vector<2x2000xf32>
      %c0_14 = arith.constant 0 : index
      %c0_15 = arith.constant 0 : index
      %18 = vector.load %arg4[%c0_14, %c0_15] : memref<2000x500xf32, #tpu.memory_space<vmem>>, vector<2000x500xf32>
      %cst_16 = arith.constant dense<0.000000e+00> : vector<2x500xf32>
      %19 = tpu.matmul %17, %18, %cst_16 {dimension_numbers = #tpu.dot_dimension_numbers<[1], [0], [0], [1], [0, 0, 1, 1], [], []>} : vector<2x2000xf32>, vector<2000x500xf32>, vector<2x500xf32> -> vector<2x500xf32>
      %c0_17 = arith.constant 0 : index
      %c0_18 = arith.constant 0 : index
      %20 = vector.load %arg5[%c0_17, %c0_18] : memref<1x500xf32, #tpu.memory_space<vmem>>, vector<1x500xf32>
      %21 = vector.broadcast %20 : vector<1x500xf32> to vector<2x500xf32>
      %22 = arith.addf %19, %21 : vector<2x500xf32>
      %cst_19 = arith.constant 0.000000e+00 : f32
      %23 = vector.broadcast %cst_19 : f32 to vector<2x500xf32>
      %24 = arith.maximumf %22, %23 : vector<2x500xf32>
      %c0_20 = arith.constant 0 : index
      %c0_21 = arith.constant 0 : index
      %25 = vector.load %arg6[%c0_20, %c0_21] : memref<500x100xf32, #tpu.memory_space<vmem>>, vector<500x100xf32>
      %cst_22 = arith.constant dense<0.000000e+00> : vector<2x100xf32>
      %26 = tpu.matmul %24, %25, %cst_22 {dimension_numbers = #tpu.dot_dimension_numbers<[1], [0], [0], [1], [0, 0, 1, 1], [], []>} : vector<2x500xf32>, vector<500x100xf32>, vector<2x100xf32> -> vector<2x100xf32>
      %c0_23 = arith.constant 0 : index
      %c0_24 = arith.constant 0 : index
      %27 = vector.load %arg7[%c0_23, %c0_24] : memref<1x100xf32, #tpu.memory_space<vmem>>, vector<1x100xf32>
      %28 = vector.broadcast %27 : vector<1x100xf32> to vector<2x100xf32>
      %29 = arith.addf %26, %28 : vector<2x100xf32>
      %cst_25 = arith.constant 0.000000e+00 : f32
      %30 = vector.broadcast %cst_25 : f32 to vector<2x100xf32>
      %31 = arith.maximumf %29, %30 : vector<2x100xf32>
      %c0_26 = arith.constant 0 : index
      %c0_27 = arith.constant 0 : index
      %32 = vector.load %arg8[%c0_26, %c0_27] : memref<100x2xf32, #tpu.memory_space<vmem>>, vector<100x2xf32>
      %cst_28 = arith.constant dense<0.000000e+00> : vector<2x2xf32>
      %33 = tpu.matmul %31, %32, %cst_28 {dimension_numbers = #tpu.dot_dimension_numbers<[1], [0], [0], [1], [0, 0, 1, 1], [], []>} : vector<2x100xf32>, vector<100x2xf32>, vector<2x2xf32> -> vector<2x2xf32>
      %c0_29 = arith.constant 0 : index
      %c0_30 = arith.constant 0 : index
      %34 = vector.load %arg9[%c0_29, %c0_30] : memref<1x2xf32, #tpu.memory_space<vmem>>, vector<1x2xf32>
      %35 = vector.broadcast %34 : vector<1x2xf32> to vector<2x2xf32>
      %36 = arith.addf %33, %35 : vector<2x2xf32>
      %c0_31 = arith.constant 0 : index
      %c0_32 = arith.constant 0 : index
      %37 = vector.load %arg10[%c0_31, %c0_32] : memref<2x2xf32, #tpu.memory_space<vmem>>, vector<2x2xf32>
      tpu.vector_store %arg10[%c0_31, %c0_32], %36 {strides = array<i32>} : memref<2x2xf32, #tpu.memory_space<vmem>>, vector<2x2xf32>,
    } else {
    }
    return
  }
  func.func @transform_0(%arg0: i32) -> (i32, i32) {
    %c0_i32 = arith.constant 0 : i32
    %c0_i32_0 = arith.constant 0 : i32
    return %c0_i32, %arg0 : i32, i32
  }
  func.func @transform_1(%arg0: i32) -> (i32, i32) {
    %c0_i32 = arith.constant 0 : i32
    %c0_i32_0 = arith.constant 0 : i32
    return %arg0, %c0_i32 : i32, i32
  }
  func.func @transform_2(%arg0: i32) -> (i32, i32) {
    %c0_i32 = arith.constant 0 : i32
    %c0_i32_0 = arith.constant 0 : i32
    %c0_i32_1 = arith.constant 0 : i32
    return %c0_i32, %c0_i32_0 : i32, i32
  }
  func.func @transform_3(%arg0: i32) -> (i32, i32) {
    %c0_i32 = arith.constant 0 : i32
    %c0_i32_0 = arith.constant 0 : i32
    %c0_i32_1 = arith.constant 0 : i32
    return %c0_i32, %c0_i32_0 : i32, i32
  }
  func.func @transform_4(%arg0: i32) -> (i32, i32) {
    %c0_i32 = arith.constant 0 : i32
    %c0_i32_0 = arith.constant 0 : i32
    %c0_i32_1 = arith.constant 0 : i32
    return %c0_i32, %c0_i32_0 : i32, i32
  }
  func.func @transform_5(%arg0: i32) -> (i32, i32) {
    %c0_i32 = arith.constant 0 : i32
    %c0_i32_0 = arith.constant 0 : i32
    %c0_i32_1 = arith.constant 0 : i32
    return %c0_i32, %c0_i32_0 : i32, i32
  }
  func.func @transform_6(%arg0: i32) -> (i32, i32) {
    %c0_i32 = arith.constant 0 : i32
    %c0_i32_0 = arith.constant 0 : i32
    %c0_i32_1 = arith.constant 0 : i32
    return %c0_i32, %c0_i32_0 : i32, i32
  }
  func.func @transform_7(%arg0: i32) -> (i32, i32) {
    %c0_i32 = arith.constant 0 : i32
    %c0_i32_0 = arith.constant 0 : i32
    %c0_i32_1 = arith.constant 0 : i32
    return %c0_i32, %c0_i32_0 : i32, i32
  }
  func.func @transform_8(%arg0: i32) -> (i32, i32) {
    %c0_i32 = arith.constant 0 : i32
    %c0_i32_0 = arith.constant 0 : i32
    %c0_i32_1 = arith.constant 0 : i32
    return %c0_i32, %c0_i32_0 : i32, i32
  }
  func.func @transform_9(%arg0: i32) -> (i32, i32) {
    %c0_i32 = arith.constant 0 : i32
    %c0_i32_0 = arith.constant 0 : i32
    %c0_i32_1 = arith.constant 0 : i32
    return %c0_i32, %c0_i32_0 : i32, i32
  }
}

</mosaic_0001>

<bundles_post_ra>
// kernel: mltp_forward.4
= control target key start
LH: loop header
LB: loop body
LE: loop exit
PB: predicated region body
PF: predicated region fallthrough
CT: control target
= control target key end

     0   :  { %11 = vsyncpa [#allocation5], 0  ;;  %s1297_s0 = inlined_call_operand.vmem [shape: f32[15,6,192], index: 0, kind: input, shape index: {}]   ;;  %s1298_s1 = inlined_call_operand.vmem [shape: f32[15,6,192], index: 1, kind: input, shape index: {}]   ;;  %s1299_s2 = inlined_call_operand.hbm [shape: f32[64,192], index: 2, kind: input, shape index: {}]   ;;  %s1300_s3 = inlined_call_operand.hbm [shape: f32[1,192], index: 3, kind: input, shape index: {}]   ;;  %s1301_s4 = inlined_call_operand.hbm [shape: f32[64,192], index: 4, kind: input, shape index: {}]   ;;  %s1302_s5 = inlined_call_operand.hbm [shape: f32[1,192], index: 5, kind: input, shape index: {}]   ;;  %s1303_s6 = inlined_call_operand.vmem [shape: f32[2,3200], index: 6, kind: output, shape index: {}]  }
   0x1   :  { %12 = vsyncpa [#allocation7], 0  ;;  %s36_s23 = sshll.u32 %s1300_s3, 4  ;;  %s37_s23 = int_to_ptr.hbm [resolvable:$true] %s36_s23 }
   0x2   :  { %13 = vsyncpa [#allocation10], 0  ;;  %s927_s24 = smov [#allocation6]   ;;  %s22_s28 = sshll.u32 %s1299_s2, 4  ;;  %s23_s28 = int_to_ptr.hbm [resolvable:$true] %s22_s28 }
   0x3   :  { %s38_s25 = sshll.u32 %s927_s24, 4  ;;  %s928_s29 = smov [#allocation4]   ;;  %s39_s25 = int_to_ptr.vmem [resolvable:$true] %s38_s25 }
   0x4   :  { %41 = dma.hbm_to_vmem [thread:$0]  %s37_s23, 32, %s39_s25, [#allocation7]  }
   0x5   :  { %s24_s30 = sshll.u32 %s928_s29, 4  ;;  %s929_s7 = smov 256   ;;  %s25_s30 = int_to_ptr.vmem [resolvable:$true] %s24_s30 }
   0x6   :  { %s930_s8 = smov 16   ;;  %s46_s3 = sshll.u32 %s1301_s4, 4  ;;  %s47_s3 = int_to_ptr.hbm [resolvable:$true] %s46_s3 }
   0x7   :  { %30 = dma.hbm_to_vmem [thread:$0]  %s23_s28, 2048, %s25_s30, [#allocation5], %s929_s7, %s929_s7, %s930_s8  }
   0x8   :  { %s931_s11 = smov [#allocation8]   ;;  %s60_s2 = sshll.u32 %s1302_s5, 4  ;;  %s61_s2 = int_to_ptr.hbm [resolvable:$true] %s60_s2 }
   0x9   :  { %s48_s12 = sshll.u32 %s931_s11, 4  ;;  %s932_s15 = smov [#allocation9]   ;;  %s49_s12 = int_to_ptr.vmem [resolvable:$true] %s48_s12 }
   0xa   :  { %54 = dma.hbm_to_vmem [thread:$0]  %s47_s3, 2048, %s49_s12, [#allocation7], %s929_s7, %s929_s7, %s930_s8  }
   0xb   :  { %s62_s16 = sshll.u32 %s932_s15, 4  ;;  %s63_s16 = int_to_ptr.vmem [resolvable:$true] %s62_s16 }
   0xc   :  { %65 = dma.hbm_to_vmem [thread:$0]  %s61_s2, 32, %s63_s16, [#allocation10]  }
   0xd   :  { %909 = dma.done.wait [#allocation5], 2048  }
   0xe   :  { %910 = vsyncadd [#allocation5], 4294965248 }
   0xf   :  { %911 = dma.done.wait [#allocation7], 2080  }
  0x10   :  { %912 = vsyncadd [#allocation7], 4294965216 }
  0x11   :  { %913 = dma.done.wait [#allocation10], 32  }
  0x12   :  { %914 = vsyncadd [#allocation10], 4294967264  ;;  %vm116_vm0 = vcmask 521216   ;;  %v119_v0 = vlaneseq  ;;  %v933_v1 = vmov -inf   ;;  %v934_v3 = vmov 13   ;;  %v988_v6 = vld [vmem:[#allocation4] sm:$0xff] }
  0x13   :  { %117 = vst.msk [vmem:[#allocation2] sm:$0x3f] %vm116_vm0, %v933_v1  ;;  %v990_v7 = vld [vmem:[#allocation4 + $0x8] sm:$0xff]  ;;  %v992_v8 = vld [vmem:[#allocation4 + $0x10] sm:$0xff]  ;;  %v994_v9 = vld [vmem:[#allocation4 + $0x18] sm:$0xff]  ;;  %v1056_v40 = vmov 0.0  }
  0x14   :  { %118 = vst.msk [vmem:[#allocation3] sm:$0x3f] %vm116_vm0, %v933_v1  ;;  %v120_v2 = vshrl.u32 %v119_v0, 7  ;;  %v996_v10 = vld [vmem:[#allocation4 + $0x20] sm:$0xff]  ;;  %v998_v11 = vld [vmem:[#allocation4 + $0x28] sm:$0xff]  ;;  %v1000_v12 = vld [vmem:[#allocation4 + $0x30] sm:$0xff] }
  0x15   :  { %v1002_v13 = vld [vmem:[#allocation4 + $0x38] sm:$0xff]  ;;  %v1004_v14 = vld [vmem:[#allocation4 + $0x40] sm:$0xff]  ;;  %v1006_v15 = vld [vmem:[#allocation4 + $0x48] sm:$0xff]  ;;  %v1058_v41 = vmov 0.0   ;;  %s1060_s4 = smov 0  }
  0x16   :  { %vm121_vm1 = vcmp.lt.s32.totalorder %v120_v2, 2  ;;  %vm122_vm2 = vcmp.lt.s32.totalorder %v120_v2, 4  ;;  %v1008_v16 = vld [vmem:[#allocation4 + $0x50] sm:$0xff]  ;;  %v1010_v17 = vld [vmem:[#allocation4 + $0x58] sm:$0xff]  ;;  %v1012_v18 = vld [vmem:[#allocation4 + $0x60] sm:$0xff] }
  0x17   :  { %v123_v4 = vsel %vm122_vm2, 14, %v934_v3  ;;  %v1014_v19 = vld [vmem:[#allocation4 + $0x68] sm:$0xff]  ;;  %v1016_v20 = vld [vmem:[#allocation4 + $0x70] sm:$0xff]  ;;  %v1018_v21 = vld [vmem:[#allocation4 + $0x78] sm:$0xff] }
  0x18   :  { %v986_v5 = vsel %vm121_vm1, 15, %v123_v4  ;;  %v1020_v22 = vld [vmem:[#allocation6] sm:$0x3]  ;;  %v1022_v23 = vld [vmem:[#allocation8] sm:$0xff]  ;;  %v1024_v24 = vld [vmem:[#allocation8 + $0x8] sm:$0xff] }
  0x19   :  { %v1026_v25 = vld [vmem:[#allocation8 + $0x10] sm:$0xff]  ;;  %v1028_v26 = vld [vmem:[#allocation8 + $0x18] sm:$0xff]  ;;  %v1030_v27 = vld [vmem:[#allocation8 + $0x20] sm:$0xff] }
  0x1a   :  { %v1032_v28 = vld [vmem:[#allocation8 + $0x28] sm:$0xff]  ;;  %v1034_v29 = vld [vmem:[#allocation8 + $0x30] sm:$0xff]  ;;  %v1036_v30 = vld [vmem:[#allocation8 + $0x38] sm:$0xff] }
  0x1b   :  { %v1038_v31 = vld [vmem:[#allocation8 + $0x40] sm:$0xff]  ;;  %v1040_v32 = vld [vmem:[#allocation8 + $0x48] sm:$0xff]  ;;  %v1042_v33 = vld [vmem:[#allocation8 + $0x50] sm:$0xff] }
  0x1c   :  { %v1044_v34 = vld [vmem:[#allocation8 + $0x58] sm:$0xff]  ;;  %v1046_v35 = vld [vmem:[#allocation8 + $0x60] sm:$0xff]  ;;  %v1048_v36 = vld [vmem:[#allocation8 + $0x68] sm:$0xff] }
  0x1d   :  { %v1050_v37 = vld [vmem:[#allocation8 + $0x70] sm:$0xff]  ;;  %v1052_v38 = vld [vmem:[#allocation8 + $0x78] sm:$0xff]  ;;  %v1054_v39 = vld [vmem:[#allocation9] sm:$0x3] }
  0x1e LB: > { %244 = vmatpush.msra.mxu2 %v1050_v37  ;;  %264 = vmatpush.msra.mxu3 %v1052_v38  ;;  %s935_s5 = smov 64   ;;  %vm147_vm3 = vcmask 523264   ;;  %s133_s17 = ssub.s32 14, %s925_s4  ;;  %v227_v44 = vperm.slane %v1054_v39, 0  ;;  %v140_v45 = vperm.slane %v1020_v22, 0  ;;  %v141_v3 = vperm.slane %v1020_v22, 1  ;;  %s925_s4 = sphi %s1060_s4, %s130_s4   ;;  %v921_v41 = vphi %v1058_v41, %v311_v41   ;;  %v917_v40 = vphi %v1056_v40, %v316_v40  }
  0x1f   : > { %158 = vmatpush.msra.mxu0 %v1016_v20  ;;  %178 = vmatpush.msra.mxu1 %v1018_v21  ;;  %s754_s18 = sshll.u32 %s133_s17, 4  ;;  %s753_s19 = sshll.u32 %s925_s4, 4 }
  0x20   : > { %232 = vrot.lane.b32.xlu0 %v917_v40, %s935_s5  ;;  %245 = vmatpush.msra.mxu2 %v1046_v35  ;;  %s1118_s22 = scalar_lea.vmem %s1298_s1, %s754_s18  ;;  %s1124_s25 = scalar_lea.vmem %s1297_s0, %s753_s19 }
  0x21   : > { %265 = vmatpush.msra.mxu3 %v1048_v36  ;;  %159 = vmatpush.msra.mxu0 %v1012_v18  ;;  %v224_v46 = vld [vmem:[%s1118_s22] sm:$0x3f]  ;;  %s750_s26 = sshll.u32 %s925_s4, 3  ;;  %s325_s27 = ssub.s32 15, %s925_s4 }
  0x22   : > { %246 = vmatpush.msra.mxu2 %v1042_v33  ;;  %179 = vmatpush.msra.mxu1 %v1014_v19  ;;  %v137_v49 = vld [vmem:[%s1124_s25] sm:$0x3f]  ;;  %s725_s28 = scalar_lea.vmem [#allocation2], %s750_s26  ;;  %s752_s29 = sshll.u32 %s325_s27, 3 }
  0x23   : > { %266 = vmatpush.msra.mxu3 %v1044_v34  ;;  %160 = vmatpush.msra.mxu0 %v1008_v16  ;;  %s331_s30 = scalar_lea.vmem [#allocation3], %s752_s29 }
  0x24   : > { %247 = vmatpush.msra.mxu2 %v1038_v31  ;;  %180 = vmatpush.msra.mxu1 %v1010_v17 }
  0x25   : > { %267 = vmatpush.msra.mxu3 %v1040_v32  ;;  %161 = vmatpush.msra.mxu0 %v1004_v14 }
  0x26   : > { %248 = vmatpush.msra.mxu2 %v1034_v29  ;;  %181 = vmatpush.msra.mxu1 %v1006_v15 }
  0x27   : > { %268 = vmatpush.msra.mxu3 %v1036_v30  ;;  %162 = vmatpush.msra.mxu0 %v1000_v12 }
  0x28   : > { %145 = vrot.lane.b32.xlu0 %v921_v41, %s935_s5  ;;  %249 = vmatpush.msra.mxu2 %v1030_v27 }
  0x29   : > { %269 = vmatpush.msra.mxu3 %v1032_v28  ;;  %182 = vmatpush.msra.mxu1 %v1002_v13 }
  0x2a   : > { %250 = vmatpush.msra.mxu2 %v1026_v25  ;;  %163 = vmatpush.msra.mxu0 %v996_v10 }
  0x2b   : > { %270 = vmatpush.msra.mxu3 %v1028_v26  ;;  %183 = vmatpush.msra.mxu1 %v998_v11 }
  0x2c   : > { %251 = vmatpush.msra.mxu2 %v1022_v23  ;;  %164 = vmatpush.msra.mxu0 %v992_v8 }
  0x2d   : > { %271 = vmatpush.msra.mxu3 %v1024_v24  ;;  %184 = vmatpush.msra.mxu1 %v994_v9 }
  0x2e   : > { %165 = vmatpush.msra.mxu0 %v988_v6 }
  0x2f   : > { %185 = vmatpush.msra.mxu1 %v990_v7 }
  0x92   : > { %v233_v42 = vpop.permute.xlu0 %232 }
  0x93   : > { %747 = vmatmul.msk.f32.vlgmr.msra.gmra.mxu2 %vm147_vm3, %v233_v42  ;;  %748 = vmatmul.msk.f32.vlgmr.msra.gmra.mxu3 %vm147_vm3, %v233_v42 }
  0x9a   : > { %v146_v43 = vpop.permute.xlu0 %145 }
  0x9b   : > { %742 = vmatmul.msk.f32.vlgmr.msra.gmra.mxu0 %vm147_vm3, %v146_v43  ;;  %743 = vmatmul.msk.f32.vlgmr.msra.gmra.mxu1 %vm147_vm3, %v146_v43 }
 0x116   : > { %v253_v47 = vpop.f32.mrf.mxu2 }
 0x117   : > { %v254_v48 = vadd.f32 %v253_v47, %v227_v44 }
 0x118   : > { %v167_v50 = vpop.f32.mrf.mxu0 }
 0x119   : > { %v276_v51 = vadd.f32 %v254_v48, %v224_v46  ;;  %v168_v52 = vadd.f32 %v167_v50, %v140_v45  ;;  %v187_v46 = vpop.f32.mrf.mxu1  ;;  %v228_v50 = vperm.slane %v1054_v39, 1 }
 0x11b   : > { %v749_v53 = vmul.f32 -1.442695, %v276_v51  ;;  %v190_v54 = vadd.f32 %v168_v52, %v137_v49 }
 0x11d   : > { %789 = vpow2.f32 %v749_v53  ;;  %v744_v55 = vmul.f32 -1.442695, %v190_v54  ;;  %v188_v53 = vadd.f32 %v187_v46, %v141_v3  ;;  %v307_v3 = vstv %s925_s4  ;;  %s130_s4 = sadd.s32 1, %s925_s4  }
 0x11e   : > { %vm308_vm12 = vcmp.lt.s32.totalorder %v307_v3, %v986_v5  ;;  %p127_p0 = scmp.ge.s32.totalorder %s130_s4, 15  }
 0x11f   : > { %791 = vpow2.f32 %v744_v55  ;;  %v273_v55 = vpop.f32.mrf.mxu3  ;;  %s936_s7 = smov (%p127_p0), 64  }
 0x123   : > { %v790_v56 = vpop.eup %789 }
 0x124   : > { %v280_v57 = vadd.f32 1.0, %v790_v56 }
 0x125   : > { %v792_v58 = vpop.eup %791 }
 0x126   : > { %793 = vrcp.f32 %v280_v57  ;;  %v194_v59 = vadd.f32 1.0, %v792_v58  ;;  %vm286_vm6 = vweird.f32 %v280_v57  ;;  %v292_v45 = vand.u32 2147483648, %v280_v57  ;;  %v138_v58 = vld [vmem:[%s1124_s25 + $0x8] sm:$0x3f] }
 0x127   : > { %v290_v48 = vand.u32 2147483647, %v280_v57 }
 0x128   : > { %795 = vrcp.f32 %v194_v59  ;;  %v206_v4 = vand.u32 2147483648, %v194_v59  ;;  %v204_v44 = vand.u32 2147483647, %v194_v59  ;;  %vm200_vm8 = vweird.f32 %v194_v59 }
 0x129   : > { %v293_v56 = vor.u32 1.1754944e-38, %v292_v45  ;;  %vm291_vm11 = vcmp.eq.f32.partialorder %v290_v48, 8.507059e+37  ;;  %v312_v48 = vstv %s133_s17 }
 0x12a   : > { %v207_v51 = vor.u32 1.1754944e-38, %v206_v4  ;;  %vm205_vm10 = vcmp.eq.f32.partialorder %v204_v44, 8.507059e+37  ;;  %vm313_vm13 = vcmp.lt.s32.totalorder %v312_v48, %v986_v5 }
 0x12c   : > { %v794_v60 = vpop.eup %793 }
 0x12d   : > { %v282_v61 = vmul.f32 %v794_v60, %v280_v57  ;;  %vm287_vm4 = vweird.f32 %v794_v60 }
 0x12e   : > { %v796_v62 = vpop.eup %795  ;;  %vm1130_vm7 = vmor %vm286_vm6, %vm287_vm4 }
 0x12f   : > { %v283_v63 = vsub.f32 1.0, %v282_v61  ;;  %v196_v0 = vmul.f32 %v796_v62, %v194_v59  ;;  %vm201_vm5 = vweird.f32 %v796_v62  ;;  %v274_v59 = vadd.f32 %v273_v55, %v228_v50 }
 0x130   : > { %vm202_vm9 = vmor %vm200_vm8, %vm201_vm5 }
 0x131   : > { %v284_v1 = vmul.f32 %v794_v60, %v283_v63  ;;  %v197_v2 = vsub.f32 1.0, %v196_v0 }
 0x133   : > { %v285_v42 = vadd.f32 %v794_v60, %v284_v1  ;;  %v198_v43 = vmul.f32 %v796_v62, %v197_v2  ;;  %v225_v2 = vld [vmem:[%s1118_s22 + $0x8] sm:$0x3f] }
 0x135   : > { %v199_v49 = vadd.f32 %v796_v62, %v198_v43  ;;  %v289_v52 = vsel %vm1130_vm7, %v794_v60, %v285_v42 }
 0x136   : > { %v294_v63 = vsel %vm291_vm11, %v293_v56, %v289_v52 }
 0x137   : > { %v203_v54 = vsel %vm202_vm9, %v796_v62, %v199_v49  ;;  %v296_v1 = vmul.f32 %v294_v63, %v274_v59  ;;  %v299_v47 = vsub.f32 1.0, %v294_v63  ;;  %v305_v50 = vmul.f32 %v917_v40, %v294_v63 }
 0x138   : > { %v208_v61 = vsel %vm205_vm10, %v207_v51, %v203_v54 }
 0x139   : > { %v210_v57 = vmul.f32 %v208_v61, %v188_v53  ;;  %v297_v4 = vadd.f32 %v296_v1, %v225_v2  ;;  %v213_v62 = vsub.f32 1.0, %v208_v61  ;;  %v219_v44 = vmul.f32 %v921_v41, %v208_v61 }
 0x13b   : > { %v211_v0 = vadd.f32 %v210_v57, %v138_v58 }
 0x13d   : > { %797 = vtanh.f32 %v211_v0 }
 0x13e   : > { %799 = vtanh.f32 %v297_v4 }
 0x143   : > { %v798_v43 = vpop.eup %797 }
 0x144   : > { %215 = vrot.lane.b32.xlu1 %v798_v43, %s935_s5  ;;  %v800_v60 = vpop.eup %799 }
 0x14c   : > { %301 = vrot.lane.b32.xlu1 %v800_v60, %s935_s5 }
 0x1b6   : > { %v216_v42 = vpop.permute.xlu1 %215 }
 0x1b7   : > { %v218_v45 = vmul.f32 %v216_v42, %v213_v62 }
 0x1b9   : > { %v220_v46 = vadd.f32 %v219_v44, %v218_v45 }
 0x1bb   : > { %v311_v41 = vsel %vm308_vm12, %v220_v46, %v921_v41  }
 0x1bc   : > { %319 = vrot.lane.b32.xlu2 %v311_v41, %s935_s5 }
 0x1be   : > { %v302_v49 = vpop.permute.xlu1 %301 }
 0x1bf   : > { %v304_v51 = vmul.f32 %v302_v49, %v299_v47 }
 0x1c1   : > { %v306_v52 = vadd.f32 %v305_v50, %v304_v51 }
 0x1c3   : > { %v316_v40 = vsel %vm313_vm13, %v306_v52, %v917_v40  }
 0x1c4   : > { %327 = vrot.lane.b32.xlu2 %v316_v40, %s935_s5 }
 0x216   : > { %v320_v53 = vpop.permute.xlu2 %319 }
 0x217   : > { %751 = vst.msk [vmem:[%s725_s28 + $0x8] sm:$0x3f] %vm116_vm0, %v320_v53 }
 0x21b   :  { %129 = sbr.rel (!%p127_p0) target bundleno = 30 (0x1e), region = 118 }
 0x21e   : > { %v328_v54 = vpop.permute.xlu2 %327  ;;  %v460_v33 = vld [vmem:[#allocation2 + $0x8] sm:$0x3f] (%p127_p0)  ;;  %v462_v34 = vld [vmem:[#allocation2 + $0x10] sm:$0x3f] (%p127_p0)  ;;  %v466_v40 = vld [vmem:[#allocation2 + $0x18] sm:$0x3f] (%p127_p0) }
 0x21f   : > { %332 = vst.msk [vmem:[%s331_s30] sm:$0x3f] %vm116_vm0, %v328_v54  ;;  %v463_v39 = vmax.f32 (%p127_p0), %v460_v33, %v462_v34  ;;  %v481_v44 = vld [vmem:[#allocation2 + $0x20] sm:$0x3f] (%p127_p0)  ;;  %v483_v45 = vld [vmem:[#allocation2 + $0x28] sm:$0x3f] (%p127_p0) }
 0x220   :  { %v484_v51 = vmax.f32 %v481_v44, %v483_v45  ;;  %v487_v52 = vld [vmem:[#allocation2 + $0x30] sm:$0x3f]  ;;  %v502_v54 = vld [vmem:[#allocation2 + $0x38] sm:$0x3f] }
 0x221   :  { %v467_v42 = vmax.f32 %v463_v39, %v466_v40  ;;  %v609_v33 = vld [vmem:[#allocation2 + $0x30] sm:$0x3f] }
 0x222   :  { %v488_v53 = vmax.f32 %v484_v51, %v487_v52  ;;  %v349_v51 = vld [vmem:[#allocation2 + $0x10] sm:$0x3f]  ;;  %v353_v52 = vld [vmem:[#allocation2 + $0x18] sm:$0x3f] }
 0x226   :  { %v461_v55 = vld [vmem:[#allocation3 + $0x8] sm:$0x3f]  ;;  %v464_v56 = vld [vmem:[#allocation3 + $0x10] sm:$0x3f]  ;;  %v468_v61 = vld [vmem:[#allocation3 + $0x18] sm:$0x3f] }
 0x227   :  { %v465_v58 = vmax.f32 %v461_v55, %v464_v56  ;;  %v482_v57 = vld [vmem:[#allocation3 + $0x20] sm:$0x3f]  ;;  %v485_v63 = vld [vmem:[#allocation3 + $0x28] sm:$0x3f]  ;;  %v503_v59 = vld [vmem:[#allocation3 + $0x38] sm:$0x3f] }
 0x228   :  { %v506_v0 = vld [vmem:[#allocation3 + $0x40] sm:$0x3f]  ;;  %v510_v4 = vld [vmem:[#allocation3 + $0x48] sm:$0x3f]  ;;  %v524_v43 = vld [vmem:[#allocation3 + $0x50] sm:$0x3f]  ;;  %v486_v41 = vmax.f32 %v482_v57, %v485_v63 }
 0x229   :  { %v469_v1 = vmax.f32 %v465_v58, %v468_v61  ;;  %v507_v2 = vmax.f32 %v503_v59, %v506_v0  ;;  %v527_v60 = vld [vmem:[#allocation3 + $0x58] sm:$0x3f]  ;;  %v545_v62 = vld [vmem:[#allocation3 + $0x8] sm:$0x3f]  ;;  %v489_v5 = vld [vmem:[#allocation3 + $0x30] sm:$0x3f] }
 0x22a   :  { %547 = vrot.lane.b32.xlu2 %v545_v62, %s936_s7  ;;  %v528_v6 = vmax.f32 %v524_v43, %v527_v60  ;;  %v531_v7 = vld [vmem:[#allocation3 + $0x60] sm:$0x3f]  ;;  %v490_v8 = vmax.f32 %v486_v41, %v489_v5  ;;  %v558_v9 = vld [vmem:[#allocation3 + $0x10] sm:$0x3f]  ;;  %v571_v11 = vld [vmem:[#allocation3 + $0x18] sm:$0x3f] }
 0x22b   :  { %471 = vrot.lane.b32.xlu0 %v469_v1, %s936_s7  ;;  %v511_v3 = vmax.f32 %v507_v2, %v510_v4  ;;  %v597_v12 = vld [vmem:[#allocation3 + $0x28] sm:$0x3f]  ;;  %v584_v13 = vld [vmem:[#allocation3 + $0x20] sm:$0x3f]  ;;  %v610_v14 = vld [vmem:[#allocation3 + $0x30] sm:$0x3f] }
 0x22c   :  { %v532_v10 = vmax.f32 %v528_v6, %v531_v7  ;;  %v636_v15 = vld [vmem:[#allocation3 + $0x40] sm:$0x3f]  ;;  %v623_v16 = vld [vmem:[#allocation3 + $0x38] sm:$0x3f]  ;;  %v649_v17 = vld [vmem:[#allocation3 + $0x48] sm:$0x3f] }
 0x22d   :  { %513 = vrot.lane.b32.xlu1 %v511_v3, %s936_s7  ;;  %v662_v18 = vld [vmem:[#allocation3 + $0x50] sm:$0x3f]  ;;  %v688_v19 = vld [vmem:[#allocation3 + $0x60] sm:$0x3f]  ;;  %v356_v21 = vld [vmem:[#allocation3 + $0x18] sm:$0x3f] }
 0x22e   :  { %v351_v20 = vld [vmem:[#allocation3 + $0x10] sm:$0x3f]  ;;  %v701_v23 = vld [vmem:[#allocation3 + $0x68] sm:$0x3f]  ;;  %v367_v24 = vld [vmem:[#allocation3 + $0x20] sm:$0x3f] }
 0x22f   :  { %v357_v22 = vmax.f32 %v351_v20, %v356_v21  ;;  %v372_v25 = vld [vmem:[#allocation3 + $0x28] sm:$0x3f]  ;;  %v399_v26 = vld [vmem:[#allocation3 + $0x40] sm:$0x3f]  ;;  %v415_v30 = vld [vmem:[#allocation3 + $0x50] sm:$0x3f] }
 0x230   :  { %v373_v27 = vmax.f32 %v367_v24, %v372_v25  ;;  %v404_v28 = vld [vmem:[#allocation3 + $0x48] sm:$0x3f]  ;;  %v420_v31 = vld [vmem:[#allocation3 + $0x58] sm:$0x3f]  ;;  %v447_v32 = vld [vmem:[#allocation3 + $0x70] sm:$0x3f] }
 0x231   :  { %v405_v29 = vmax.f32 %v399_v26, %v404_v28  ;;  %v421_v35 = vmax.f32 %v415_v30, %v420_v31  ;;  %v452_v36 = vld [vmem:[#allocation3 + $0x78] sm:$0x3f]  ;;  %v334_v46 = vld [vmem:[#allocation3] sm:$0x3f]  ;;  %v339_v47 = vld [vmem:[#allocation3 + $0x8] sm:$0x3f] }
 0x232   :  { %560 = vrot.lane.b32.xlu2 %v558_v9, %s936_s7  ;;  %v675_v37 = vld [vmem:[#allocation3 + $0x58] sm:$0x3f]  ;;  %v453_v38 = vmax.f32 %v447_v32, %v452_v36  ;;  %v340_v48 = vmax.f32 %v334_v46, %v339_v47  ;;  %v504_v55 = vld [vmem:[#allocation2 + $0x40] sm:$0x3f]  ;;  %v383_v56 = vld [vmem:[#allocation3 + $0x30] sm:$0x3f] }
 0x233   :  { %492 = vrot.lane.b32.xlu0 %v490_v8, %s936_s7  ;;  %v388_v58 = vld [vmem:[#allocation3 + $0x38] sm:$0x3f]  ;;  %v505_v0 = vmax.f32 %v502_v54, %v504_v55  ;;  %v508_v1 = vld [vmem:[#allocation2 + $0x48] sm:$0x3f]  ;;  %v523_v43 = vld [vmem:[#allocation2 + $0x50] sm:$0x3f]  ;;  %v354_v55 = vmax.f32 %v349_v51, %v353_v52 }
 0x234   :  { %v389_v57 = vmax.f32 %v383_v56, %v388_v58  ;;  %v525_v60 = vld [vmem:[#allocation2 + $0x58] sm:$0x3f]  ;;  %v431_v62 = vld [vmem:[#allocation3 + $0x60] sm:$0x3f]  ;;  %v436_v41 = vld [vmem:[#allocation3 + $0x68] sm:$0x3f] }
 0x235   :  { %534 = vrot.lane.b32.xlu1 %v532_v10, %s936_s7  ;;  %v509_v2 = vmax.f32 %v505_v0, %v508_v1  ;;  %v437_v5 = vmax.f32 %v431_v62, %v436_v41  ;;  %v526_v7 = vmax.f32 %v523_v43, %v525_v60  ;;  %v529_v8 = vld [vmem:[#allocation2 + $0x60] sm:$0x3f]  ;;  %v570_v21 = vld [vmem:[#allocation2 + $0x18] sm:$0x3f]  ;;  %v648_v58 = vld [vmem:[#allocation2 + $0x48] sm:$0x3f] }
 0x236   :  { %v583_v25 = vld [vmem:[#allocation2 + $0x20] sm:$0x3f]  ;;  %v369_v43 = vld [vmem:[#allocation2 + $0x28] sm:$0x3f] }
 0x237   :  { %v530_v9 = vmax.f32 %v526_v7, %v529_v8  ;;  %v635_v47 = vld [vmem:[#allocation2 + $0x40] sm:$0x3f]  ;;  %v401_v62 = vld [vmem:[#allocation2 + $0x48] sm:$0x3f]  ;;  %v381_v7 = vld [vmem:[#allocation2 + $0x30] sm:$0x3f] }
 0x238   :  { %v333_v56 = vld [vmem:[#allocation2] sm:$0x3f]  ;;  %v385_v8 = vld [vmem:[#allocation2 + $0x38] sm:$0x3f] }
 0x239   :  { %v397_v60 = vld [vmem:[#allocation2 + $0x40] sm:$0x3f] }
 0x23a   :  { %599 = vrot.lane.b32.xlu2 %v597_v12, %s936_s7 }
 0x23b   :  { %573 = vrot.lane.b32.xlu0 %v571_v11, %s936_s7 }
 0x23d   :  { %586 = vrot.lane.b32.xlu1 %v584_v13, %s936_s7 }
 0x242   :  { %638 = vrot.lane.b32.xlu2 %v636_v15, %s936_s7 }
 0x243   :  { %612 = vrot.lane.b32.xlu0 %v610_v14, %s936_s7  ;;  %v544_v14 = vld [vmem:[#allocation2 + $0x8] sm:$0x3f] }
 0x245   :  { %625 = vrot.lane.b32.xlu1 %v623_v16, %s936_s7 }
 0x24a   :  { %677 = vrot.lane.b32.xlu2 %v675_v37, %s936_s7 }
 0x24b   :  { %651 = vrot.lane.b32.xlu0 %v649_v17, %s936_s7  ;;  %v557_v17 = vld [vmem:[#allocation2 + $0x10] sm:$0x3f] }
 0x24d   :  { %664 = vrot.lane.b32.xlu1 %v662_v18, %s936_s7 }
 0x252   :  { %342 = vrot.lane.b32.xlu2 %v340_v48, %s936_s7 }
 0x253   :  { %690 = vrot.lane.b32.xlu0 %v688_v19, %s936_s7 }
 0x255   :  { %703 = vrot.lane.b32.xlu1 %v701_v23, %s936_s7 }
 0x25a   :  { %391 = vrot.lane.b32.xlu2 %v389_v57, %s936_s7 }
 0x25b   :  { %359 = vrot.lane.b32.xlu0 %v357_v22, %s936_s7 }
 0x25d   :  { %375 = vrot.lane.b32.xlu1 %v373_v27, %s936_s7 }
 0x262   :  { %439 = vrot.lane.b32.xlu2 %v437_v5, %s936_s7  ;;  %v402_v5 = vmax.f32 %v397_v60, %v401_v62 }
 0x263   :  { %407 = vrot.lane.b32.xlu0 %v405_v29, %s936_s7  ;;  %v596_v29 = vld [vmem:[#allocation2 + $0x28] sm:$0x3f] }
 0x265   :  { %423 = vrot.lane.b32.xlu1 %v421_v35, %s936_s7 }
 0x26b   :  { %455 = vrot.lane.b32.xlu0 %v453_v38, %s936_s7  ;;  %v622_v38 = vld [vmem:[#allocation2 + $0x38] sm:$0x3f] }
 0x284   :  { %v548_v13 = vpop.permute.xlu2 %547 }
 0x285   :  { %v550_v15 = vsel %vm147_vm3, %v544_v14, %v548_v13 }
 0x28c   :  { %v561_v18 = vpop.permute.xlu2 %560 }
 0x28d   :  { %v563_v19 = vsel %vm147_vm3, %v557_v17, %v561_v18  ;;  %v413_v17 = vld [vmem:[#allocation2 + $0x50] sm:$0x3f]  ;;  %v417_v18 = vld [vmem:[#allocation2 + $0x58] sm:$0x3f] }
 0x294   :  { %v600_v30 = vpop.permute.xlu2 %599 }
 0x295   :  { %v602_v31 = vsel %vm147_vm3, %v596_v29, %v600_v30  ;;  %v674_v30 = vld [vmem:[#allocation2 + $0x58] sm:$0x3f] }
 0x29c   :  { %v639_v39 = vpop.permute.xlu2 %638 }
 0x29d   :  { %v472_v49 = vpop.permute.xlu0 %471 }
 0x29e   :  { %v474_v50 = vsel %vm147_vm3, %v467_v42, %v472_v49  ;;  %v641_v49 = vsel %vm147_vm3, %v635_v47, %v639_v39 }
 0x29f   :  { %476 = vst.sshfl [vmem:[#allocation1] sm:$0xff pattern:$0x73625140] %v474_v50  ;;  %v514_v4 = vpop.permute.xlu1 %513 }
 0x2a0   :  { %v516_v3 = vsel %vm147_vm3, %v509_v2, %v514_v4  ;;  %v365_v4 = vld [vmem:[#allocation2 + $0x20] sm:$0x3f] }
 0x2a1   :  { %v370_v41 = vmax.f32 %v365_v4, %v369_v43 }
 0x2a4   :  { %v1229_v45 = vpop.permute.xlu2 %677 }
 0x2a5   :  { %v493_v61 = vpop.permute.xlu0 %492 }
 0x2a6   :  { %v478_v63 = vld [vmem:[#allocation1 + $0x1] ss:$4 sm:$0xff]  ;;  %v495_v59 = vsel %vm147_vm3, %v488_v53, %v493_v61 }
 0x2a7   :  { %480 = vst [vmem:[%s1303_s6 + $0x10] sm:$0x3] %v478_v63  ;;  %v535_v10 = vpop.permute.xlu1 %534  ;;  %v336_v53 = vld [vmem:[#allocation2 + $0x8] sm:$0x3f] }
 0x2a8   :  { %497 = vst.sshfl [vmem:[#allocation1] sm:$0xff pattern:$0x73625140] %v495_v59  ;;  %v537_v11 = vsel %vm147_vm3, %v530_v9, %v535_v10  ;;  %v337_v63 = vmax.f32 %v333_v56, %v336_v53  ;;  %v661_v9 = vld [vmem:[#allocation2 + $0x50] sm:$0x3f]  ;;  %v386_v10 = vmax.f32 %v381_v7, %v385_v8 }
 0x2ac   :  { %v343_v57 = vpop.permute.xlu2 %342 }
 0x2ad   :  { %v574_v22 = vpop.permute.xlu0 %573  ;;  %v346_v0 = vsel %vm147_vm3, %v337_v63, %v343_v57 }
 0x2ae   :  { %v576_v23 = vsel %vm147_vm3, %v570_v21, %v574_v22  ;;  %347 = vst [vmem:[%s1303_s6] sm:$0x3] %v346_v0  ;;  %v449_v22 = vld [vmem:[#allocation2 + $0x78] sm:$0x3f] }
 0x2af   :  { %v499_v6 = vld [vmem:[#allocation1 + $0x1] ss:$4 sm:$0xff]  ;;  %v587_v26 = vpop.permute.xlu1 %586 }
 0x2b0   :  { %501 = vst [vmem:[%s1303_s6 + $0x12] sm:$0x3] %v499_v6  ;;  %v589_v27 = vsel %vm147_vm3, %v583_v25, %v587_v26  ;;  %v433_v25 = vld [vmem:[#allocation2 + $0x68] sm:$0x3f] }
 0x2b1   :  { %518 = vst.sshfl [vmem:[#allocation1] sm:$0xff pattern:$0x73625140] %v516_v3 }
 0x2b5   :  { %v613_v34 = vpop.permute.xlu0 %612 }
 0x2b6   :  { %v615_v35 = vsel %vm147_vm3, %v609_v33, %v613_v34  ;;  %v680_v33 = vsel %vm147_vm3, %v674_v30, %v1229_v45 }
 0x2b7   :  { %v626_v37 = vpop.permute.xlu1 %625 }
 0x2b8   :  { %v520_v12 = vld [vmem:[#allocation1 + $0x1] ss:$4 sm:$0xff]  ;;  %v628_v42 = vsel %vm147_vm3, %v622_v38, %v626_v37 }
 0x2b9   :  { %522 = vst [vmem:[%s1303_s6 + $0x14] sm:$0x3] %v520_v12  ;;  %v700_v38 = vld [vmem:[#allocation2 + $0x68] sm:$0x3f] }
 0x2ba   :  { %539 = vst.sshfl [vmem:[#allocation1] sm:$0xff pattern:$0x73625140] %v537_v11  ;;  %v392_v11 = vpop.permute.xlu2 %391 }
 0x2bb   :  { %v394_v14 = vsel %vm147_vm3, %v386_v10, %v392_v11 }
 0x2bc   :  { %395 = vst [vmem:[%s1303_s6 + $0x6] sm:$0x3] %v394_v14 }
 0x2bd   :  { %v652_v40 = vpop.permute.xlu0 %651 }
 0x2be   :  { %v654_v1 = vsel %vm147_vm3, %v648_v58, %v652_v40 }
 0x2bf   :  { %v665_v48 = vpop.permute.xlu1 %664 }
 0x2c1   :  { %v541_v16 = vld [vmem:[#allocation1 + $0x1] ss:$4 sm:$0xff] }
 0x2c2   :  { %543 = vst [vmem:[%s1303_s6 + $0x16] sm:$0x3] %v541_v16  ;;  %v440_v29 = vpop.permute.xlu2 %439 }
 0x2c3   :  { %552 = vst.sshfl [vmem:[#allocation1] sm:$0xff pattern:$0x73625140] %v550_v15  ;;  %v667_v15 = vsel %vm147_vm3, %v661_v9, %v665_v48 }
 0x2c5   :  { %v1231_v46 = vpop.permute.xlu0 %690 }
 0x2c7   :  { %v1237_v54 = vpop.permute.xlu1 %703 }
 0x2c8   :  { %v706_v40 = vsel %vm147_vm3, %v700_v38, %v1237_v54 }
 0x2ca   :  { %v554_v20 = vld [vmem:[#allocation1 + $0x2] ss:$4 sm:$0xff] }
 0x2cb   :  { %556 = vst [vmem:[%s1303_s6 + $0x18] sm:$0x3] %v554_v20  ;;  %v445_v20 = vld [vmem:[#allocation2 + $0x70] sm:$0x3f] }
 0x2cc   :  { %565 = vst.sshfl [vmem:[#allocation1] sm:$0xff pattern:$0x73625140] %v563_v19  ;;  %v418_v19 = vmax.f32 %v413_v17, %v417_v18 }
 0x2cd   :  { %v360_v61 = vpop.permute.xlu0 %359 }
 0x2ce   :  { %v362_v59 = vsel %vm147_vm3, %v354_v55, %v360_v61 }
 0x2cf   :  { %363 = vst [vmem:[%s1303_s6 + $0x2] sm:$0x3] %v362_v59  ;;  %v376_v3 = vpop.permute.xlu1 %375 }
 0x2d0   :  { %v378_v12 = vsel %vm147_vm3, %v370_v41, %v376_v3 }
 0x2d1   :  { %379 = vst [vmem:[%s1303_s6 + $0x4] sm:$0x3] %v378_v12 }
 0x2d3   :  { %v567_v24 = vld [vmem:[#allocation1 + $0x2] ss:$4 sm:$0xff] }
 0x2d4   :  { %569 = vst [vmem:[%s1303_s6 + $0x1a] sm:$0x3] %v567_v24  ;;  %v429_v24 = vld [vmem:[#allocation2 + $0x60] sm:$0x3f] }
 0x2d5   :  { %578 = vst.sshfl [vmem:[#allocation1] sm:$0xff pattern:$0x73625140] %v576_v23  ;;  %v408_v6 = vpop.permute.xlu0 %407 }
 0x2d6   :  { %v410_v13 = vsel %vm147_vm3, %v402_v5, %v408_v6 }
 0x2d7   :  { %411 = vst [vmem:[%s1303_s6 + $0x8] sm:$0x3] %v410_v13  ;;  %v424_v21 = vpop.permute.xlu1 %423 }
 0x2d8   :  { %v426_v26 = vsel %vm147_vm3, %v418_v19, %v424_v21 }
 0x2d9   :  { %427 = vst [vmem:[%s1303_s6 + $0xa] sm:$0x3] %v426_v26 }
 0x2dc   :  { %v580_v28 = vld [vmem:[#allocation1 + $0x2] ss:$4 sm:$0xff] }
 0x2dd   :  { %582 = vst [vmem:[%s1303_s6 + $0x1c] sm:$0x3] %v580_v28  ;;  %v456_v23 = vpop.permute.xlu0 %455  ;;  %v434_v28 = vmax.f32 %v429_v24, %v433_v25 }
 0x2de   :  { %591 = vst.sshfl [vmem:[#allocation1] sm:$0xff pattern:$0x73625140] %v589_v27  ;;  %v450_v27 = vmax.f32 %v445_v20, %v449_v22 }
 0x2e5   :  { %v593_v32 = vld [vmem:[#allocation1 + $0x2] ss:$4 sm:$0xff] }
 0x2e6   :  { %595 = vst [vmem:[%s1303_s6 + $0x1e] sm:$0x3] %v593_v32  ;;  %v442_v32 = vsel %vm147_vm3, %v434_v28, %v440_v29 }
 0x2e7   :  { %604 = vst.sshfl [vmem:[#allocation1] sm:$0xff pattern:$0x73625140] %v602_v31  ;;  %v458_v31 = vsel %vm147_vm3, %v450_v27, %v456_v23 }
 0x2e8   :  { %459 = vst [vmem:[%s1303_s6 + $0xe] sm:$0x3] %v458_v31 }
 0x2e9   :  { %443 = vst [vmem:[%s1303_s6 + $0xc] sm:$0x3] %v442_v32 }
 0x2ee   :  { %v606_v36 = vld [vmem:[#allocation1 + $0x2] ss:$4 sm:$0xff] }
 0x2ef   :  { %608 = vst [vmem:[%s1303_s6 + $0x20] sm:$0x3] %v606_v36 }
 0x2f0   :  { %617 = vst.sshfl [vmem:[#allocation1] sm:$0xff pattern:$0x73625140] %v615_v35  ;;  %v687_v35 = vld [vmem:[#allocation2 + $0x60] sm:$0x3f] }
 0x2f1   :  { %v693_v37 = vsel %vm147_vm3, %v687_v35, %v1231_v46 }
 0x2f7   :  { %v619_v44 = vld [vmem:[#allocation1 + $0x2] ss:$4 sm:$0xff] }
 0x2f8   :  { %621 = vst [vmem:[%s1303_s6 + $0x22] sm:$0x3] %v619_v44 }
 0x2f9   :  { %630 = vst.sshfl [vmem:[#allocation1] sm:$0xff pattern:$0x73625140] %v628_v42 }
 0x300   :  { %v632_v50 = vld [vmem:[#allocation1 + $0x2] ss:$4 sm:$0xff] }
 0x301   :  { %634 = vst [vmem:[%s1303_s6 + $0x24] sm:$0x3] %v632_v50 }
 0x302   :  { %643 = vst.sshfl [vmem:[#allocation1] sm:$0xff pattern:$0x73625140] %v641_v49 }
 0x309   :  { %v645_v2 = vld [vmem:[#allocation1 + $0x2] ss:$4 sm:$0xff] }
 0x30a   :  { %647 = vst [vmem:[%s1303_s6 + $0x26] sm:$0x3] %v645_v2 }
 0x30b   :  { %656 = vst.sshfl [vmem:[#allocation1] sm:$0xff pattern:$0x73625140] %v654_v1 }
 0x312   :  { %v658_v16 = vld [vmem:[#allocation1 + $0x2] ss:$4 sm:$0xff] }
 0x313   :  { %660 = vst [vmem:[%s1303_s6 + $0x28] sm:$0x3] %v658_v16 }
 0x314   :  { %669 = vst.sshfl [vmem:[#allocation1] sm:$0xff pattern:$0x73625140] %v667_v15 }
 0x31b   :  { %v671_v34 = vld [vmem:[#allocation1 + $0x2] ss:$4 sm:$0xff] }
 0x31c   :  { %673 = vst [vmem:[%s1303_s6 + $0x2a] sm:$0x3] %v671_v34 }
 0x31d   :  { %682 = vst.sshfl [vmem:[#allocation1] sm:$0xff pattern:$0x73625140] %v680_v33 }
 0x324   :  { %v684_v36 = vld [vmem:[#allocation1 + $0x2] ss:$4 sm:$0xff] }
 0x325   :  { %686 = vst [vmem:[%s1303_s6 + $0x2c] sm:$0x3] %v684_v36 }
 0x326   :  { %695 = vst.sshfl [vmem:[#allocation1] sm:$0xff pattern:$0x73625140] %v693_v37 }
 0x32d   :  { %v697_v39 = vld [vmem:[#allocation1 + $0x2] ss:$4 sm:$0xff] }
 0x32e   :  { %699 = vst [vmem:[%s1303_s6 + $0x2e] sm:$0x3] %v697_v39 }
 0x32f   :  { %708 = vst.sshfl [vmem:[#allocation1] sm:$0xff pattern:$0x73625140] %v706_v40 }
 0x336   :  { %v710_v42 = vld [vmem:[#allocation1 + $0x2] ss:$4 sm:$0xff] }
 0x337   :  { %712 = vst [vmem:[%s1303_s6 + $0x30] sm:$0x3] %v710_v42 }
 0x338   :  { %717 = vsyncpa [#allocation5], 1 }
 0x339   :  { %718 = vsyncpa [#allocation7], 1 }
 0x33a   :  { %719 = vsyncpa [#allocation10], 1 }

// kernel: mltp_forward.3
= control target key start
LH: loop header
LB: loop body
LE: loop exit
PB: predicated region body
PF: predicated region fallthrough
CT: control target
= control target key end

     0   :  { %14 = vsyncpa [#allocation3], 0  ;;  %s1433_s0 = inlined_call_operand.vmem [shape: f32[3,30,128], index: 0, kind: input, shape index: {}]   ;;  %s1434_s1 = inlined_call_operand.vmem [shape: f32[3,128,64], index: 1, kind: input, shape index: {}]   ;;  %s1435_s2 = inlined_call_operand.hbm [shape: f32[3,1,64], index: 2, kind: input, shape index: {}]   ;;  %s1436_s3 = inlined_call_operand.hbm [shape: f32[64,192], index: 3, kind: input, shape index: {}]   ;;  %s1437_s4 = inlined_call_operand.hbm [shape: f32[1,192], index: 4, kind: input, shape index: {}]   ;;  %s1438_s5 = inlined_call_operand.hbm [shape: f32[64,192], index: 5, kind: input, shape index: {}]   ;;  %s1439_s6 = inlined_call_operand.hbm [shape: f32[1,192], index: 6, kind: input, shape index: {}]   ;;  %s1440_s7 = inlined_call_operand.vmem [shape: f32[3,30,192], index: 7, kind: output, shape index: {0}]   ;;  %s1441_s8 = inlined_call_operand.vmem [shape: f32[3,30,192], index: 8, kind: output, shape index: {1}]  }
   0x1   :  { %16 = vsyncpa [#allocation3 + $0x1], 0 }
   0x2   :  { %17 = vsyncpa [#allocation5], 0 }
   0x3   :  { %18 = vsyncpa [#allocation8], 0  ;;  %s1219_s27 = smov 0   ;;  %s1221_s28 = smov 0  }
   0x4   :  { %s1223_s29 = smov 0   ;;  %s1225_s30 = smov 0  }
   0x5 LB: > { %s254_s11 = sshll.u32 %s1436_s3, 4  ;;  %s1243_s12 = sadd.s32 4294967295, %s1166_s30   ;;  %s1166_s30 = sphi %s1225_s30, %s1449_s30   ;;  %s1162_s29 = sphi %s1223_s29, %s1448_s29   ;;  %s1158_s28 = sphi %s1221_s28, %s1447_s28   ;;  %s1154_s27 = sphi %s1219_s27, %s1446_s27   ;;  %s255_s11 = int_to_ptr.hbm [resolvable:$true] %s254_s11 }
   0x6   : > { %p842_p0 = scmp.ge.s32.totalorder %s1166_s30, 1  ;;  %p97_p1 = scmp.eq.s32.totalorder %s1243_s12, 0 }
   0x7   : > { %p243_p2 = scmp.lt.s32.totalorder %s1166_s30, 4  ;;  %s1168_s14 = smov [#allocation4]  }
   0x8   : > { %s256_s15 = sshll.u32 %s1168_s14, 4  ;;  %s280_s18 = sshll.u32 %s1438_s5, 4  ;;  %s257_s15 = int_to_ptr.vmem [resolvable:$true] %s256_s15  ;;  %s281_s18 = int_to_ptr.hbm [resolvable:$true] %s280_s18 }
   0x9   : > { %p1248_p3 = pnand %p842_p0, %p243_p2  ;;  %s269_s22 = sshll.u32 %s1437_s4, 4  ;;  %s270_s22 = int_to_ptr.hbm [resolvable:$true] %s269_s22 }
   0xa   : > { %s1169_s23 = smov [#allocation7]   ;;  %s1170_s25 = smov 256  }
   0xb   : > { %p909_p4 = pneg %p1248_p3  ;;  %s282_s24 = sshll.u32 %s1169_s23, 4  ;;  %s283_s24 = int_to_ptr.vmem [resolvable:$true] %s282_s24 }
   0xc   : > { %s1171_s26 = smov 16   ;;  %s295_s14 = sshll.u32 %s1439_s6, 4  ;;  %s296_s14 = int_to_ptr.hbm [resolvable:$true] %s295_s14 }
   0xd   : > { %p1259_p5 = pnand %p909_p4, %p97_p1  ;;  %s1172_s16 = smov [#allocation6]  }
   0xe   : > { %s271_s17 = sshll.u32 %s1172_s16, 4  ;;  %s83_s20 = sadd.s32 1, %s1162_s29  ;;  %s272_s17 = int_to_ptr.vmem [resolvable:$true] %s271_s17 }
   0xf   : > { %912 = dma.hbm_to_vmem [thread:$0]  (!%p1259_p5), %s255_s11, 2048, %s257_s15, [#allocation5], %s1170_s25, %s1170_s25, %s1171_s26  }
  0x10   : > { %918 = dma.hbm_to_vmem [thread:$0]  (!%p1259_p5), %s281_s18, 2048, %s283_s24, [#allocation8], %s1170_s25, %s1170_s25, %s1171_s26  }
  0x11   : > { %915 = dma.hbm_to_vmem [thread:$0]  (!%p1259_p5), %s270_s22, 32, %s272_s17, [#allocation5]  }
  0x12   : > { %s1173_s11 = smov [#allocation9]   ;;  %s1278_s18 = sadd.s32 1, %s1166_s30  }
  0x13   : > { %s297_s15 = sshll.u32 %s1173_s11, 4  ;;  %s80_s21 = ssub.s32 %s1166_s30, %s1278_s18  ;;  %s298_s15 = int_to_ptr.vmem [resolvable:$true] %s297_s15 }
  0x14   : > { %921 = dma.hbm_to_vmem [thread:$0]  (!%p1259_p5), %s296_s14, 32, %s298_s15, [#allocation8]  }
  0x15   : > { %p90_p6 = scmp.ne.s32.totalorder %s1162_s29, %s1158_s28  ;;  %p81_p7 = scmp.eq.s32.totalorder %s80_s21, 0 }
  0x16   : > { %p91_p8 = scmp.eq.s32.totalorder %s1166_s30, 0  ;;  %p96_p9 = scmp.ne.s32.totalorder %s1158_s28, %s1154_s27 }
  0x17   : > { %p930_p10 = scmp.lt.s32.totalorder %s1166_s30, 3  ;;  %s324_s19 = sand.u32 1, %s1162_s29  }
  0x18   : > { %s1290_s23 = scalar_select %p81_p7, %s1162_s29, %s83_s20  }
  0x19   : > { %p92_p11 = por %p91_p8, %p90_p6  ;;  %p1294_p12 = por %p97_p1, %p96_p9 }
  0x1a   : > { %s330_s26 = scalar_lea.hbm %s1435_s2, %s1166_s30  ;;  %s327_s10 = scalar_lea.vmem [#allocation2], %s324_s19 }
  0x1b   : > { %s332_s9 = sshll.u32 %s330_s26, 4  ;;  %s334_s14 = sshll.u32 %s327_s10, 4  ;;  %s333_s9 = int_to_ptr.hbm [resolvable:$true] %s332_s9  ;;  %s335_s14 = int_to_ptr.vmem [resolvable:$true] %s334_s14 }
  0x1c   : > { %p1303_p13 = pnand %p930_p10, %p92_p11  ;;  %s325_s16 = scalar_lea.sflag [#allocation3], %s324_s19 }
  0x1d   : > { %s1094_s17 = sshra.s32 %s333_s9, 4  ;;  %s1101_s20 = scalar_lea.hbm %s1435_s2, 3  ;;  %s1095_s17 = int_to_ptr.hbm [resolvable:$true] %s1094_s17 }
  0x1e   : > { %s1096_s11 = scalar_lea.hbm %s1095_s17, 1  ;;  %p1098_p2 = pneg %p1303_p13 }
  0x1f   : > { %p1097_p0 = scmp.ne.s32.totalorder %s1095_s17, %s1096_s11  ;;  %p1102_p6 = scmp.lt.s32.totalorder %s1095_s17, %s1435_s2 }
  0x20   : > { %p1103_p7 = scmp.lt.s32.totalorder %s1101_s20, %s1096_s11 }
  0x21   : > { %p1099_p4 = pnand %p1098_p2, %p1097_p0 }
  0x22   : > { %p1104_p8 = por %p1103_p7, %p1102_p6 }
  0x23   : > { %p1100_p5 = pneg %p1099_p4 }
  0x25   : > { %p1105_p9 = pnand %p1104_p8, %p1100_p5 }
  0x27   : > { %1108 = shalt.err (!%p1105_p9)
}
  0x28   : > { %925 = dma.hbm_to_vmem [thread:$0]  (!%p1303_p13), %s333_s9, 16, %s335_s14, %s325_s16  }
  0x29   : > { %343 = sbr.rel (%p1248_p3) target bundleno = 409 (0x199), region = 48  ;;  %s345_s19 = sand.u32 (!%p1248_p3), 1, %s1158_s28  }
  0x2a   : > { %s346_s25 = scalar_lea.sflag (!%p1248_p3), [#allocation3], %s345_s19  ;;  %s1320_s26 = scalar_lea.vmem (!%p1248_p3), [#allocation2], %s345_s19 }
  0x2e   : > { %1141 = dma.done.wait (%p1294_p12), %s346_s25, 16  }
  0x2f   : > { %1143 = vsyncadd (%p1294_p12), %s346_s25, 4294967280 }
  0x30   : > { %1145 = dma.done.wait (%p97_p1), [#allocation5], 2080  }
  0x31   : > { %1147 = vsyncadd (%p97_p1), [#allocation5], 4294965216 }
  0x32   : > { %1149 = dma.done.wait (%p97_p1), [#allocation8], 2080  }
  0x33   : > { %1151 = vsyncadd (%p97_p1), [#allocation8], 4294965216  ;;  %p416_p3 = scmp.lt.s32.totalorder %s1243_s12, 2  ;;  %v507_v14 = vld [vmem:[#allocation4 + $0x70] sm:$0xff]  ;;  %v505_v16 = vld [vmem:[#allocation4 + $0x60] sm:$0xff]  ;;  %vm515_vm0 = vcmask 523264  }
  0x34   : > { %v609_v15 = vld [vmem:[#allocation7 + $0x70] sm:$0xff]  ;;  %536 = vmatpush.msra.mxu1 %v507_v14  ;;  %v607_v17 = vld [vmem:[#allocation7 + $0x60] sm:$0xff]  ;;  %883 = vmatpush.msra.mxu2 %v507_v14  ;;  %v610_v36 = vld [vmem:[#allocation7 + $0x78] sm:$0xff]  ;;  %vm593_vm1 = vcmask 521216  }
  0x35   : > { %s1451_s12 = smov (!%p416_p3, %s1243_s12), 2  ;;  %625 = vmatpush.msra.mxu3 %v609_v15  ;;  %v503_v19 = vld [vmem:[#allocation4 + $0x50] sm:$0xff]  ;;  %v501_v22 = vld [vmem:[#allocation4 + $0x40] sm:$0xff]  ;;  %v508_v44 = vld [vmem:[#allocation4 + $0x78] sm:$0xff] }
  0x36   : > { %s880_s13 = sshll.u32 %s1451_s12, 7  ;;  %s879_s14 = sshll.u32 %s1451_s12, 5  ;;  %537 = vmatpush.msra.mxu1 %v505_v16  ;;  %v605_v20 = vld [vmem:[#allocation7 + $0x50] sm:$0xff]  ;;  %884 = vmatpush.msra.mxu2 %v505_v16  ;;  %v603_v24 = vld [vmem:[#allocation7 + $0x40] sm:$0xff]  ;;  %v608_v37 = vld [vmem:[#allocation7 + $0x68] sm:$0xff] }
  0x37   : > { %s1342_s10 = scalar_lea.vmem %s1434_s1, %s880_s13  ;;  %s1363_s17 = scalar_lea.vmem %s1433_s0, %s879_s14  ;;  %626 = vmatpush.msra.mxu3 %v607_v17  ;;  %v499_v25 = vld [vmem:[#allocation4 + $0x30] sm:$0xff]  ;;  %v497_v30 = vld [vmem:[#allocation4 + $0x20] sm:$0xff]  ;;  %v506_v45 = vld [vmem:[#allocation4 + $0x68] sm:$0xff] }
  0x38   : > { %v455_v0 = vld [vmem:[%s1342_s10 + $0x78] sm:$0xff]  ;;  %v454_v1 = vld [vmem:[%s1342_s10 + $0x70] sm:$0xff]  ;;  %v453_v2 = vld [vmem:[%s1342_s10 + $0x68] sm:$0xff]  ;;  %538 = vmatpush.msra.mxu1 %v503_v19  ;;  %885 = vmatpush.msra.mxu2 %v503_v19  ;;  %s881_s11 = sshll.u32 %s1451_s12, 6 }
  0x39   : > { %460 = vmatpush.msra.mxu0 %v455_v0  ;;  %v452_v3 = vld [vmem:[%s1342_s10 + $0x60] sm:$0xff]  ;;  %v451_v4 = vld [vmem:[%s1342_s10 + $0x58] sm:$0xff]  ;;  %v450_v5 = vld [vmem:[%s1342_s10 + $0x50] sm:$0xff]  ;;  %627 = vmatpush.msra.mxu3 %v605_v20  ;;  %s1391_s20 = scalar_lea.vmem %s1440_s7, %s881_s11  ;;  %s1397_s19 = scalar_lea.vmem %s1441_s8, %s881_s11 }
  0x3a   : > { %v449_v6 = vld [vmem:[%s1342_s10 + $0x48] sm:$0xff]  ;;  %v448_v7 = vld [vmem:[%s1342_s10 + $0x40] sm:$0xff]  ;;  %v447_v8 = vld [vmem:[%s1342_s10 + $0x38] sm:$0xff]  ;;  %539 = vmatpush.msra.mxu1 %v501_v22  ;;  %886 = vmatpush.msra.mxu2 %v501_v22 }
  0x3b   : > { %461 = vmatpush.msra.mxu0 %v454_v1  ;;  %v446_v9 = vld [vmem:[%s1342_s10 + $0x30] sm:$0xff]  ;;  %v445_v10 = vld [vmem:[%s1342_s10 + $0x28] sm:$0xff]  ;;  %v444_v11 = vld [vmem:[%s1342_s10 + $0x20] sm:$0xff]  ;;  %628 = vmatpush.msra.mxu3 %v603_v24 }
  0x3c   : > { %v443_v12 = vld [vmem:[%s1342_s10 + $0x18] sm:$0xff]  ;;  %v442_v13 = vld [vmem:[%s1342_s10 + $0x10] sm:$0xff]  ;;  %v441_v18 = vld [vmem:[%s1342_s10 + $0x8] sm:$0xff]  ;;  %540 = vmatpush.msra.mxu1 %v499_v25  ;;  %887 = vmatpush.msra.mxu2 %v499_v25 }
  0x3d   : > { %462 = vmatpush.msra.mxu0 %v453_v2  ;;  %v440_v21 = vld [vmem:[%s1342_s10] sm:$0xff]  ;;  %v601_v26 = vld [vmem:[#allocation7 + $0x30] sm:$0xff]  ;;  %v437_v27 = vld [vmem:[%s1363_s17 + $0x8] sm:$0xff] }
  0x3e   : > { %v436_v23 = vld [vmem:[%s1363_s17] sm:$0xff]  ;;  %629 = vmatpush.msra.mxu3 %v601_v26  ;;  %v438_v28 = vld [vmem:[%s1363_s17 + $0x10] sm:$0xff]  ;;  %v439_v29 = vld [vmem:[%s1363_s17 + $0x18] sm:$0x3f]  ;;  %541 = vmatpush.msra.mxu1 %v497_v30 }
  0x3f   : > { %463 = vmatpush.msra.mxu0 %v452_v3  ;;  %v599_v31 = vld [vmem:[#allocation7 + $0x20] sm:$0xff]  ;;  %v495_v32 = vld [vmem:[#allocation4 + $0x10] sm:$0xff]  ;;  %888 = vmatpush.msra.mxu2 %v497_v30  ;;  %v606_v38 = vld [vmem:[#allocation7 + $0x58] sm:$0xff] }
  0x40   : > { %630 = vmatpush.msra.mxu3 %v599_v31  ;;  %v597_v33 = vld [vmem:[#allocation7 + $0x10] sm:$0xff]  ;;  %542 = vmatpush.msra.mxu1 %v495_v32  ;;  %v493_v34 = vld [vmem:[#allocation4] sm:$0xff]  ;;  %v604_v39 = vld [vmem:[#allocation7 + $0x48] sm:$0xff] }
  0x41   : > { %464 = vmatpush.msra.mxu0 %v451_v4  ;;  %v595_v35 = vld [vmem:[#allocation7] sm:$0xff]  ;;  %889 = vmatpush.msra.mxu2 %v495_v32  ;;  %v602_v40 = vld [vmem:[#allocation7 + $0x38] sm:$0xff]  ;;  %v600_v41 = vld [vmem:[#allocation7 + $0x28] sm:$0xff] }
  0x42   : > { %631 = vmatpush.msra.mxu3 %v597_v33  ;;  %543 = vmatpush.msra.mxu1 %v493_v34  ;;  %v598_v42 = vld [vmem:[#allocation7 + $0x18] sm:$0xff]  ;;  %v596_v43 = vld [vmem:[#allocation7 + $0x8] sm:$0xff]  ;;  %v611_v4 = vld [vmem:[#allocation9] sm:$0x3] }
  0x43   : > { %465 = vmatpush.msra.mxu0 %v450_v5  ;;  %890 = vmatpush.msra.mxu2 %v493_v34  ;;  %v504_v46 = vld [vmem:[#allocation4 + $0x58] sm:$0xff]  ;;  %v502_v47 = vld [vmem:[#allocation4 + $0x48] sm:$0xff]  ;;  %v509_v1 = vld [vmem:[#allocation6] sm:$0x3] }
  0x44   : > { %632 = vmatpush.msra.mxu3 %v595_v35  ;;  %654 = vmatpush.msrb.mxu1 %v610_v36  ;;  %v973_v48 = vld [vmem:[%s1320_s26] ss:$0 sm:$0xff]  ;;  %v498_v50 = vld [vmem:[#allocation4 + $0x28] sm:$0xff]  ;;  %v511_v2 = vperm.slane %v509_v1, 0 }
  0x45   : > { %466 = vmatpush.msra.mxu0 %v449_v6  ;;  %565 = vmatpush.msrb.mxu2 %v508_v44  ;;  %v500_v49 = vld [vmem:[#allocation4 + $0x38] sm:$0xff]  ;;  %v494_v55 = vld [vmem:[#allocation4 + $0x8] sm:$0xff]  ;;  %v613_v6 = vperm.slane %v611_v4, 0 }
  0x46   : > { %655 = vmatpush.msrb.mxu1 %v608_v37  ;;  %v496_v52 = vld [vmem:[#allocation4 + $0x18] sm:$0xff] }
  0x47   : > { %467 = vmatpush.msra.mxu0 %v448_v7  ;;  %566 = vmatpush.msrb.mxu2 %v506_v45 }
  0x48   : > { %656 = vmatpush.msrb.mxu1 %v606_v38 }
  0x49   : > { %468 = vmatpush.msra.mxu0 %v447_v8  ;;  %567 = vmatpush.msrb.mxu2 %v504_v46 }
  0x4a   : > { %657 = vmatpush.msrb.mxu1 %v604_v39 }
  0x4b   : > { %469 = vmatpush.msra.mxu0 %v446_v9  ;;  %568 = vmatpush.msrb.mxu2 %v502_v47 }
  0x4c   : > { %658 = vmatpush.msrb.mxu1 %v602_v40 }
  0x4d   : > { %470 = vmatpush.msra.mxu0 %v445_v10  ;;  %569 = vmatpush.msrb.mxu2 %v500_v49 }
  0x4e   : > { %659 = vmatpush.msrb.mxu1 %v600_v41 }
  0x4f   : > { %471 = vmatpush.msra.mxu0 %v444_v11  ;;  %570 = vmatpush.msrb.mxu2 %v498_v50 }
  0x50   : > { %660 = vmatpush.msrb.mxu1 %v598_v42 }
  0x51   : > { %472 = vmatpush.msra.mxu0 %v443_v12  ;;  %571 = vmatpush.msrb.mxu2 %v496_v52  ;;  %v614_v12 = vperm.slane %v611_v4, 1 }
  0x52   : > { %661 = vmatpush.msrb.mxu1 %v596_v43 }
  0x53   : > { %473 = vmatpush.msra.mxu0 %v442_v13  ;;  %572 = vmatpush.msrb.mxu2 %v494_v55 }
  0x55   : > { %474 = vmatpush.msra.mxu0 %v441_v18 }
  0x57   : > { %475 = vmatpush.msra.mxu0 %v440_v21 }
  0x58   : > { %476 = vmatmul.f32.vlgmr.msra.gmra.mxu0 %v436_v23 }
  0x60   : > { %479 = vmatmul.f32.gmra.mxu0 %v437_v27 }
  0x68   : > { %482 = vmatmul.f32.gmra.mxu0 %v438_v28  ;;  %v512_v28 = vperm.slane %v509_v1, 1 }
  0x70   : > { %485 = vmatmul.f32.gmra.mxu0 %v439_v29 }
  0xd5   : > { %v477_v51 = vpop.f32.mrf.mxu0 }
  0xd6   : > { %v478_v53 = vadd.f32 %v973_v48, %v477_v51 }
  0xd8   : > { %v489_v54 = vmax.f32 %v478_v53, 0.0 }
  0xda   : > { %861 = vmatmul.msk.f32.vlgmr.msra.gmra.mxu1 %vm515_vm0, %v489_v54  ;;  %869 = vmatmul.msk.f32.vlgmr.msra.gmra.mxu3 %vm515_vm0, %v489_v54 }
  0xdd   : > { %v480_v56 = vpop.f32.mrf.mxu0 }
  0xde   : > { %v481_v57 = vadd.f32 %v973_v48, %v480_v56 }
  0xe0   : > { %v490_v58 = vmax.f32 %v481_v57, 0.0 }
  0xe2   : > { %862 = vmatmul.msk.f32.gmra.mxu1 %vm515_vm0, %v490_v58  ;;  %870 = vmatmul.msk.f32.gmra.mxu3 %vm515_vm0, %v490_v58 }
  0xe5   : > { %v483_v59 = vpop.f32.mrf.mxu0 }
  0xe6   : > { %v484_v60 = vadd.f32 %v973_v48, %v483_v59 }
  0xe8   : > { %v491_v61 = vmax.f32 %v484_v60, 0.0 }
  0xea   : > { %863 = vmatmul.msk.f32.vlgmr.msra.gmra.mxu2 %vm515_vm0, %v491_v61  ;;  %871 = vmatmul.msk.f32.gmra.mxu3 %vm515_vm0, %v491_v61 }
  0xeb   : > { %873 = vmatmul.msk.f32.vlgmr.msrb.gmra.mxu1 %vm515_vm0, %v489_v54 }
  0xed   : > { %v486_v62 = vpop.f32.mrf.mxu0 }
  0xee   : > { %v487_v63 = vadd.f32 %v973_v48, %v486_v62 }
  0xf0   : > { %v492_v0 = vmax.f32 %v487_v63, 0.0 }
  0xf2   : > { %864 = vmatmul.msk.f32.gmra.mxu2 %vm515_vm0, %v492_v0  ;;  %872 = vmatmul.msk.f32.gmra.mxu3 %vm515_vm0, %v492_v0 }
  0xf3   : > { %874 = vmatmul.msk.f32.gmra.mxu1 %vm515_vm0, %v490_v58 }
  0xfa   : > { %865 = vmatmul.msk.f32.vlgmr.msrb.gmra.mxu2 %vm515_vm0, %v489_v54 }
  0xfb   : > { %875 = vmatmul.msk.f32.gmra.mxu1 %vm515_vm0, %v491_v61 }
 0x102   : > { %866 = vmatmul.msk.f32.gmra.mxu2 %vm515_vm0, %v490_v58 }
 0x103   : > { %876 = vmatmul.msk.f32.gmra.mxu1 %vm515_vm0, %v492_v0 }
 0x10a   : > { %867 = vmatmul.msk.f32.gmra.mxu2 %vm515_vm0, %v491_v61 }
 0x112   : > { %868 = vmatmul.msk.f32.gmra.mxu2 %vm515_vm0, %v492_v0 }
 0x157   : > { %v545_v3 = vpop.f32.mrf.mxu1 }
 0x158   : > { %v546_v5 = vadd.f32 %v545_v3, %v511_v2 }
 0x15a   : > { %586 = vst [vmem:[%s1391_s20] sm:$0xff] %v546_v5 }
 0x15d   : > { %v634_v7 = vpop.f32.mrf.mxu3 }
 0x15e   : > { %v635_v8 = vadd.f32 %v634_v7, %v613_v6 }
 0x15f   : > { %v548_v9 = vpop.f32.mrf.mxu1 }
 0x160   : > { %675 = vst [vmem:[%s1397_s19] sm:$0xff] %v635_v8  ;;  %v549_v10 = vadd.f32 %v548_v9, %v511_v2 }
 0x162   : > { %588 = vst [vmem:[%s1391_s20 + $0x10] sm:$0xff] %v549_v10 }
 0x165   : > { %v637_v11 = vpop.f32.mrf.mxu3 }
 0x166   : > { %v638_v13 = vadd.f32 %v637_v11, %v613_v6 }
 0x168   : > { %677 = vst [vmem:[%s1397_s19 + $0x10] sm:$0xff] %v638_v13  ;;  %v663_v14 = vpop.f32.mrf.mxu1 }
 0x169   : > { %v664_v15 = vadd.f32 %v663_v14, %v614_v12 }
 0x16b   : > { %676 = vst.msk [vmem:[%s1397_s19 + $0x8] sm:$0xff] %vm515_vm0, %v664_v15 }
 0x16d   : > { %v551_v16 = vpop.f32.mrf.mxu2  ;;  %v640_v17 = vpop.f32.mrf.mxu3 }
 0x16e   : > { %v552_v18 = vadd.f32 %v551_v16, %v511_v2  ;;  %v641_v19 = vadd.f32 %v640_v17, %v613_v6 }
 0x170   : > { %590 = vst [vmem:[%s1391_s20 + $0x20] sm:$0xff] %v552_v18  ;;  %v666_v20 = vpop.f32.mrf.mxu1 }
 0x171   : > { %679 = vst [vmem:[%s1397_s19 + $0x20] sm:$0xff] %v641_v19  ;;  %v667_v21 = vadd.f32 %v666_v20, %v614_v12 }
 0x173   : > { %678 = vst.msk [vmem:[%s1397_s19 + $0x18] sm:$0xff] %vm515_vm0, %v667_v21 }
 0x175   : > { %v554_v22 = vpop.f32.mrf.mxu2  ;;  %v643_v23 = vpop.f32.mrf.mxu3 }
 0x176   : > { %v555_v24 = vadd.f32 %v554_v22, %v511_v2  ;;  %v644_v25 = vadd.f32 %v643_v23, %v613_v6 }
 0x178   : > { %592 = vst [vmem:[%s1391_s20 + $0x30] sm:$0x3f] %v555_v24  ;;  %v669_v26 = vpop.f32.mrf.mxu1 }
 0x179   : > { %681 = vst [vmem:[%s1397_s19 + $0x30] sm:$0x3f] %v644_v25  ;;  %v670_v27 = vadd.f32 %v669_v26, %v614_v12 }
 0x17b   : > { %680 = vst.msk [vmem:[%s1397_s19 + $0x28] sm:$0xff] %vm515_vm0, %v670_v27 }
 0x17d   : > { %v574_v29 = vpop.f32.mrf.mxu2 }
 0x17e   : > { %v575_v30 = vadd.f32 %v574_v29, %v512_v28 }
 0x180   : > { %587 = vst.msk [vmem:[%s1391_s20 + $0x8] sm:$0xff] %vm515_vm0, %v575_v30  ;;  %v672_v31 = vpop.f32.mrf.mxu1 }
 0x181   : > { %v673_v32 = vadd.f32 %v672_v31, %v614_v12 }
 0x183   : > { %682 = vst.msk [vmem:[%s1397_s19 + $0x38] sm:$0x3f] %vm593_vm1, %v673_v32 }
 0x185   : > { %v577_v33 = vpop.f32.mrf.mxu2 }
 0x186   : > { %v578_v34 = vadd.f32 %v577_v33, %v512_v28 }
 0x188   : > { %589 = vst.msk [vmem:[%s1391_s20 + $0x18] sm:$0xff] %vm515_vm0, %v578_v34 }
 0x18d   : > { %v580_v35 = vpop.f32.mrf.mxu2 }
 0x18e   : > { %v581_v36 = vadd.f32 %v580_v35, %v512_v28 }
 0x190   : > { %591 = vst.msk [vmem:[%s1391_s20 + $0x28] sm:$0xff] %vm515_vm0, %v581_v36 }
 0x195   : > { %v583_v37 = vpop.f32.mrf.mxu2 }
 0x196   : > { %v584_v38 = vadd.f32 %v583_v37, %v512_v28 }
 0x198   : > { %594 = vst.msk [vmem:[%s1391_s20 + $0x38] sm:$0x3f] %vm593_vm1, %v584_v38 }
 0x199 PF: > { %p21_p1 = scmp.ge.s32.totalorder %s1278_s18, 5   ;;  %s1446_s27 = smov %s1158_s28 }
 0x19a   : > { %s1447_s28 = smov %s1162_s29  ;;  %s1448_s29 = smov %s1290_s23 }
 0x19b   : > { %s1449_s30 = smov %s1278_s18  ;;  %23 = sbr.rel (!%p21_p1) target bundleno = 5 (0x5), region = 122 }
 0x1a0   :  { %720 = vsyncpa [#allocation3], 1 }
 0x1a1   :  { %722 = vsyncpa [#allocation3 + $0x1], 1 }
 0x1a2   :  { %723 = vsyncpa [#allocation5], 1 }
 0x1a3   :  { %724 = vsyncpa [#allocation8], 1 }

// kernel: mltp_forward.5
= control target key start
LH: loop header
LB: loop body
LE: loop exit
PB: predicated region body
PF: predicated region fallthrough
CT: control target
= control target key end

     0   :  { %14 = vsyncpa [#allocation4], 0  ;;  %s6150_s30 = smov 0   ;;  %s11086_s0 = inlined_call_operand.vmem [shape: f32[2,3200], index: 0, kind: input, shape index: {}]   ;;  %s11087_s1 = inlined_call_operand.vmem [shape: f32[3200,2000], index: 1, kind: input, shape index: {}]   ;;  %s11088_s2 = inlined_call_operand.vmem [shape: f32[1,2000], index: 2, kind: input, shape index: {}]   ;;  %s11089_s3 = inlined_call_operand.vmem [shape: f32[2000,500], index: 3, kind: input, shape index: {}]   ;;  %s11090_s4 = inlined_call_operand.vmem [shape: f32[1,500], index: 4, kind: input, shape index: {}]   ;;  %s11091_s5 = inlined_call_operand.vmem [shape: f32[500,100], index: 5, kind: input, shape index: {}]   ;;  %s11092_s6 = inlined_call_operand.vmem [shape: f32[1,100], index: 6, kind: input, shape index: {}]   ;;  %s11093_s7 = inlined_call_operand.vmem [shape: f32[100,2], index: 7, kind: input, shape index: {}]   ;;  %s11094_s8 = inlined_call_operand.vmem [shape: f32[1,2], index: 8, kind: input, shape index: {}]   ;;  %s11095_s9 = inlined_call_operand.hbm [shape: f32[2,2], index: 9, kind: output, shape index: {}]  }
   0x1 LB: > { %s6156_s10 = sadd.s32 4294967295, %s6096_s30   ;;  %p5987_p0 = scmp.ge.s32.totalorder %s6096_s30, 1  ;;  %s6096_s30 = sphi %s6150_s30, %s20_s30  }
   0x2   : > { %p296_p1 = scmp.lt.s32.totalorder %s6096_s30, 6 }
   0x4   : > { %p297_p2 = pnand %p5987_p0, %p296_p1 }
   0x5   : > { %s333_s11 = smul.u32 (!%p297_p2), 5, %s6156_s10  ;;  %p5991_p5 = scmp.ne.s32.totalorder (!%p297_p2), %s6156_s10, 0 }
   0x6   : > { %300 = sbr.rel (%p297_p2) target bundleno = 2148 (0x864), region = 56 }
   0x7   : > { %s339_s12 = smul.u32 (!%p297_p2), 80, %s6156_s10  ;;  %p334_p3 = scmp.lt.s32.totalorder (!%p297_p2), %s333_s11, 24 }
   0x9   : > { %p340_p4 = scmp.lt.s32.totalorder (!%p297_p2), %s339_s12, 399 }
   0xb   : > { %s11097_s11 = smov (!%p334_p3, %s333_s11), 24  ;;  %s11099_s12 = smov (!%p340_p4, %s339_s12), 399 }
   0xc   : > { %s5988_s13 = sshll.u32 %s11097_s11, 1  ;;  %s6005_s17 = sshll.u32 %s11099_s12, 7 }
   0xd   : > { %s6165_s16 = scalar_lea.vmem %s11086_s0, %s5988_s13  ;;  %s6170_s20 = scalar_lea.vmem %s11087_s1, %s6005_s17 }
   0xe   : > { %349 = sbr.rel (%p5991_p5) target bundleno = 24 (0x18), region = 60 }
  0x13   : > { %vm353_vm0 = vcmask 1041408   ;;  %vm354_vm1 = vcmask 1043458   ;;  %vm356_vm2 = vcmask 1045508   ;;  %v6098_v0 = vmov 0.0  }
  0x14   : > { %350 = vst [vmem:[#allocation2] sm:$0xff] %v6098_v0  ;;  %vm355_vm3 = vmor %vm354_vm1, %vm353_vm0  ;;  %vm358_vm4 = vcmask 654342  }
  0x15   : > { %351 = vst [vmem:[#allocation2 + $0x8] sm:$0xff] %v6098_v0  ;;  %vm357_vm5 = vmor %vm356_vm2, %vm355_vm3 }
  0x16   : > { %352 = vst [vmem:[#allocation2 + $0x10] sm:$0xff] %v6098_v0  ;;  %vm359_vm6 = vmor %vm358_vm4, %vm357_vm5 }
  0x17   : > { %360 = vst.msk [vmem:[#allocation2 + $0x18] sm:$0xff] %vm359_vm6, %v6098_v0 }
  0x18 PF: > { %v607_v1 = vld [vmem:[%s6170_s20 + $0x780] sm:$0xff]  ;;  %v864_v0 = vld [vmem:[%s6170_s20 + $0xf88] sm:$0xff]  ;;  %vm3290_vm7 = vcmask 1041408   ;;  %vm3292_vm8 = vcmask 1045508   ;;  %vm3294_vm9 = vcmask 1043456   ;;  %vm3316_vm10 = vcmask 1043458  }
  0x19   : > { %v1119_v2 = vld [vmem:[%s6170_s20 + $0x1780] sm:$0xff]  ;;  %1662 = vmatpush.msra.mxu0 %v607_v1  ;;  %vm3317_vm11 = vmor %vm3316_vm10, %vm3290_vm7  ;;  %vm3319_vm13 = vcmask 654342   ;;  %p5992_p6 = scmp.ne.s32.totalorder %s6156_s10, 4 }
  0x1a   : > { %v591_v3 = vld [vmem:[%s6170_s20 + $0x700] sm:$0xff]  ;;  %1702 = vmatpush.msra.mxu2 %v1119_v2  ;;  %vm3318_vm12 = vmor %vm3292_vm8, %vm3317_vm11 }
  0x1b   : > { %v863_v4 = vld [vmem:[%s6170_s20 + $0xf80] sm:$0xff]  ;;  %1663 = vmatpush.msra.mxu0 %v591_v3  ;;  %vm3320_vm14 = vmor %vm3319_vm13, %vm3318_vm12 }
  0x1c   : > { %v1103_v5 = vld [vmem:[%s6170_s20 + $0x1700] sm:$0xff]  ;;  %1682 = vmatpush.msra.mxu1 %v863_v4  ;;  %v608_v4 = vld [vmem:[%s6170_s20 + $0x788] sm:$0xff] }
  0x1d   : > { %v1375_v6 = vld [vmem:[%s6170_s20 + $0x1f80] sm:$0xff]  ;;  %1703 = vmatpush.msra.mxu2 %v1103_v5  ;;  %v848_v5 = vld [vmem:[%s6170_s20 + $0xf08] sm:$0xff] }
  0x1e   : > { %1722 = vmatpush.msra.mxu3 %v1375_v6  ;;  %v575_v7 = vld [vmem:[%s6170_s20 + $0x680] sm:$0xff]  ;;  %v1120_v6 = vld [vmem:[%s6170_s20 + $0x1788] sm:$0xff] }
  0x1f   : > { %v847_v8 = vld [vmem:[%s6170_s20 + $0xf00] sm:$0xff]  ;;  %1664 = vmatpush.msra.mxu0 %v575_v7 }
  0x20   : > { %v1087_v9 = vld [vmem:[%s6170_s20 + $0x1680] sm:$0xff]  ;;  %1683 = vmatpush.msra.mxu1 %v847_v8  ;;  %v592_v8 = vld [vmem:[%s6170_s20 + $0x708] sm:$0xff] }
  0x21   : > { %v1359_v10 = vld [vmem:[%s6170_s20 + $0x1f00] sm:$0xff]  ;;  %1704 = vmatpush.msra.mxu2 %v1087_v9  ;;  %v832_v9 = vld [vmem:[%s6170_s20 + $0xe88] sm:$0xff] }
  0x22   : > { %v831_v11 = vld [vmem:[%s6170_s20 + $0xe80] sm:$0xff]  ;;  %1723 = vmatpush.msra.mxu3 %v1359_v10  ;;  %v1104_v10 = vld [vmem:[%s6170_s20 + $0x1708] sm:$0xff] }
  0x23   : > { %v559_v12 = vld [vmem:[%s6170_s20 + $0x600] sm:$0xff]  ;;  %1684 = vmatpush.msra.mxu1 %v831_v11 }
  0x24   : > { %v1071_v13 = vld [vmem:[%s6170_s20 + $0x1600] sm:$0xff]  ;;  %1665 = vmatpush.msra.mxu0 %v559_v12  ;;  %v576_v12 = vld [vmem:[%s6170_s20 + $0x688] sm:$0xff] }
  0x25   : > { %v1343_v14 = vld [vmem:[%s6170_s20 + $0x1e80] sm:$0xff]  ;;  %1705 = vmatpush.msra.mxu2 %v1071_v13  ;;  %v816_v13 = vld [vmem:[%s6170_s20 + $0xe08] sm:$0xff] }
  0x26   : > { %v815_v15 = vld [vmem:[%s6170_s20 + $0xe00] sm:$0xff]  ;;  %1724 = vmatpush.msra.mxu3 %v1343_v14  ;;  %v1088_v14 = vld [vmem:[%s6170_s20 + $0x1688] sm:$0xff] }
  0x27   : > { %v1327_v16 = vld [vmem:[%s6170_s20 + $0x1e00] sm:$0xff]  ;;  %1685 = vmatpush.msra.mxu1 %v815_v15 }
  0x28   : > { %v543_v17 = vld [vmem:[%s6170_s20 + $0x580] sm:$0xff]  ;;  %1725 = vmatpush.msra.mxu3 %v1327_v16  ;;  %v560_v16 = vld [vmem:[%s6170_s20 + $0x608] sm:$0xff] }
  0x29   : > { %v1055_v18 = vld [vmem:[%s6170_s20 + $0x1580] sm:$0xff]  ;;  %1666 = vmatpush.msra.mxu0 %v543_v17  ;;  %v800_v17 = vld [vmem:[%s6170_s20 + $0xd88] sm:$0xff] }
  0x2a   : > { %v799_v19 = vld [vmem:[%s6170_s20 + $0xd80] sm:$0xff]  ;;  %1706 = vmatpush.msra.mxu2 %v1055_v18  ;;  %v1072_v18 = vld [vmem:[%s6170_s20 + $0x1608] sm:$0xff] }
  0x2b   : > { %v1311_v20 = vld [vmem:[%s6170_s20 + $0x1d80] sm:$0xff]  ;;  %1686 = vmatpush.msra.mxu1 %v799_v19 }
  0x2c   : > { %v527_v21 = vld [vmem:[%s6170_s20 + $0x500] sm:$0xff]  ;;  %1726 = vmatpush.msra.mxu3 %v1311_v20  ;;  %v544_v20 = vld [vmem:[%s6170_s20 + $0x588] sm:$0xff] }
  0x2d   : > { %v1039_v22 = vld [vmem:[%s6170_s20 + $0x1500] sm:$0xff]  ;;  %1667 = vmatpush.msra.mxu0 %v527_v21  ;;  %v784_v21 = vld [vmem:[%s6170_s20 + $0xd08] sm:$0xff] }
  0x2e   : > { %v783_v23 = vld [vmem:[%s6170_s20 + $0xd00] sm:$0xff]  ;;  %1707 = vmatpush.msra.mxu2 %v1039_v22  ;;  %v1056_v22 = vld [vmem:[%s6170_s20 + $0x1588] sm:$0xff] }
  0x2f   : > { %v1295_v24 = vld [vmem:[%s6170_s20 + $0x1d00] sm:$0xff]  ;;  %1687 = vmatpush.msra.mxu1 %v783_v23 }
  0x30   : > { %v511_v25 = vld [vmem:[%s6170_s20 + $0x480] sm:$0xff]  ;;  %1727 = vmatpush.msra.mxu3 %v1295_v24 }
  0x31   : > { %v1023_v26 = vld [vmem:[%s6170_s20 + $0x1480] sm:$0xff]  ;;  %1668 = vmatpush.msra.mxu0 %v511_v25  ;;  %v528_v25 = vld [vmem:[%s6170_s20 + $0x508] sm:$0xff] }
  0x32   : > { %v767_v27 = vld [vmem:[%s6170_s20 + $0xc80] sm:$0xff]  ;;  %1708 = vmatpush.msra.mxu2 %v1023_v26  ;;  %v768_v26 = vld [vmem:[%s6170_s20 + $0xc88] sm:$0xff] }
  0x33   : > { %v1279_v28 = vld [vmem:[%s6170_s20 + $0x1c80] sm:$0xff]  ;;  %1688 = vmatpush.msra.mxu1 %v767_v27  ;;  %v1040_v27 = vld [vmem:[%s6170_s20 + $0x1508] sm:$0xff] }
  0x34   : > { %v495_v29 = vld [vmem:[%s6170_s20 + $0x400] sm:$0xff]  ;;  %1728 = vmatpush.msra.mxu3 %v1279_v28 }
  0x35   : > { %v1007_v30 = vld [vmem:[%s6170_s20 + $0x1400] sm:$0xff]  ;;  %1669 = vmatpush.msra.mxu0 %v495_v29  ;;  %v512_v29 = vld [vmem:[%s6170_s20 + $0x488] sm:$0xff] }
  0x36   : > { %v751_v31 = vld [vmem:[%s6170_s20 + $0xc00] sm:$0xff]  ;;  %1709 = vmatpush.msra.mxu2 %v1007_v30  ;;  %v752_v30 = vld [vmem:[%s6170_s20 + $0xc08] sm:$0xff] }
  0x37   : > { %v1263_v32 = vld [vmem:[%s6170_s20 + $0x1c00] sm:$0xff]  ;;  %1689 = vmatpush.msra.mxu1 %v751_v31  ;;  %v1024_v31 = vld [vmem:[%s6170_s20 + $0x1488] sm:$0xff] }
  0x38   : > { %v479_v33 = vld [vmem:[%s6170_s20 + $0x380] sm:$0xff]  ;;  %1729 = vmatpush.msra.mxu3 %v1263_v32 }
  0x39   : > { %v991_v34 = vld [vmem:[%s6170_s20 + $0x1380] sm:$0xff]  ;;  %1670 = vmatpush.msra.mxu0 %v479_v33  ;;  %v496_v33 = vld [vmem:[%s6170_s20 + $0x408] sm:$0xff] }
  0x3a   : > { %v735_v35 = vld [vmem:[%s6170_s20 + $0xb80] sm:$0xff]  ;;  %1710 = vmatpush.msra.mxu2 %v991_v34  ;;  %v736_v34 = vld [vmem:[%s6170_s20 + $0xb88] sm:$0xff] }
  0x3b   : > { %v1247_v36 = vld [vmem:[%s6170_s20 + $0x1b80] sm:$0xff]  ;;  %1690 = vmatpush.msra.mxu1 %v735_v35  ;;  %v1008_v35 = vld [vmem:[%s6170_s20 + $0x1408] sm:$0xff] }
  0x3c   : > { %v463_v37 = vld [vmem:[%s6170_s20 + $0x300] sm:$0xff]  ;;  %1730 = vmatpush.msra.mxu3 %v1247_v36 }
  0x3d   : > { %v975_v38 = vld [vmem:[%s6170_s20 + $0x1300] sm:$0xff]  ;;  %1671 = vmatpush.msra.mxu0 %v463_v37  ;;  %v480_v37 = vld [vmem:[%s6170_s20 + $0x388] sm:$0xff] }
  0x3e   : > { %v719_v39 = vld [vmem:[%s6170_s20 + $0xb00] sm:$0xff]  ;;  %1711 = vmatpush.msra.mxu2 %v975_v38  ;;  %v366_v38 = vld [vmem:[%s6165_s16 + $0x8] sm:$0x3] }
  0x3f   : > { %v1231_v40 = vld [vmem:[%s6170_s20 + $0x1b00] sm:$0xff]  ;;  %1691 = vmatpush.msra.mxu1 %v719_v39  ;;  %v720_v39 = vld [vmem:[%s6170_s20 + $0xb08] sm:$0xff]  ;;  %1651 = vst [vmem:[#allocation1 + $0x20] ss:$4 sm:$0xff] %v366_v38 }
  0x40   : > { %v447_v41 = vld [vmem:[%s6170_s20 + $0x280] sm:$0xff]  ;;  %1731 = vmatpush.msra.mxu3 %v1231_v40  ;;  %v992_v40 = vld [vmem:[%s6170_s20 + $0x1388] sm:$0xff] }
  0x41   : > { %v959_v42 = vld [vmem:[%s6170_s20 + $0x1280] sm:$0xff]  ;;  %1672 = vmatpush.msra.mxu0 %v447_v41  ;;  %v1520_v38 = vld [vmem:[%s6170_s20 + $0x2408] sm:$0xff] }
  0x42   : > { %v703_v43 = vld [vmem:[%s6170_s20 + $0xa80] sm:$0xff]  ;;  %1712 = vmatpush.msra.mxu2 %v959_v42  ;;  %v464_v42 = vld [vmem:[%s6170_s20 + $0x308] sm:$0xff] }
  0x43   : > { %v1215_v44 = vld [vmem:[%s6170_s20 + $0x1a80] sm:$0xff]  ;;  %1692 = vmatpush.msra.mxu1 %v703_v43  ;;  %v704_v43 = vld [vmem:[%s6170_s20 + $0xa88] sm:$0xff] }
  0x44   : > { %v431_v45 = vld [vmem:[%s6170_s20 + $0x200] sm:$0xff]  ;;  %1732 = vmatpush.msra.mxu3 %v1215_v44  ;;  %v976_v44 = vld [vmem:[%s6170_s20 + $0x1308] sm:$0xff] }
  0x45   : > { %v943_v46 = vld [vmem:[%s6170_s20 + $0x1200] sm:$0xff]  ;;  %1673 = vmatpush.msra.mxu0 %v431_v45 }
  0x46   : > { %v687_v47 = vld [vmem:[%s6170_s20 + $0xa00] sm:$0xff]  ;;  %1713 = vmatpush.msra.mxu2 %v943_v46  ;;  %v448_v46 = vld [vmem:[%s6170_s20 + $0x288] sm:$0xff] }
  0x47   : > { %v1199_v48 = vld [vmem:[%s6170_s20 + $0x1a00] sm:$0xff]  ;;  %1693 = vmatpush.msra.mxu1 %v687_v47  ;;  %v688_v47 = vld [vmem:[%s6170_s20 + $0xa08] sm:$0xff] }
  0x48   : > { %v415_v49 = vld [vmem:[%s6170_s20 + $0x180] sm:$0xff]  ;;  %1733 = vmatpush.msra.mxu3 %v1199_v48  ;;  %v960_v48 = vld [vmem:[%s6170_s20 + $0x1288] sm:$0xff] }
  0x49   : > { %v927_v50 = vld [vmem:[%s6170_s20 + $0x1180] sm:$0xff]  ;;  %1674 = vmatpush.msra.mxu0 %v415_v49 }
  0x4a   : > { %v671_v51 = vld [vmem:[%s6170_s20 + $0x980] sm:$0xff]  ;;  %1714 = vmatpush.msra.mxu2 %v927_v50  ;;  %v432_v50 = vld [vmem:[%s6170_s20 + $0x208] sm:$0xff] }
  0x4b   : > { %v1183_v52 = vld [vmem:[%s6170_s20 + $0x1980] sm:$0xff]  ;;  %1694 = vmatpush.msra.mxu1 %v671_v51  ;;  %v672_v51 = vld [vmem:[%s6170_s20 + $0x988] sm:$0xff] }
  0x4c   : > { %v399_v53 = vld [vmem:[%s6170_s20 + $0x100] sm:$0xff]  ;;  %1734 = vmatpush.msra.mxu3 %v1183_v52  ;;  %v944_v52 = vld [vmem:[%s6170_s20 + $0x1208] sm:$0xff] }
  0x4d   : > { %v911_v54 = vld [vmem:[%s6170_s20 + $0x1100] sm:$0xff]  ;;  %1675 = vmatpush.msra.mxu0 %v399_v53 }
  0x4e   : > { %v655_v55 = vld [vmem:[%s6170_s20 + $0x900] sm:$0xff]  ;;  %1715 = vmatpush.msra.mxu2 %v911_v54  ;;  %v416_v54 = vld [vmem:[%s6170_s20 + $0x188] sm:$0xff] }
  0x4f   : > { %v1167_v56 = vld [vmem:[%s6170_s20 + $0x1900] sm:$0xff]  ;;  %1695 = vmatpush.msra.mxu1 %v655_v55  ;;  %v656_v55 = vld [vmem:[%s6170_s20 + $0x908] sm:$0xff] }
  0x50   : > { %v383_v57 = vld [vmem:[%s6170_s20 + $0x80] sm:$0xff]  ;;  %1735 = vmatpush.msra.mxu3 %v1167_v56  ;;  %v928_v56 = vld [vmem:[%s6170_s20 + $0x1188] sm:$0xff] }
  0x51   : > { %v895_v58 = vld [vmem:[%s6170_s20 + $0x1080] sm:$0xff]  ;;  %1676 = vmatpush.msra.mxu0 %v383_v57 }
  0x52   : > { %v639_v59 = vld [vmem:[%s6170_s20 + $0x880] sm:$0xff]  ;;  %1716 = vmatpush.msra.mxu2 %v895_v58  ;;  %v400_v58 = vld [vmem:[%s6170_s20 + $0x108] sm:$0xff] }
  0x53   : > { %v1151_v60 = vld [vmem:[%s6170_s20 + $0x1880] sm:$0xff]  ;;  %1696 = vmatpush.msra.mxu1 %v639_v59  ;;  %v640_v59 = vld [vmem:[%s6170_s20 + $0x888] sm:$0xff] }
  0x54   : > { %v367_v61 = vld [vmem:[%s6170_s20] sm:$0xff]  ;;  %1736 = vmatpush.msra.mxu3 %v1151_v60  ;;  %v912_v60 = vld [vmem:[%s6170_s20 + $0x1108] sm:$0xff] }
  0x55   : > { %v879_v62 = vld [vmem:[%s6170_s20 + $0x1000] sm:$0xff]  ;;  %1677 = vmatpush.msra.mxu0 %v367_v61 }
  0x56   : > { %v1631_v63 = vld [vmem:[%s6170_s20 + $0x2780] sm:$0xff]  ;;  %1717 = vmatpush.msra.mxu2 %v879_v62 }
  0x57   : > { %v623_v1 = vld [vmem:[%s6170_s20 + $0x800] sm:$0xff]  ;;  %1742 = vmatpush.msrb.mxu0 %v1631_v63  ;;  %v384_v63 = vld [vmem:[%s6170_s20 + $0x88] sm:$0xff] }
  0x58   : > { %v1135_v2 = vld [vmem:[%s6170_s20 + $0x1800] sm:$0xff]  ;;  %1782 = vmatpush.msrb.mxu2 %v864_v0  ;;  %1697 = vmatpush.msra.mxu1 %v623_v1  ;;  %v624_v0 = vld [vmem:[%s6170_s20 + $0x808] sm:$0xff] }
  0x59   : > { %v1615_v3 = vld [vmem:[%s6170_s20 + $0x2700] sm:$0xff]  ;;  %1737 = vmatpush.msra.mxu3 %v1135_v2  ;;  %v896_v1 = vld [vmem:[%s6170_s20 + $0x1088] sm:$0xff] }
  0x5a   : > { %v1599_v7 = vld [vmem:[%s6170_s20 + $0x2680] sm:$0xff]  ;;  %1743 = vmatpush.msrb.mxu0 %v1615_v3  ;;  %1762 = vmatpush.msrb.mxu1 %v608_v4  ;;  %v1376_v4 = vld [vmem:[%s6170_s20 + $0x1f88] sm:$0xff] }
  0x5b   : > { %1783 = vmatpush.msrb.mxu2 %v848_v5  ;;  %1802 = vmatpush.msrb.mxu3 %v1120_v6  ;;  %v1583_v11 = vld [vmem:[%s6170_s20 + $0x2600] sm:$0xff]  ;;  %v609_v5 = vld [vmem:[%s6170_s20 + $0x790] sm:$0xff]  ;;  %v368_v6 = vld [vmem:[%s6170_s20 + $0x8] sm:$0xff] }
  0x5c   : > { %1744 = vmatpush.msrb.mxu0 %v1599_v7  ;;  %1763 = vmatpush.msrb.mxu1 %v592_v8  ;;  %v1567_v15 = vld [vmem:[%s6170_s20 + $0x2580] sm:$0xff]  ;;  %v880_v7 = vld [vmem:[%s6170_s20 + $0x1008] sm:$0xff] }
  0x5d   : > { %1784 = vmatpush.msrb.mxu2 %v832_v9  ;;  %1803 = vmatpush.msrb.mxu3 %v1104_v10  ;;  %v1551_v19 = vld [vmem:[%s6170_s20 + $0x2500] sm:$0xff]  ;;  %v1360_v9 = vld [vmem:[%s6170_s20 + $0x1f08] sm:$0xff] }
  0x5e   : > { %1745 = vmatpush.msrb.mxu0 %v1583_v11  ;;  %1764 = vmatpush.msrb.mxu1 %v576_v12  ;;  %v365_v23 = vld [vmem:[%s6165_s16] sm:$0xff]  ;;  %v1632_v10 = vld [vmem:[%s6170_s20 + $0x2788] sm:$0xff]  ;;  %v593_v11 = vld [vmem:[%s6170_s20 + $0x710] sm:$0xff] }
  0x5f   : > { %1785 = vmatpush.msrb.mxu2 %v816_v13  ;;  %1804 = vmatpush.msrb.mxu3 %v1088_v14  ;;  %v1535_v24 = vld [vmem:[%s6170_s20 + $0x2480] sm:$0xff]  ;;  %1649 = vst [vmem:[#allocation1] ss:$4 sm:$0xff] %v365_v23  ;;  %v865_v12 = vld [vmem:[%s6170_s20 + $0xf90] sm:$0xff]  ;;  %v1344_v13 = vld [vmem:[%s6170_s20 + $0x1e88] sm:$0xff] }
  0x60   : > { %1746 = vmatpush.msrb.mxu0 %v1567_v15  ;;  %1765 = vmatpush.msrb.mxu1 %v560_v16  ;;  %v1519_v28 = vld [vmem:[%s6170_s20 + $0x2400] sm:$0xff]  ;;  %v1616_v14 = vld [vmem:[%s6170_s20 + $0x2708] sm:$0xff]  ;;  %v577_v15 = vld [vmem:[%s6170_s20 + $0x690] sm:$0xff] }
  0x61   : > { %1786 = vmatpush.msrb.mxu2 %v800_v17  ;;  %1805 = vmatpush.msrb.mxu3 %v1072_v18  ;;  %v1503_v32 = vld [vmem:[%s6170_s20 + $0x2380] sm:$0xff]  ;;  %v849_v16 = vld [vmem:[%s6170_s20 + $0xf10] sm:$0xff]  ;;  %v1328_v17 = vld [vmem:[%s6170_s20 + $0x1e08] sm:$0xff] }
  0x62   : > { %1747 = vmatpush.msrb.mxu0 %v1551_v19  ;;  %1766 = vmatpush.msrb.mxu1 %v544_v20  ;;  %v1487_v36 = vld [vmem:[%s6170_s20 + $0x2300] sm:$0xff]  ;;  %v1600_v18 = vld [vmem:[%s6170_s20 + $0x2688] sm:$0xff]  ;;  %v561_v19 = vld [vmem:[%s6170_s20 + $0x610] sm:$0xff] }
  0x63   : > { %1787 = vmatpush.msrb.mxu2 %v784_v21  ;;  %1806 = vmatpush.msrb.mxu3 %v1056_v22  ;;  %v1471_v41 = vld [vmem:[%s6170_s20 + $0x2280] sm:$0xff]  ;;  %v833_v20 = vld [vmem:[%s6170_s20 + $0xe90] sm:$0xff]  ;;  %v1584_v22 = vld [vmem:[%s6170_s20 + $0x2608] sm:$0xff] }
  0x64   : > { %1748 = vmatpush.msrb.mxu0 %v1535_v24  ;;  %1767 = vmatpush.msrb.mxu1 %v528_v25  ;;  %v1455_v45 = vld [vmem:[%s6170_s20 + $0x2200] sm:$0xff]  ;;  %v1312_v23 = vld [vmem:[%s6170_s20 + $0x1d88] sm:$0xff]  ;;  %v545_v24 = vld [vmem:[%s6170_s20 + $0x590] sm:$0xff] }
  0x65   : > { %1788 = vmatpush.msrb.mxu2 %v768_v26  ;;  %1807 = vmatpush.msrb.mxu3 %v1040_v27  ;;  %v1439_v49 = vld [vmem:[%s6170_s20 + $0x2180] sm:$0xff]  ;;  %v817_v25 = vld [vmem:[%s6170_s20 + $0xe10] sm:$0xff]  ;;  %v1568_v26 = vld [vmem:[%s6170_s20 + $0x2588] sm:$0xff] }
  0x66   : > { %1749 = vmatpush.msrb.mxu0 %v1519_v28  ;;  %1768 = vmatpush.msrb.mxu1 %v512_v29  ;;  %v1423_v53 = vld [vmem:[%s6170_s20 + $0x2100] sm:$0xff]  ;;  %v6297_v61 = vld.sshfl [vmem:[#allocation1 + $0x10] sm:$0xff pattern:$0x73625140]  ;;  %v1296_v27 = vld [vmem:[%s6170_s20 + $0x1d08] sm:$0xff] }
  0x67   : > { %1789 = vmatpush.msrb.mxu2 %v752_v30  ;;  %1808 = vmatpush.msrb.mxu3 %v1024_v31  ;;  %v1407_v57 = vld [vmem:[%s6170_s20 + $0x2080] sm:$0xff]  ;;  %v6306_v3 = vld.sshfl [vmem:[#allocation1 + $0x18] sm:$0xff pattern:$0x73625140]  ;;  %v529_v28 = vld [vmem:[%s6170_s20 + $0x510] sm:$0xff] }
  0x68   : > { %1750 = vmatpush.msrb.mxu0 %v1503_v32  ;;  %1769 = vmatpush.msrb.mxu1 %v496_v33  ;;  %v1391_v62 = vld [vmem:[%s6170_s20 + $0x2000] sm:$0xff]  ;;  %v6313_v8 = vld.sshfl [vmem:[#allocation1 + $0x8] sm:$0xff pattern:$0x73625140]  ;;  %v801_v29 = vld [vmem:[%s6170_s20 + $0xd90] sm:$0xff] }
  0x69   : > { %1790 = vmatpush.msrb.mxu2 %v736_v34  ;;  %1809 = vmatpush.msrb.mxu3 %v1008_v35  ;;  %v6303_v2 = vld.sshfl [vmem:[#allocation1] sm:$0xff pattern:$0x73625140]  ;;  %v1552_v30 = vld [vmem:[%s6170_s20 + $0x2508] sm:$0xff]  ;;  %v513_v32 = vld [vmem:[%s6170_s20 + $0x490] sm:$0xff] }
  0x6a   : > { %1751 = vmatpush.msrb.mxu0 %v1487_v36  ;;  %1770 = vmatpush.msrb.mxu1 %v480_v37  ;;  %v6329_v21 = vld.sshfl [vmem:[#allocation1 + $0x20] sm:$0xff pattern:$0x73625140]  ;;  %v1280_v31 = vld [vmem:[%s6170_s20 + $0x1c88] sm:$0xff]  ;;  %v785_v33 = vld [vmem:[%s6170_s20 + $0xd10] sm:$0xff] }
  0x6b   : > { %1791 = vmatpush.msrb.mxu2 %v720_v39  ;;  %1810 = vmatpush.msrb.mxu3 %v992_v40  ;;  %v1536_v34 = vld [vmem:[%s6170_s20 + $0x2488] sm:$0xff]  ;;  %v497_v36 = vld [vmem:[%s6170_s20 + $0x410] sm:$0xff] }
  0x6c   : > { %1752 = vmatpush.msrb.mxu0 %v1471_v41  ;;  %1771 = vmatpush.msrb.mxu1 %v464_v42  ;;  %v1264_v35 = vld [vmem:[%s6170_s20 + $0x1c08] sm:$0xff]  ;;  %v769_v37 = vld [vmem:[%s6170_s20 + $0xc90] sm:$0xff] }
  0x6d   : > { %1792 = vmatpush.msrb.mxu2 %v704_v43  ;;  %1811 = vmatpush.msrb.mxu3 %v976_v44  ;;  %v1248_v39 = vld [vmem:[%s6170_s20 + $0x1b88] sm:$0xff]  ;;  %v481_v40 = vld [vmem:[%s6170_s20 + $0x390] sm:$0xff] }
  0x6e   : > { %1753 = vmatpush.msrb.mxu0 %v1455_v45  ;;  %1772 = vmatpush.msrb.mxu1 %v448_v46  ;;  %v753_v41 = vld [vmem:[%s6170_s20 + $0xc10] sm:$0xff]  ;;  %v1504_v42 = vld [vmem:[%s6170_s20 + $0x2388] sm:$0xff] }
  0x6f   : > { %1793 = vmatpush.msrb.mxu2 %v688_v47  ;;  %1812 = vmatpush.msrb.mxu3 %v960_v48  ;;  %v1232_v43 = vld [vmem:[%s6170_s20 + $0x1b08] sm:$0xff]  ;;  %v465_v44 = vld [vmem:[%s6170_s20 + $0x310] sm:$0xff] }
  0x70   : > { %1754 = vmatpush.msrb.mxu0 %v1439_v49  ;;  %1773 = vmatpush.msrb.mxu1 %v432_v50  ;;  %v737_v45 = vld [vmem:[%s6170_s20 + $0xb90] sm:$0xff]  ;;  %v1488_v46 = vld [vmem:[%s6170_s20 + $0x2308] sm:$0xff] }
  0x71   : > { %1794 = vmatpush.msrb.mxu2 %v672_v51  ;;  %1813 = vmatpush.msrb.mxu3 %v944_v52  ;;  %v1216_v47 = vld [vmem:[%s6170_s20 + $0x1a88] sm:$0xff]  ;;  %v449_v48 = vld [vmem:[%s6170_s20 + $0x290] sm:$0xff] }
  0x72   : > { %1755 = vmatpush.msrb.mxu0 %v1423_v53  ;;  %1774 = vmatpush.msrb.mxu1 %v416_v54  ;;  %v721_v49 = vld [vmem:[%s6170_s20 + $0xb10] sm:$0xff]  ;;  %v1200_v50 = vld [vmem:[%s6170_s20 + $0x1a08] sm:$0xff] }
  0x73   : > { %1795 = vmatpush.msrb.mxu2 %v656_v55  ;;  %1814 = vmatpush.msrb.mxu3 %v928_v56  ;;  %v1472_v51 = vld [vmem:[%s6170_s20 + $0x2288] sm:$0xff]  ;;  %v433_v52 = vld [vmem:[%s6170_s20 + $0x210] sm:$0xff] }
  0x74   : > { %1756 = vmatpush.msrb.mxu0 %v1407_v57  ;;  %1775 = vmatpush.msrb.mxu1 %v400_v58  ;;  %v705_v53 = vld [vmem:[%s6170_s20 + $0xa90] sm:$0xff]  ;;  %v1184_v54 = vld [vmem:[%s6170_s20 + $0x1988] sm:$0xff] }
  0x75   : > { %1796 = vmatpush.msrb.mxu2 %v640_v59  ;;  %1815 = vmatpush.msrb.mxu3 %v912_v60  ;;  %v1456_v55 = vld [vmem:[%s6170_s20 + $0x2208] sm:$0xff]  ;;  %v417_v56 = vld [vmem:[%s6170_s20 + $0x190] sm:$0xff] }
  0x76   : > { %1718 = vmatmul.f32.vlgmr.msra.gmra.mxu2 %v6297_v61  ;;  %1757 = vmatpush.msrb.mxu0 %v1391_v62  ;;  %v689_v57 = vld [vmem:[%s6170_s20 + $0xa10] sm:$0xff]  ;;  %v1168_v58 = vld [vmem:[%s6170_s20 + $0x1908] sm:$0xff] }
  0x77   : > { %1776 = vmatpush.msrb.mxu1 %v384_v63  ;;  %1797 = vmatpush.msrb.mxu2 %v624_v0  ;;  %v1440_v59 = vld [vmem:[%s6170_s20 + $0x2188] sm:$0xff]  ;;  %v401_v60 = vld [vmem:[%s6170_s20 + $0x110] sm:$0xff] }
  0x78   : > { %1816 = vmatpush.msrb.mxu3 %v896_v1  ;;  %1678 = vmatmul.f32.vlgmr.msra.gmra.mxu0 %v6303_v2  ;;  %v673_v62 = vld [vmem:[%s6170_s20 + $0x990] sm:$0xff]  ;;  %v1152_v63 = vld [vmem:[%s6170_s20 + $0x1888] sm:$0xff] }
  0x79   : > { %1738 = vmatmul.f32.vlgmr.msra.gmra.mxu3 %v6306_v3  ;;  %1822 = vmatpush.msra.mxu0 %v1376_v4  ;;  %v1424_v0 = vld [vmem:[%s6170_s20 + $0x2108] sm:$0xff]  ;;  %v385_v1 = vld [vmem:[%s6170_s20 + $0x90] sm:$0xff] }
  0x7a   : > { %1862 = vmatpush.msra.mxu2 %v609_v5  ;;  %1777 = vmatpush.msrb.mxu1 %v368_v6  ;;  %v657_v4 = vld [vmem:[%s6170_s20 + $0x910] sm:$0xff]  ;;  %v1136_v5 = vld [vmem:[%s6170_s20 + $0x1808] sm:$0xff] }
  0x7b   : > { %1817 = vmatpush.msrb.mxu3 %v880_v7  ;;  %1698 = vmatmul.f32.vlgmr.msra.gmra.mxu1 %v6313_v8  ;;  %v1408_v6 = vld [vmem:[%s6170_s20 + $0x2088] sm:$0xff]  ;;  %v369_v7 = vld [vmem:[%s6170_s20 + $0x10] sm:$0xff] }
  0x7c   : > { %1823 = vmatpush.msra.mxu0 %v1360_v9  ;;  %1842 = vmatpush.msra.mxu1 %v1632_v10  ;;  %v641_v9 = vld [vmem:[%s6170_s20 + $0x890] sm:$0xff] }
  0x7d   : > { %1863 = vmatpush.msra.mxu2 %v593_v11  ;;  %1882 = vmatpush.msra.mxu3 %v865_v12  ;;  %v1633_v10 = vld [vmem:[%s6170_s20 + $0x2790] sm:$0xff]  ;;  %v1392_v12 = vld [vmem:[%s6170_s20 + $0x2008] sm:$0xff] }
  0x7e   : > { %1824 = vmatpush.msra.mxu0 %v1344_v13  ;;  %1843 = vmatpush.msra.mxu1 %v1616_v14  ;;  %v1121_v11 = vld [vmem:[%s6170_s20 + $0x1790] sm:$0xff] }
  0x7f   : > { %1864 = vmatpush.msra.mxu2 %v577_v15  ;;  %1883 = vmatpush.msra.mxu3 %v849_v16  ;;  %v625_v13 = vld [vmem:[%s6170_s20 + $0x810] sm:$0xff] }
  0x80   : > { %1825 = vmatpush.msra.mxu0 %v1328_v17  ;;  %1844 = vmatpush.msra.mxu1 %v1600_v18  ;;  %v1105_v14 = vld [vmem:[%s6170_s20 + $0x1710] sm:$0xff]  ;;  %v610_v17 = vld [vmem:[%s6170_s20 + $0x798] sm:$0xff] }
  0x81   : > { %1865 = vmatpush.msra.mxu2 %v561_v19  ;;  %1884 = vmatpush.msra.mxu3 %v833_v20  ;;  %v1377_v15 = vld [vmem:[%s6170_s20 + $0x1f90] sm:$0xff] }
  0x82   : > { %1758 = vmatmul.f32.vlgmr.msrb.gmra.mxu0 %v6329_v21  ;;  %1845 = vmatpush.msra.mxu1 %v1584_v22  ;;  %v1617_v16 = vld [vmem:[%s6170_s20 + $0x2710] sm:$0xff]  ;;  %v594_v22 = vld [vmem:[%s6170_s20 + $0x718] sm:$0xff] }
  0x83   : > { %1826 = vmatpush.msra.mxu0 %v1312_v23  ;;  %1866 = vmatpush.msra.mxu2 %v545_v24  ;;  %v1089_v18 = vld [vmem:[%s6170_s20 + $0x1690] sm:$0xff] }
  0x84   : > { %1885 = vmatpush.msra.mxu3 %v817_v25  ;;  %1846 = vmatpush.msra.mxu1 %v1568_v26  ;;  %v1361_v19 = vld [vmem:[%s6170_s20 + $0x1f10] sm:$0xff]  ;;  %v578_v26 = vld [vmem:[%s6170_s20 + $0x698] sm:$0xff] }
  0x85   : > { %1827 = vmatpush.msra.mxu0 %v1296_v27  ;;  %1867 = vmatpush.msra.mxu2 %v529_v28  ;;  %v1601_v20 = vld [vmem:[%s6170_s20 + $0x2690] sm:$0xff] }
  0x86   : > { %1886 = vmatpush.msra.mxu3 %v801_v29  ;;  %1847 = vmatpush.msra.mxu1 %v1552_v30  ;;  %v1073_v23 = vld [vmem:[%s6170_s20 + $0x1610] sm:$0xff]  ;;  %v562_v30 = vld [vmem:[%s6170_s20 + $0x618] sm:$0xff] }
  0x87   : > { %1828 = vmatpush.msra.mxu0 %v1280_v31  ;;  %1868 = vmatpush.msra.mxu2 %v513_v32  ;;  %v1345_v24 = vld [vmem:[%s6170_s20 + $0x1e90] sm:$0xff] }
  0x88   : > { %1887 = vmatpush.msra.mxu3 %v785_v33  ;;  %1848 = vmatpush.msra.mxu1 %v1536_v34  ;;  %v1585_v25 = vld [vmem:[%s6170_s20 + $0x2610] sm:$0xff]  ;;  %v546_v34 = vld [vmem:[%s6170_s20 + $0x598] sm:$0xff] }
  0x89   : > { %1829 = vmatpush.msra.mxu0 %v1264_v35  ;;  %1869 = vmatpush.msra.mxu2 %v497_v36  ;;  %v1057_v27 = vld [vmem:[%s6170_s20 + $0x1590] sm:$0xff] }
  0x8a   : > { %1888 = vmatpush.msra.mxu3 %v769_v37  ;;  %1849 = vmatpush.msra.mxu1 %v1520_v38  ;;  %v1329_v28 = vld [vmem:[%s6170_s20 + $0x1e10] sm:$0xff]  ;;  %v530_v38 = vld [vmem:[%s6170_s20 + $0x518] sm:$0xff] }
  0x8b   : > { %1830 = vmatpush.msra.mxu0 %v1248_v39  ;;  %1870 = vmatpush.msra.mxu2 %v481_v40  ;;  %v1569_v29 = vld [vmem:[%s6170_s20 + $0x2590] sm:$0xff] }
  0x8c   : > { %1889 = vmatpush.msra.mxu3 %v753_v41  ;;  %1850 = vmatpush.msra.mxu1 %v1504_v42  ;;  %v1041_v31 = vld [vmem:[%s6170_s20 + $0x1510] sm:$0xff]  ;;  %v514_v42 = vld [vmem:[%s6170_s20 + $0x498] sm:$0xff] }
  0x8d   : > { %1831 = vmatpush.msra.mxu0 %v1232_v43  ;;  %1871 = vmatpush.msra.mxu2 %v465_v44  ;;  %v1313_v32 = vld [vmem:[%s6170_s20 + $0x1d90] sm:$0xff] }
  0x8e   : > { %1890 = vmatpush.msra.mxu3 %v737_v45  ;;  %1851 = vmatpush.msra.mxu1 %v1488_v46  ;;  %v1553_v33 = vld [vmem:[%s6170_s20 + $0x2510] sm:$0xff]  ;;  %v498_v46 = vld [vmem:[%s6170_s20 + $0x418] sm:$0xff] }
  0x8f   : > { %1832 = vmatpush.msra.mxu0 %v1216_v47  ;;  %1872 = vmatpush.msra.mxu2 %v449_v48  ;;  %v1025_v35 = vld [vmem:[%s6170_s20 + $0x1490] sm:$0xff] }
  0x90   : > { %1891 = vmatpush.msra.mxu3 %v721_v49  ;;  %1798 = vmatmul.f32.vlgmr.msrb.gmra.mxu2 %v6313_v8  ;;  %v1297_v36 = vld [vmem:[%s6170_s20 + $0x1d10] sm:$0xff] }
  0x91   : > { %1833 = vmatpush.msra.mxu0 %v1200_v50  ;;  %1852 = vmatpush.msra.mxu1 %v1472_v51  ;;  %v1537_v37 = vld [vmem:[%s6170_s20 + $0x2490] sm:$0xff]  ;;  %v482_v50 = vld [vmem:[%s6170_s20 + $0x398] sm:$0xff] }
  0x92   : > { %1873 = vmatpush.msra.mxu2 %v433_v52  ;;  %1892 = vmatpush.msra.mxu3 %v705_v53  ;;  %v1009_v39 = vld [vmem:[%s6170_s20 + $0x1410] sm:$0xff] }
  0x93   : > { %1818 = vmatmul.f32.vlgmr.msrb.gmra.mxu3 %v6297_v61  ;;  %1834 = vmatpush.msra.mxu0 %v1184_v54  ;;  %v1281_v40 = vld [vmem:[%s6170_s20 + $0x1c90] sm:$0xff]  ;;  %v466_v54 = vld [vmem:[%s6170_s20 + $0x318] sm:$0xff] }
  0x94   : > { %1853 = vmatpush.msra.mxu1 %v1456_v55  ;;  %1874 = vmatpush.msra.mxu2 %v417_v56  ;;  %v1521_v41 = vld [vmem:[%s6170_s20 + $0x2410] sm:$0xff] }
  0x95   : > { %1893 = vmatpush.msra.mxu3 %v689_v57  ;;  %1778 = vmatmul.f32.vlgmr.msrb.gmra.mxu1 %v6303_v2  ;;  %v993_v43 = vld [vmem:[%s6170_s20 + $0x1390] sm:$0xff] }
  0x96   : > { %1835 = vmatpush.msra.mxu0 %v1168_v58  ;;  %1854 = vmatpush.msra.mxu1 %v1440_v59  ;;  %v1265_v44 = vld [vmem:[%s6170_s20 + $0x1c10] sm:$0xff]  ;;  %v450_v58 = vld [vmem:[%s6170_s20 + $0x298] sm:$0xff] }
  0x97   : > { %1875 = vmatpush.msra.mxu2 %v401_v60  ;;  %1894 = vmatpush.msra.mxu3 %v673_v62  ;;  %v1505_v45 = vld [vmem:[%s6170_s20 + $0x2390] sm:$0xff] }
  0x98   : > { %1836 = vmatpush.msra.mxu0 %v1152_v63  ;;  %1855 = vmatpush.msra.mxu1 %v1424_v0  ;;  %v977_v47 = vld [vmem:[%s6170_s20 + $0x1310] sm:$0xff]  ;;  %v434_v63 = vld [vmem:[%s6170_s20 + $0x218] sm:$0xff] }
  0x99   : > { %1876 = vmatpush.msra.mxu2 %v385_v1  ;;  %1895 = vmatpush.msra.mxu3 %v657_v4  ;;  %v1249_v48 = vld [vmem:[%s6170_s20 + $0x1b90] sm:$0xff] }
  0x9a   : > { %1837 = vmatpush.msra.mxu0 %v1136_v5  ;;  %1856 = vmatpush.msra.mxu1 %v1408_v6  ;;  %v1489_v49 = vld [vmem:[%s6170_s20 + $0x2310] sm:$0xff]  ;;  %v418_v5 = vld [vmem:[%s6170_s20 + $0x198] sm:$0xff] }
  0x9b   : > { %1877 = vmatpush.msra.mxu2 %v369_v7  ;;  %1896 = vmatpush.msra.mxu3 %v641_v9  ;;  %v961_v51 = vld [vmem:[%s6170_s20 + $0x1290] sm:$0xff] }
  0x9c   : > { %1838 = vmatmul.f32.vlgmr.msra.gmra.mxu0 %v6306_v3  ;;  %1857 = vmatpush.msra.mxu1 %v1392_v12  ;;  %v1233_v52 = vld [vmem:[%s6170_s20 + $0x1b10] sm:$0xff] }
  0x9d   : > { %1942 = vmatpush.msrb.mxu2 %v1633_v10  ;;  %1902 = vmatpush.msrb.mxu0 %v1121_v11  ;;  %v1473_v53 = vld [vmem:[%s6170_s20 + $0x2290] sm:$0xff]  ;;  %v402_v10 = vld [vmem:[%s6170_s20 + $0x118] sm:$0xff] }
  0x9e   : > { %1897 = vmatpush.msra.mxu3 %v625_v13  ;;  %1858 = vmatmul.f32.vlgmr.msra.gmra.mxu1 %v6329_v21  ;;  %v945_v55 = vld [vmem:[%s6170_s20 + $0x1210] sm:$0xff] }
  0x9f   : > { %1903 = vmatpush.msrb.mxu0 %v1105_v14  ;;  %1922 = vmatpush.msrb.mxu1 %v1377_v15  ;;  %v1217_v56 = vld [vmem:[%s6170_s20 + $0x1a90] sm:$0xff]  ;;  %v386_v14 = vld [vmem:[%s6170_s20 + $0x98] sm:$0xff] }
  0xa0   : > { %1943 = vmatpush.msrb.mxu2 %v1617_v16  ;;  %1962 = vmatpush.msrb.mxu3 %v610_v17  ;;  %v1457_v57 = vld [vmem:[%s6170_s20 + $0x2210] sm:$0xff]  ;;  %v866_v15 = vld [vmem:[%s6170_s20 + $0xf98] sm:$0xff] }
  0xa1   : > { %1904 = vmatpush.msrb.mxu0 %v1089_v18  ;;  %1923 = vmatpush.msrb.mxu1 %v1361_v19  ;;  %v929_v59 = vld [vmem:[%s6170_s20 + $0x1190] sm:$0xff]  ;;  %v1378_v16 = vld [vmem:[%s6170_s20 + $0x1f98] sm:$0xff] }
  0xa2   : > { %1944 = vmatpush.msrb.mxu2 %v1601_v20  ;;  %1963 = vmatpush.msrb.mxu3 %v594_v22  ;;  %v1201_v60 = vld [vmem:[%s6170_s20 + $0x1a10] sm:$0xff]  ;;  %v370_v18 = vld [vmem:[%s6170_s20 + $0x18] sm:$0xff] }
  0xa3   : > { %1905 = vmatpush.msrb.mxu0 %v1073_v23  ;;  %1924 = vmatpush.msrb.mxu1 %v1345_v24  ;;  %v1441_v62 = vld [vmem:[%s6170_s20 + $0x2190] sm:$0xff]  ;;  %v850_v19 = vld [vmem:[%s6170_s20 + $0xf18] sm:$0xff] }
  0xa4   : > { %1945 = vmatpush.msrb.mxu2 %v1585_v25  ;;  %1964 = vmatpush.msrb.mxu3 %v578_v26  ;;  %v913_v0 = vld [vmem:[%s6170_s20 + $0x1110] sm:$0xff]  ;;  %v1122_v20 = vld [vmem:[%s6170_s20 + $0x1798] sm:$0xff] }
  0xa5   : > { %1906 = vmatpush.msrb.mxu0 %v1057_v27  ;;  %1925 = vmatpush.msrb.mxu1 %v1329_v28  ;;  %v1185_v1 = vld [vmem:[%s6170_s20 + $0x1990] sm:$0xff]  ;;  %v1362_v22 = vld [vmem:[%s6170_s20 + $0x1f18] sm:$0xff] }
  0xa6   : > { %1946 = vmatpush.msrb.mxu2 %v1569_v29  ;;  %1965 = vmatpush.msrb.mxu3 %v562_v30  ;;  %v1425_v4 = vld [vmem:[%s6170_s20 + $0x2110] sm:$0xff]  ;;  %v1634_v23 = vld [vmem:[%s6170_s20 + $0x2798] sm:$0xff] }
  0xa7   : > { %1907 = vmatpush.msrb.mxu0 %v1041_v31  ;;  %1926 = vmatpush.msrb.mxu1 %v1313_v32  ;;  %v897_v6 = vld [vmem:[%s6170_s20 + $0x1090] sm:$0xff]  ;;  %v834_v24 = vld [vmem:[%s6170_s20 + $0xe98] sm:$0xff] }
  0xa8   : > { %1947 = vmatpush.msrb.mxu2 %v1553_v33  ;;  %1966 = vmatpush.msrb.mxu3 %v546_v34  ;;  %v1169_v7 = vld [vmem:[%s6170_s20 + $0x1910] sm:$0xff]  ;;  %v1106_v25 = vld [vmem:[%s6170_s20 + $0x1718] sm:$0xff] }
  0xa9   : > { %1908 = vmatpush.msrb.mxu0 %v1025_v35  ;;  %1927 = vmatpush.msrb.mxu1 %v1297_v36  ;;  %v1409_v9 = vld [vmem:[%s6170_s20 + $0x2090] sm:$0xff]  ;;  %v1346_v26 = vld [vmem:[%s6170_s20 + $0x1e98] sm:$0xff] }
  0xaa   : > { %1948 = vmatpush.msrb.mxu2 %v1537_v37  ;;  %1967 = vmatpush.msrb.mxu3 %v530_v38  ;;  %v881_v11 = vld [vmem:[%s6170_s20 + $0x1010] sm:$0xff]  ;;  %v1618_v27 = vld [vmem:[%s6170_s20 + $0x2718] sm:$0xff] }
  0xab   : > { %1909 = vmatpush.msrb.mxu0 %v1009_v39  ;;  %1928 = vmatpush.msrb.mxu1 %v1281_v40  ;;  %v1153_v12 = vld [vmem:[%s6170_s20 + $0x1890] sm:$0xff]  ;;  %v818_v28 = vld [vmem:[%s6170_s20 + $0xe18] sm:$0xff] }
  0xac   : > { %1949 = vmatpush.msrb.mxu2 %v1521_v41  ;;  %1968 = vmatpush.msrb.mxu3 %v514_v42  ;;  %v1393_v13 = vld [vmem:[%s6170_s20 + $0x2010] sm:$0xff]  ;;  %v1090_v29 = vld [vmem:[%s6170_s20 + $0x1698] sm:$0xff] }
  0xad   : > { %1910 = vmatpush.msrb.mxu0 %v993_v43  ;;  %1929 = vmatpush.msrb.mxu1 %v1265_v44  ;;  %v1137_v17 = vld [vmem:[%s6170_s20 + $0x1810] sm:$0xff]  ;;  %v1330_v30 = vld [vmem:[%s6170_s20 + $0x1e18] sm:$0xff] }
  0xae   : > { %1950 = vmatpush.msrb.mxu2 %v1505_v45  ;;  %1969 = vmatpush.msrb.mxu3 %v498_v46  ;;  %v1602_v31 = vld [vmem:[%s6170_s20 + $0x2698] sm:$0xff] }
  0xaf   : > { %1911 = vmatpush.msrb.mxu0 %v977_v47  ;;  %1930 = vmatpush.msrb.mxu1 %v1249_v48  ;;  %v802_v32 = vld [vmem:[%s6170_s20 + $0xd98] sm:$0xff] }
  0xb0   : > { %1951 = vmatpush.msrb.mxu2 %v1489_v49  ;;  %1970 = vmatpush.msrb.mxu3 %v482_v50  ;;  %v1074_v33 = vld [vmem:[%s6170_s20 + $0x1618] sm:$0xff] }
  0xb1   : > { %1912 = vmatpush.msrb.mxu0 %v961_v51  ;;  %1931 = vmatpush.msrb.mxu1 %v1233_v52  ;;  %v1314_v34 = vld [vmem:[%s6170_s20 + $0x1d98] sm:$0xff] }
  0xb2   : > { %1952 = vmatpush.msrb.mxu2 %v1473_v53  ;;  %1971 = vmatpush.msrb.mxu3 %v466_v54  ;;  %v1586_v35 = vld [vmem:[%s6170_s20 + $0x2618] sm:$0xff] }
  0xb3   : > { %1913 = vmatpush.msrb.mxu0 %v945_v55  ;;  %1932 = vmatpush.msrb.mxu1 %v1217_v56  ;;  %v786_v36 = vld [vmem:[%s6170_s20 + $0xd18] sm:$0xff] }
  0xb4   : > { %1953 = vmatpush.msrb.mxu2 %v1457_v57  ;;  %1972 = vmatpush.msrb.mxu3 %v450_v58  ;;  %v1058_v37 = vld [vmem:[%s6170_s20 + $0x1598] sm:$0xff] }
  0xb5   : > { %1914 = vmatpush.msrb.mxu0 %v929_v59  ;;  %1933 = vmatpush.msrb.mxu1 %v1201_v60  ;;  %v1298_v38 = vld [vmem:[%s6170_s20 + $0x1d18] sm:$0xff] }
  0xb6   : > { %1954 = vmatpush.msrb.mxu2 %v1441_v62  ;;  %1973 = vmatpush.msrb.mxu3 %v434_v63  ;;  %v1570_v39 = vld [vmem:[%s6170_s20 + $0x2598] sm:$0xff] }
  0xb7   : > { %1915 = vmatpush.msrb.mxu0 %v913_v0  ;;  %1934 = vmatpush.msrb.mxu1 %v1185_v1  ;;  %v770_v40 = vld [vmem:[%s6170_s20 + $0xc98] sm:$0xff] }
  0xb8   : > { %1955 = vmatpush.msrb.mxu2 %v1425_v4  ;;  %1974 = vmatpush.msrb.mxu3 %v418_v5  ;;  %v1042_v41 = vld [vmem:[%s6170_s20 + $0x1518] sm:$0xff] }
  0xb9   : > { %1916 = vmatpush.msrb.mxu0 %v897_v6  ;;  %1935 = vmatpush.msrb.mxu1 %v1169_v7  ;;  %v1282_v42 = vld [vmem:[%s6170_s20 + $0x1c98] sm:$0xff] }
  0xba   : > { %1956 = vmatpush.msrb.mxu2 %v1409_v9  ;;  %1975 = vmatpush.msrb.mxu3 %v402_v10  ;;  %v1554_v43 = vld [vmem:[%s6170_s20 + $0x2518] sm:$0xff] }
  0xbb   : > { %1878 = vmatmul.f32.vlgmr.msra.gmra.mxu2 %v6303_v2  ;;  %1917 = vmatpush.msrb.mxu0 %v881_v11  ;;  %v754_v44 = vld [vmem:[%s6170_s20 + $0xc18] sm:$0xff] }
  0xbc   : > { %1936 = vmatpush.msrb.mxu1 %v1153_v12  ;;  %1957 = vmatpush.msrb.mxu2 %v1393_v13  ;;  %v1026_v45 = vld [vmem:[%s6170_s20 + $0x1498] sm:$0xff] }
  0xbd   : > { %1976 = vmatpush.msrb.mxu3 %v386_v14  ;;  %1982 = vmatpush.msra.mxu0 %v866_v15  ;;  %v1266_v46 = vld [vmem:[%s6170_s20 + $0x1c18] sm:$0xff] }
  0xbe   : > { %1898 = vmatmul.f32.vlgmr.msra.gmra.mxu3 %v6313_v8  ;;  %2022 = vmatpush.msra.mxu2 %v1378_v16  ;;  %v1538_v47 = vld [vmem:[%s6170_s20 + $0x2498] sm:$0xff] }
  0xbf   : > { %1937 = vmatpush.msrb.mxu1 %v1137_v17  ;;  %1977 = vmatpush.msrb.mxu3 %v370_v18  ;;  %v738_v48 = vld [vmem:[%s6170_s20 + $0xb98] sm:$0xff] }
  0xc0   : > { %1983 = vmatpush.msra.mxu0 %v850_v19  ;;  %2023 = vmatpush.msra.mxu2 %v1362_v22  ;;  %v1010_v49 = vld [vmem:[%s6170_s20 + $0x1418] sm:$0xff] }
  0xc1   : > { %2002 = vmatpush.msra.mxu1 %v1122_v20  ;;  %2042 = vmatpush.msra.mxu3 %v1634_v23  ;;  %v1250_v50 = vld [vmem:[%s6170_s20 + $0x1b98] sm:$0xff]  ;;  %v1123_v20 = vld [vmem:[%s6170_s20 + $0x17a0] sm:$0xff] }
  0xc2   : > { %1984 = vmatpush.msra.mxu0 %v834_v24  ;;  %2024 = vmatpush.msra.mxu2 %v1346_v26  ;;  %v1522_v51 = vld [vmem:[%s6170_s20 + $0x2418] sm:$0xff]  ;;  %v595_v24 = vld [vmem:[%s6170_s20 + $0x720] sm:$0xff] }
  0xc3   : > { %2003 = vmatpush.msra.mxu1 %v1106_v25  ;;  %2043 = vmatpush.msra.mxu3 %v1618_v27  ;;  %v722_v52 = vld [vmem:[%s6170_s20 + $0xb18] sm:$0xff]  ;;  %v867_v25 = vld [vmem:[%s6170_s20 + $0xfa0] sm:$0xff] }
  0xc4   : > { %1958 = vmatmul.f32.vlgmr.msrb.gmra.mxu2 %v6329_v21  ;;  %1985 = vmatpush.msra.mxu0 %v818_v28  ;;  %v994_v53 = vld [vmem:[%s6170_s20 + $0x1398] sm:$0xff]  ;;  %v1107_v26 = vld [vmem:[%s6170_s20 + $0x1720] sm:$0xff] }
  0xc5   : > { %2004 = vmatpush.msra.mxu1 %v1090_v29  ;;  %2025 = vmatpush.msra.mxu2 %v1330_v30  ;;  %v1234_v54 = vld [vmem:[%s6170_s20 + $0x1b18] sm:$0xff]  ;;  %v1379_v27 = vld [vmem:[%s6170_s20 + $0x1fa0] sm:$0xff] }
  0xc6   : > { %2044 = vmatpush.msra.mxu3 %v1602_v31  ;;  %1918 = vmatmul.f32.vlgmr.msrb.gmra.mxu0 %v6297_v61  ;;  %v1506_v55 = vld [vmem:[%s6170_s20 + $0x2398] sm:$0xff]  ;;  %v851_v28 = vld [vmem:[%s6170_s20 + $0xf20] sm:$0xff] }
  0xc7   : > { %1986 = vmatpush.msra.mxu0 %v802_v32  ;;  %2005 = vmatpush.msra.mxu1 %v1074_v33  ;;  %v706_v56 = vld [vmem:[%s6170_s20 + $0xa98] sm:$0xff]  ;;  %v1091_v29 = vld [vmem:[%s6170_s20 + $0x16a0] sm:$0xff] }
  0xc8   : > { %2026 = vmatpush.msra.mxu2 %v1314_v34  ;;  %2045 = vmatpush.msra.mxu3 %v1586_v35  ;;  %v978_v57 = vld [vmem:[%s6170_s20 + $0x1318] sm:$0xff]  ;;  %v1363_v30 = vld [vmem:[%s6170_s20 + $0x1f20] sm:$0xff] }
  0xc9   : > { %1938 = vmatmul.f32.vlgmr.msrb.gmra.mxu1 %v6306_v3  ;;  %1987 = vmatpush.msra.mxu0 %v786_v36  ;;  %v1218_v58 = vld [vmem:[%s6170_s20 + $0x1a98] sm:$0xff]  ;;  %v835_v31 = vld [vmem:[%s6170_s20 + $0xea0] sm:$0xff] }
  0xca   : > { %2006 = vmatpush.msra.mxu1 %v1058_v37  ;;  %2027 = vmatpush.msra.mxu2 %v1298_v38  ;;  %v1490_v59 = vld [vmem:[%s6170_s20 + $0x2318] sm:$0xff]  ;;  %v1347_v32 = vld [vmem:[%s6170_s20 + $0x1ea0] sm:$0xff] }
  0xcb   : > { %2046 = vmatpush.msra.mxu3 %v1570_v39  ;;  %1988 = vmatpush.msra.mxu0 %v770_v40  ;;  %v690_v60 = vld [vmem:[%s6170_s20 + $0xa18] sm:$0xff]  ;;  %v547_v33 = vld [vmem:[%s6170_s20 + $0x5a0] sm:$0xff] }
  0xcc   : > { %2007 = vmatpush.msra.mxu1 %v1042_v41  ;;  %2028 = vmatpush.msra.mxu2 %v1282_v42  ;;  %v962_v62 = vld [vmem:[%s6170_s20 + $0x1298] sm:$0xff]  ;;  %v819_v34 = vld [vmem:[%s6170_s20 + $0xe20] sm:$0xff] }
  0xcd   : > { %2047 = vmatpush.msra.mxu3 %v1554_v43  ;;  %1989 = vmatpush.msra.mxu0 %v754_v44  ;;  %v1202_v63 = vld [vmem:[%s6170_s20 + $0x1a18] sm:$0xff]  ;;  %v1059_v35 = vld [vmem:[%s6170_s20 + $0x15a0] sm:$0xff] }
  0xce   : > { %2008 = vmatpush.msra.mxu1 %v1026_v45  ;;  %2029 = vmatpush.msra.mxu2 %v1266_v46  ;;  %v1474_v0 = vld [vmem:[%s6170_s20 + $0x2298] sm:$0xff]  ;;  %v531_v36 = vld [vmem:[%s6170_s20 + $0x520] sm:$0xff] }
  0xcf   : > { %2048 = vmatpush.msra.mxu3 %v1538_v47  ;;  %1990 = vmatpush.msra.mxu0 %v738_v48  ;;  %v674_v1 = vld [vmem:[%s6170_s20 + $0x998] sm:$0xff]  ;;  %v803_v37 = vld [vmem:[%s6170_s20 + $0xda0] sm:$0xff] }
  0xd0   : > { %2009 = vmatpush.msra.mxu1 %v1010_v49  ;;  %2030 = vmatpush.msra.mxu2 %v1250_v50  ;;  %v946_v4 = vld [vmem:[%s6170_s20 + $0x1218] sm:$0xff]  ;;  %v1043_v38 = vld [vmem:[%s6170_s20 + $0x1520] sm:$0xff] }
  0xd1   : > { %2049 = vmatpush.msra.mxu3 %v1522_v51  ;;  %1991 = vmatpush.msra.mxu0 %v722_v52  ;;  %v1186_v5 = vld [vmem:[%s6170_s20 + $0x1998] sm:$0xff]  ;;  %v1315_v39 = vld [vmem:[%s6170_s20 + $0x1da0] sm:$0xff] }
  0xd2   : > { %2010 = vmatpush.msra.mxu1 %v994_v53  ;;  %2031 = vmatpush.msra.mxu2 %v1234_v54  ;;  %v1458_v6 = vld [vmem:[%s6170_s20 + $0x2218] sm:$0xff]  ;;  %v515_v40 = vld [vmem:[%s6170_s20 + $0x4a0] sm:$0xff] }
  0xd3   : > { %2050 = vmatpush.msra.mxu3 %v1506_v55  ;;  %1992 = vmatpush.msra.mxu0 %v706_v56  ;;  %v658_v7 = vld [vmem:[%s6170_s20 + $0x918] sm:$0xff]  ;;  %v787_v41 = vld [vmem:[%s6170_s20 + $0xd20] sm:$0xff] }
  0xd4   : > { %2011 = vmatpush.msra.mxu1 %v978_v57  ;;  %2032 = vmatpush.msra.mxu2 %v1218_v58  ;;  %v930_v9 = vld [vmem:[%s6170_s20 + $0x1198] sm:$0xff]  ;;  %v1027_v42 = vld [vmem:[%s6170_s20 + $0x14a0] sm:$0xff] }
  0xd5   : > { %2051 = vmatpush.msra.mxu3 %v1490_v59  ;;  %1993 = vmatpush.msra.mxu0 %v690_v60  ;;  %v1170_v10 = vld [vmem:[%s6170_s20 + $0x1918] sm:$0xff]  ;;  %v1299_v43 = vld [vmem:[%s6170_s20 + $0x1d20] sm:$0xff] }
  0xd6   : > { %2012 = vmatpush.msra.mxu1 %v962_v62  ;;  %2033 = vmatpush.msra.mxu2 %v1202_v63  ;;  %v1442_v11 = vld [vmem:[%s6170_s20 + $0x2198] sm:$0xff]  ;;  %v499_v44 = vld [vmem:[%s6170_s20 + $0x420] sm:$0xff] }
  0xd7   : > { %2052 = vmatpush.msra.mxu3 %v1474_v0  ;;  %1994 = vmatpush.msra.mxu0 %v674_v1  ;;  %v642_v12 = vld [vmem:[%s6170_s20 + $0x898] sm:$0xff]  ;;  %v771_v45 = vld [vmem:[%s6170_s20 + $0xca0] sm:$0xff] }
  0xd8   : > { %2013 = vmatpush.msra.mxu1 %v946_v4  ;;  %2034 = vmatpush.msra.mxu2 %v1186_v5  ;;  %v914_v13 = vld [vmem:[%s6170_s20 + $0x1118] sm:$0xff]  ;;  %v1011_v46 = vld [vmem:[%s6170_s20 + $0x1420] sm:$0xff] }
  0xd9   : > { %2053 = vmatpush.msra.mxu3 %v1458_v6  ;;  %1995 = vmatpush.msra.mxu0 %v658_v7  ;;  %v1154_v14 = vld [vmem:[%s6170_s20 + $0x1898] sm:$0xff]  ;;  %v1283_v47 = vld [vmem:[%s6170_s20 + $0x1ca0] sm:$0xff] }
  0xda   : > { %1978 = vmatmul.f32.vlgmr.msrb.gmra.mxu3 %v6303_v2  ;;  %2014 = vmatpush.msra.mxu1 %v930_v9  ;;  %v1426_v15 = vld [vmem:[%s6170_s20 + $0x2118] sm:$0xff]  ;;  %v611_v2 = vld [vmem:[%s6170_s20 + $0x7a0] sm:$0xff] }
  0xdb   : > { %2035 = vmatpush.msra.mxu2 %v1170_v10  ;;  %2054 = vmatpush.msra.mxu3 %v1442_v11  ;;  %v626_v16 = vld [vmem:[%s6170_s20 + $0x818] sm:$0xff]  ;;  %v483_v48 = vld [vmem:[%s6170_s20 + $0x3a0] sm:$0xff] }
  0xdc   : > { %v898_v17 = vld [vmem:[%s6170_s20 + $0x1098] sm:$0xff]  ;;  %1996 = vmatpush.msra.mxu0 %v642_v12  ;;  %2015 = vmatpush.msra.mxu1 %v914_v13  ;;  %v755_v49 = vld [vmem:[%s6170_s20 + $0xc20] sm:$0xff] }
  0xdd   : > { %v1138_v18 = vld [vmem:[%s6170_s20 + $0x1818] sm:$0xff]  ;;  %2036 = vmatpush.msra.mxu2 %v1154_v14  ;;  %2055 = vmatpush.msra.mxu3 %v1426_v15  ;;  %v995_v50 = vld [vmem:[%s6170_s20 + $0x13a0] sm:$0xff] }
  0xde   : > { %v1410_v19 = vld [vmem:[%s6170_s20 + $0x2098] sm:$0xff]  ;;  %1997 = vmatpush.msra.mxu0 %v626_v16  ;;  %2016 = vmatpush.msra.mxu1 %v898_v17  ;;  %v1267_v51 = vld [vmem:[%s6170_s20 + $0x1c20] sm:$0xff] }
  0xdf   : > { %v882_v22 = vld [vmem:[%s6170_s20 + $0x1018] sm:$0xff]  ;;  %2037 = vmatpush.msra.mxu2 %v1138_v18  ;;  %2056 = vmatpush.msra.mxu3 %v1410_v19  ;;  %v467_v52 = vld [vmem:[%s6170_s20 + $0x320] sm:$0xff] }
  0xe0   : > { %v1394_v23 = vld [vmem:[%s6170_s20 + $0x2018] sm:$0xff]  ;;  %2038 = vmatmul.f32.vlgmr.msra.gmra.mxu2 %v6306_v3  ;;  %2062 = vmatpush.msrb.mxu0 %v611_v2  ;;  %v579_v3 = vld [vmem:[%s6170_s20 + $0x6a0] sm:$0xff] }
  0xe1   : > { %2102 = vmatpush.msrb.mxu2 %v1123_v20  ;;  %2017 = vmatpush.msra.mxu1 %v882_v22  ;;  %v739_v53 = vld [vmem:[%s6170_s20 + $0xba0] sm:$0xff]  ;;  %v868_v20 = vld [vmem:[%s6170_s20 + $0xfa8] sm:$0xff] }
  0xe2   : > { %2057 = vmatpush.msra.mxu3 %v1394_v23  ;;  %1998 = vmatmul.f32.vlgmr.msra.gmra.mxu0 %v6313_v8  ;;  %v563_v8 = vld [vmem:[%s6170_s20 + $0x620] sm:$0xff] }
  0xe3   : > { %2058 = vmatmul.f32.vlgmr.msra.gmra.mxu3 %v6329_v21  ;;  %2063 = vmatpush.msrb.mxu0 %v595_v24  ;;  %v1075_v21 = vld [vmem:[%s6170_s20 + $0x1620] sm:$0xff] }
  0xe4   : > { %2082 = vmatpush.msrb.mxu1 %v867_v25  ;;  %2103 = vmatpush.msrb.mxu2 %v1107_v26  ;;  %v979_v54 = vld [vmem:[%s6170_s20 + $0x1320] sm:$0xff]  ;;  %v612_v25 = vld [vmem:[%s6170_s20 + $0x7a8] sm:$0xff] }
  0xe5   : > { %2122 = vmatpush.msrb.mxu3 %v1379_v27  ;;  %2018 = vmatmul.f32.vlgmr.msra.gmra.mxu1 %v6297_v61  ;;  %v1331_v61 = vld [vmem:[%s6170_s20 + $0x1e20] sm:$0xff]  ;;  %v852_v26 = vld [vmem:[%s6170_s20 + $0xf28] sm:$0xff] }
  0xe6   : > { %2064 = vmatpush.msrb.mxu0 %v579_v3  ;;  %2083 = vmatpush.msrb.mxu1 %v851_v28  ;;  %v1251_v55 = vld [vmem:[%s6170_s20 + $0x1ba0] sm:$0xff]  ;;  %v1124_v27 = vld [vmem:[%s6170_s20 + $0x17a8] sm:$0xff] }
  0xe7   : > { %2104 = vmatpush.msrb.mxu2 %v1091_v29  ;;  %2123 = vmatpush.msrb.mxu3 %v1363_v30  ;;  %v451_v56 = vld [vmem:[%s6170_s20 + $0x2a0] sm:$0xff]  ;;  %v596_v28 = vld [vmem:[%s6170_s20 + $0x728] sm:$0xff] }
  0xe8   : > { %2065 = vmatpush.msrb.mxu0 %v563_v8  ;;  %2084 = vmatpush.msrb.mxu1 %v835_v31  ;;  %v723_v57 = vld [vmem:[%s6170_s20 + $0xb20] sm:$0xff]  ;;  %v836_v29 = vld [vmem:[%s6170_s20 + $0xea8] sm:$0xff] }
  0xe9   : > { %2105 = vmatpush.msrb.mxu2 %v1075_v21  ;;  %2124 = vmatpush.msrb.mxu3 %v1347_v32  ;;  %v963_v58 = vld [vmem:[%s6170_s20 + $0x12a0] sm:$0xff]  ;;  %v1108_v30 = vld [vmem:[%s6170_s20 + $0x1728] sm:$0xff] }
  0xea   : > { %2066 = vmatpush.msrb.mxu0 %v547_v33  ;;  %2085 = vmatpush.msrb.mxu1 %v819_v34  ;;  %v1235_v59 = vld [vmem:[%s6170_s20 + $0x1b20] sm:$0xff]  ;;  %v580_v31 = vld [vmem:[%s6170_s20 + $0x6a8] sm:$0xff] }
  0xeb   : > { %2106 = vmatpush.msrb.mxu2 %v1059_v35  ;;  %2125 = vmatpush.msrb.mxu3 %v1331_v61  ;;  %v435_v60 = vld [vmem:[%s6170_s20 + $0x220] sm:$0xff]  ;;  %v820_v21 = vld [vmem:[%s6170_s20 + $0xe28] sm:$0xff] }
  0xec   : > { %2067 = vmatpush.msrb.mxu0 %v531_v36  ;;  %2086 = vmatpush.msrb.mxu1 %v803_v37  ;;  %v707_v62 = vld [vmem:[%s6170_s20 + $0xaa0] sm:$0xff]  ;;  %v1092_v32 = vld [vmem:[%s6170_s20 + $0x16a8] sm:$0xff] }
  0xed   : > { %2107 = vmatpush.msrb.mxu2 %v1043_v38  ;;  %2126 = vmatpush.msrb.mxu3 %v1315_v39  ;;  %v947_v63 = vld [vmem:[%s6170_s20 + $0x1220] sm:$0xff]  ;;  %v564_v34 = vld [vmem:[%s6170_s20 + $0x628] sm:$0xff] }
  0xee   : > { %2068 = vmatpush.msrb.mxu0 %v515_v40  ;;  %2087 = vmatpush.msrb.mxu1 %v787_v41  ;;  %v1219_v0 = vld [vmem:[%s6170_s20 + $0x1aa0] sm:$0xff]  ;;  %v804_v35 = vld [vmem:[%s6170_s20 + $0xda8] sm:$0xff] }
  0xef   : > { %2108 = vmatpush.msrb.mxu2 %v1027_v42  ;;  %2127 = vmatpush.msrb.mxu3 %v1299_v43  ;;  %v419_v1 = vld [vmem:[%s6170_s20 + $0x1a0] sm:$0xff]  ;;  %v1076_v61 = vld [vmem:[%s6170_s20 + $0x1628] sm:$0xff] }
  0xf0   : > { %2069 = vmatpush.msrb.mxu0 %v499_v44  ;;  %2088 = vmatpush.msrb.mxu1 %v771_v45  ;;  %v691_v4 = vld [vmem:[%s6170_s20 + $0xa20] sm:$0xff]  ;;  %v548_v37 = vld [vmem:[%s6170_s20 + $0x5a8] sm:$0xff] }
  0xf1   : > { %2109 = vmatpush.msrb.mxu2 %v1011_v46  ;;  %2128 = vmatpush.msrb.mxu3 %v1283_v47  ;;  %v931_v5 = vld [vmem:[%s6170_s20 + $0x11a0] sm:$0xff]  ;;  %v788_v38 = vld [vmem:[%s6170_s20 + $0xd28] sm:$0xff] }
  0xf2   : > { %2070 = vmatpush.msrb.mxu0 %v483_v48  ;;  %2089 = vmatpush.msrb.mxu1 %v755_v49  ;;  %v1203_v6 = vld [vmem:[%s6170_s20 + $0x1a20] sm:$0xff]  ;;  %v1060_v39 = vld [vmem:[%s6170_s20 + $0x15a8] sm:$0xff] }
  0xf3   : > { %2110 = vmatpush.msrb.mxu2 %v995_v50  ;;  %2129 = vmatpush.msrb.mxu3 %v1267_v51  ;;  %v403_v7 = vld [vmem:[%s6170_s20 + $0x120] sm:$0xff]  ;;  %v532_v41 = vld [vmem:[%s6170_s20 + $0x528] sm:$0xff] }
  0xf4   : > { %2071 = vmatpush.msrb.mxu0 %v467_v52  ;;  %2090 = vmatpush.msrb.mxu1 %v739_v53  ;;  %v675_v9 = vld [vmem:[%s6170_s20 + $0x9a0] sm:$0xff]  ;;  %v772_v42 = vld [vmem:[%s6170_s20 + $0xca8] sm:$0xff] }
  0xf5   : > { %2111 = vmatpush.msrb.mxu2 %v979_v54  ;;  %2130 = vmatpush.msrb.mxu3 %v1251_v55  ;;  %v915_v10 = vld [vmem:[%s6170_s20 + $0x1120] sm:$0xff]  ;;  %v1044_v43 = vld [vmem:[%s6170_s20 + $0x1528] sm:$0xff] }
  0xf6   : > { %2072 = vmatpush.msrb.mxu0 %v451_v56  ;;  %2091 = vmatpush.msrb.mxu1 %v723_v57  ;;  %v1187_v11 = vld [vmem:[%s6170_s20 + $0x19a0] sm:$0xff]  ;;  %v516_v45 = vld [vmem:[%s6170_s20 + $0x4a8] sm:$0xff] }
  0xf7   : > { %2112 = vmatpush.msrb.mxu2 %v963_v58  ;;  %2131 = vmatpush.msrb.mxu3 %v1235_v59  ;;  %v387_v12 = vld [vmem:[%s6170_s20 + $0xa0] sm:$0xff]  ;;  %v756_v46 = vld [vmem:[%s6170_s20 + $0xc28] sm:$0xff] }
  0xf8   : > { %2073 = vmatpush.msrb.mxu0 %v435_v60  ;;  %2092 = vmatpush.msrb.mxu1 %v707_v62  ;;  %v659_v13 = vld [vmem:[%s6170_s20 + $0x920] sm:$0xff]  ;;  %v1028_v47 = vld [vmem:[%s6170_s20 + $0x14a8] sm:$0xff] }
  0xf9   : > { %2113 = vmatpush.msrb.mxu2 %v947_v63  ;;  %2132 = vmatpush.msrb.mxu3 %v1219_v0  ;;  %v899_v14 = vld [vmem:[%s6170_s20 + $0x10a0] sm:$0xff]  ;;  %v500_v49 = vld [vmem:[%s6170_s20 + $0x428] sm:$0xff] }
  0xfa   : > { %2074 = vmatpush.msrb.mxu0 %v419_v1  ;;  %2093 = vmatpush.msrb.mxu1 %v691_v4  ;;  %v1171_v15 = vld [vmem:[%s6170_s20 + $0x1920] sm:$0xff]  ;;  %v740_v50 = vld [vmem:[%s6170_s20 + $0xba8] sm:$0xff] }
  0xfb   : > { %2114 = vmatpush.msrb.mxu2 %v931_v5  ;;  %2133 = vmatpush.msrb.mxu3 %v1203_v6  ;;  %v371_v16 = vld [vmem:[%s6170_s20 + $0x20] sm:$0xff]  ;;  %v1012_v51 = vld [vmem:[%s6170_s20 + $0x1428] sm:$0xff] }
  0xfc   : > { %2075 = vmatpush.msrb.mxu0 %v403_v7  ;;  %2094 = vmatpush.msrb.mxu1 %v675_v9  ;;  %v643_v17 = vld [vmem:[%s6170_s20 + $0x8a0] sm:$0xff]  ;;  %v484_v53 = vld [vmem:[%s6170_s20 + $0x3a8] sm:$0xff] }
  0xfd   : > { %2115 = vmatpush.msrb.mxu2 %v915_v10  ;;  %2134 = vmatpush.msrb.mxu3 %v1187_v11  ;;  %v883_v18 = vld [vmem:[%s6170_s20 + $0x1020] sm:$0xff]  ;;  %v724_v54 = vld [vmem:[%s6170_s20 + $0xb28] sm:$0xff] }
  0xfe   : > { %2076 = vmatpush.msrb.mxu0 %v387_v12  ;;  %2095 = vmatpush.msrb.mxu1 %v659_v13  ;;  %v1155_v19 = vld [vmem:[%s6170_s20 + $0x18a0] sm:$0xff]  ;;  %v996_v55 = vld [vmem:[%s6170_s20 + $0x13a8] sm:$0xff] }
  0xff   : > { %2116 = vmatpush.msrb.mxu2 %v899_v14  ;;  %2135 = vmatpush.msrb.mxu3 %v1171_v15  ;;  %v1635_v2 = vld [vmem:[%s6170_s20 + $0x27a0] sm:$0xff]  ;;  %v468_v57 = vld [vmem:[%s6170_s20 + $0x328] sm:$0xff] }
 0x100   : > { %2077 = vmatpush.msrb.mxu0 %v371_v16  ;;  %2096 = vmatpush.msrb.mxu1 %v643_v17  ;;  %v627_v22 = vld [vmem:[%s6170_s20 + $0x820] sm:$0xff]  ;;  %v708_v58 = vld [vmem:[%s6170_s20 + $0xaa8] sm:$0xff] }
 0x101   : > { %v1139_v23 = vld [vmem:[%s6170_s20 + $0x1820] sm:$0xff]  ;;  %2117 = vmatpush.msrb.mxu2 %v883_v18  ;;  %2136 = vmatpush.msrb.mxu3 %v1155_v19  ;;  %v980_v59 = vld [vmem:[%s6170_s20 + $0x1328] sm:$0xff] }
 0x102   : > { %v1619_v24 = vld [vmem:[%s6170_s20 + $0x2720] sm:$0xff]  ;;  %2142 = vmatpush.msra.mxu0 %v1635_v2  ;;  %2097 = vmatpush.msrb.mxu1 %v627_v22  ;;  %v452_v62 = vld [vmem:[%s6170_s20 + $0x2a8] sm:$0xff]  ;;  %v6651_v2 = vld.sshfl [vmem:[#allocation1 + $0x10] sm:$0xff pattern:$0x73625140] }
 0x103   : > { %2182 = vmatpush.msra.mxu2 %v868_v20  ;;  %2137 = vmatpush.msrb.mxu3 %v1139_v23  ;;  %v1603_v3 = vld [vmem:[%s6170_s20 + $0x26a0] sm:$0xff]  ;;  %v692_v63 = vld [vmem:[%s6170_s20 + $0xa28] sm:$0xff]  ;;  %v613_v22 = vld [vmem:[%s6170_s20 + $0x7b0] sm:$0xff] }
 0x104   : > { %2143 = vmatpush.msra.mxu0 %v1619_v24  ;;  %2162 = vmatpush.msra.mxu1 %v612_v25  ;;  %v1587_v8 = vld [vmem:[%s6170_s20 + $0x2620] sm:$0xff]  ;;  %v964_v0 = vld [vmem:[%s6170_s20 + $0x12a8] sm:$0xff] }
 0x105   : > { %2183 = vmatpush.msra.mxu2 %v852_v26  ;;  %2202 = vmatpush.msra.mxu3 %v1124_v27  ;;  %v1571_v33 = vld [vmem:[%s6170_s20 + $0x25a0] sm:$0xff]  ;;  %v436_v4 = vld [vmem:[%s6170_s20 + $0x228] sm:$0xff]  ;;  %v6661_v26 = vld.sshfl [vmem:[#allocation1 + $0x18] sm:$0xff pattern:$0x73625140] }
 0x106   : > { %2144 = vmatpush.msra.mxu0 %v1603_v3  ;;  %2163 = vmatpush.msra.mxu1 %v596_v28  ;;  %v1555_v36 = vld [vmem:[%s6170_s20 + $0x2520] sm:$0xff]  ;;  %v676_v5 = vld [vmem:[%s6170_s20 + $0x9a8] sm:$0xff]  ;;  %v597_v28 = vld [vmem:[%s6170_s20 + $0x730] sm:$0xff] }
 0x107   : > { %2184 = vmatpush.msra.mxu2 %v836_v29  ;;  %2203 = vmatpush.msra.mxu3 %v1108_v30  ;;  %v1539_v40 = vld [vmem:[%s6170_s20 + $0x24a0] sm:$0xff]  ;;  %v948_v6 = vld [vmem:[%s6170_s20 + $0x1228] sm:$0xff]  ;;  %v869_v29 = vld [vmem:[%s6170_s20 + $0xfb0] sm:$0xff] }
 0x108   : > { %2145 = vmatpush.msra.mxu0 %v1587_v8  ;;  %2164 = vmatpush.msra.mxu1 %v580_v31  ;;  %v1523_v44 = vld [vmem:[%s6170_s20 + $0x2420] sm:$0xff]  ;;  %v420_v9 = vld [vmem:[%s6170_s20 + $0x1a8] sm:$0xff] }
 0x109   : > { %2185 = vmatpush.msra.mxu2 %v820_v21  ;;  %2204 = vmatpush.msra.mxu3 %v1092_v32  ;;  %v1507_v48 = vld [vmem:[%s6170_s20 + $0x23a0] sm:$0xff]  ;;  %v660_v10 = vld [vmem:[%s6170_s20 + $0x928] sm:$0xff]  ;;  %v581_v21 = vld [vmem:[%s6170_s20 + $0x6b0] sm:$0xff] }
 0x10a   : > { %2146 = vmatpush.msra.mxu0 %v1571_v33  ;;  %2165 = vmatpush.msra.mxu1 %v564_v34  ;;  %v1491_v52 = vld [vmem:[%s6170_s20 + $0x2320] sm:$0xff]  ;;  %v932_v11 = vld [vmem:[%s6170_s20 + $0x11a8] sm:$0xff]  ;;  %v853_v32 = vld [vmem:[%s6170_s20 + $0xf30] sm:$0xff] }
 0x10b   : > { %2186 = vmatpush.msra.mxu2 %v804_v35  ;;  %2205 = vmatpush.msra.mxu3 %v1076_v61  ;;  %v1475_v56 = vld [vmem:[%s6170_s20 + $0x22a0] sm:$0xff]  ;;  %v404_v13 = vld [vmem:[%s6170_s20 + $0x128] sm:$0xff]  ;;  %v565_v35 = vld [vmem:[%s6170_s20 + $0x630] sm:$0xff] }
 0x10c   : > { %2147 = vmatpush.msra.mxu0 %v1555_v36  ;;  %2166 = vmatpush.msra.mxu1 %v548_v37  ;;  %v1459_v60 = vld [vmem:[%s6170_s20 + $0x2220] sm:$0xff]  ;;  %v644_v14 = vld [vmem:[%s6170_s20 + $0x8a8] sm:$0xff]  ;;  %v837_v61 = vld [vmem:[%s6170_s20 + $0xeb0] sm:$0xff] }
 0x10d   : > { %2187 = vmatpush.msra.mxu2 %v788_v38  ;;  %2206 = vmatpush.msra.mxu3 %v1060_v39  ;;  %v1443_v1 = vld [vmem:[%s6170_s20 + $0x21a0] sm:$0xff]  ;;  %v916_v15 = vld [vmem:[%s6170_s20 + $0x1128] sm:$0xff]  ;;  %v549_v38 = vld [vmem:[%s6170_s20 + $0x5b0] sm:$0xff] }
 0x10e   : > { %2148 = vmatpush.msra.mxu0 %v1539_v40  ;;  %2167 = vmatpush.msra.mxu1 %v532_v41  ;;  %v1427_v7 = vld [vmem:[%s6170_s20 + $0x2120] sm:$0xff]  ;;  %v388_v17 = vld [vmem:[%s6170_s20 + $0xa8] sm:$0xff]  ;;  %v821_v39 = vld [vmem:[%s6170_s20 + $0xe30] sm:$0xff] }
 0x10f   : > { %2188 = vmatpush.msra.mxu2 %v772_v42  ;;  %2207 = vmatpush.msra.mxu3 %v1044_v43  ;;  %v1411_v12 = vld [vmem:[%s6170_s20 + $0x20a0] sm:$0xff]  ;;  %v628_v18 = vld [vmem:[%s6170_s20 + $0x828] sm:$0xff]  ;;  %v533_v43 = vld [vmem:[%s6170_s20 + $0x530] sm:$0xff] }
 0x110   : > { %2149 = vmatpush.msra.mxu0 %v1523_v44  ;;  %2168 = vmatpush.msra.mxu1 %v516_v45  ;;  %v1395_v16 = vld [vmem:[%s6170_s20 + $0x2020] sm:$0xff]  ;;  %v900_v19 = vld [vmem:[%s6170_s20 + $0x10a8] sm:$0xff]  ;;  %v805_v44 = vld [vmem:[%s6170_s20 + $0xdb0] sm:$0xff] }
 0x111   : > { %2189 = vmatpush.msra.mxu2 %v756_v46  ;;  %2208 = vmatpush.msra.mxu3 %v1028_v47  ;;  %v1380_v20 = vld [vmem:[%s6170_s20 + $0x1fa8] sm:$0xff]  ;;  %v6657_v24 = vld.sshfl [vmem:[#allocation1] sm:$0xff pattern:$0x73625140]  ;;  %v517_v47 = vld [vmem:[%s6170_s20 + $0x4b0] sm:$0xff] }
 0x112   : > { %2150 = vmatpush.msra.mxu0 %v1507_v48  ;;  %2169 = vmatpush.msra.mxu1 %v500_v49  ;;  %v372_v23 = vld [vmem:[%s6170_s20 + $0x28] sm:$0xff]  ;;  %v6684_v41 = vld.sshfl [vmem:[#allocation1 + $0x20] sm:$0xff pattern:$0x73625140]  ;;  %v789_v48 = vld [vmem:[%s6170_s20 + $0xd30] sm:$0xff] }
 0x113   : > { %2190 = vmatpush.msra.mxu2 %v740_v50  ;;  %2209 = vmatpush.msra.mxu3 %v1012_v51  ;;  %v884_v25 = vld [vmem:[%s6170_s20 + $0x1028] sm:$0xff]  ;;  %v501_v51 = vld [vmem:[%s6170_s20 + $0x430] sm:$0xff] }
 0x114   : > { %2151 = vmatpush.msra.mxu0 %v1491_v52  ;;  %2170 = vmatpush.msra.mxu1 %v484_v53  ;;  %v1364_v27 = vld [vmem:[%s6170_s20 + $0x1f28] sm:$0xff]  ;;  %v773_v52 = vld [vmem:[%s6170_s20 + $0xcb0] sm:$0xff] }
 0x115   : > { %2191 = vmatpush.msra.mxu2 %v724_v54  ;;  %2210 = vmatpush.msra.mxu3 %v996_v55  ;;  %v1636_v3 = vld [vmem:[%s6170_s20 + $0x27a8] sm:$0xff]  ;;  %v485_v55 = vld [vmem:[%s6170_s20 + $0x3b0] sm:$0xff] }
 0x116   : > { %2152 = vmatpush.msra.mxu0 %v1475_v56  ;;  %2171 = vmatpush.msra.mxu1 %v468_v57  ;;  %v6668_v30 = vld.sshfl [vmem:[#allocation1 + $0x8] sm:$0xff pattern:$0x73625140]  ;;  %v757_v56 = vld [vmem:[%s6170_s20 + $0xc30] sm:$0xff] }
 0x117   : > { %2192 = vmatpush.msra.mxu2 %v708_v58  ;;  %2211 = vmatpush.msra.mxu3 %v980_v59  ;;  %v1348_v8 = vld [vmem:[%s6170_s20 + $0x1ea8] sm:$0xff]  ;;  %v469_v59 = vld [vmem:[%s6170_s20 + $0x330] sm:$0xff] }
 0x118   : > { %2153 = vmatpush.msra.mxu0 %v1459_v60  ;;  %2172 = vmatpush.msra.mxu1 %v452_v62  ;;  %v1620_v31 = vld [vmem:[%s6170_s20 + $0x2728] sm:$0xff]  ;;  %v741_v60 = vld [vmem:[%s6170_s20 + $0xbb0] sm:$0xff] }
 0x119   : > { %2193 = vmatpush.msra.mxu2 %v692_v63  ;;  %2212 = vmatpush.msra.mxu3 %v964_v0  ;;  %v1332_v33 = vld [vmem:[%s6170_s20 + $0x1e28] sm:$0xff]  ;;  %v453_v0 = vld [vmem:[%s6170_s20 + $0x2b0] sm:$0xff] }
 0x11a   : > { %2154 = vmatpush.msra.mxu0 %v1443_v1  ;;  %2173 = vmatpush.msra.mxu1 %v436_v4  ;;  %v1604_v34 = vld [vmem:[%s6170_s20 + $0x26a8] sm:$0xff]  ;;  %v725_v1 = vld [vmem:[%s6170_s20 + $0xb30] sm:$0xff] }
 0x11b   : > { %2194 = vmatpush.msra.mxu2 %v676_v5  ;;  %2213 = vmatpush.msra.mxu3 %v948_v6  ;;  %v1588_v36 = vld [vmem:[%s6170_s20 + $0x2628] sm:$0xff]  ;;  %v437_v6 = vld [vmem:[%s6170_s20 + $0x230] sm:$0xff] }
 0x11c   : > { %2155 = vmatpush.msra.mxu0 %v1427_v7  ;;  %2174 = vmatpush.msra.mxu1 %v420_v9  ;;  %v1316_v37 = vld [vmem:[%s6170_s20 + $0x1da8] sm:$0xff]  ;;  %v709_v7 = vld [vmem:[%s6170_s20 + $0xab0] sm:$0xff] }
 0x11d   : > { %2195 = vmatpush.msra.mxu2 %v660_v10  ;;  %2214 = vmatpush.msra.mxu3 %v932_v11  ;;  %v1572_v40 = vld [vmem:[%s6170_s20 + $0x25a8] sm:$0xff]  ;;  %v421_v11 = vld [vmem:[%s6170_s20 + $0x1b0] sm:$0xff] }
 0x11e   : > { %2156 = vmatpush.msra.mxu0 %v1411_v12  ;;  %2175 = vmatpush.msra.mxu1 %v404_v13  ;;  %v1300_v42 = vld [vmem:[%s6170_s20 + $0x1d28] sm:$0xff]  ;;  %v693_v12 = vld [vmem:[%s6170_s20 + $0xa30] sm:$0xff]  ;;  %v6719_v13 = vpop.f32.mrf.mxu0 }
 0x11f   : > { %2196 = vmatpush.msra.mxu2 %v644_v14  ;;  %2215 = vmatpush.msra.mxu3 %v916_v15  ;;  %v1556_v45 = vld [vmem:[%s6170_s20 + $0x2528] sm:$0xff] }
 0x120   : > { %2118 = vmatmul.f32.vlgmr.msrb.gmra.mxu2 %v6651_v2  ;;  %2157 = vmatpush.msra.mxu0 %v1395_v16  ;;  %v1284_v46 = vld [vmem:[%s6170_s20 + $0x1ca8] sm:$0xff]  ;;  %v405_v16 = vld [vmem:[%s6170_s20 + $0x130] sm:$0xff] }
 0x121   : > { %2176 = vmatpush.msra.mxu1 %v388_v17  ;;  %2197 = vmatpush.msra.mxu2 %v628_v18  ;;  %v1540_v49 = vld [vmem:[%s6170_s20 + $0x24a8] sm:$0xff]  ;;  %v677_v17 = vld [vmem:[%s6170_s20 + $0x9b0] sm:$0xff] }
 0x122   : > { %2216 = vmatpush.msra.mxu3 %v900_v19  ;;  %2078 = vmatmul.f32.vlgmr.msrb.gmra.mxu0 %v6657_v24  ;;  %v1268_v50 = vld [vmem:[%s6170_s20 + $0x1c28] sm:$0xff] }
 0x123   : > { %2138 = vmatmul.f32.vlgmr.msrb.gmra.mxu3 %v6661_v26  ;;  %2222 = vmatpush.msrb.mxu0 %v1380_v20  ;;  %v1524_v53 = vld [vmem:[%s6170_s20 + $0x2428] sm:$0xff]  ;;  %v6729_v20 = vpop.f32.mrf.mxu1 }
 0x124   : > { %2262 = vmatpush.msrb.mxu2 %v613_v22  ;;  %2177 = vmatpush.msra.mxu1 %v372_v23  ;;  %v1252_v54 = vld [vmem:[%s6170_s20 + $0x1ba8] sm:$0xff]  ;;  %v389_v22 = vld [vmem:[%s6170_s20 + $0xb0] sm:$0xff] }
 0x125   : > { %2217 = vmatpush.msra.mxu3 %v884_v25  ;;  %2098 = vmatmul.f32.vlgmr.msrb.gmra.mxu1 %v6668_v30  ;;  %v1508_v57 = vld [vmem:[%s6170_s20 + $0x23a8] sm:$0xff]  ;;  %v661_v23 = vld [vmem:[%s6170_s20 + $0x930] sm:$0xff]  ;;  %v6733_v25 = vpop.f32.mrf.mxu2 }
 0x126   : > { %2223 = vmatpush.msrb.mxu0 %v1364_v27  ;;  %2242 = vmatpush.msrb.mxu1 %v1636_v3  ;;  %v1236_v58 = vld [vmem:[%s6170_s20 + $0x1b28] sm:$0xff] }
 0x127   : > { %2263 = vmatpush.msrb.mxu2 %v597_v28  ;;  %2282 = vmatpush.msrb.mxu3 %v869_v29  ;;  %v1492_v62 = vld [vmem:[%s6170_s20 + $0x2328] sm:$0xff]  ;;  %v373_v28 = vld [vmem:[%s6170_s20 + $0x30] sm:$0xff] }
 0x128   : > { %2224 = vmatpush.msrb.mxu0 %v1348_v8  ;;  %2243 = vmatpush.msrb.mxu1 %v1620_v31  ;;  %v1220_v63 = vld [vmem:[%s6170_s20 + $0x1aa8] sm:$0xff]  ;;  %v645_v29 = vld [vmem:[%s6170_s20 + $0x8b0] sm:$0xff] }
 0x129   : > { %2264 = vmatpush.msrb.mxu2 %v581_v21  ;;  %2283 = vmatpush.msrb.mxu3 %v853_v32  ;;  %v1204_v4 = vld [vmem:[%s6170_s20 + $0x1a28] sm:$0xff]  ;;  %v1637_v8 = vld [vmem:[%s6170_s20 + $0x27b0] sm:$0xff]  ;;  %v6742_v32 = vpop.f32.mrf.mxu3 }
 0x12a   : > { %2225 = vmatpush.msrb.mxu0 %v1332_v33  ;;  %2244 = vmatpush.msrb.mxu1 %v1604_v34  ;;  %v1476_v5 = vld [vmem:[%s6170_s20 + $0x22a8] sm:$0xff]  ;;  %v1125_v31 = vld [vmem:[%s6170_s20 + $0x17b0] sm:$0xff] }
 0x12b   : > { %2265 = vmatpush.msrb.mxu2 %v565_v35  ;;  %2284 = vmatpush.msrb.mxu3 %v837_v61  ;;  %v1188_v9 = vld [vmem:[%s6170_s20 + $0x19a8] sm:$0xff]  ;;  %v629_v33 = vld [vmem:[%s6170_s20 + $0x830] sm:$0xff]  ;;  %v6748_v61 = vpop.f32.mrf.mxu0 }
 0x12c   : > { %2158 = vmatmul.f32.vlgmr.msra.gmra.mxu0 %v6684_v41  ;;  %2245 = vmatpush.msrb.mxu1 %v1588_v36  ;;  %v1460_v10 = vld [vmem:[%s6170_s20 + $0x2228] sm:$0xff]  ;;  %v1109_v34 = vld [vmem:[%s6170_s20 + $0x1730] sm:$0xff] }
 0x12d   : > { %2226 = vmatpush.msrb.mxu0 %v1316_v37  ;;  %2266 = vmatpush.msrb.mxu2 %v549_v38  ;;  %v1172_v14 = vld [vmem:[%s6170_s20 + $0x1928] sm:$0xff]  ;;  %v1381_v35 = vld [vmem:[%s6170_s20 + $0x1fb0] sm:$0xff]  ;;  %v614_v37 = vld [vmem:[%s6170_s20 + $0x7b8] sm:$0xff]  ;;  %v6752_v38 = vpop.f32.mrf.mxu1 }
 0x12e   : > { %2285 = vmatpush.msrb.mxu3 %v821_v39  ;;  %2246 = vmatpush.msrb.mxu1 %v1572_v40  ;;  %v1444_v15 = vld [vmem:[%s6170_s20 + $0x21a8] sm:$0xff]  ;;  %v1621_v36 = vld [vmem:[%s6170_s20 + $0x2730] sm:$0xff] }
 0x12f   : > { %2227 = vmatpush.msrb.mxu0 %v1300_v42  ;;  %2267 = vmatpush.msrb.mxu2 %v533_v43  ;;  %v1156_v18 = vld [vmem:[%s6170_s20 + $0x18a8] sm:$0xff]  ;;  %v1093_v39 = vld [vmem:[%s6170_s20 + $0x16b0] sm:$0xff]  ;;  %v1799_v42 = vpop.f32.mrf.mxu2 }
 0x130   : > { %2286 = vmatpush.msrb.mxu3 %v805_v44  ;;  %2247 = vmatpush.msrb.mxu1 %v1556_v45  ;;  %v1428_v19 = vld [vmem:[%s6170_s20 + $0x2128] sm:$0xff]  ;;  %v1365_v40 = vld [vmem:[%s6170_s20 + $0x1f30] sm:$0xff]  ;;  %v598_v44 = vld [vmem:[%s6170_s20 + $0x738] sm:$0xff] }
 0x131   : > { %2228 = vmatpush.msrb.mxu0 %v1284_v46  ;;  %2268 = vmatpush.msrb.mxu2 %v517_v47  ;;  %v1140_v27 = vld [vmem:[%s6170_s20 + $0x1828] sm:$0xff]  ;;  %v1605_v43 = vld [vmem:[%s6170_s20 + $0x26b0] sm:$0xff] }
 0x132   : > { %2287 = vmatpush.msrb.mxu3 %v789_v48  ;;  %2248 = vmatpush.msrb.mxu1 %v1540_v49  ;;  %v1412_v3 = vld [vmem:[%s6170_s20 + $0x20a8] sm:$0xff]  ;;  %v1077_v45 = vld [vmem:[%s6170_s20 + $0x1630] sm:$0xff]  ;;  %v582_v48 = vld [vmem:[%s6170_s20 + $0x6b8] sm:$0xff] }
 0x133   : > { %2229 = vmatpush.msrb.mxu0 %v1268_v50  ;;  %2269 = vmatpush.msrb.mxu2 %v501_v51  ;;  %v1396_v21 = vld [vmem:[%s6170_s20 + $0x2028] sm:$0xff]  ;;  %v1349_v46 = vld [vmem:[%s6170_s20 + $0x1eb0] sm:$0xff]  ;;  %v6765_v51 = vpop.f32.mrf.mxu3 }
 0x134   : > { %2288 = vmatpush.msrb.mxu3 %v773_v52  ;;  %2249 = vmatpush.msrb.mxu1 %v1524_v53  ;;  %v1589_v47 = vld [vmem:[%s6170_s20 + $0x2630] sm:$0xff]  ;;  %v566_v53 = vld [vmem:[%s6170_s20 + $0x638] sm:$0xff] }
 0x135   : > { %2230 = vmatpush.msrb.mxu0 %v1252_v54  ;;  %2270 = vmatpush.msrb.mxu2 %v485_v55  ;;  %v1061_v49 = vld [vmem:[%s6170_s20 + $0x15b0] sm:$0xff] }
 0x136   : > { %2289 = vmatpush.msrb.mxu3 %v757_v56  ;;  %2250 = vmatpush.msrb.mxu1 %v1508_v57  ;;  %v1333_v50 = vld [vmem:[%s6170_s20 + $0x1e30] sm:$0xff]  ;;  %v6771_v56 = vpop.f32.mrf.mxu0 }
 0x137   : > { %2231 = vmatpush.msrb.mxu0 %v1236_v58  ;;  %2271 = vmatpush.msrb.mxu2 %v469_v59  ;;  %v1573_v52 = vld [vmem:[%s6170_s20 + $0x25b0] sm:$0xff]  ;;  %v550_v58 = vld [vmem:[%s6170_s20 + $0x5b8] sm:$0xff] }
 0x138   : > { %2290 = vmatpush.msrb.mxu3 %v741_v60  ;;  %2251 = vmatpush.msrb.mxu1 %v1492_v62  ;;  %v1045_v54 = vld [vmem:[%s6170_s20 + $0x1530] sm:$0xff] }
 0x139   : > { %2232 = vmatpush.msrb.mxu0 %v1220_v63  ;;  %2272 = vmatpush.msrb.mxu2 %v453_v0  ;;  %v1317_v55 = vld [vmem:[%s6170_s20 + $0x1db0] sm:$0xff]  ;;  %v534_v0 = vld [vmem:[%s6170_s20 + $0x538] sm:$0xff] }
 0x13a   : > { %2291 = vmatpush.msrb.mxu3 %v725_v1  ;;  %2198 = vmatmul.f32.vlgmr.msra.gmra.mxu2 %v6668_v30  ;;  %v1557_v57 = vld [vmem:[%s6170_s20 + $0x2530] sm:$0xff]  ;;  %v6779_v1 = vpop.f32.mrf.mxu1 }
 0x13b   : > { %2233 = vmatpush.msrb.mxu0 %v1204_v4  ;;  %2252 = vmatpush.msrb.mxu1 %v1476_v5  ;;  %v1029_v59 = vld [vmem:[%s6170_s20 + $0x14b0] sm:$0xff] }
 0x13c   : > { %2273 = vmatpush.msrb.mxu2 %v437_v6  ;;  %2292 = vmatpush.msrb.mxu3 %v709_v7  ;;  %v1301_v60 = vld [vmem:[%s6170_s20 + $0x1d30] sm:$0xff]  ;;  %v518_v7 = vld [vmem:[%s6170_s20 + $0x4b8] sm:$0xff] }
 0x13d   : > { %2218 = vmatmul.f32.vlgmr.msra.gmra.mxu3 %v6651_v2  ;;  %2234 = vmatpush.msrb.mxu0 %v1188_v9  ;;  %v1541_v63 = vld [vmem:[%s6170_s20 + $0x24b0] sm:$0xff] }
 0x13e   : > { %2253 = vmatpush.msrb.mxu1 %v1460_v10  ;;  %2274 = vmatpush.msrb.mxu2 %v421_v11  ;;  %v1879_v62 = vpop.f32.mrf.mxu2  ;;  %v1013_v4 = vld [vmem:[%s6170_s20 + $0x1430] sm:$0xff] }
 0x13f   : > { %2293 = vmatpush.msrb.mxu3 %v693_v12  ;;  %2178 = vmatmul.f32.vlgmr.msra.gmra.mxu1 %v6657_v24  ;;  %v1285_v5 = vld [vmem:[%s6170_s20 + $0x1cb0] sm:$0xff] }
 0x140   : > { %2235 = vmatpush.msrb.mxu0 %v1172_v14  ;;  %2254 = vmatpush.msrb.mxu1 %v1444_v15  ;;  %v1525_v6 = vld [vmem:[%s6170_s20 + $0x2430] sm:$0xff]  ;;  %v502_v14 = vld [vmem:[%s6170_s20 + $0x438] sm:$0xff] }
 0x141   : > { %2275 = vmatpush.msrb.mxu2 %v405_v16  ;;  %2294 = vmatpush.msrb.mxu3 %v677_v17  ;;  %v997_v9 = vld [vmem:[%s6170_s20 + $0x13b0] sm:$0xff]  ;;  %v1899_v11 = vpop.f32.mrf.mxu3  ;;  %v1800_v17 = vadd.f32 %v1799_v42, %v6752_v38 }
 0x142   : > { %2236 = vmatpush.msrb.mxu0 %v1156_v18  ;;  %2255 = vmatpush.msrb.mxu1 %v1428_v19  ;;  %v1269_v10 = vld [vmem:[%s6170_s20 + $0x1c30] sm:$0xff] }
 0x143   : > { %2276 = vmatpush.msrb.mxu2 %v389_v22  ;;  %2295 = vmatpush.msrb.mxu3 %v661_v23  ;;  %v1509_v12 = vld [vmem:[%s6170_s20 + $0x23b0] sm:$0xff]  ;;  %v1919_v18 = vpop.f32.mrf.mxu0  ;;  %v486_v22 = vld [vmem:[%s6170_s20 + $0x3b8] sm:$0xff] }
 0x144   : > { %2237 = vmatpush.msrb.mxu0 %v1140_v27  ;;  %2256 = vmatpush.msrb.mxu1 %v1412_v3  ;;  %v981_v15 = vld [vmem:[%s6170_s20 + $0x1330] sm:$0xff]  ;;  %v1900_v3 = vadd.f32 %v1899_v11, %v1879_v62 }
 0x145   : > { %2277 = vmatpush.msrb.mxu2 %v373_v28  ;;  %2296 = vmatpush.msrb.mxu3 %v645_v29  ;;  %v1253_v16 = vld [vmem:[%s6170_s20 + $0x1bb0] sm:$0xff]  ;;  %v470_v29 = vld [vmem:[%s6170_s20 + $0x338] sm:$0xff] }
 0x146   : > { %2238 = vmatmul.f32.vlgmr.msrb.gmra.mxu0 %v6661_v26  ;;  %2257 = vmatpush.msrb.mxu1 %v1396_v21  ;;  %v1493_v19 = vld [vmem:[%s6170_s20 + $0x2330] sm:$0xff] }
 0x147   : > { %2342 = vmatpush.msra.mxu2 %v1637_v8  ;;  %2302 = vmatpush.msra.mxu0 %v1125_v31  ;;  %v965_v23 = vld [vmem:[%s6170_s20 + $0x12b0] sm:$0xff]  ;;  %v1939_v8 = vpop.f32.mrf.mxu1 }
 0x148   : > { %2297 = vmatpush.msrb.mxu3 %v629_v33  ;;  %2258 = vmatmul.f32.vlgmr.msrb.gmra.mxu1 %v6684_v41  ;;  %v1237_v27 = vld [vmem:[%s6170_s20 + $0x1b30] sm:$0xff]  ;;  %v1820_v33 = vadd.f32 %v6765_v51, %v1800_v17 }
 0x149   : > { %2303 = vmatpush.msra.mxu0 %v1109_v34  ;;  %2322 = vmatpush.msra.mxu1 %v1381_v35  ;;  %v1477_v28 = vld [vmem:[%s6170_s20 + $0x22b0] sm:$0xff]  ;;  %v1959_v34 = vpop.f32.mrf.mxu2 }
 0x14a   : > { %2343 = vmatpush.msra.mxu2 %v1621_v36  ;;  %2362 = vmatpush.msra.mxu3 %v614_v37  ;;  %v949_v31 = vld [vmem:[%s6170_s20 + $0x1230] sm:$0xff]  ;;  %v454_v36 = vld [vmem:[%s6170_s20 + $0x2b8] sm:$0xff] }
 0x14b   : > { %2304 = vmatpush.msra.mxu0 %v1093_v39  ;;  %2323 = vmatpush.msra.mxu1 %v1365_v40  ;;  %v1221_v21 = vld [vmem:[%s6170_s20 + $0x1ab0] sm:$0xff]  ;;  %v1700_v39 = vadd.f32 %v6729_v20, %v6719_v13  ;;  %v1920_v40 = vadd.f32 %v1919_v18, %v1900_v3  ;;  %v422_v13 = vld [vmem:[%s6170_s20 + $0x1b8] sm:$0xff] }
 0x14c   : > { %2344 = vmatpush.msra.mxu2 %v1605_v43  ;;  %2363 = vmatpush.msra.mxu3 %v598_v44  ;;  %v1461_v35 = vld [vmem:[%s6170_s20 + $0x2230] sm:$0xff]  ;;  %v438_v43 = vld [vmem:[%s6170_s20 + $0x238] sm:$0xff] }
 0x14d   : > { %2305 = vmatpush.msra.mxu0 %v1077_v45  ;;  %2324 = vmatpush.msra.mxu1 %v1349_v46  ;;  %v933_v37 = vld [vmem:[%s6170_s20 + $0x11b0] sm:$0xff]  ;;  %v1622_v3 = vld [vmem:[%s6170_s20 + $0x2738] sm:$0xff] }
 0x14e   : > { %2345 = vmatpush.msra.mxu2 %v1589_v47  ;;  %2364 = vmatpush.msra.mxu3 %v582_v48  ;;  %v1205_v38 = vld [vmem:[%s6170_s20 + $0x1a30] sm:$0xff]  ;;  %v1840_v47 = vadd.f32 %v6771_v56, %v1820_v33 }
 0x14f   : > { %2306 = vmatpush.msra.mxu0 %v1061_v49  ;;  %2325 = vmatpush.msra.mxu1 %v1333_v50  ;;  %v1445_v42 = vld [vmem:[%s6170_s20 + $0x21b0] sm:$0xff] }
 0x150   : > { %2346 = vmatpush.msra.mxu2 %v1573_v52  ;;  %2365 = vmatpush.msra.mxu3 %v566_v53  ;;  %v917_v45 = vld [vmem:[%s6170_s20 + $0x1130] sm:$0xff]  ;;  %v1720_v52 = vadd.f32 %v6733_v25, %v1700_v39  ;;  %v1940_v53 = vadd.f32 %v1939_v8, %v1920_v40  ;;  %v1590_v39 = vld [vmem:[%s6170_s20 + $0x2638] sm:$0xff] }
 0x151   : > { %2307 = vmatpush.msra.mxu0 %v1045_v54  ;;  %2326 = vmatpush.msra.mxu1 %v1317_v55  ;;  %v1189_v46 = vld [vmem:[%s6170_s20 + $0x19b0] sm:$0xff]  ;;  %v406_v55 = vld [vmem:[%s6170_s20 + $0x138] sm:$0xff] }
 0x152   : > { %2347 = vmatpush.msra.mxu2 %v1557_v57  ;;  %2366 = vmatpush.msra.mxu3 %v550_v58  ;;  %v1429_v48 = vld [vmem:[%s6170_s20 + $0x2130] sm:$0xff]  ;;  %v1860_v58 = vadd.f32 %v6779_v1, %v1840_v47  ;;  %v1382_v1 = vld [vmem:[%s6170_s20 + $0x1fb8] sm:$0xff] }
 0x153   : > { %2308 = vmatpush.msra.mxu0 %v1029_v59  ;;  %2327 = vmatpush.msra.mxu1 %v1301_v60  ;;  %v901_v49 = vld [vmem:[%s6170_s20 + $0x10b0] sm:$0xff]  ;;  %v790_v40 = vld [vmem:[%s6170_s20 + $0xd38] sm:$0xff] }
 0x154   : > { %2348 = vmatpush.msra.mxu2 %v1541_v63  ;;  %2367 = vmatpush.msra.mxu3 %v534_v0  ;;  %v1173_v50 = vld [vmem:[%s6170_s20 + $0x1930] sm:$0xff]  ;;  %v390_v63 = vld [vmem:[%s6170_s20 + $0xb8] sm:$0xff]  ;;  %v3278_v11 = vrot.slane %v1860_v58, 6 }
 0x155   : > { %2309 = vmatpush.msra.mxu0 %v1013_v4  ;;  %2328 = vmatpush.msra.mxu1 %v1285_v5  ;;  %v1413_v54 = vld [vmem:[%s6170_s20 + $0x20b0] sm:$0xff]  ;;  %v870_v0 = vld [vmem:[%s6170_s20 + $0xfb8] sm:$0xff]  ;;  %v1740_v4 = vadd.f32 %v6742_v32, %v1720_v52  ;;  %v1960_v5 = vadd.f32 %v1959_v34, %v1940_v53 }
 0x156   : > { %2349 = vmatpush.msra.mxu2 %v1525_v6  ;;  %2368 = vmatpush.msra.mxu3 %v518_v7  ;;  %v885_v56 = vld [vmem:[%s6170_s20 + $0x1030] sm:$0xff]  ;;  %v1126_v32 = vld [vmem:[%s6170_s20 + $0x17b8] sm:$0xff] }
 0x157   : > { %2310 = vmatpush.msra.mxu0 %v997_v9  ;;  %2329 = vmatpush.msra.mxu1 %v1269_v10  ;;  %v1157_v59 = vld [vmem:[%s6170_s20 + $0x18b0] sm:$0xff]  ;;  %v374_v9 = vld [vmem:[%s6170_s20 + $0x38] sm:$0xff]  ;;  %v1760_v17 = vadd.f32 %v6748_v61, %v1740_v4  ;;  %v3279_v18 = vrot.slane %v1960_v5, 4 }
 0x158   : > { %2350 = vmatpush.msra.mxu2 %v1509_v12  ;;  %2369 = vmatpush.msra.mxu3 %v502_v14  ;;  %v1397_v60 = vld [vmem:[%s6170_s20 + $0x2030] sm:$0xff]  ;;  %v854_v12 = vld [vmem:[%s6170_s20 + $0xf38] sm:$0xff] }
 0x159   : > { %2311 = vmatpush.msra.mxu0 %v981_v15  ;;  %2330 = vmatpush.msra.mxu1 %v1253_v16  ;;  %v1141_v7 = vld [vmem:[%s6170_s20 + $0x1830] sm:$0xff]  ;;  %v1366_v15 = vld [vmem:[%s6170_s20 + $0x1f38] sm:$0xff] }
 0x15a   : > { %2351 = vmatpush.msra.mxu2 %v1493_v19  ;;  %2370 = vmatpush.msra.mxu3 %v486_v22  ;;  %v1638_v16 = vld [vmem:[%s6170_s20 + $0x27b8] sm:$0xff] }
 0x15b   : > { %2312 = vmatpush.msra.mxu0 %v965_v23  ;;  %2331 = vmatpush.msra.mxu1 %v1237_v27  ;;  %v838_v19 = vld [vmem:[%s6170_s20 + $0xeb8] sm:$0xff] }
 0x15c   : > { %2352 = vmatpush.msra.mxu2 %v1477_v28  ;;  %2371 = vmatpush.msra.mxu3 %v470_v29  ;;  %v1110_v22 = vld [vmem:[%s6170_s20 + $0x1738] sm:$0xff]  ;;  %v361_v28 = vld [vmem:[#allocation2] sm:$0xff]  ;;  %v3291_v29 = vsel %vm3290_vm7, %v1760_v17, %v3278_v11 }
 0x15d   : > { %2313 = vmatpush.msra.mxu0 %v949_v31  ;;  %2332 = vmatpush.msra.mxu1 %v1221_v21  ;;  %v1979_v44 = vpop.f32.mrf.mxu3  ;;  %v1350_v27 = vld [vmem:[%s6170_s20 + $0x1eb8] sm:$0xff] }
 0x15e   : > { %2353 = vmatpush.msra.mxu2 %v1461_v35  ;;  %2372 = vmatpush.msra.mxu3 %v454_v36  ;;  %v822_v61 = vld [vmem:[%s6170_s20 + $0xe38] sm:$0xff] }
 0x15f   : > { %2314 = vmatpush.msra.mxu0 %v933_v37  ;;  %2333 = vmatpush.msra.mxu1 %v1205_v38  ;;  %v1999_v20 = vpop.f32.mrf.mxu0  ;;  %v1094_v31 = vld [vmem:[%s6170_s20 + $0x16b8] sm:$0xff] }
 0x160   : > { %2354 = vmatpush.msra.mxu2 %v1445_v42  ;;  %2373 = vmatpush.msra.mxu3 %v438_v43  ;;  %v2000_v51 = vadd.f32 %v1999_v20, %v1979_v44  ;;  %v1334_v21 = vld [vmem:[%s6170_s20 + $0x1e38] sm:$0xff] }
 0x161   : > { %2315 = vmatpush.msra.mxu0 %v917_v45  ;;  %2334 = vmatpush.msra.mxu1 %v1189_v46  ;;  %v1606_v34 = vld [vmem:[%s6170_s20 + $0x26b8] sm:$0xff] }
 0x162   : > { %2355 = vmatpush.msra.mxu2 %v1429_v48  ;;  %2374 = vmatpush.msra.mxu3 %v422_v13  ;;  %v2019_v57 = vpop.f32.mrf.mxu1  ;;  %v806_v36 = vld [vmem:[%s6170_s20 + $0xdb8] sm:$0xff] }
 0x163   : > { %2316 = vmatpush.msra.mxu0 %v901_v49  ;;  %2335 = vmatpush.msra.mxu1 %v1173_v50  ;;  %v2020_v25 = vadd.f32 %v2019_v57, %v2000_v51  ;;  %v2039_v62 = vpop.f32.mrf.mxu2  ;;  %v1078_v37 = vld [vmem:[%s6170_s20 + $0x1638] sm:$0xff] }
 0x164   : > { %2356 = vmatpush.msra.mxu2 %v1413_v54  ;;  %2375 = vmatpush.msra.mxu3 %v406_v55  ;;  %v1318_v38 = vld [vmem:[%s6170_s20 + $0x1db8] sm:$0xff] }
 0x165   : > { %2278 = vmatmul.f32.vlgmr.msrb.gmra.mxu2 %v6657_v24  ;;  %2317 = vmatpush.msra.mxu0 %v885_v56  ;;  %v2040_v6 = vadd.f32 %v2039_v62, %v2020_v25  ;;  %v1062_v42 = vld [vmem:[%s6170_s20 + $0x15b8] sm:$0xff] }
 0x166   : > { %2336 = vmatpush.msra.mxu1 %v1157_v59  ;;  %2357 = vmatpush.msra.mxu2 %v1397_v60  ;;  %v2059_v10 = vpop.f32.mrf.mxu3  ;;  %v1302_v43 = vld [vmem:[%s6170_s20 + $0x1d38] sm:$0xff] }
 0x167   : > { %2376 = vmatpush.msra.mxu3 %v390_v63  ;;  %2382 = vmatpush.msrb.mxu0 %v870_v0  ;;  %v2060_v14 = vadd.f32 %v2059_v10, %v2040_v6  ;;  %v1574_v44 = vld [vmem:[%s6170_s20 + $0x25b8] sm:$0xff] }
 0x168   : > { %2298 = vmatmul.f32.vlgmr.msrb.gmra.mxu3 %v6668_v30  ;;  %2422 = vmatpush.msrb.mxu2 %v1382_v1  ;;  %v774_v45 = vld [vmem:[%s6170_s20 + $0xcb8] sm:$0xff] }
 0x169   : > { %2337 = vmatpush.msra.mxu1 %v1141_v7  ;;  %2377 = vmatpush.msra.mxu3 %v374_v9  ;;  %v3280_v23 = vrot.slane %v2060_v14, 2  ;;  %v1046_v46 = vld [vmem:[%s6170_s20 + $0x1538] sm:$0xff] }
 0x16a   : > { %2383 = vmatpush.msrb.mxu0 %v854_v12  ;;  %2423 = vmatpush.msrb.mxu2 %v1366_v15  ;;  %v1286_v47 = vld [vmem:[%s6170_s20 + $0x1cb8] sm:$0xff] }
 0x16b   : > { %2402 = vmatpush.msrb.mxu1 %v1126_v32  ;;  %2442 = vmatpush.msrb.mxu3 %v1638_v16  ;;  %v3293_v8 = vsel %vm3292_vm8, %v3279_v18, %v3280_v23  ;;  %v1558_v48 = vld [vmem:[%s6170_s20 + $0x2538] sm:$0xff] }
 0x16c   : > { %2384 = vmatpush.msrb.mxu0 %v838_v19  ;;  %v3295_v33 = vsel %vm3294_vm9, %v3291_v29, %v3293_v8  ;;  %2424 = vmatpush.msrb.mxu2 %v1350_v27  ;;  %v758_v13 = vld [vmem:[%s6170_s20 + $0xc38] sm:$0xff]  ;;  %v1127_v27 = vld [vmem:[%s6170_s20 + $0x17c0] sm:$0xff] }
 0x16d   : > { %2403 = vmatpush.msrb.mxu1 %v1110_v22  ;;  %2443 = vmatpush.msrb.mxu3 %v1622_v3  ;;  %v3309_v35 = vadd.f32 %v3295_v33, %v361_v28  ;;  %v1030_v20 = vld [vmem:[%s6170_s20 + $0x14b8] sm:$0xff]  ;;  %v599_v29 = vld [vmem:[%s6170_s20 + $0x740] sm:$0xff] }
 0x16e   : > { %2358 = vmatmul.f32.vlgmr.msra.gmra.mxu2 %v6684_v41  ;;  %2385 = vmatpush.msrb.mxu0 %v822_v61  ;;  %v1270_v49 = vld [vmem:[%s6170_s20 + $0x1c38] sm:$0xff]  ;;  %v871_v61 = vld [vmem:[%s6170_s20 + $0xfc0] sm:$0xff] }
 0x16f   : > { %2404 = vmatpush.msrb.mxu1 %v1094_v31  ;;  %2425 = vmatpush.msrb.mxu2 %v1334_v21  ;;  %3313 = vst [vmem:[#allocation2] sm:$0xff] %v3309_v35  ;;  %v1542_v50 = vld [vmem:[%s6170_s20 + $0x24b8] sm:$0xff]  ;;  %v1111_v8 = vld [vmem:[%s6170_s20 + $0x1740] sm:$0xff] }
 0x170   : > { %2444 = vmatpush.msrb.mxu3 %v1606_v34  ;;  %2318 = vmatmul.f32.vlgmr.msra.gmra.mxu0 %v6651_v2  ;;  %v742_v51 = vld [vmem:[%s6170_s20 + $0xbb8] sm:$0xff]  ;;  %v1383_v31 = vld [vmem:[%s6170_s20 + $0x1fc0] sm:$0xff] }
 0x171   : > { %2386 = vmatpush.msrb.mxu0 %v806_v36  ;;  %2405 = vmatpush.msrb.mxu1 %v1078_v37  ;;  %v1014_v52 = vld [vmem:[%s6170_s20 + $0x1438] sm:$0xff]  ;;  %v855_v21 = vld [vmem:[%s6170_s20 + $0xf40] sm:$0xff] }
 0x172   : > { %2426 = vmatpush.msrb.mxu2 %v1318_v38  ;;  %2445 = vmatpush.msrb.mxu3 %v1590_v39  ;;  %v1254_v53 = vld [vmem:[%s6170_s20 + $0x1bb8] sm:$0xff]  ;;  %v1095_v33 = vld [vmem:[%s6170_s20 + $0x16c0] sm:$0xff] }
 0x173   : > { %2338 = vmatmul.f32.vlgmr.msra.gmra.mxu1 %v6661_v26  ;;  %2387 = vmatpush.msrb.mxu0 %v790_v40  ;;  %v1526_v54 = vld [vmem:[%s6170_s20 + $0x2438] sm:$0xff]  ;;  %v1367_v34 = vld [vmem:[%s6170_s20 + $0x1f40] sm:$0xff] }
 0x174   : > { %2406 = vmatpush.msrb.mxu1 %v1062_v42  ;;  %2427 = vmatpush.msrb.mxu2 %v1302_v43  ;;  %v726_v55 = vld [vmem:[%s6170_s20 + $0xb38] sm:$0xff]  ;;  %v839_v35 = vld [vmem:[%s6170_s20 + $0xec0] sm:$0xff] }
 0x175   : > { %2446 = vmatpush.msrb.mxu3 %v1574_v44  ;;  %2388 = vmatpush.msrb.mxu0 %v774_v45  ;;  %v998_v56 = vld [vmem:[%s6170_s20 + $0x13b8] sm:$0xff]  ;;  %v1351_v36 = vld [vmem:[%s6170_s20 + $0x1ec0] sm:$0xff] }
 0x176   : > { %2407 = vmatpush.msrb.mxu1 %v1046_v46  ;;  %2428 = vmatpush.msrb.mxu2 %v1286_v47  ;;  %v1238_v57 = vld [vmem:[%s6170_s20 + $0x1b38] sm:$0xff]  ;;  %v551_v37 = vld [vmem:[%s6170_s20 + $0x5c0] sm:$0xff] }
 0x177   : > { %2447 = vmatpush.msrb.mxu3 %v1558_v48  ;;  %2389 = vmatpush.msrb.mxu0 %v758_v13  ;;  %v1510_v58 = vld [vmem:[%s6170_s20 + $0x23b8] sm:$0xff]  ;;  %v823_v38 = vld [vmem:[%s6170_s20 + $0xe40] sm:$0xff] }
 0x178   : > { %2408 = vmatpush.msrb.mxu1 %v1030_v20  ;;  %2429 = vmatpush.msrb.mxu2 %v1270_v49  ;;  %v710_v59 = vld [vmem:[%s6170_s20 + $0xab8] sm:$0xff]  ;;  %v1063_v39 = vld [vmem:[%s6170_s20 + $0x15c0] sm:$0xff] }
 0x179   : > { %2448 = vmatpush.msrb.mxu3 %v1542_v50  ;;  %2390 = vmatpush.msrb.mxu0 %v742_v51  ;;  %v982_v60 = vld [vmem:[%s6170_s20 + $0x1338] sm:$0xff]  ;;  %v535_v40 = vld [vmem:[%s6170_s20 + $0x540] sm:$0xff] }
 0x17a   : > { %2409 = vmatpush.msrb.mxu1 %v1014_v52  ;;  %2430 = vmatpush.msrb.mxu2 %v1254_v53  ;;  %v1222_v25 = vld [vmem:[%s6170_s20 + $0x1ab8] sm:$0xff]  ;;  %v807_v42 = vld [vmem:[%s6170_s20 + $0xdc0] sm:$0xff] }
 0x17b   : > { %2449 = vmatpush.msrb.mxu3 %v1526_v54  ;;  %2391 = vmatpush.msrb.mxu0 %v726_v55  ;;  %v1494_v62 = vld [vmem:[%s6170_s20 + $0x2338] sm:$0xff]  ;;  %v1047_v43 = vld [vmem:[%s6170_s20 + $0x1540] sm:$0xff] }
 0x17c   : > { %2410 = vmatpush.msrb.mxu1 %v998_v56  ;;  %2431 = vmatpush.msrb.mxu2 %v1238_v57  ;;  %v694_v63 = vld [vmem:[%s6170_s20 + $0xa38] sm:$0xff]  ;;  %v1319_v44 = vld [vmem:[%s6170_s20 + $0x1dc0] sm:$0xff] }
 0x17d   : > { %2450 = vmatpush.msrb.mxu3 %v1510_v58  ;;  %2392 = vmatpush.msrb.mxu0 %v710_v59  ;;  %v966_v0 = vld [vmem:[%s6170_s20 + $0x12b8] sm:$0xff]  ;;  %v519_v45 = vld [vmem:[%s6170_s20 + $0x4c0] sm:$0xff] }
 0x17e   : > { %v1206_v4 = vld [vmem:[%s6170_s20 + $0x1a38] sm:$0xff]  ;;  %2411 = vmatpush.msrb.mxu1 %v982_v60  ;;  %2432 = vmatpush.msrb.mxu2 %v1222_v25  ;;  %v791_v46 = vld [vmem:[%s6170_s20 + $0xd40] sm:$0xff] }
 0x17f   : > { %v1478_v5 = vld [vmem:[%s6170_s20 + $0x22b8] sm:$0xff]  ;;  %2451 = vmatpush.msrb.mxu3 %v1494_v62  ;;  %2393 = vmatpush.msrb.mxu0 %v694_v63  ;;  %v1031_v47 = vld [vmem:[%s6170_s20 + $0x14c0] sm:$0xff] }
 0x180   : > { %v678_v1 = vld [vmem:[%s6170_s20 + $0x9b8] sm:$0xff]  ;;  %2412 = vmatpush.msrb.mxu1 %v966_v0  ;;  %2433 = vmatpush.msrb.mxu2 %v1206_v4  ;;  %v1303_v48 = vld [vmem:[%s6170_s20 + $0x1d40] sm:$0xff] }
 0x181   : > { %v950_v6 = vld [vmem:[%s6170_s20 + $0x1238] sm:$0xff]  ;;  %2452 = vmatpush.msrb.mxu3 %v1478_v5  ;;  %2394 = vmatpush.msrb.mxu0 %v678_v1  ;;  %v503_v13 = vld [vmem:[%s6170_s20 + $0x440] sm:$0xff] }
 0x182   : > { %v1190_v7 = vld [vmem:[%s6170_s20 + $0x19b8] sm:$0xff]  ;;  %2413 = vmatpush.msrb.mxu1 %v950_v6  ;;  %2378 = vmatmul.f32.vlgmr.msra.gmra.mxu3 %v6657_v24  ;;  %v615_v24 = vld [vmem:[%s6170_s20 + $0x7c0] sm:$0xff] }
 0x183   : > { %v1462_v9 = vld [vmem:[%s6170_s20 + $0x2238] sm:$0xff]  ;;  %2434 = vmatpush.msrb.mxu2 %v1190_v7  ;;  %v775_v20 = vld [vmem:[%s6170_s20 + $0xcc0] sm:$0xff] }
 0x184   : > { %v662_v10 = vld [vmem:[%s6170_s20 + $0x938] sm:$0xff]  ;;  %2453 = vmatpush.msrb.mxu3 %v1462_v9  ;;  %v1015_v49 = vld [vmem:[%s6170_s20 + $0x1440] sm:$0xff] }
 0x185   : > { %v934_v11 = vld [vmem:[%s6170_s20 + $0x11b8] sm:$0xff]  ;;  %2395 = vmatpush.msrb.mxu0 %v662_v10  ;;  %v1287_v50 = vld [vmem:[%s6170_s20 + $0x1cc0] sm:$0xff] }
 0x186   : > { %v1174_v12 = vld [vmem:[%s6170_s20 + $0x1938] sm:$0xff]  ;;  %2414 = vmatpush.msrb.mxu1 %v934_v11  ;;  %v487_v51 = vld [vmem:[%s6170_s20 + $0x3c0] sm:$0xff] }
 0x187   : > { %v1446_v32 = vld [vmem:[%s6170_s20 + $0x21b8] sm:$0xff]  ;;  %2435 = vmatpush.msrb.mxu2 %v1174_v12  ;;  %v759_v52 = vld [vmem:[%s6170_s20 + $0xc40] sm:$0xff] }
 0x188   : > { %v646_v14 = vld [vmem:[%s6170_s20 + $0x8b8] sm:$0xff]  ;;  %2454 = vmatpush.msrb.mxu3 %v1446_v32  ;;  %v999_v53 = vld [vmem:[%s6170_s20 + $0x13c0] sm:$0xff] }
 0x189   : > { %v918_v15 = vld [vmem:[%s6170_s20 + $0x1138] sm:$0xff]  ;;  %2396 = vmatpush.msrb.mxu0 %v646_v14  ;;  %v1271_v54 = vld [vmem:[%s6170_s20 + $0x1c40] sm:$0xff] }
 0x18a   : > { %v1158_v16 = vld [vmem:[%s6170_s20 + $0x18b8] sm:$0xff]  ;;  %2415 = vmatpush.msrb.mxu1 %v918_v15  ;;  %v471_v55 = vld [vmem:[%s6170_s20 + $0x340] sm:$0xff] }
 0x18b   : > { %v1430_v17 = vld [vmem:[%s6170_s20 + $0x2138] sm:$0xff]  ;;  %2436 = vmatpush.msrb.mxu2 %v1158_v16  ;;  %v743_v56 = vld [vmem:[%s6170_s20 + $0xbc0] sm:$0xff] }
 0x18c   : > { %v630_v18 = vld [vmem:[%s6170_s20 + $0x838] sm:$0xff]  ;;  %2455 = vmatpush.msrb.mxu3 %v1430_v17  ;;  %v983_v57 = vld [vmem:[%s6170_s20 + $0x1340] sm:$0xff] }
 0x18d   : > { %v902_v19 = vld [vmem:[%s6170_s20 + $0x10b8] sm:$0xff]  ;;  %2397 = vmatpush.msrb.mxu0 %v630_v18  ;;  %v1255_v58 = vld [vmem:[%s6170_s20 + $0x1bc0] sm:$0xff] }
 0x18e   : > { %v1142_v22 = vld [vmem:[%s6170_s20 + $0x1838] sm:$0xff]  ;;  %2416 = vmatpush.msrb.mxu1 %v902_v19  ;;  %2398 = vmatmul.f32.vlgmr.msrb.gmra.mxu0 %v6668_v30  ;;  %v567_v30 = vld [vmem:[%s6170_s20 + $0x640] sm:$0xff] }
 0x18f   : > { %v1414_v23 = vld [vmem:[%s6170_s20 + $0x20b8] sm:$0xff]  ;;  %2437 = vmatpush.msrb.mxu2 %v1142_v22  ;;  %2462 = vmatpush.msra.mxu0 %v615_v24  ;;  %v455_v59 = vld [vmem:[%s6170_s20 + $0x2c0] sm:$0xff] }
 0x190   : > { %v886_v3 = vld [vmem:[%s6170_s20 + $0x1038] sm:$0xff]  ;;  %2456 = vmatpush.msrb.mxu3 %v1414_v23  ;;  %2438 = vmatmul.f32.vlgmr.msrb.gmra.mxu2 %v6661_v26  ;;  %v583_v26 = vld [vmem:[%s6170_s20 + $0x6c0] sm:$0xff] }
 0x191   : > { %v1398_v28 = vld [vmem:[%s6170_s20 + $0x2038] sm:$0xff]  ;;  %2502 = vmatpush.msra.mxu2 %v1127_v27  ;;  %2417 = vmatpush.msrb.mxu1 %v886_v3  ;;  %v727_v60 = vld [vmem:[%s6170_s20 + $0xb40] sm:$0xff]  ;;  %v872_v27 = vld [vmem:[%s6170_s20 + $0xfc8] sm:$0xff] }
 0x192   : > { %2457 = vmatpush.msrb.mxu3 %v1398_v28  ;;  %2463 = vmatpush.msra.mxu0 %v599_v29  ;;  %v967_v25 = vld [vmem:[%s6170_s20 + $0x12c0] sm:$0xff] }
 0x193   : > { %2458 = vmatmul.f32.vlgmr.msrb.gmra.mxu3 %v6684_v41  ;;  %2482 = vmatpush.msra.mxu1 %v871_v61  ;;  %v1079_v41 = vld [vmem:[%s6170_s20 + $0x1640] sm:$0xff]  ;;  %v616_v61 = vld [vmem:[%s6170_s20 + $0x7c8] sm:$0xff] }
 0x194   : > { %2503 = vmatpush.msra.mxu2 %v1111_v8  ;;  %2522 = vmatpush.msra.mxu3 %v1383_v31  ;;  %v1239_v62 = vld [vmem:[%s6170_s20 + $0x1b40] sm:$0xff]  ;;  %v856_v8 = vld [vmem:[%s6170_s20 + $0xf48] sm:$0xff] }
 0x195   : > { %2418 = vmatmul.f32.vlgmr.msrb.gmra.mxu1 %v6651_v2  ;;  %2464 = vmatpush.msra.mxu0 %v583_v26  ;;  %v1335_v2 = vld [vmem:[%s6170_s20 + $0x1e40] sm:$0xff]  ;;  %v1128_v31 = vld [vmem:[%s6170_s20 + $0x17c8] sm:$0xff] }
 0x196   : > { %2483 = vmatpush.msra.mxu1 %v855_v21  ;;  %2504 = vmatpush.msra.mxu2 %v1095_v33  ;;  %v439_v63 = vld [vmem:[%s6170_s20 + $0x240] sm:$0xff]  ;;  %v600_v21 = vld [vmem:[%s6170_s20 + $0x748] sm:$0xff] }
 0x197   : > { %2523 = vmatpush.msra.mxu3 %v1367_v34  ;;  %2465 = vmatpush.msra.mxu0 %v567_v30  ;;  %v711_v0 = vld [vmem:[%s6170_s20 + $0xac0] sm:$0xff]  ;;  %v840_v33 = vld [vmem:[%s6170_s20 + $0xec8] sm:$0xff] }
 0x198   : > { %2484 = vmatpush.msra.mxu1 %v839_v35  ;;  %2505 = vmatpush.msra.mxu2 %v1079_v41  ;;  %v951_v4 = vld [vmem:[%s6170_s20 + $0x1240] sm:$0xff]  ;;  %v1112_v34 = vld [vmem:[%s6170_s20 + $0x1748] sm:$0xff] }
 0x199   : > { %2524 = vmatpush.msra.mxu3 %v1351_v36  ;;  %2466 = vmatpush.msra.mxu0 %v551_v37  ;;  %v1223_v5 = vld [vmem:[%s6170_s20 + $0x1ac0] sm:$0xff]  ;;  %v584_v35 = vld [vmem:[%s6170_s20 + $0x6c8] sm:$0xff] }
 0x19a   : > { %2485 = vmatpush.msra.mxu1 %v823_v38  ;;  %2506 = vmatpush.msra.mxu2 %v1063_v39  ;;  %v423_v1 = vld [vmem:[%s6170_s20 + $0x1c0] sm:$0xff]  ;;  %v824_v41 = vld [vmem:[%s6170_s20 + $0xe48] sm:$0xff] }
 0x19b   : > { %2525 = vmatpush.msra.mxu3 %v1335_v2  ;;  %2467 = vmatpush.msra.mxu0 %v535_v40  ;;  %v695_v6 = vld [vmem:[%s6170_s20 + $0xa40] sm:$0xff]  ;;  %v1096_v36 = vld [vmem:[%s6170_s20 + $0x16c8] sm:$0xff] }
 0x19c   : > { %2486 = vmatpush.msra.mxu1 %v807_v42  ;;  %2507 = vmatpush.msra.mxu2 %v1047_v43  ;;  %v935_v7 = vld [vmem:[%s6170_s20 + $0x11c0] sm:$0xff]  ;;  %v568_v38 = vld [vmem:[%s6170_s20 + $0x648] sm:$0xff] }
 0x19d   : > { %2526 = vmatpush.msra.mxu3 %v1319_v44  ;;  %2468 = vmatpush.msra.mxu0 %v519_v45  ;;  %v1207_v9 = vld [vmem:[%s6170_s20 + $0x1a40] sm:$0xff]  ;;  %v808_v39 = vld [vmem:[%s6170_s20 + $0xdc8] sm:$0xff] }
 0x19e   : > { %2487 = vmatpush.msra.mxu1 %v791_v46  ;;  %2508 = vmatpush.msra.mxu2 %v1031_v47  ;;  %v407_v10 = vld [vmem:[%s6170_s20 + $0x140] sm:$0xff]  ;;  %v1080_v2 = vld [vmem:[%s6170_s20 + $0x1648] sm:$0xff] }
 0x19f   : > { %2527 = vmatpush.msra.mxu3 %v1303_v48  ;;  %2469 = vmatpush.msra.mxu0 %v503_v13  ;;  %v679_v11 = vld [vmem:[%s6170_s20 + $0x9c0] sm:$0xff]  ;;  %v552_v42 = vld [vmem:[%s6170_s20 + $0x5c8] sm:$0xff] }
 0x1a0   : > { %2488 = vmatpush.msra.mxu1 %v775_v20  ;;  %2509 = vmatpush.msra.mxu2 %v1015_v49  ;;  %v919_v12 = vld [vmem:[%s6170_s20 + $0x1140] sm:$0xff]  ;;  %v792_v43 = vld [vmem:[%s6170_s20 + $0xd48] sm:$0xff] }
 0x1a1   : > { %2528 = vmatpush.msra.mxu3 %v1287_v50  ;;  %2470 = vmatpush.msra.mxu0 %v487_v51  ;;  %v1191_v32 = vld [vmem:[%s6170_s20 + $0x19c0] sm:$0xff]  ;;  %v1064_v44 = vld [vmem:[%s6170_s20 + $0x15c8] sm:$0xff] }
 0x1a2   : > { %2489 = vmatpush.msra.mxu1 %v759_v52  ;;  %2510 = vmatpush.msra.mxu2 %v999_v53  ;;  %v391_v14 = vld [vmem:[%s6170_s20 + $0xc0] sm:$0xff]  ;;  %v536_v46 = vld [vmem:[%s6170_s20 + $0x548] sm:$0xff] }
 0x1a3   : > { %2529 = vmatpush.msra.mxu3 %v1271_v54  ;;  %2471 = vmatpush.msra.mxu0 %v471_v55  ;;  %v663_v15 = vld [vmem:[%s6170_s20 + $0x940] sm:$0xff]  ;;  %v776_v47 = vld [vmem:[%s6170_s20 + $0xcc8] sm:$0xff] }
 0x1a4   : > { %2490 = vmatpush.msra.mxu1 %v743_v56  ;;  %2511 = vmatpush.msra.mxu2 %v983_v57  ;;  %v903_v16 = vld [vmem:[%s6170_s20 + $0x10c0] sm:$0xff]  ;;  %v1048_v48 = vld [vmem:[%s6170_s20 + $0x1548] sm:$0xff] }
 0x1a5   : > { %2530 = vmatpush.msra.mxu3 %v1255_v58  ;;  %2472 = vmatpush.msra.mxu0 %v455_v59  ;;  %v1175_v17 = vld [vmem:[%s6170_s20 + $0x1940] sm:$0xff]  ;;  %v520_v20 = vld [vmem:[%s6170_s20 + $0x4c8] sm:$0xff] }
 0x1a6   : > { %2491 = vmatpush.msra.mxu1 %v727_v60  ;;  %2512 = vmatpush.msra.mxu2 %v967_v25  ;;  %v375_v18 = vld [vmem:[%s6170_s20 + $0x40] sm:$0xff]  ;;  %v760_v49 = vld [vmem:[%s6170_s20 + $0xc48] sm:$0xff] }
 0x1a7   : > { %2531 = vmatpush.msra.mxu3 %v1239_v62  ;;  %2473 = vmatpush.msra.mxu0 %v439_v63  ;;  %v647_v19 = vld [vmem:[%s6170_s20 + $0x8c0] sm:$0xff]  ;;  %v1032_v50 = vld [vmem:[%s6170_s20 + $0x14c8] sm:$0xff] }
 0x1a8   : > { %2492 = vmatpush.msra.mxu1 %v711_v0  ;;  %2513 = vmatpush.msra.mxu2 %v951_v4  ;;  %v887_v22 = vld [vmem:[%s6170_s20 + $0x1040] sm:$0xff]  ;;  %v504_v52 = vld [vmem:[%s6170_s20 + $0x448] sm:$0xff] }
 0x1a9   : > { %2532 = vmatpush.msra.mxu3 %v1223_v5  ;;  %2474 = vmatpush.msra.mxu0 %v423_v1  ;;  %v1159_v23 = vld [vmem:[%s6170_s20 + $0x18c0] sm:$0xff]  ;;  %v744_v53 = vld [vmem:[%s6170_s20 + $0xbc8] sm:$0xff] }
 0x1aa   : > { %2493 = vmatpush.msra.mxu1 %v695_v6  ;;  %2514 = vmatpush.msra.mxu2 %v935_v7  ;;  %v1639_v24 = vld [vmem:[%s6170_s20 + $0x27c0] sm:$0xff]  ;;  %v1016_v54 = vld [vmem:[%s6170_s20 + $0x1448] sm:$0xff] }
 0x1ab   : > { %2533 = vmatpush.msra.mxu3 %v1207_v9  ;;  %2475 = vmatpush.msra.mxu0 %v407_v10  ;;  %v631_v3 = vld [vmem:[%s6170_s20 + $0x840] sm:$0xff]  ;;  %v488_v56 = vld [vmem:[%s6170_s20 + $0x3c8] sm:$0xff] }
 0x1ac   : > { %2494 = vmatpush.msra.mxu1 %v679_v11  ;;  %2515 = vmatpush.msra.mxu2 %v919_v12  ;;  %v1143_v28 = vld [vmem:[%s6170_s20 + $0x1840] sm:$0xff]  ;;  %v728_v57 = vld [vmem:[%s6170_s20 + $0xb48] sm:$0xff] }
 0x1ad   : > { %2534 = vmatpush.msra.mxu3 %v1191_v32  ;;  %2476 = vmatpush.msra.mxu0 %v391_v14  ;;  %v1623_v29 = vld [vmem:[%s6170_s20 + $0x2740] sm:$0xff]  ;;  %v1000_v58 = vld [vmem:[%s6170_s20 + $0x13c8] sm:$0xff] }
 0x1ae   : > { %2495 = vmatpush.msra.mxu1 %v663_v15  ;;  %2516 = vmatpush.msra.mxu2 %v903_v16  ;;  %v1607_v26 = vld [vmem:[%s6170_s20 + $0x26c0] sm:$0xff]  ;;  %v472_v60 = vld [vmem:[%s6170_s20 + $0x348] sm:$0xff] }
 0x1af   : > { %2535 = vmatpush.msra.mxu3 %v1175_v17  ;;  %2477 = vmatpush.msra.mxu0 %v375_v18  ;;  %v1591_v30 = vld [vmem:[%s6170_s20 + $0x2640] sm:$0xff]  ;;  %v712_v25 = vld [vmem:[%s6170_s20 + $0xac8] sm:$0xff] }
 0x1b0   : > { %2496 = vmatpush.msra.mxu1 %v647_v19  ;;  %2517 = vmatpush.msra.mxu2 %v887_v22  ;;  %v1575_v37 = vld [vmem:[%s6170_s20 + $0x25c0] sm:$0xff]  ;;  %v984_v62 = vld [vmem:[%s6170_s20 + $0x1348] sm:$0xff] }
 0x1b1   : > { %2536 = vmatpush.msra.mxu3 %v1159_v23  ;;  %2542 = vmatpush.msrb.mxu0 %v1639_v24  ;;  %v1559_v40 = vld [vmem:[%s6170_s20 + $0x2540] sm:$0xff]  ;;  %v456_v0 = vld [vmem:[%s6170_s20 + $0x2c8] sm:$0xff]  ;;  %v7031_v24 = vld.sshfl [vmem:[#allocation1 + $0x10] sm:$0xff pattern:$0x73625140] }
 0x1b2   : > { %2582 = vmatpush.msrb.mxu2 %v872_v27  ;;  %2497 = vmatpush.msra.mxu1 %v631_v3  ;;  %v1543_v45 = vld [vmem:[%s6170_s20 + $0x24c0] sm:$0xff]  ;;  %v696_v4 = vld [vmem:[%s6170_s20 + $0xa48] sm:$0xff]  ;;  %v617_v3 = vld [vmem:[%s6170_s20 + $0x7d0] sm:$0xff] }
 0x1b3   : > { %2537 = vmatpush.msra.mxu3 %v1143_v28  ;;  %2543 = vmatpush.msrb.mxu0 %v1623_v29  ;;  %v1527_v13 = vld [vmem:[%s6170_s20 + $0x2440] sm:$0xff]  ;;  %v968_v5 = vld [vmem:[%s6170_s20 + $0x12c8] sm:$0xff] }
 0x1b4   : > { %2562 = vmatpush.msrb.mxu1 %v616_v61  ;;  %2583 = vmatpush.msrb.mxu2 %v856_v8  ;;  %v1511_v51 = vld [vmem:[%s6170_s20 + $0x23c0] sm:$0xff]  ;;  %v440_v6 = vld [vmem:[%s6170_s20 + $0x248] sm:$0xff]  ;;  %v7041_v8 = vld.sshfl [vmem:[#allocation1 + $0x18] sm:$0xff pattern:$0x73625140] }
 0x1b5   : > { %2602 = vmatpush.msrb.mxu3 %v1128_v31  ;;  %2544 = vmatpush.msrb.mxu0 %v1607_v26  ;;  %v1495_v55 = vld [vmem:[%s6170_s20 + $0x2340] sm:$0xff]  ;;  %v680_v7 = vld [vmem:[%s6170_s20 + $0x9c8] sm:$0xff] }
 0x1b6   : > { %2563 = vmatpush.msrb.mxu1 %v600_v21  ;;  %2584 = vmatpush.msrb.mxu2 %v840_v33  ;;  %v1479_v59 = vld [vmem:[%s6170_s20 + $0x22c0] sm:$0xff]  ;;  %v952_v9 = vld [vmem:[%s6170_s20 + $0x1248] sm:$0xff]  ;;  %v601_v21 = vld [vmem:[%s6170_s20 + $0x750] sm:$0xff] }
 0x1b7   : > { %2603 = vmatpush.msrb.mxu3 %v1112_v34  ;;  %2545 = vmatpush.msrb.mxu0 %v1591_v30  ;;  %v1463_v63 = vld [vmem:[%s6170_s20 + $0x2240] sm:$0xff]  ;;  %v424_v11 = vld [vmem:[%s6170_s20 + $0x1c8] sm:$0xff]  ;;  %v873_v33 = vld [vmem:[%s6170_s20 + $0xfd0] sm:$0xff] }
 0x1b8   : > { %2564 = vmatpush.msrb.mxu1 %v584_v35  ;;  %2585 = vmatpush.msrb.mxu2 %v824_v41  ;;  %v1447_v1 = vld [vmem:[%s6170_s20 + $0x21c0] sm:$0xff]  ;;  %v664_v12 = vld [vmem:[%s6170_s20 + $0x948] sm:$0xff]  ;;  %v585_v41 = vld [vmem:[%s6170_s20 + $0x6d0] sm:$0xff] }
 0x1b9   : > { %2604 = vmatpush.msrb.mxu3 %v1096_v36  ;;  %2546 = vmatpush.msrb.mxu0 %v1575_v37  ;;  %v1431_v10 = vld [vmem:[%s6170_s20 + $0x2140] sm:$0xff]  ;;  %v936_v32 = vld [vmem:[%s6170_s20 + $0x11c8] sm:$0xff]  ;;  %v857_v36 = vld [vmem:[%s6170_s20 + $0xf50] sm:$0xff] }
 0x1ba   : > { %2565 = vmatpush.msrb.mxu1 %v568_v38  ;;  %2586 = vmatpush.msrb.mxu2 %v808_v39  ;;  %v1415_v14 = vld [vmem:[%s6170_s20 + $0x20c0] sm:$0xff]  ;;  %v408_v15 = vld [vmem:[%s6170_s20 + $0x148] sm:$0xff]  ;;  %v569_v39 = vld [vmem:[%s6170_s20 + $0x650] sm:$0xff] }
 0x1bb   : > { %2605 = vmatpush.msrb.mxu3 %v1080_v2  ;;  %2547 = vmatpush.msrb.mxu0 %v1559_v40  ;;  %v648_v16 = vld [vmem:[%s6170_s20 + $0x8c8] sm:$0xff]  ;;  %v1399_v18 = vld [vmem:[%s6170_s20 + $0x2040] sm:$0xff]  ;;  %v841_v2 = vld [vmem:[%s6170_s20 + $0xed0] sm:$0xff] }
 0x1bc   : > { %2566 = vmatpush.msrb.mxu1 %v552_v42  ;;  %2587 = vmatpush.msrb.mxu2 %v792_v43  ;;  %v920_v17 = vld [vmem:[%s6170_s20 + $0x1148] sm:$0xff]  ;;  %v7037_v29 = vld.sshfl [vmem:[#allocation1] sm:$0xff pattern:$0x73625140]  ;;  %v553_v43 = vld [vmem:[%s6170_s20 + $0x5d0] sm:$0xff] }
 0x1bd   : > { %2606 = vmatpush.msrb.mxu3 %v1064_v44  ;;  %2548 = vmatpush.msrb.mxu0 %v1543_v45  ;;  %v392_v19 = vld [vmem:[%s6170_s20 + $0xc8] sm:$0xff]  ;;  %v825_v44 = vld [vmem:[%s6170_s20 + $0xe50] sm:$0xff] }
 0x1be   : > { %2567 = vmatpush.msrb.mxu1 %v536_v46  ;;  %2588 = vmatpush.msrb.mxu2 %v776_v47  ;;  %v632_v22 = vld [vmem:[%s6170_s20 + $0x848] sm:$0xff]  ;;  %v7064_v46 = vld.sshfl [vmem:[#allocation1 + $0x20] sm:$0xff pattern:$0x73625140] }
 0x1bf   : > { %2607 = vmatpush.msrb.mxu3 %v1048_v48  ;;  %2549 = vmatpush.msrb.mxu0 %v1527_v13  ;;  %v904_v23 = vld [vmem:[%s6170_s20 + $0x10c8] sm:$0xff]  ;;  %v537_v48 = vld [vmem:[%s6170_s20 + $0x550] sm:$0xff] }
 0x1c0   : > { %2568 = vmatpush.msrb.mxu1 %v520_v20  ;;  %2589 = vmatpush.msrb.mxu2 %v760_v49  ;;  %v1384_v27 = vld [vmem:[%s6170_s20 + $0x1fc8] sm:$0xff]  ;;  %v809_v13 = vld [vmem:[%s6170_s20 + $0xdd0] sm:$0xff] }
 0x1c1   : > { %2608 = vmatpush.msrb.mxu3 %v1032_v50  ;;  %2550 = vmatpush.msrb.mxu0 %v1511_v51  ;;  %v376_v28 = vld [vmem:[%s6170_s20 + $0x48] sm:$0xff]  ;;  %v521_v50 = vld [vmem:[%s6170_s20 + $0x4d0] sm:$0xff] }
 0x1c2   : > { %2569 = vmatpush.msrb.mxu1 %v504_v52  ;;  %2590 = vmatpush.msrb.mxu2 %v744_v53  ;;  %v888_v61 = vld [vmem:[%s6170_s20 + $0x1048] sm:$0xff]  ;;  %v793_v51 = vld [vmem:[%s6170_s20 + $0xd50] sm:$0xff] }
 0x1c3   : > { %2609 = vmatpush.msrb.mxu3 %v1016_v54  ;;  %2551 = vmatpush.msrb.mxu0 %v1495_v55  ;;  %v1368_v31 = vld [vmem:[%s6170_s20 + $0x1f48] sm:$0xff]  ;;  %v505_v54 = vld [vmem:[%s6170_s20 + $0x450] sm:$0xff] }
 0x1c4   : > { %2570 = vmatpush.msrb.mxu1 %v488_v56  ;;  %2591 = vmatpush.msrb.mxu2 %v728_v57  ;;  %v1640_v26 = vld [vmem:[%s6170_s20 + $0x27c8] sm:$0xff]  ;;  %v777_v55 = vld [vmem:[%s6170_s20 + $0xcd0] sm:$0xff] }
 0x1c5   : > { %2610 = vmatpush.msrb.mxu3 %v1000_v58  ;;  %2552 = vmatpush.msrb.mxu0 %v1479_v59  ;;  %v7048_v34 = vld.sshfl [vmem:[#allocation1 + $0x8] sm:$0xff pattern:$0x73625140]  ;;  %v489_v58 = vld [vmem:[%s6170_s20 + $0x3d0] sm:$0xff] }
 0x1c6   : > { %2571 = vmatpush.msrb.mxu1 %v472_v60  ;;  %2592 = vmatpush.msrb.mxu2 %v712_v25  ;;  %v1352_v30 = vld [vmem:[%s6170_s20 + $0x1ec8] sm:$0xff]  ;;  %v761_v59 = vld [vmem:[%s6170_s20 + $0xc50] sm:$0xff] }
 0x1c7   : > { %2611 = vmatpush.msrb.mxu3 %v984_v62  ;;  %2553 = vmatpush.msrb.mxu0 %v1463_v63  ;;  %v1624_v35 = vld [vmem:[%s6170_s20 + $0x2748] sm:$0xff]  ;;  %v473_v62 = vld [vmem:[%s6170_s20 + $0x350] sm:$0xff] }
 0x1c8   : > { %2572 = vmatpush.msrb.mxu1 %v456_v0  ;;  %2593 = vmatpush.msrb.mxu2 %v696_v4  ;;  %v1336_v37 = vld [vmem:[%s6170_s20 + $0x1e48] sm:$0xff]  ;;  %v745_v63 = vld [vmem:[%s6170_s20 + $0xbd0] sm:$0xff] }
 0x1c9   : > { %2612 = vmatpush.msrb.mxu3 %v968_v5  ;;  %2554 = vmatpush.msrb.mxu0 %v1447_v1  ;;  %v1608_v38 = vld [vmem:[%s6170_s20 + $0x26c8] sm:$0xff]  ;;  %v457_v5 = vld [vmem:[%s6170_s20 + $0x2d0] sm:$0xff] }
 0x1ca   : > { %2573 = vmatpush.msrb.mxu1 %v440_v6  ;;  %2594 = vmatpush.msrb.mxu2 %v680_v7  ;;  %v1592_v40 = vld [vmem:[%s6170_s20 + $0x2648] sm:$0xff]  ;;  %v729_v1 = vld [vmem:[%s6170_s20 + $0xb50] sm:$0xff] }
 0x1cb   : > { %2613 = vmatpush.msrb.mxu3 %v952_v9  ;;  %2555 = vmatpush.msrb.mxu0 %v1431_v10  ;;  %v1320_v42 = vld [vmem:[%s6170_s20 + $0x1dc8] sm:$0xff]  ;;  %v441_v9 = vld [vmem:[%s6170_s20 + $0x250] sm:$0xff] }
 0x1cc   : > { %2574 = vmatpush.msrb.mxu1 %v424_v11  ;;  %2595 = vmatpush.msrb.mxu2 %v664_v12  ;;  %v1576_v45 = vld [vmem:[%s6170_s20 + $0x25c8] sm:$0xff]  ;;  %v713_v10 = vld [vmem:[%s6170_s20 + $0xad0] sm:$0xff] }
 0x1cd   : > { %2614 = vmatpush.msrb.mxu3 %v936_v32  ;;  %2556 = vmatpush.msrb.mxu0 %v1415_v14  ;;  %v1304_v47 = vld [vmem:[%s6170_s20 + $0x1d48] sm:$0xff]  ;;  %v425_v32 = vld [vmem:[%s6170_s20 + $0x1d0] sm:$0xff] }
 0x1ce   : > { %2575 = vmatpush.msrb.mxu1 %v408_v15  ;;  %2596 = vmatpush.msrb.mxu2 %v648_v16  ;;  %v1560_v20 = vld [vmem:[%s6170_s20 + $0x2548] sm:$0xff]  ;;  %v697_v14 = vld [vmem:[%s6170_s20 + $0xa50] sm:$0xff]  ;;  %v7099_v15 = vpop.f32.mrf.mxu0 }
 0x1cf   : > { %2615 = vmatpush.msrb.mxu3 %v920_v17  ;;  %2518 = vmatmul.f32.vlgmr.msra.gmra.mxu2 %v7031_v24  ;;  %v1288_v49 = vld [vmem:[%s6170_s20 + $0x1cc8] sm:$0xff] }
 0x1d0   : > { %2557 = vmatpush.msrb.mxu0 %v1399_v18  ;;  %2576 = vmatpush.msrb.mxu1 %v392_v19  ;;  %v1544_v52 = vld [vmem:[%s6170_s20 + $0x24c8] sm:$0xff]  ;;  %v409_v18 = vld [vmem:[%s6170_s20 + $0x150] sm:$0xff] }
 0x1d1   : > { %2597 = vmatpush.msrb.mxu2 %v632_v22  ;;  %2616 = vmatpush.msrb.mxu3 %v904_v23  ;;  %v1272_v53 = vld [vmem:[%s6170_s20 + $0x1c48] sm:$0xff]  ;;  %v681_v19 = vld [vmem:[%s6170_s20 + $0x9d0] sm:$0xff] }
 0x1d2   : > { %2478 = vmatmul.f32.vlgmr.msra.gmra.mxu0 %v7037_v29  ;;  %2538 = vmatmul.f32.vlgmr.msra.gmra.mxu3 %v7041_v8  ;;  %v1528_v56 = vld [vmem:[%s6170_s20 + $0x2448] sm:$0xff] }
 0x1d3   : > { %2622 = vmatpush.msra.mxu0 %v1384_v27  ;;  %2662 = vmatpush.msra.mxu2 %v617_v3  ;;  %v1256_v57 = vld [vmem:[%s6170_s20 + $0x1bc8] sm:$0xff]  ;;  %v7109_v27 = vpop.f32.mrf.mxu1  ;;  %v393_v3 = vld [vmem:[%s6170_s20 + $0xd0] sm:$0xff] }
 0x1d4   : > { %2577 = vmatpush.msrb.mxu1 %v376_v28  ;;  %2617 = vmatpush.msrb.mxu3 %v888_v61  ;;  %v1512_v60 = vld [vmem:[%s6170_s20 + $0x23c8] sm:$0xff]  ;;  %v665_v28 = vld [vmem:[%s6170_s20 + $0x950] sm:$0xff]  ;;  %v7113_v61 = vpop.f32.mrf.mxu2 }
 0x1d5   : > { %2498 = vmatmul.f32.vlgmr.msra.gmra.mxu1 %v7048_v34  ;;  %2623 = vmatpush.msra.mxu0 %v1368_v31  ;;  %v1240_v25 = vld [vmem:[%s6170_s20 + $0x1b48] sm:$0xff] }
 0x1d6   : > { %2642 = vmatpush.msra.mxu1 %v1640_v26  ;;  %2663 = vmatpush.msra.mxu2 %v601_v21  ;;  %v1496_v0 = vld [vmem:[%s6170_s20 + $0x2348] sm:$0xff]  ;;  %v377_v21 = vld [vmem:[%s6170_s20 + $0x50] sm:$0xff] }
 0x1d7   : > { %2682 = vmatpush.msra.mxu3 %v873_v33  ;;  %2624 = vmatpush.msra.mxu0 %v1352_v30  ;;  %v1224_v4 = vld [vmem:[%s6170_s20 + $0x1ac8] sm:$0xff]  ;;  %v649_v33 = vld [vmem:[%s6170_s20 + $0x8d0] sm:$0xff] }
 0x1d8   : > { %2643 = vmatpush.msra.mxu1 %v1624_v35  ;;  %2664 = vmatpush.msra.mxu2 %v585_v41  ;;  %v1208_v6 = vld [vmem:[%s6170_s20 + $0x1a48] sm:$0xff]  ;;  %v1641_v30 = vld [vmem:[%s6170_s20 + $0x27d0] sm:$0xff] }
 0x1d9   : > { %2683 = vmatpush.msra.mxu3 %v857_v36  ;;  %2625 = vmatpush.msra.mxu0 %v1336_v37  ;;  %v1480_v7 = vld [vmem:[%s6170_s20 + $0x22c8] sm:$0xff]  ;;  %v1129_v35 = vld [vmem:[%s6170_s20 + $0x17d0] sm:$0xff]  ;;  %v7122_v36 = vpop.f32.mrf.mxu3 }
 0x1da   : > { %2644 = vmatpush.msra.mxu1 %v1608_v38  ;;  %2665 = vmatpush.msra.mxu2 %v569_v39  ;;  %v1192_v11 = vld [vmem:[%s6170_s20 + $0x19c8] sm:$0xff]  ;;  %v633_v37 = vld [vmem:[%s6170_s20 + $0x850] sm:$0xff] }
 0x1db   : > { %2684 = vmatpush.msra.mxu3 %v841_v2  ;;  %2558 = vmatmul.f32.vlgmr.msrb.gmra.mxu0 %v7064_v46  ;;  %v1464_v12 = vld [vmem:[%s6170_s20 + $0x2248] sm:$0xff]  ;;  %v1113_v38 = vld [vmem:[%s6170_s20 + $0x1750] sm:$0xff]  ;;  %v7128_v2 = vpop.f32.mrf.mxu0 }
 0x1dc   : > { %2645 = vmatpush.msra.mxu1 %v1592_v40  ;;  %2626 = vmatpush.msra.mxu0 %v1320_v42  ;;  %v1176_v16 = vld [vmem:[%s6170_s20 + $0x1948] sm:$0xff]  ;;  %v1385_v39 = vld [vmem:[%s6170_s20 + $0x1fd0] sm:$0xff]  ;;  %v618_v42 = vld [vmem:[%s6170_s20 + $0x7d8] sm:$0xff] }
 0x1dd   : > { %2666 = vmatpush.msra.mxu2 %v553_v43  ;;  %2685 = vmatpush.msra.mxu3 %v825_v44  ;;  %v1448_v17 = vld [vmem:[%s6170_s20 + $0x21c8] sm:$0xff]  ;;  %v1625_v40 = vld [vmem:[%s6170_s20 + $0x2750] sm:$0xff]  ;;  %v7132_v43 = vpop.f32.mrf.mxu1 }
 0x1de   : > { %2646 = vmatpush.msra.mxu1 %v1576_v45  ;;  %2627 = vmatpush.msra.mxu0 %v1304_v47  ;;  %v1160_v22 = vld [vmem:[%s6170_s20 + $0x18c8] sm:$0xff]  ;;  %v1097_v44 = vld [vmem:[%s6170_s20 + $0x16d0] sm:$0xff]  ;;  %v2199_v47 = vpop.f32.mrf.mxu2 }
 0x1df   : > { %2667 = vmatpush.msra.mxu2 %v537_v48  ;;  %2686 = vmatpush.msra.mxu3 %v809_v13  ;;  %v1432_v23 = vld [vmem:[%s6170_s20 + $0x2148] sm:$0xff]  ;;  %v1369_v45 = vld [vmem:[%s6170_s20 + $0x1f50] sm:$0xff]  ;;  %v602_v13 = vld [vmem:[%s6170_s20 + $0x758] sm:$0xff] }
 0x1e0   : > { %2647 = vmatpush.msra.mxu1 %v1560_v20  ;;  %2628 = vmatpush.msra.mxu0 %v1288_v49  ;;  %v1144_v31 = vld [vmem:[%s6170_s20 + $0x1848] sm:$0xff]  ;;  %v1609_v48 = vld [vmem:[%s6170_s20 + $0x26d0] sm:$0xff] }
 0x1e1   : > { %2668 = vmatpush.msra.mxu2 %v521_v50  ;;  %2687 = vmatpush.msra.mxu3 %v793_v51  ;;  %v1416_v26 = vld [vmem:[%s6170_s20 + $0x20c8] sm:$0xff]  ;;  %v1081_v20 = vld [vmem:[%s6170_s20 + $0x1650] sm:$0xff]  ;;  %v586_v51 = vld [vmem:[%s6170_s20 + $0x6d8] sm:$0xff] }
 0x1e2   : > { %2648 = vmatpush.msra.mxu1 %v1544_v52  ;;  %2629 = vmatpush.msra.mxu0 %v1272_v53  ;;  %v1400_v41 = vld [vmem:[%s6170_s20 + $0x2048] sm:$0xff]  ;;  %v1353_v49 = vld [vmem:[%s6170_s20 + $0x1ed0] sm:$0xff] }
 0x1e3   : > { %2669 = vmatpush.msra.mxu2 %v505_v54  ;;  %2688 = vmatpush.msra.mxu3 %v777_v55  ;;  %v1593_v50 = vld [vmem:[%s6170_s20 + $0x2650] sm:$0xff]  ;;  %v7145_v54 = vpop.f32.mrf.mxu3 }
 0x1e4   : > { %2649 = vmatpush.msra.mxu1 %v1528_v56  ;;  %2630 = vmatpush.msra.mxu0 %v1256_v57  ;;  %v1065_v52 = vld [vmem:[%s6170_s20 + $0x15d0] sm:$0xff]  ;;  %v570_v56 = vld [vmem:[%s6170_s20 + $0x658] sm:$0xff] }
 0x1e5   : > { %2670 = vmatpush.msra.mxu2 %v489_v58  ;;  %2689 = vmatpush.msra.mxu3 %v761_v59  ;;  %v1337_v53 = vld [vmem:[%s6170_s20 + $0x1e50] sm:$0xff]  ;;  %v7151_v59 = vpop.f32.mrf.mxu0 }
 0x1e6   : > { %2650 = vmatpush.msra.mxu1 %v1512_v60  ;;  %2631 = vmatpush.msra.mxu0 %v1240_v25  ;;  %v1577_v55 = vld [vmem:[%s6170_s20 + $0x25d0] sm:$0xff]  ;;  %v554_v25 = vld [vmem:[%s6170_s20 + $0x5d8] sm:$0xff] }
 0x1e7   : > { %2671 = vmatpush.msra.mxu2 %v473_v62  ;;  %2690 = vmatpush.msra.mxu3 %v745_v63  ;;  %v1049_v57 = vld [vmem:[%s6170_s20 + $0x1550] sm:$0xff] }
 0x1e8   : > { %2651 = vmatpush.msra.mxu1 %v1496_v0  ;;  %2632 = vmatpush.msra.mxu0 %v1224_v4  ;;  %v1321_v58 = vld [vmem:[%s6170_s20 + $0x1dd0] sm:$0xff]  ;;  %v2279_v0 = vpop.f32.mrf.mxu2 }
 0x1e9   : > { %2672 = vmatpush.msra.mxu2 %v457_v5  ;;  %2691 = vmatpush.msra.mxu3 %v729_v1  ;;  %v1561_v60 = vld [vmem:[%s6170_s20 + $0x2550] sm:$0xff]  ;;  %v538_v5 = vld [vmem:[%s6170_s20 + $0x558] sm:$0xff]  ;;  %v7159_v1 = vpop.f32.mrf.mxu1 }
 0x1ea   : > { %2598 = vmatmul.f32.vlgmr.msrb.gmra.mxu2 %v7048_v34  ;;  %2633 = vmatpush.msra.mxu0 %v1208_v6  ;;  %v1033_v62 = vld [vmem:[%s6170_s20 + $0x14d0] sm:$0xff] }
 0x1eb   : > { %2652 = vmatpush.msra.mxu1 %v1480_v7  ;;  %2673 = vmatpush.msra.mxu2 %v441_v9  ;;  %v1305_v63 = vld [vmem:[%s6170_s20 + $0x1d50] sm:$0xff] }
 0x1ec   : > { %2692 = vmatpush.msra.mxu3 %v713_v10  ;;  %2634 = vmatpush.msra.mxu0 %v1192_v11  ;;  %v1545_v4 = vld [vmem:[%s6170_s20 + $0x24d0] sm:$0xff]  ;;  %v522_v10 = vld [vmem:[%s6170_s20 + $0x4d8] sm:$0xff] }
 0x1ed   : > { %2618 = vmatmul.f32.vlgmr.msrb.gmra.mxu3 %v7031_v24  ;;  %2653 = vmatpush.msra.mxu1 %v1464_v12  ;;  %v1017_v6 = vld [vmem:[%s6170_s20 + $0x1450] sm:$0xff] }
 0x1ee   : > { %2674 = vmatpush.msra.mxu2 %v425_v32  ;;  %2693 = vmatpush.msra.mxu3 %v697_v14  ;;  %v1289_v7 = vld [vmem:[%s6170_s20 + $0x1cd0] sm:$0xff]  ;;  %v2299_v32 = vpop.f32.mrf.mxu3 }
 0x1ef   : > { %2578 = vmatmul.f32.vlgmr.msrb.gmra.mxu1 %v7037_v29  ;;  %2635 = vmatpush.msra.mxu0 %v1176_v16  ;;  %v1529_v9 = vld [vmem:[%s6170_s20 + $0x2450] sm:$0xff]  ;;  %v506_v16 = vld [vmem:[%s6170_s20 + $0x458] sm:$0xff] }
 0x1f0   : > { %2654 = vmatpush.msra.mxu1 %v1448_v17  ;;  %2675 = vmatpush.msra.mxu2 %v409_v18  ;;  %v1001_v11 = vld [vmem:[%s6170_s20 + $0x13d0] sm:$0xff] }
 0x1f1   : > { %2694 = vmatpush.msra.mxu3 %v681_v19  ;;  %2636 = vmatpush.msra.mxu0 %v1160_v22  ;;  %v1273_v12 = vld [vmem:[%s6170_s20 + $0x1c50] sm:$0xff]  ;;  %v2200_v19 = vadd.f32 %v2199_v47, %v7132_v43  ;;  %v2319_v22 = vpop.f32.mrf.mxu0 }
 0x1f2   : > { %2655 = vmatpush.msra.mxu1 %v1432_v23  ;;  %2676 = vmatpush.msra.mxu2 %v393_v3  ;;  %v1513_v14 = vld [vmem:[%s6170_s20 + $0x23d0] sm:$0xff]  ;;  %v490_v3 = vld [vmem:[%s6170_s20 + $0x3d8] sm:$0xff] }
 0x1f3   : > { %2695 = vmatpush.msra.mxu3 %v665_v28  ;;  %2637 = vmatpush.msra.mxu0 %v1144_v31  ;;  %v985_v17 = vld [vmem:[%s6170_s20 + $0x1350] sm:$0xff] }
 0x1f4   : > { %2656 = vmatpush.msra.mxu1 %v1416_v26  ;;  %2677 = vmatpush.msra.mxu2 %v377_v21  ;;  %v1257_v18 = vld [vmem:[%s6170_s20 + $0x1bd0] sm:$0xff]  ;;  %v2300_v26 = vadd.f32 %v2299_v32, %v2279_v0 }
 0x1f5   : > { %2696 = vmatpush.msra.mxu3 %v649_v33  ;;  %2638 = vmatmul.f32.vlgmr.msra.gmra.mxu0 %v7041_v8  ;;  %v1497_v23 = vld [vmem:[%s6170_s20 + $0x2350] sm:$0xff]  ;;  %v474_v33 = vld [vmem:[%s6170_s20 + $0x358] sm:$0xff] }
 0x1f6   : > { %2742 = vmatpush.msrb.mxu2 %v1641_v30  ;;  %2702 = vmatpush.msrb.mxu0 %v1129_v35  ;;  %v969_v28 = vld [vmem:[%s6170_s20 + $0x12d0] sm:$0xff]  ;;  %v2339_v30 = vpop.f32.mrf.mxu1 }
 0x1f7   : > { %2657 = vmatpush.msra.mxu1 %v1400_v41  ;;  %2697 = vmatpush.msra.mxu3 %v633_v37  ;;  %v1241_v31 = vld [vmem:[%s6170_s20 + $0x1b50] sm:$0xff]  ;;  %v2220_v37 = vadd.f32 %v7145_v54, %v2200_v19 }
 0x1f8   : > { %2658 = vmatmul.f32.vlgmr.msra.gmra.mxu1 %v7064_v46  ;;  %2703 = vmatpush.msrb.mxu0 %v1113_v38  ;;  %v1481_v21 = vld [vmem:[%s6170_s20 + $0x22d0] sm:$0xff]  ;;  %v2359_v38 = vpop.f32.mrf.mxu2 }
 0x1f9   : > { %2722 = vmatpush.msrb.mxu1 %v1385_v39  ;;  %2743 = vmatpush.msrb.mxu2 %v1625_v40  ;;  %v953_v35 = vld [vmem:[%s6170_s20 + $0x1250] sm:$0xff]  ;;  %v458_v40 = vld [vmem:[%s6170_s20 + $0x2d8] sm:$0xff] }
 0x1fa   : > { %2762 = vmatpush.msrb.mxu3 %v618_v42  ;;  %2704 = vmatpush.msrb.mxu0 %v1097_v44  ;;  %v1225_v41 = vld [vmem:[%s6170_s20 + $0x1ad0] sm:$0xff]  ;;  %v2100_v44 = vadd.f32 %v7109_v27, %v7099_v15  ;;  %v426_v15 = vld [vmem:[%s6170_s20 + $0x1d8] sm:$0xff] }
 0x1fb   : > { %2723 = vmatpush.msrb.mxu1 %v1369_v45  ;;  %2744 = vmatpush.msrb.mxu2 %v1609_v48  ;;  %v1465_v39 = vld [vmem:[%s6170_s20 + $0x2250] sm:$0xff]  ;;  %v2320_v45 = vadd.f32 %v2319_v22, %v2300_v26  ;;  %v442_v48 = vld [vmem:[%s6170_s20 + $0x258] sm:$0xff] }
 0x1fc   : > { %2763 = vmatpush.msrb.mxu3 %v602_v13  ;;  %2705 = vmatpush.msrb.mxu0 %v1081_v20  ;;  %v937_v42 = vld [vmem:[%s6170_s20 + $0x11d0] sm:$0xff]  ;;  %v1626_v26 = vld [vmem:[%s6170_s20 + $0x2758] sm:$0xff] }
 0x1fd   : > { %2724 = vmatpush.msrb.mxu1 %v1353_v49  ;;  %2745 = vmatpush.msrb.mxu2 %v1593_v50  ;;  %v1209_v43 = vld [vmem:[%s6170_s20 + $0x1a50] sm:$0xff]  ;;  %v2240_v50 = vadd.f32 %v7151_v59, %v2220_v37 }
 0x1fe   : > { %2764 = vmatpush.msrb.mxu3 %v586_v51  ;;  %2706 = vmatpush.msrb.mxu0 %v1065_v52  ;;  %v1449_v47 = vld [vmem:[%s6170_s20 + $0x21d0] sm:$0xff] }
 0x1ff   : > { %2725 = vmatpush.msrb.mxu1 %v1337_v53  ;;  %2746 = vmatpush.msrb.mxu2 %v1577_v55  ;;  %v921_v20 = vld [vmem:[%s6170_s20 + $0x1150] sm:$0xff]  ;;  %v2120_v55 = vadd.f32 %v7113_v61, %v2100_v44  ;;  %v1594_v44 = vld [vmem:[%s6170_s20 + $0x2658] sm:$0xff] }
 0x200   : > { %2765 = vmatpush.msrb.mxu3 %v570_v56  ;;  %2707 = vmatpush.msrb.mxu0 %v1049_v57  ;;  %v1193_v49 = vld [vmem:[%s6170_s20 + $0x19d0] sm:$0xff]  ;;  %v2340_v56 = vadd.f32 %v2339_v30, %v2320_v45  ;;  %v794_v45 = vld [vmem:[%s6170_s20 + $0xd58] sm:$0xff] }
 0x201   : > { %2726 = vmatpush.msrb.mxu1 %v1321_v58  ;;  %2747 = vmatpush.msrb.mxu2 %v1561_v60  ;;  %v1433_v51 = vld [vmem:[%s6170_s20 + $0x2150] sm:$0xff]  ;;  %v410_v58 = vld [vmem:[%s6170_s20 + $0x158] sm:$0xff] }
 0x202   : > { %2766 = vmatpush.msrb.mxu3 %v554_v25  ;;  %2708 = vmatpush.msrb.mxu0 %v1033_v62  ;;  %v905_v52 = vld [vmem:[%s6170_s20 + $0x10d0] sm:$0xff]  ;;  %v2260_v25 = vadd.f32 %v7159_v1, %v2240_v50  ;;  %v1386_v1 = vld [vmem:[%s6170_s20 + $0x1fd8] sm:$0xff] }
 0x203   : > { %2727 = vmatpush.msrb.mxu1 %v1305_v63  ;;  %2748 = vmatpush.msrb.mxu2 %v1545_v4  ;;  %v1177_v53 = vld [vmem:[%s6170_s20 + $0x1950] sm:$0xff]  ;;  %v394_v4 = vld [vmem:[%s6170_s20 + $0xd8] sm:$0xff] }
 0x204   : > { %2767 = vmatpush.msrb.mxu3 %v538_v5  ;;  %2709 = vmatpush.msrb.mxu0 %v1017_v6  ;;  %v1417_v57 = vld [vmem:[%s6170_s20 + $0x20d0] sm:$0xff]  ;;  %v874_v5 = vld [vmem:[%s6170_s20 + $0xfd8] sm:$0xff]  ;;  %v2140_v6 = vadd.f32 %v7122_v36, %v2120_v55  ;;  %v3281_v32 = vrot.slane %v2260_v25, 6 }
 0x205   : > { %2728 = vmatpush.msrb.mxu1 %v1289_v7  ;;  %2749 = vmatpush.msrb.mxu2 %v1529_v9  ;;  %v2379_v13 = vpop.f32.mrf.mxu3  ;;  %v889_v59 = vld [vmem:[%s6170_s20 + $0x1050] sm:$0xff]  ;;  %v2360_v7 = vadd.f32 %v2359_v38, %v2340_v56  ;;  %v1130_v36 = vld [vmem:[%s6170_s20 + $0x17d8] sm:$0xff] }
 0x206   : > { %2768 = vmatpush.msrb.mxu3 %v522_v10  ;;  %2710 = vmatpush.msrb.mxu0 %v1001_v11  ;;  %v1161_v62 = vld [vmem:[%s6170_s20 + $0x18d0] sm:$0xff]  ;;  %v378_v11 = vld [vmem:[%s6170_s20 + $0x58] sm:$0xff]  ;;  %v2160_v19 = vadd.f32 %v7128_v2, %v2140_v6 }
 0x207   : > { %2729 = vmatpush.msrb.mxu1 %v1273_v12  ;;  %2750 = vmatpush.msrb.mxu2 %v1513_v14  ;;  %v1401_v63 = vld [vmem:[%s6170_s20 + $0x2050] sm:$0xff]  ;;  %v858_v14 = vld [vmem:[%s6170_s20 + $0xf58] sm:$0xff]  ;;  %v3282_v22 = vrot.slane %v2360_v7, 4 }
 0x208   : > { %2769 = vmatpush.msrb.mxu3 %v506_v16  ;;  %2711 = vmatpush.msrb.mxu0 %v985_v17  ;;  %v1145_v10 = vld [vmem:[%s6170_s20 + $0x1850] sm:$0xff]  ;;  %v1370_v17 = vld [vmem:[%s6170_s20 + $0x1f58] sm:$0xff] }
 0x209   : > { %2730 = vmatpush.msrb.mxu1 %v1257_v18  ;;  %2751 = vmatpush.msrb.mxu2 %v1497_v23  ;;  %v1642_v18 = vld [vmem:[%s6170_s20 + $0x27d8] sm:$0xff] }
 0x20a   : > { %2770 = vmatpush.msrb.mxu3 %v490_v3  ;;  %2712 = vmatpush.msrb.mxu0 %v969_v28  ;;  %v842_v23 = vld [vmem:[%s6170_s20 + $0xed8] sm:$0xff] }
 0x20b   : > { %2731 = vmatpush.msrb.mxu1 %v1241_v31  ;;  %2752 = vmatpush.msrb.mxu2 %v1481_v21  ;;  %v2399_v27 = vpop.f32.mrf.mxu0  ;;  %v1114_v3 = vld [vmem:[%s6170_s20 + $0x1758] sm:$0xff]  ;;  %v362_v21 = vld [vmem:[#allocation2 + $0x8] sm:$0xff] }
 0x20c   : > { %2771 = vmatpush.msrb.mxu3 %v474_v33  ;;  %2713 = vmatpush.msrb.mxu0 %v953_v35  ;;  %v2400_v54 = vadd.f32 %v2399_v27, %v2379_v13  ;;  %v1354_v31 = vld [vmem:[%s6170_s20 + $0x1ed8] sm:$0xff]  ;;  %v3296_v33 = vsel %vm3290_vm7, %v2160_v19, %v3281_v32 }
 0x20d   : > { %2732 = vmatpush.msrb.mxu1 %v1225_v41  ;;  %2753 = vmatpush.msrb.mxu2 %v1465_v39  ;;  %v826_v2 = vld [vmem:[%s6170_s20 + $0xe58] sm:$0xff] }
 0x20e   : > { %2772 = vmatpush.msrb.mxu3 %v458_v40  ;;  %2714 = vmatpush.msrb.mxu0 %v937_v42  ;;  %v1098_v35 = vld [vmem:[%s6170_s20 + $0x16d8] sm:$0xff] }
 0x20f   : > { %2733 = vmatpush.msrb.mxu1 %v1209_v43  ;;  %2754 = vmatpush.msrb.mxu2 %v1449_v47  ;;  %v1338_v41 = vld [vmem:[%s6170_s20 + $0x1e58] sm:$0xff] }
 0x210   : > { %2773 = vmatpush.msrb.mxu3 %v442_v48  ;;  %2715 = vmatpush.msrb.mxu0 %v921_v20  ;;  %v1610_v38 = vld [vmem:[%s6170_s20 + $0x26d8] sm:$0xff] }
 0x211   : > { %2734 = vmatpush.msrb.mxu1 %v1193_v49  ;;  %2755 = vmatpush.msrb.mxu2 %v1433_v51  ;;  %v810_v40 = vld [vmem:[%s6170_s20 + $0xdd8] sm:$0xff] }
 0x212   : > { %2774 = vmatpush.msrb.mxu3 %v426_v15  ;;  %v2419_v60 = vpop.f32.mrf.mxu1  ;;  %2716 = vmatpush.msrb.mxu0 %v905_v52  ;;  %v1082_v42 = vld [vmem:[%s6170_s20 + $0x1658] sm:$0xff] }
 0x213   : > { %2735 = vmatpush.msrb.mxu1 %v1177_v53  ;;  %v2420_v61 = vadd.f32 %v2419_v60, %v2400_v54  ;;  %v2439_v0 = vpop.f32.mrf.mxu2  ;;  %2756 = vmatpush.msrb.mxu2 %v1417_v57  ;;  %v1322_v43 = vld [vmem:[%s6170_s20 + $0x1dd8] sm:$0xff] }
 0x214   : > { %2775 = vmatpush.msrb.mxu3 %v410_v58  ;;  %2678 = vmatmul.f32.vlgmr.msra.gmra.mxu2 %v7037_v29  ;;  %v1066_v47 = vld [vmem:[%s6170_s20 + $0x15d8] sm:$0xff] }
 0x215   : > { %2717 = vmatpush.msrb.mxu0 %v889_v59  ;;  %v2440_v9 = vadd.f32 %v2439_v0, %v2420_v61  ;;  %2736 = vmatpush.msrb.mxu1 %v1161_v62  ;;  %v1306_v48 = vld [vmem:[%s6170_s20 + $0x1d58] sm:$0xff] }
 0x216   : > { %2757 = vmatpush.msrb.mxu2 %v1401_v63  ;;  %v2459_v12 = vpop.f32.mrf.mxu3  ;;  %2776 = vmatpush.msrb.mxu3 %v394_v4  ;;  %v1578_v13 = vld [vmem:[%s6170_s20 + $0x25d8] sm:$0xff] }
 0x217   : > { %2782 = vmatpush.msra.mxu0 %v874_v5  ;;  %v2460_v16 = vadd.f32 %v2459_v12, %v2440_v9  ;;  %2698 = vmatmul.f32.vlgmr.msra.gmra.mxu3 %v7048_v34  ;;  %v778_v20 = vld [vmem:[%s6170_s20 + $0xcd8] sm:$0xff] }
 0x218   : > { %2822 = vmatpush.msra.mxu2 %v1386_v1  ;;  %2737 = vmatpush.msrb.mxu1 %v1145_v10  ;;  %v1050_v49 = vld [vmem:[%s6170_s20 + $0x1558] sm:$0xff] }
 0x219   : > { %2777 = vmatpush.msrb.mxu3 %v378_v11  ;;  %v3283_v28 = vrot.slane %v2460_v16, 2  ;;  %2783 = vmatpush.msra.mxu0 %v858_v14  ;;  %v1290_v50 = vld [vmem:[%s6170_s20 + $0x1cd8] sm:$0xff] }
 0x21a   : > { %2802 = vmatpush.msra.mxu1 %v1130_v36  ;;  %2823 = vmatpush.msra.mxu2 %v1370_v17  ;;  %v1562_v51 = vld [vmem:[%s6170_s20 + $0x2558] sm:$0xff] }
 0x21b   : > { %2842 = vmatpush.msra.mxu3 %v1642_v18  ;;  %v3297_v30 = vsel %vm3292_vm8, %v3282_v22, %v3283_v28  ;;  %2784 = vmatpush.msra.mxu0 %v842_v23  ;;  %v762_v15 = vld [vmem:[%s6170_s20 + $0xc58] sm:$0xff] }
 0x21c   : > { %2803 = vmatpush.msra.mxu1 %v1114_v3  ;;  %v3298_v37 = vsel %vm3294_vm9, %v3296_v33, %v3297_v30  ;;  %2824 = vmatpush.msra.mxu2 %v1354_v31  ;;  %v1034_v27 = vld [vmem:[%s6170_s20 + $0x14d8] sm:$0xff]  ;;  %v1131_v31 = vld [vmem:[%s6170_s20 + $0x17e0] sm:$0xff] }
 0x21d   : > { %2843 = vmatpush.msra.mxu3 %v1626_v26  ;;  %v3310_v39 = vadd.f32 %v3298_v37, %v362_v21  ;;  %2758 = vmatmul.f32.vlgmr.msrb.gmra.mxu2 %v7064_v46  ;;  %v1274_v52 = vld [vmem:[%s6170_s20 + $0x1c58] sm:$0xff]  ;;  %v603_v33 = vld [vmem:[%s6170_s20 + $0x760] sm:$0xff] }
 0x21e   : > { %2785 = vmatpush.msra.mxu0 %v826_v2  ;;  %2804 = vmatpush.msra.mxu1 %v1098_v35  ;;  %v1546_v53 = vld [vmem:[%s6170_s20 + $0x24d8] sm:$0xff]  ;;  %v875_v2 = vld [vmem:[%s6170_s20 + $0xfe0] sm:$0xff] }
 0x21f   : > { %2825 = vmatpush.msra.mxu2 %v1338_v41  ;;  %3314 = vst [vmem:[#allocation2 + $0x8] sm:$0xff] %v3310_v39  ;;  %2844 = vmatpush.msra.mxu3 %v1610_v38  ;;  %v746_v54 = vld [vmem:[%s6170_s20 + $0xbd8] sm:$0xff]  ;;  %v1115_v30 = vld [vmem:[%s6170_s20 + $0x1760] sm:$0xff] }
 0x220   : > { %2718 = vmatmul.f32.vlgmr.msrb.gmra.mxu0 %v7031_v24  ;;  %2805 = vmatpush.msra.mxu1 %v1082_v42  ;;  %v1018_v55 = vld [vmem:[%s6170_s20 + $0x1458] sm:$0xff]  ;;  %v1387_v35 = vld [vmem:[%s6170_s20 + $0x1fe0] sm:$0xff] }
 0x221   : > { %2786 = vmatpush.msra.mxu0 %v810_v40  ;;  %2826 = vmatpush.msra.mxu2 %v1322_v43  ;;  %v1258_v56 = vld [vmem:[%s6170_s20 + $0x1bd8] sm:$0xff]  ;;  %v859_v41 = vld [vmem:[%s6170_s20 + $0xf60] sm:$0xff] }
 0x222   : > { %2845 = vmatpush.msra.mxu3 %v1594_v44  ;;  %2738 = vmatmul.f32.vlgmr.msrb.gmra.mxu1 %v7041_v8  ;;  %v1530_v57 = vld [vmem:[%s6170_s20 + $0x2458] sm:$0xff]  ;;  %v1099_v37 = vld [vmem:[%s6170_s20 + $0x16e0] sm:$0xff] }
 0x223   : > { %2787 = vmatpush.msra.mxu0 %v794_v45  ;;  %2806 = vmatpush.msra.mxu1 %v1066_v47  ;;  %v730_v58 = vld [vmem:[%s6170_s20 + $0xb58] sm:$0xff]  ;;  %v1371_v38 = vld [vmem:[%s6170_s20 + $0x1f60] sm:$0xff] }
 0x224   : > { %2827 = vmatpush.msra.mxu2 %v1306_v48  ;;  %2846 = vmatpush.msra.mxu3 %v1578_v13  ;;  %v1002_v59 = vld [vmem:[%s6170_s20 + $0x13d8] sm:$0xff]  ;;  %v843_v39 = vld [vmem:[%s6170_s20 + $0xee0] sm:$0xff] }
 0x225   : > { %2788 = vmatpush.msra.mxu0 %v778_v20  ;;  %2807 = vmatpush.msra.mxu1 %v1050_v49  ;;  %v1242_v60 = vld [vmem:[%s6170_s20 + $0x1b58] sm:$0xff]  ;;  %v1355_v40 = vld [vmem:[%s6170_s20 + $0x1ee0] sm:$0xff] }
 0x226   : > { %2828 = vmatpush.msra.mxu2 %v1290_v50  ;;  %2847 = vmatpush.msra.mxu3 %v1562_v51  ;;  %v1514_v25 = vld [vmem:[%s6170_s20 + $0x23d8] sm:$0xff]  ;;  %v555_v42 = vld [vmem:[%s6170_s20 + $0x5e0] sm:$0xff] }
 0x227   : > { %2789 = vmatpush.msra.mxu0 %v762_v15  ;;  %2808 = vmatpush.msra.mxu1 %v1034_v27  ;;  %v714_v62 = vld [vmem:[%s6170_s20 + $0xad8] sm:$0xff]  ;;  %v827_v43 = vld [vmem:[%s6170_s20 + $0xe60] sm:$0xff] }
 0x228   : > { %2829 = vmatpush.msra.mxu2 %v1274_v52  ;;  %2848 = vmatpush.msra.mxu3 %v1546_v53  ;;  %v986_v63 = vld [vmem:[%s6170_s20 + $0x1358] sm:$0xff]  ;;  %v1067_v44 = vld [vmem:[%s6170_s20 + $0x15e0] sm:$0xff] }
 0x229   : > { %2790 = vmatpush.msra.mxu0 %v746_v54  ;;  %2809 = vmatpush.msra.mxu1 %v1018_v55  ;;  %v1226_v61 = vld [vmem:[%s6170_s20 + $0x1ad8] sm:$0xff]  ;;  %v539_v45 = vld [vmem:[%s6170_s20 + $0x560] sm:$0xff] }
 0x22a   : > { %2830 = vmatpush.msra.mxu2 %v1258_v56  ;;  %2849 = vmatpush.msra.mxu3 %v1530_v57  ;;  %v1498_v0 = vld [vmem:[%s6170_s20 + $0x2358] sm:$0xff]  ;;  %v811_v47 = vld [vmem:[%s6170_s20 + $0xde0] sm:$0xff] }
 0x22b   : > { %2791 = vmatpush.msra.mxu0 %v730_v58  ;;  %2810 = vmatpush.msra.mxu1 %v1002_v59  ;;  %v698_v4 = vld [vmem:[%s6170_s20 + $0xa58] sm:$0xff]  ;;  %v1051_v48 = vld [vmem:[%s6170_s20 + $0x1560] sm:$0xff] }
 0x22c   : > { %2831 = vmatpush.msra.mxu2 %v1242_v60  ;;  %2850 = vmatpush.msra.mxu3 %v1514_v25  ;;  %v970_v5 = vld [vmem:[%s6170_s20 + $0x12d8] sm:$0xff]  ;;  %v1323_v13 = vld [vmem:[%s6170_s20 + $0x1de0] sm:$0xff] }
 0x22d   : > { %2792 = vmatpush.msra.mxu0 %v714_v62  ;;  %v1210_v6 = vld [vmem:[%s6170_s20 + $0x1a58] sm:$0xff]  ;;  %2811 = vmatpush.msra.mxu1 %v986_v63  ;;  %v523_v20 = vld [vmem:[%s6170_s20 + $0x4e0] sm:$0xff] }
 0x22e   : > { %2832 = vmatpush.msra.mxu2 %v1226_v61  ;;  %v1482_v7 = vld [vmem:[%s6170_s20 + $0x22d8] sm:$0xff]  ;;  %2851 = vmatpush.msra.mxu3 %v1498_v0  ;;  %v795_v49 = vld [vmem:[%s6170_s20 + $0xd60] sm:$0xff] }
 0x22f   : > { %v682_v1 = vld [vmem:[%s6170_s20 + $0x9d8] sm:$0xff]  ;;  %2793 = vmatpush.msra.mxu0 %v698_v4  ;;  %2812 = vmatpush.msra.mxu1 %v970_v5  ;;  %v1035_v50 = vld [vmem:[%s6170_s20 + $0x14e0] sm:$0xff] }
 0x230   : > { %v954_v9 = vld [vmem:[%s6170_s20 + $0x1258] sm:$0xff]  ;;  %2833 = vmatpush.msra.mxu2 %v1210_v6  ;;  %2852 = vmatpush.msra.mxu3 %v1482_v7  ;;  %v1307_v51 = vld [vmem:[%s6170_s20 + $0x1d60] sm:$0xff] }
 0x231   : > { %v1194_v10 = vld [vmem:[%s6170_s20 + $0x19d8] sm:$0xff]  ;;  %2794 = vmatpush.msra.mxu0 %v682_v1  ;;  %2813 = vmatpush.msra.mxu1 %v954_v9  ;;  %v507_v15 = vld [vmem:[%s6170_s20 + $0x460] sm:$0xff] }
 0x232   : > { %v1466_v11 = vld [vmem:[%s6170_s20 + $0x2258] sm:$0xff]  ;;  %2834 = vmatpush.msra.mxu2 %v1194_v10  ;;  %2778 = vmatmul.f32.vlgmr.msrb.gmra.mxu3 %v7037_v29  ;;  %v619_v29 = vld [vmem:[%s6170_s20 + $0x7e0] sm:$0xff] }
 0x233   : > { %v666_v12 = vld [vmem:[%s6170_s20 + $0x958] sm:$0xff]  ;;  %2853 = vmatpush.msra.mxu3 %v1466_v11  ;;  %v779_v27 = vld [vmem:[%s6170_s20 + $0xce0] sm:$0xff] }
 0x234   : > { %v938_v32 = vld [vmem:[%s6170_s20 + $0x11d8] sm:$0xff]  ;;  %2795 = vmatpush.msra.mxu0 %v666_v12  ;;  %v1019_v52 = vld [vmem:[%s6170_s20 + $0x1460] sm:$0xff] }
 0x235   : > { %v1178_v14 = vld [vmem:[%s6170_s20 + $0x1958] sm:$0xff]  ;;  %2814 = vmatpush.msra.mxu1 %v938_v32  ;;  %v1291_v53 = vld [vmem:[%s6170_s20 + $0x1ce0] sm:$0xff] }
 0x236   : > { %v1450_v36 = vld [vmem:[%s6170_s20 + $0x21d8] sm:$0xff]  ;;  %2835 = vmatpush.msra.mxu2 %v1178_v14  ;;  %v491_v54 = vld [vmem:[%s6170_s20 + $0x3e0] sm:$0xff] }
 0x237   : > { %v650_v16 = vld [vmem:[%s6170_s20 + $0x8d8] sm:$0xff]  ;;  %2854 = vmatpush.msra.mxu3 %v1450_v36  ;;  %v763_v55 = vld [vmem:[%s6170_s20 + $0xc60] sm:$0xff] }
 0x238   : > { %v922_v17 = vld [vmem:[%s6170_s20 + $0x1158] sm:$0xff]  ;;  %2796 = vmatpush.msra.mxu0 %v650_v16  ;;  %v1003_v56 = vld [vmem:[%s6170_s20 + $0x13e0] sm:$0xff] }
 0x239   : > { %v1162_v18 = vld [vmem:[%s6170_s20 + $0x18d8] sm:$0xff]  ;;  %2815 = vmatpush.msra.mxu1 %v922_v17  ;;  %v1275_v57 = vld [vmem:[%s6170_s20 + $0x1c60] sm:$0xff] }
 0x23a   : > { %v1434_v19 = vld [vmem:[%s6170_s20 + $0x2158] sm:$0xff]  ;;  %2836 = vmatpush.msra.mxu2 %v1162_v18  ;;  %v475_v58 = vld [vmem:[%s6170_s20 + $0x360] sm:$0xff] }
 0x23b   : > { %v634_v22 = vld [vmem:[%s6170_s20 + $0x858] sm:$0xff]  ;;  %2855 = vmatpush.msra.mxu3 %v1434_v19  ;;  %v747_v59 = vld [vmem:[%s6170_s20 + $0xbe0] sm:$0xff] }
 0x23c   : > { %v906_v23 = vld [vmem:[%s6170_s20 + $0x10d8] sm:$0xff]  ;;  %2797 = vmatpush.msra.mxu0 %v634_v22  ;;  %v987_v60 = vld [vmem:[%s6170_s20 + $0x1360] sm:$0xff] }
 0x23d   : > { %v1146_v3 = vld [vmem:[%s6170_s20 + $0x1858] sm:$0xff]  ;;  %2816 = vmatpush.msra.mxu1 %v906_v23  ;;  %2798 = vmatmul.f32.vlgmr.msra.gmra.mxu0 %v7048_v34  ;;  %v571_v34 = vld [vmem:[%s6170_s20 + $0x660] sm:$0xff] }
 0x23e   : > { %v1418_v28 = vld [vmem:[%s6170_s20 + $0x20d8] sm:$0xff]  ;;  %2837 = vmatpush.msra.mxu2 %v1146_v3  ;;  %2862 = vmatpush.msrb.mxu0 %v619_v29  ;;  %v1259_v25 = vld [vmem:[%s6170_s20 + $0x1be0] sm:$0xff] }
 0x23f   : > { %v890_v26 = vld [vmem:[%s6170_s20 + $0x1058] sm:$0xff]  ;;  %2856 = vmatpush.msra.mxu3 %v1418_v28  ;;  %2838 = vmatmul.f32.vlgmr.msra.gmra.mxu2 %v7041_v8  ;;  %v587_v8 = vld [vmem:[%s6170_s20 + $0x6e0] sm:$0xff] }
 0x240   : > { %v1402_v21 = vld [vmem:[%s6170_s20 + $0x2058] sm:$0xff]  ;;  %2902 = vmatpush.msrb.mxu2 %v1131_v31  ;;  %2817 = vmatpush.msra.mxu1 %v890_v26  ;;  %v459_v62 = vld [vmem:[%s6170_s20 + $0x2e0] sm:$0xff]  ;;  %v876_v31 = vld [vmem:[%s6170_s20 + $0xfe8] sm:$0xff] }
 0x241   : > { %2857 = vmatpush.msra.mxu3 %v1402_v21  ;;  %2863 = vmatpush.msrb.mxu0 %v603_v33  ;;  %v731_v63 = vld [vmem:[%s6170_s20 + $0xb60] sm:$0xff] }
 0x242   : > { %2858 = vmatmul.f32.vlgmr.msra.gmra.mxu3 %v7064_v46  ;;  %2882 = vmatpush.msrb.mxu1 %v875_v2  ;;  %v1083_v46 = vld [vmem:[%s6170_s20 + $0x1660] sm:$0xff]  ;;  %v620_v2 = vld [vmem:[%s6170_s20 + $0x7e8] sm:$0xff] }
 0x243   : > { %2903 = vmatpush.msrb.mxu2 %v1115_v30  ;;  %2922 = vmatpush.msrb.mxu3 %v1387_v35  ;;  %v971_v61 = vld [vmem:[%s6170_s20 + $0x12e0] sm:$0xff]  ;;  %v860_v30 = vld [vmem:[%s6170_s20 + $0xf68] sm:$0xff] }
 0x244   : > { %2818 = vmatmul.f32.vlgmr.msra.gmra.mxu1 %v7031_v24  ;;  %2864 = vmatpush.msrb.mxu0 %v587_v8  ;;  %v1339_v24 = vld [vmem:[%s6170_s20 + $0x1e60] sm:$0xff]  ;;  %v1132_v35 = vld [vmem:[%s6170_s20 + $0x17e8] sm:$0xff] }
 0x245   : > { %2883 = vmatpush.msrb.mxu1 %v859_v41  ;;  %2904 = vmatpush.msrb.mxu2 %v1099_v37  ;;  %v1243_v0 = vld [vmem:[%s6170_s20 + $0x1b60] sm:$0xff]  ;;  %v604_v41 = vld [vmem:[%s6170_s20 + $0x768] sm:$0xff] }
 0x246   : > { %2923 = vmatpush.msrb.mxu3 %v1371_v38  ;;  %2865 = vmatpush.msrb.mxu0 %v571_v34  ;;  %v443_v4 = vld [vmem:[%s6170_s20 + $0x260] sm:$0xff]  ;;  %v844_v37 = vld [vmem:[%s6170_s20 + $0xee8] sm:$0xff] }
 0x247   : > { %2884 = vmatpush.msrb.mxu1 %v843_v39  ;;  %2905 = vmatpush.msrb.mxu2 %v1083_v46  ;;  %v715_v5 = vld [vmem:[%s6170_s20 + $0xae0] sm:$0xff]  ;;  %v1116_v38 = vld [vmem:[%s6170_s20 + $0x1768] sm:$0xff] }
 0x248   : > { %2924 = vmatpush.msrb.mxu3 %v1355_v40  ;;  %2866 = vmatpush.msrb.mxu0 %v555_v42  ;;  %v955_v6 = vld [vmem:[%s6170_s20 + $0x1260] sm:$0xff]  ;;  %v588_v39 = vld [vmem:[%s6170_s20 + $0x6e8] sm:$0xff] }
 0x249   : > { %2885 = vmatpush.msrb.mxu1 %v827_v43  ;;  %2906 = vmatpush.msrb.mxu2 %v1067_v44  ;;  %v1227_v7 = vld [vmem:[%s6170_s20 + $0x1ae0] sm:$0xff]  ;;  %v828_v46 = vld [vmem:[%s6170_s20 + $0xe68] sm:$0xff] }
 0x24a   : > { %2925 = vmatpush.msrb.mxu3 %v1339_v24  ;;  %2867 = vmatpush.msrb.mxu0 %v539_v45  ;;  %v427_v1 = vld [vmem:[%s6170_s20 + $0x1e0] sm:$0xff]  ;;  %v1100_v40 = vld [vmem:[%s6170_s20 + $0x16e8] sm:$0xff] }
 0x24b   : > { %2886 = vmatpush.msrb.mxu1 %v811_v47  ;;  %2907 = vmatpush.msrb.mxu2 %v1051_v48  ;;  %v699_v9 = vld [vmem:[%s6170_s20 + $0xa60] sm:$0xff]  ;;  %v572_v43 = vld [vmem:[%s6170_s20 + $0x668] sm:$0xff] }
 0x24c   : > { %2926 = vmatpush.msrb.mxu3 %v1323_v13  ;;  %2868 = vmatpush.msrb.mxu0 %v523_v20  ;;  %v939_v10 = vld [vmem:[%s6170_s20 + $0x11e0] sm:$0xff]  ;;  %v812_v44 = vld [vmem:[%s6170_s20 + $0xde8] sm:$0xff] }
 0x24d   : > { %2887 = vmatpush.msrb.mxu1 %v795_v49  ;;  %2908 = vmatpush.msrb.mxu2 %v1035_v50  ;;  %v1211_v11 = vld [vmem:[%s6170_s20 + $0x1a60] sm:$0xff]  ;;  %v1084_v24 = vld [vmem:[%s6170_s20 + $0x1668] sm:$0xff] }
 0x24e   : > { %2927 = vmatpush.msrb.mxu3 %v1307_v51  ;;  %2869 = vmatpush.msrb.mxu0 %v507_v15  ;;  %v411_v12 = vld [vmem:[%s6170_s20 + $0x160] sm:$0xff]  ;;  %v556_v47 = vld [vmem:[%s6170_s20 + $0x5e8] sm:$0xff] }
 0x24f   : > { %2888 = vmatpush.msrb.mxu1 %v779_v27  ;;  %2909 = vmatpush.msrb.mxu2 %v1019_v52  ;;  %v683_v32 = vld [vmem:[%s6170_s20 + $0x9e0] sm:$0xff]  ;;  %v796_v48 = vld [vmem:[%s6170_s20 + $0xd68] sm:$0xff] }
 0x250   : > { %2928 = vmatpush.msrb.mxu3 %v1291_v53  ;;  %2870 = vmatpush.msrb.mxu0 %v491_v54  ;;  %v923_v14 = vld [vmem:[%s6170_s20 + $0x1160] sm:$0xff]  ;;  %v1068_v13 = vld [vmem:[%s6170_s20 + $0x15e8] sm:$0xff] }
 0x251   : > { %2889 = vmatpush.msrb.mxu1 %v763_v55  ;;  %2910 = vmatpush.msrb.mxu2 %v1003_v56  ;;  %v1195_v36 = vld [vmem:[%s6170_s20 + $0x19e0] sm:$0xff]  ;;  %v540_v49 = vld [vmem:[%s6170_s20 + $0x568] sm:$0xff] }
 0x252   : > { %2929 = vmatpush.msrb.mxu3 %v1275_v57  ;;  %2871 = vmatpush.msrb.mxu0 %v475_v58  ;;  %v395_v16 = vld [vmem:[%s6170_s20 + $0xe0] sm:$0xff]  ;;  %v780_v50 = vld [vmem:[%s6170_s20 + $0xce8] sm:$0xff] }
 0x253   : > { %2890 = vmatpush.msrb.mxu1 %v747_v59  ;;  %2911 = vmatpush.msrb.mxu2 %v987_v60  ;;  %v667_v17 = vld [vmem:[%s6170_s20 + $0x960] sm:$0xff]  ;;  %v1052_v51 = vld [vmem:[%s6170_s20 + $0x1568] sm:$0xff] }
 0x254   : > { %2930 = vmatpush.msrb.mxu3 %v1259_v25  ;;  %2872 = vmatpush.msrb.mxu0 %v459_v62  ;;  %v907_v18 = vld [vmem:[%s6170_s20 + $0x10e0] sm:$0xff]  ;;  %v524_v27 = vld [vmem:[%s6170_s20 + $0x4e8] sm:$0xff] }
 0x255   : > { %2891 = vmatpush.msrb.mxu1 %v731_v63  ;;  %2912 = vmatpush.msrb.mxu2 %v971_v61  ;;  %v1179_v19 = vld [vmem:[%s6170_s20 + $0x1960] sm:$0xff]  ;;  %v764_v52 = vld [vmem:[%s6170_s20 + $0xc68] sm:$0xff] }
 0x256   : > { %2931 = vmatpush.msrb.mxu3 %v1243_v0  ;;  %2873 = vmatpush.msrb.mxu0 %v443_v4  ;;  %v379_v22 = vld [vmem:[%s6170_s20 + $0x60] sm:$0xff]  ;;  %v1036_v53 = vld [vmem:[%s6170_s20 + $0x14e8] sm:$0xff] }
 0x257   : > { %2892 = vmatpush.msrb.mxu1 %v715_v5  ;;  %2913 = vmatpush.msrb.mxu2 %v955_v6  ;;  %v651_v23 = vld [vmem:[%s6170_s20 + $0x8e0] sm:$0xff]  ;;  %v508_v55 = vld [vmem:[%s6170_s20 + $0x468] sm:$0xff] }
 0x258   : > { %2932 = vmatpush.msrb.mxu3 %v1227_v7  ;;  %2874 = vmatpush.msrb.mxu0 %v427_v1  ;;  %v891_v3 = vld [vmem:[%s6170_s20 + $0x1060] sm:$0xff]  ;;  %v748_v56 = vld [vmem:[%s6170_s20 + $0xbe8] sm:$0xff] }
 0x259   : > { %2893 = vmatpush.msrb.mxu1 %v699_v9  ;;  %2914 = vmatpush.msrb.mxu2 %v939_v10  ;;  %v1163_v28 = vld [vmem:[%s6170_s20 + $0x18e0] sm:$0xff]  ;;  %v1020_v57 = vld [vmem:[%s6170_s20 + $0x1468] sm:$0xff] }
 0x25a   : > { %2933 = vmatpush.msrb.mxu3 %v1211_v11  ;;  %2875 = vmatpush.msrb.mxu0 %v411_v12  ;;  %v1643_v29 = vld [vmem:[%s6170_s20 + $0x27e0] sm:$0xff]  ;;  %v492_v59 = vld [vmem:[%s6170_s20 + $0x3e8] sm:$0xff] }
 0x25b   : > { %2894 = vmatpush.msrb.mxu1 %v683_v32  ;;  %2915 = vmatpush.msrb.mxu2 %v923_v14  ;;  %v635_v26 = vld [vmem:[%s6170_s20 + $0x860] sm:$0xff]  ;;  %v732_v60 = vld [vmem:[%s6170_s20 + $0xb68] sm:$0xff] }
 0x25c   : > { %2934 = vmatpush.msrb.mxu3 %v1195_v36  ;;  %2876 = vmatpush.msrb.mxu0 %v395_v16  ;;  %v1147_v21 = vld [vmem:[%s6170_s20 + $0x1860] sm:$0xff]  ;;  %v1004_v25 = vld [vmem:[%s6170_s20 + $0x13e8] sm:$0xff] }
 0x25d   : > { %2895 = vmatpush.msrb.mxu1 %v667_v17  ;;  %2916 = vmatpush.msrb.mxu2 %v907_v18  ;;  %v1627_v33 = vld [vmem:[%s6170_s20 + $0x2760] sm:$0xff]  ;;  %v476_v63 = vld [vmem:[%s6170_s20 + $0x368] sm:$0xff] }
 0x25e   : > { %2935 = vmatpush.msrb.mxu3 %v1179_v19  ;;  %2877 = vmatpush.msrb.mxu0 %v379_v22  ;;  %v1611_v8 = vld [vmem:[%s6170_s20 + $0x26e0] sm:$0xff]  ;;  %v716_v61 = vld [vmem:[%s6170_s20 + $0xae8] sm:$0xff] }
 0x25f   : > { %2896 = vmatpush.msrb.mxu1 %v651_v23  ;;  %2917 = vmatpush.msrb.mxu2 %v891_v3  ;;  %v1595_v34 = vld [vmem:[%s6170_s20 + $0x2660] sm:$0xff]  ;;  %v988_v0 = vld [vmem:[%s6170_s20 + $0x1368] sm:$0xff] }
 0x260   : > { %2936 = vmatpush.msrb.mxu3 %v1163_v28  ;;  %2942 = vmatpush.msra.mxu0 %v1643_v29  ;;  %v1579_v42 = vld [vmem:[%s6170_s20 + $0x25e0] sm:$0xff]  ;;  %v460_v5 = vld [vmem:[%s6170_s20 + $0x2e8] sm:$0xff]  ;;  %v7411_v29 = vld.sshfl [vmem:[#allocation1 + $0x10] sm:$0xff pattern:$0x73625140] }
 0x261   : > { %2982 = vmatpush.msra.mxu2 %v876_v31  ;;  %2897 = vmatpush.msrb.mxu1 %v635_v26  ;;  %v1563_v45 = vld [vmem:[%s6170_s20 + $0x2560] sm:$0xff]  ;;  %v700_v6 = vld [vmem:[%s6170_s20 + $0xa68] sm:$0xff]  ;;  %v621_v26 = vld [vmem:[%s6170_s20 + $0x7f0] sm:$0xff] }
 0x262   : > { %2937 = vmatpush.msrb.mxu3 %v1147_v21  ;;  %2943 = vmatpush.msra.mxu0 %v1627_v33  ;;  %v1547_v20 = vld [vmem:[%s6170_s20 + $0x24e0] sm:$0xff]  ;;  %v972_v7 = vld [vmem:[%s6170_s20 + $0x12e8] sm:$0xff] }
 0x263   : > { %2962 = vmatpush.msra.mxu1 %v620_v2  ;;  %2983 = vmatpush.msra.mxu2 %v860_v30  ;;  %v1531_v15 = vld [vmem:[%s6170_s20 + $0x2460] sm:$0xff]  ;;  %v444_v9 = vld [vmem:[%s6170_s20 + $0x268] sm:$0xff]  ;;  %v7421_v30 = vld.sshfl [vmem:[#allocation1 + $0x18] sm:$0xff pattern:$0x73625140] }
 0x264   : > { %3002 = vmatpush.msra.mxu3 %v1132_v35  ;;  %2944 = vmatpush.msra.mxu0 %v1611_v8  ;;  %v1515_v54 = vld [vmem:[%s6170_s20 + $0x23e0] sm:$0xff]  ;;  %v684_v10 = vld [vmem:[%s6170_s20 + $0x9e8] sm:$0xff] }
 0x265   : > { %2963 = vmatpush.msra.mxu1 %v604_v41  ;;  %2984 = vmatpush.msra.mxu2 %v844_v37  ;;  %v1499_v58 = vld [vmem:[%s6170_s20 + $0x2360] sm:$0xff]  ;;  %v956_v11 = vld [vmem:[%s6170_s20 + $0x1268] sm:$0xff]  ;;  %v605_v41 = vld [vmem:[%s6170_s20 + $0x770] sm:$0xff] }
 0x266   : > { %3003 = vmatpush.msra.mxu3 %v1116_v38  ;;  %2945 = vmatpush.msra.mxu0 %v1595_v34  ;;  %v1483_v62 = vld [vmem:[%s6170_s20 + $0x22e0] sm:$0xff]  ;;  %v428_v32 = vld [vmem:[%s6170_s20 + $0x1e8] sm:$0xff]  ;;  %v877_v37 = vld [vmem:[%s6170_s20 + $0xff0] sm:$0xff] }
 0x267   : > { %2964 = vmatpush.msra.mxu1 %v588_v39  ;;  %2985 = vmatpush.msra.mxu2 %v828_v46  ;;  %v1467_v4 = vld [vmem:[%s6170_s20 + $0x2260] sm:$0xff]  ;;  %v668_v14 = vld [vmem:[%s6170_s20 + $0x968] sm:$0xff]  ;;  %v589_v46 = vld [vmem:[%s6170_s20 + $0x6f0] sm:$0xff] }
 0x268   : > { %3004 = vmatpush.msra.mxu3 %v1100_v40  ;;  %2946 = vmatpush.msra.mxu0 %v1579_v42  ;;  %v1451_v1 = vld [vmem:[%s6170_s20 + $0x21e0] sm:$0xff]  ;;  %v940_v36 = vld [vmem:[%s6170_s20 + $0x11e8] sm:$0xff]  ;;  %v861_v40 = vld [vmem:[%s6170_s20 + $0xf70] sm:$0xff] }
 0x269   : > { %2965 = vmatpush.msra.mxu1 %v572_v43  ;;  %2986 = vmatpush.msra.mxu2 %v812_v44  ;;  %v1435_v12 = vld [vmem:[%s6170_s20 + $0x2160] sm:$0xff]  ;;  %v412_v17 = vld [vmem:[%s6170_s20 + $0x168] sm:$0xff]  ;;  %v573_v44 = vld [vmem:[%s6170_s20 + $0x670] sm:$0xff] }
 0x26a   : > { %3005 = vmatpush.msra.mxu3 %v1084_v24  ;;  %2947 = vmatpush.msra.mxu0 %v1563_v45  ;;  %v1419_v16 = vld [vmem:[%s6170_s20 + $0x20e0] sm:$0xff]  ;;  %v652_v18 = vld [vmem:[%s6170_s20 + $0x8e8] sm:$0xff]  ;;  %v845_v24 = vld [vmem:[%s6170_s20 + $0xef0] sm:$0xff] }
 0x26b   : > { %2966 = vmatpush.msra.mxu1 %v556_v47  ;;  %2987 = vmatpush.msra.mxu2 %v796_v48  ;;  %v924_v19 = vld [vmem:[%s6170_s20 + $0x1168] sm:$0xff]  ;;  %v1403_v22 = vld [vmem:[%s6170_s20 + $0x2060] sm:$0xff]  ;;  %v557_v48 = vld [vmem:[%s6170_s20 + $0x5f0] sm:$0xff] }
 0x26c   : > { %3006 = vmatpush.msra.mxu3 %v1068_v13  ;;  %2948 = vmatpush.msra.mxu0 %v1547_v20  ;;  %v396_v23 = vld [vmem:[%s6170_s20 + $0xe8] sm:$0xff]  ;;  %v7417_v33 = vld.sshfl [vmem:[#allocation1] sm:$0xff pattern:$0x73625140]  ;;  %v829_v13 = vld [vmem:[%s6170_s20 + $0xe70] sm:$0xff] }
 0x26d   : > { %2967 = vmatpush.msra.mxu1 %v540_v49  ;;  %2988 = vmatpush.msra.mxu2 %v780_v50  ;;  %v636_v3 = vld [vmem:[%s6170_s20 + $0x868] sm:$0xff]  ;;  %v7444_v49 = vld.sshfl [vmem:[#allocation1 + $0x20] sm:$0xff pattern:$0x73625140] }
 0x26e   : > { %3007 = vmatpush.msra.mxu3 %v1052_v51  ;;  %2949 = vmatpush.msra.mxu0 %v1531_v15  ;;  %v908_v28 = vld [vmem:[%s6170_s20 + $0x10e8] sm:$0xff]  ;;  %v541_v51 = vld [vmem:[%s6170_s20 + $0x570] sm:$0xff] }
 0x26f   : > { %2968 = vmatpush.msra.mxu1 %v524_v27  ;;  %2989 = vmatpush.msra.mxu2 %v764_v52  ;;  %v1388_v31 = vld [vmem:[%s6170_s20 + $0x1fe8] sm:$0xff]  ;;  %v813_v15 = vld [vmem:[%s6170_s20 + $0xdf0] sm:$0xff] }
 0x270   : > { %3008 = vmatpush.msra.mxu3 %v1036_v53  ;;  %2950 = vmatpush.msra.mxu0 %v1515_v54  ;;  %v380_v21 = vld [vmem:[%s6170_s20 + $0x68] sm:$0xff]  ;;  %v525_v53 = vld [vmem:[%s6170_s20 + $0x4f0] sm:$0xff] }
 0x271   : > { %2969 = vmatpush.msra.mxu1 %v508_v55  ;;  %2990 = vmatpush.msra.mxu2 %v748_v56  ;;  %v892_v2 = vld [vmem:[%s6170_s20 + $0x1068] sm:$0xff]  ;;  %v797_v54 = vld [vmem:[%s6170_s20 + $0xd70] sm:$0xff] }
 0x272   : > { %3009 = vmatpush.msra.mxu3 %v1020_v57  ;;  %2951 = vmatpush.msra.mxu0 %v1499_v58  ;;  %v1372_v35 = vld [vmem:[%s6170_s20 + $0x1f68] sm:$0xff]  ;;  %v509_v57 = vld [vmem:[%s6170_s20 + $0x470] sm:$0xff] }
 0x273   : > { %2970 = vmatpush.msra.mxu1 %v492_v59  ;;  %2991 = vmatpush.msra.mxu2 %v732_v60  ;;  %v1644_v8 = vld [vmem:[%s6170_s20 + $0x27e8] sm:$0xff]  ;;  %v781_v58 = vld [vmem:[%s6170_s20 + $0xcf0] sm:$0xff] }
 0x274   : > { %3010 = vmatpush.msra.mxu3 %v1004_v25  ;;  %2952 = vmatpush.msra.mxu0 %v1483_v62  ;;  %v7428_v38 = vld.sshfl [vmem:[#allocation1 + $0x8] sm:$0xff pattern:$0x73625140]  ;;  %v493_v25 = vld [vmem:[%s6170_s20 + $0x3f0] sm:$0xff] }
 0x275   : > { %2971 = vmatpush.msra.mxu1 %v476_v63  ;;  %2992 = vmatpush.msra.mxu2 %v716_v61  ;;  %v1356_v34 = vld [vmem:[%s6170_s20 + $0x1ee8] sm:$0xff]  ;;  %v765_v62 = vld [vmem:[%s6170_s20 + $0xc70] sm:$0xff] }
 0x276   : > { %3011 = vmatpush.msra.mxu3 %v988_v0  ;;  %2953 = vmatpush.msra.mxu0 %v1467_v4  ;;  %v1628_v39 = vld [vmem:[%s6170_s20 + $0x2768] sm:$0xff]  ;;  %v477_v0 = vld [vmem:[%s6170_s20 + $0x370] sm:$0xff] }
 0x277   : > { %2972 = vmatpush.msra.mxu1 %v460_v5  ;;  %2993 = vmatpush.msra.mxu2 %v700_v6  ;;  %v1340_v42 = vld [vmem:[%s6170_s20 + $0x1e68] sm:$0xff]  ;;  %v749_v4 = vld [vmem:[%s6170_s20 + $0xbf0] sm:$0xff] }
 0x278   : > { %3012 = vmatpush.msra.mxu3 %v972_v7  ;;  %2954 = vmatpush.msra.mxu0 %v1451_v1  ;;  %v1612_v43 = vld [vmem:[%s6170_s20 + $0x26e8] sm:$0xff]  ;;  %v461_v7 = vld [vmem:[%s6170_s20 + $0x2f0] sm:$0xff] }
 0x279   : > { %2973 = vmatpush.msra.mxu1 %v444_v9  ;;  %2994 = vmatpush.msra.mxu2 %v684_v10  ;;  %v1596_v45 = vld [vmem:[%s6170_s20 + $0x2668] sm:$0xff]  ;;  %v733_v1 = vld [vmem:[%s6170_s20 + $0xb70] sm:$0xff] }
 0x27a   : > { %3013 = vmatpush.msra.mxu3 %v956_v11  ;;  %2955 = vmatpush.msra.mxu0 %v1435_v12  ;;  %v1324_v47 = vld [vmem:[%s6170_s20 + $0x1de8] sm:$0xff]  ;;  %v445_v11 = vld [vmem:[%s6170_s20 + $0x270] sm:$0xff] }
 0x27b   : > { %2974 = vmatpush.msra.mxu1 %v428_v32  ;;  %2995 = vmatpush.msra.mxu2 %v668_v14  ;;  %v1580_v20 = vld [vmem:[%s6170_s20 + $0x25e8] sm:$0xff]  ;;  %v717_v12 = vld [vmem:[%s6170_s20 + $0xaf0] sm:$0xff] }
 0x27c   : > { %3014 = vmatpush.msra.mxu3 %v940_v36  ;;  %2956 = vmatpush.msra.mxu0 %v1419_v16  ;;  %v1308_v50 = vld [vmem:[%s6170_s20 + $0x1d68] sm:$0xff]  ;;  %v429_v36 = vld [vmem:[%s6170_s20 + $0x1f0] sm:$0xff] }
 0x27d   : > { %2975 = vmatpush.msra.mxu1 %v412_v17  ;;  %2996 = vmatpush.msra.mxu2 %v652_v18  ;;  %v1564_v27 = vld [vmem:[%s6170_s20 + $0x2568] sm:$0xff]  ;;  %v701_v16 = vld [vmem:[%s6170_s20 + $0xa70] sm:$0xff]  ;;  %v7479_v17 = vpop.f32.mrf.mxu0 }
 0x27e   : > { %3015 = vmatpush.msra.mxu3 %v924_v19  ;;  %2918 = vmatmul.f32.vlgmr.msrb.gmra.mxu2 %v7411_v29  ;;  %v1292_v52 = vld [vmem:[%s6170_s20 + $0x1ce8] sm:$0xff] }
 0x27f   : > { %2957 = vmatpush.msra.mxu0 %v1403_v22  ;;  %2976 = vmatpush.msra.mxu1 %v396_v23  ;;  %v1548_v55 = vld [vmem:[%s6170_s20 + $0x24e8] sm:$0xff]  ;;  %v413_v22 = vld [vmem:[%s6170_s20 + $0x170] sm:$0xff] }
 0x280   : > { %2997 = vmatpush.msra.mxu2 %v636_v3  ;;  %3016 = vmatpush.msra.mxu3 %v908_v28  ;;  %v1276_v56 = vld [vmem:[%s6170_s20 + $0x1c68] sm:$0xff]  ;;  %v685_v23 = vld [vmem:[%s6170_s20 + $0x9f0] sm:$0xff] }
 0x281   : > { %2878 = vmatmul.f32.vlgmr.msrb.gmra.mxu0 %v7417_v33  ;;  %2938 = vmatmul.f32.vlgmr.msrb.gmra.mxu3 %v7421_v30  ;;  %v1532_v59 = vld [vmem:[%s6170_s20 + $0x2468] sm:$0xff] }
 0x282   : > { %3022 = vmatpush.msrb.mxu0 %v1388_v31  ;;  %3062 = vmatpush.msrb.mxu2 %v621_v26  ;;  %v1260_v60 = vld [vmem:[%s6170_s20 + $0x1be8] sm:$0xff]  ;;  %v7489_v31 = vpop.f32.mrf.mxu1  ;;  %v397_v26 = vld [vmem:[%s6170_s20 + $0xf0] sm:$0xff] }
 0x283   : > { %2977 = vmatpush.msra.mxu1 %v380_v21  ;;  %3017 = vmatpush.msra.mxu3 %v892_v2  ;;  %v1516_v63 = vld [vmem:[%s6170_s20 + $0x23e8] sm:$0xff]  ;;  %v669_v21 = vld [vmem:[%s6170_s20 + $0x970] sm:$0xff]  ;;  %v7493_v2 = vpop.f32.mrf.mxu2 }
 0x284   : > { %2898 = vmatmul.f32.vlgmr.msrb.gmra.mxu1 %v7428_v38  ;;  %3023 = vmatpush.msrb.mxu0 %v1372_v35  ;;  %v1244_v61 = vld [vmem:[%s6170_s20 + $0x1b68] sm:$0xff] }
 0x285   : > { %3042 = vmatpush.msrb.mxu1 %v1644_v8  ;;  %3063 = vmatpush.msrb.mxu2 %v605_v41  ;;  %v1500_v5 = vld [vmem:[%s6170_s20 + $0x2368] sm:$0xff]  ;;  %v381_v41 = vld [vmem:[%s6170_s20 + $0x70] sm:$0xff] }
 0x286   : > { %3082 = vmatpush.msrb.mxu3 %v877_v37  ;;  %3024 = vmatpush.msrb.mxu0 %v1356_v34  ;;  %v1228_v6 = vld [vmem:[%s6170_s20 + $0x1ae8] sm:$0xff]  ;;  %v653_v37 = vld [vmem:[%s6170_s20 + $0x8f0] sm:$0xff] }
 0x287   : > { %3043 = vmatpush.msrb.mxu1 %v1628_v39  ;;  %3064 = vmatpush.msrb.mxu2 %v589_v46  ;;  %v1212_v9 = vld [vmem:[%s6170_s20 + $0x1a68] sm:$0xff]  ;;  %v1645_v34 = vld [vmem:[%s6170_s20 + $0x27f0] sm:$0xff] }
 0x288   : > { %3083 = vmatpush.msrb.mxu3 %v861_v40  ;;  %3025 = vmatpush.msrb.mxu0 %v1340_v42  ;;  %v1484_v10 = vld [vmem:[%s6170_s20 + $0x22e8] sm:$0xff]  ;;  %v1133_v39 = vld [vmem:[%s6170_s20 + $0x17f0] sm:$0xff]  ;;  %v7502_v40 = vpop.f32.mrf.mxu3 }
 0x289   : > { %3044 = vmatpush.msrb.mxu1 %v1612_v43  ;;  %3065 = vmatpush.msrb.mxu2 %v573_v44  ;;  %v1196_v32 = vld [vmem:[%s6170_s20 + $0x19e8] sm:$0xff]  ;;  %v637_v42 = vld [vmem:[%s6170_s20 + $0x870] sm:$0xff] }
 0x28a   : > { %3084 = vmatpush.msrb.mxu3 %v845_v24  ;;  %2958 = vmatmul.f32.vlgmr.msra.gmra.mxu0 %v7444_v49  ;;  %v1468_v14 = vld [vmem:[%s6170_s20 + $0x2268] sm:$0xff]  ;;  %v1117_v43 = vld [vmem:[%s6170_s20 + $0x1770] sm:$0xff]  ;;  %v7508_v24 = vpop.f32.mrf.mxu0 }
 0x28b   : > { %3045 = vmatpush.msrb.mxu1 %v1596_v45  ;;  %3026 = vmatpush.msrb.mxu0 %v1324_v47  ;;  %v1180_v18 = vld [vmem:[%s6170_s20 + $0x1968] sm:$0xff]  ;;  %v1389_v44 = vld [vmem:[%s6170_s20 + $0x1ff0] sm:$0xff]  ;;  %v622_v47 = vld [vmem:[%s6170_s20 + $0x7f8] sm:$0xff] }
 0x28c   : > { %3066 = vmatpush.msrb.mxu2 %v557_v48  ;;  %3085 = vmatpush.msrb.mxu3 %v829_v13  ;;  %v1452_v19 = vld [vmem:[%s6170_s20 + $0x21e8] sm:$0xff]  ;;  %v1629_v45 = vld [vmem:[%s6170_s20 + $0x2770] sm:$0xff]  ;;  %v7512_v48 = vpop.f32.mrf.mxu1 }
 0x28d   : > { %3046 = vmatpush.msrb.mxu1 %v1580_v20  ;;  %3027 = vmatpush.msrb.mxu0 %v1308_v50  ;;  %v1164_v3 = vld [vmem:[%s6170_s20 + $0x18e8] sm:$0xff]  ;;  %v1101_v13 = vld [vmem:[%s6170_s20 + $0x16f0] sm:$0xff]  ;;  %v2599_v50 = vpop.f32.mrf.mxu2 }
 0x28e   : > { %3067 = vmatpush.msrb.mxu2 %v541_v51  ;;  %3086 = vmatpush.msrb.mxu3 %v813_v15  ;;  %v1436_v28 = vld [vmem:[%s6170_s20 + $0x2168] sm:$0xff]  ;;  %v1373_v20 = vld [vmem:[%s6170_s20 + $0x1f70] sm:$0xff]  ;;  %v606_v15 = vld [vmem:[%s6170_s20 + $0x778] sm:$0xff] }
 0x28f   : > { %3047 = vmatpush.msrb.mxu1 %v1564_v27  ;;  %3028 = vmatpush.msrb.mxu0 %v1292_v52  ;;  %v1148_v35 = vld [vmem:[%s6170_s20 + $0x1868] sm:$0xff]  ;;  %v1613_v51 = vld [vmem:[%s6170_s20 + $0x26f0] sm:$0xff] }
 0x290   : > { %3068 = vmatpush.msrb.mxu2 %v525_v53  ;;  %3087 = vmatpush.msrb.mxu3 %v797_v54  ;;  %v1420_v8 = vld [vmem:[%s6170_s20 + $0x20e8] sm:$0xff]  ;;  %v1085_v27 = vld [vmem:[%s6170_s20 + $0x1670] sm:$0xff]  ;;  %v590_v54 = vld [vmem:[%s6170_s20 + $0x6f8] sm:$0xff] }
 0x291   : > { %3048 = vmatpush.msrb.mxu1 %v1548_v55  ;;  %3029 = vmatpush.msrb.mxu0 %v1276_v56  ;;  %v1404_v46 = vld [vmem:[%s6170_s20 + $0x2068] sm:$0xff]  ;;  %v1357_v52 = vld [vmem:[%s6170_s20 + $0x1ef0] sm:$0xff] }
 0x292   : > { %3069 = vmatpush.msrb.mxu2 %v509_v57  ;;  %3088 = vmatpush.msrb.mxu3 %v781_v58  ;;  %v1597_v53 = vld [vmem:[%s6170_s20 + $0x2670] sm:$0xff]  ;;  %v7525_v57 = vpop.f32.mrf.mxu3 }
 0x293   : > { %3049 = vmatpush.msrb.mxu1 %v1532_v59  ;;  %3030 = vmatpush.msrb.mxu0 %v1260_v60  ;;  %v1069_v55 = vld [vmem:[%s6170_s20 + $0x15f0] sm:$0xff]  ;;  %v574_v59 = vld [vmem:[%s6170_s20 + $0x678] sm:$0xff] }
 0x294   : > { %3070 = vmatpush.msrb.mxu2 %v493_v25  ;;  %3089 = vmatpush.msrb.mxu3 %v765_v62  ;;  %v1341_v56 = vld [vmem:[%s6170_s20 + $0x1e70] sm:$0xff]  ;;  %v7531_v62 = vpop.f32.mrf.mxu0 }
 0x295   : > { %3050 = vmatpush.msrb.mxu1 %v1516_v63  ;;  %3031 = vmatpush.msrb.mxu0 %v1244_v61  ;;  %v1581_v58 = vld [vmem:[%s6170_s20 + $0x25f0] sm:$0xff]  ;;  %v558_v61 = vld [vmem:[%s6170_s20 + $0x5f8] sm:$0xff] }
 0x296   : > { %3071 = vmatpush.msrb.mxu2 %v477_v0  ;;  %3090 = vmatpush.msrb.mxu3 %v749_v4  ;;  %v1053_v60 = vld [vmem:[%s6170_s20 + $0x1570] sm:$0xff] }
 0x297   : > { %3051 = vmatpush.msrb.mxu1 %v1500_v5  ;;  %3032 = vmatpush.msrb.mxu0 %v1228_v6  ;;  %v1325_v25 = vld [vmem:[%s6170_s20 + $0x1df0] sm:$0xff]  ;;  %v2679_v5 = vpop.f32.mrf.mxu2 }
 0x298   : > { %3072 = vmatpush.msrb.mxu2 %v461_v7  ;;  %3091 = vmatpush.msrb.mxu3 %v733_v1  ;;  %v1565_v63 = vld [vmem:[%s6170_s20 + $0x2570] sm:$0xff]  ;;  %v542_v7 = vld [vmem:[%s6170_s20 + $0x578] sm:$0xff]  ;;  %v7539_v1 = vpop.f32.mrf.mxu1 }
 0x299   : > { %2998 = vmatmul.f32.vlgmr.msra.gmra.mxu2 %v7428_v38  ;;  %3033 = vmatpush.msrb.mxu0 %v1212_v9  ;;  %v1037_v0 = vld [vmem:[%s6170_s20 + $0x14f0] sm:$0xff] }
 0x29a   : > { %3052 = vmatpush.msrb.mxu1 %v1484_v10  ;;  %3073 = vmatpush.msrb.mxu2 %v445_v11  ;;  %v1309_v4 = vld [vmem:[%s6170_s20 + $0x1d70] sm:$0xff] }
 0x29b   : > { %3092 = vmatpush.msrb.mxu3 %v717_v12  ;;  %3034 = vmatpush.msrb.mxu0 %v1196_v32  ;;  %v1549_v6 = vld [vmem:[%s6170_s20 + $0x24f0] sm:$0xff]  ;;  %v526_v12 = vld [vmem:[%s6170_s20 + $0x4f8] sm:$0xff] }
 0x29c   : > { %3018 = vmatmul.f32.vlgmr.msra.gmra.mxu3 %v7411_v29  ;;  %3053 = vmatpush.msrb.mxu1 %v1468_v14  ;;  %v1021_v9 = vld [vmem:[%s6170_s20 + $0x1470] sm:$0xff] }
 0x29d   : > { %3074 = vmatpush.msrb.mxu2 %v429_v36  ;;  %3093 = vmatpush.msrb.mxu3 %v701_v16  ;;  %v1293_v10 = vld [vmem:[%s6170_s20 + $0x1cf0] sm:$0xff]  ;;  %v2699_v36 = vpop.f32.mrf.mxu3 }
 0x29e   : > { %2978 = vmatmul.f32.vlgmr.msra.gmra.mxu1 %v7417_v33  ;;  %3035 = vmatpush.msrb.mxu0 %v1180_v18  ;;  %v1533_v11 = vld [vmem:[%s6170_s20 + $0x2470] sm:$0xff]  ;;  %v510_v18 = vld [vmem:[%s6170_s20 + $0x478] sm:$0xff] }
 0x29f   : > { %3054 = vmatpush.msrb.mxu1 %v1452_v19  ;;  %3075 = vmatpush.msrb.mxu2 %v413_v22  ;;  %v1005_v32 = vld [vmem:[%s6170_s20 + $0x13f0] sm:$0xff] }
 0x2a0   : > { %3094 = vmatpush.msrb.mxu3 %v685_v23  ;;  %3036 = vmatpush.msrb.mxu0 %v1164_v3  ;;  %v1277_v14 = vld [vmem:[%s6170_s20 + $0x1c70] sm:$0xff]  ;;  %v2600_v23 = vadd.f32 %v2599_v50, %v7512_v48  ;;  %v2719_v3 = vpop.f32.mrf.mxu0 }
 0x2a1   : > { %3055 = vmatpush.msrb.mxu1 %v1436_v28  ;;  %3076 = vmatpush.msrb.mxu2 %v397_v26  ;;  %v1517_v16 = vld [vmem:[%s6170_s20 + $0x23f0] sm:$0xff]  ;;  %v494_v26 = vld [vmem:[%s6170_s20 + $0x3f8] sm:$0xff] }
 0x2a2   : > { %3095 = vmatpush.msrb.mxu3 %v669_v21  ;;  %3037 = vmatpush.msrb.mxu0 %v1148_v35  ;;  %v989_v19 = vld [vmem:[%s6170_s20 + $0x1370] sm:$0xff] }
 0x2a3   : > { %3056 = vmatpush.msrb.mxu1 %v1420_v8  ;;  %3077 = vmatpush.msrb.mxu2 %v381_v41  ;;  %v1261_v22 = vld [vmem:[%s6170_s20 + $0x1bf0] sm:$0xff]  ;;  %v2700_v8 = vadd.f32 %v2699_v36, %v2679_v5 }
 0x2a4   : > { %3096 = vmatpush.msrb.mxu3 %v653_v37  ;;  %3038 = vmatmul.f32.vlgmr.msrb.gmra.mxu0 %v7421_v30  ;;  %v1501_v28 = vld [vmem:[%s6170_s20 + $0x2370] sm:$0xff]  ;;  %v478_v37 = vld [vmem:[%s6170_s20 + $0x378] sm:$0xff] }
 0x2a5   : > { %3142 = vmatpush.msra.mxu2 %v1645_v34  ;;  %3102 = vmatpush.msra.mxu0 %v1133_v39  ;;  %v973_v21 = vld [vmem:[%s6170_s20 + $0x12f0] sm:$0xff]  ;;  %v2739_v34 = vpop.f32.mrf.mxu1 }
 0x2a6   : > { %3057 = vmatpush.msrb.mxu1 %v1404_v46  ;;  %3097 = vmatpush.msrb.mxu3 %v637_v42  ;;  %v1245_v35 = vld [vmem:[%s6170_s20 + $0x1b70] sm:$0xff]  ;;  %v2620_v42 = vadd.f32 %v7525_v57, %v2600_v23 }
 0x2a7   : > { %3058 = vmatmul.f32.vlgmr.msrb.gmra.mxu1 %v7444_v49  ;;  %3103 = vmatpush.msra.mxu0 %v1117_v43  ;;  %v1485_v41 = vld [vmem:[%s6170_s20 + $0x22f0] sm:$0xff]  ;;  %v2759_v43 = vpop.f32.mrf.mxu2 }
 0x2a8   : > { %3122 = vmatpush.msra.mxu1 %v1389_v44  ;;  %3143 = vmatpush.msra.mxu2 %v1629_v45  ;;  %v957_v39 = vld [vmem:[%s6170_s20 + $0x1270] sm:$0xff]  ;;  %v462_v45 = vld [vmem:[%s6170_s20 + $0x2f8] sm:$0xff] }
 0x2a9   : > { %3162 = vmatpush.msra.mxu3 %v622_v47  ;;  %3104 = vmatpush.msra.mxu0 %v1101_v13  ;;  %v1229_v46 = vld [vmem:[%s6170_s20 + $0x1af0] sm:$0xff]  ;;  %v2500_v13 = vadd.f32 %v7489_v31, %v7479_v17  ;;  %v430_v17 = vld [vmem:[%s6170_s20 + $0x1f8] sm:$0xff] }
 0x2aa   : > { %3123 = vmatpush.msra.mxu1 %v1373_v20  ;;  %3144 = vmatpush.msra.mxu2 %v1613_v51  ;;  %v1469_v44 = vld [vmem:[%s6170_s20 + $0x2270] sm:$0xff]  ;;  %v2720_v20 = vadd.f32 %v2719_v3, %v2700_v8  ;;  %v446_v51 = vld [vmem:[%s6170_s20 + $0x278] sm:$0xff] }
 0x2ab   : > { %3163 = vmatpush.msra.mxu3 %v606_v15  ;;  %3105 = vmatpush.msra.mxu0 %v1085_v27  ;;  %v941_v47 = vld [vmem:[%s6170_s20 + $0x11f0] sm:$0xff]  ;;  %v1630_v8 = vld [vmem:[%s6170_s20 + $0x2778] sm:$0xff] }
 0x2ac   : > { %3124 = vmatpush.msra.mxu1 %v1357_v52  ;;  %3145 = vmatpush.msra.mxu2 %v1597_v53  ;;  %v1213_v48 = vld [vmem:[%s6170_s20 + $0x1a70] sm:$0xff]  ;;  %v2640_v53 = vadd.f32 %v7531_v62, %v2620_v42 }
 0x2ad   : > { %3164 = vmatpush.msra.mxu3 %v590_v54  ;;  %3106 = vmatpush.msra.mxu0 %v1069_v55  ;;  %v1453_v50 = vld [vmem:[%s6170_s20 + $0x21f0] sm:$0xff] }
 0x2ae   : > { %3125 = vmatpush.msra.mxu1 %v1341_v56  ;;  %3146 = vmatpush.msra.mxu2 %v1581_v58  ;;  %v925_v27 = vld [vmem:[%s6170_s20 + $0x1170] sm:$0xff]  ;;  %v2520_v58 = vadd.f32 %v7493_v2, %v2500_v13  ;;  %v1598_v13 = vld [vmem:[%s6170_s20 + $0x2678] sm:$0xff] }
 0x2af   : > { %3165 = vmatpush.msra.mxu3 %v574_v59  ;;  %3107 = vmatpush.msra.mxu0 %v1053_v60  ;;  %v1197_v52 = vld [vmem:[%s6170_s20 + $0x19f0] sm:$0xff]  ;;  %v2740_v59 = vadd.f32 %v2739_v34, %v2720_v20  ;;  %v798_v20 = vld [vmem:[%s6170_s20 + $0xd78] sm:$0xff] }
 0x2b0   : > { %3126 = vmatpush.msra.mxu1 %v1325_v25  ;;  %3147 = vmatpush.msra.mxu2 %v1565_v63  ;;  %v1437_v54 = vld [vmem:[%s6170_s20 + $0x2170] sm:$0xff]  ;;  %v414_v25 = vld [vmem:[%s6170_s20 + $0x178] sm:$0xff] }
 0x2b1   : > { %3166 = vmatpush.msra.mxu3 %v558_v61  ;;  %3108 = vmatpush.msra.mxu0 %v1037_v0  ;;  %v909_v55 = vld [vmem:[%s6170_s20 + $0x10f0] sm:$0xff]  ;;  %v2660_v61 = vadd.f32 %v7539_v1, %v2640_v53  ;;  %v1390_v1 = vld [vmem:[%s6170_s20 + $0x1ff8] sm:$0xff] }
 0x2b2   : > { %3127 = vmatpush.msra.mxu1 %v1309_v4  ;;  %3148 = vmatpush.msra.mxu2 %v1549_v6  ;;  %v1181_v56 = vld [vmem:[%s6170_s20 + $0x1970] sm:$0xff]  ;;  %v398_v6 = vld [vmem:[%s6170_s20 + $0xf8] sm:$0xff] }
 0x2b3   : > { %3167 = vmatpush.msra.mxu3 %v542_v7  ;;  %3109 = vmatpush.msra.mxu0 %v1021_v9  ;;  %v1421_v60 = vld [vmem:[%s6170_s20 + $0x20f0] sm:$0xff]  ;;  %v878_v7 = vld [vmem:[%s6170_s20 + $0xff8] sm:$0xff]  ;;  %v2540_v9 = vadd.f32 %v7502_v40, %v2520_v58  ;;  %v3284_v36 = vrot.slane %v2660_v61, 6 }
 0x2b4   : > { %3128 = vmatpush.msra.mxu1 %v1293_v10  ;;  %3149 = vmatpush.msra.mxu2 %v1533_v11  ;;  %v893_v62 = vld [vmem:[%s6170_s20 + $0x1070] sm:$0xff]  ;;  %v2760_v10 = vadd.f32 %v2759_v43, %v2740_v59  ;;  %v1134_v40 = vld [vmem:[%s6170_s20 + $0x17f8] sm:$0xff] }
 0x2b5   : > { %3168 = vmatpush.msra.mxu3 %v526_v12  ;;  %3110 = vmatpush.msra.mxu0 %v1005_v32  ;;  %v2779_v15 = vpop.f32.mrf.mxu3  ;;  %v1165_v0 = vld [vmem:[%s6170_s20 + $0x18f0] sm:$0xff]  ;;  %v382_v32 = vld [vmem:[%s6170_s20 + $0x78] sm:$0xff]  ;;  %v2560_v23 = vadd.f32 %v7508_v24, %v2540_v9 }
 0x2b6   : > { %3129 = vmatpush.msra.mxu1 %v1277_v14  ;;  %3150 = vmatpush.msra.mxu2 %v1517_v16  ;;  %v1405_v4 = vld [vmem:[%s6170_s20 + $0x2070] sm:$0xff]  ;;  %v862_v16 = vld [vmem:[%s6170_s20 + $0xf78] sm:$0xff]  ;;  %v3285_v3 = vrot.slane %v2760_v10, 4 }
 0x2b7   : > { %3169 = vmatpush.msra.mxu3 %v510_v18  ;;  %3111 = vmatpush.msra.mxu0 %v989_v19  ;;  %v1149_v12 = vld [vmem:[%s6170_s20 + $0x1870] sm:$0xff]  ;;  %v1374_v19 = vld [vmem:[%s6170_s20 + $0x1f78] sm:$0xff] }
 0x2b8   : > { %3130 = vmatpush.msra.mxu1 %v1261_v22  ;;  %3151 = vmatpush.msra.mxu2 %v1501_v28  ;;  %v1646_v22 = vld [vmem:[%s6170_s20 + $0x27f8] sm:$0xff] }
 0x2b9   : > { %3170 = vmatpush.msra.mxu3 %v494_v26  ;;  %3112 = vmatpush.msra.mxu0 %v973_v21  ;;  %v846_v28 = vld [vmem:[%s6170_s20 + $0xef8] sm:$0xff] }
 0x2ba   : > { %3131 = vmatpush.msra.mxu1 %v1245_v35  ;;  %3152 = vmatpush.msra.mxu2 %v1485_v41  ;;  %v2799_v31 = vpop.f32.mrf.mxu0  ;;  %v1118_v26 = vld [vmem:[%s6170_s20 + $0x1778] sm:$0xff] }
 0x2bb   : > { %3171 = vmatpush.msra.mxu3 %v478_v37  ;;  %3113 = vmatpush.msra.mxu0 %v957_v39  ;;  %v2800_v57 = vadd.f32 %v2799_v31, %v2779_v15  ;;  %v1358_v35 = vld [vmem:[%s6170_s20 + $0x1ef8] sm:$0xff]  ;;  %v3299_v37 = vsel %vm3290_vm7, %v2560_v23, %v3284_v36 }
 0x2bc   : > { %3132 = vmatpush.msra.mxu1 %v1229_v46  ;;  %3153 = vmatpush.msra.mxu2 %v1469_v44  ;;  %v363_v41 = vld [vmem:[#allocation2 + $0x10] sm:$0xff] }
 0x2bd   : > { %3172 = vmatpush.msra.mxu3 %v462_v45  ;;  %3114 = vmatpush.msra.mxu0 %v941_v47  ;;  %v830_v24 = vld [vmem:[%s6170_s20 + $0xe78] sm:$0xff] }
 0x2be   : > { %3133 = vmatpush.msra.mxu1 %v1213_v48  ;;  %3154 = vmatpush.msra.mxu2 %v1453_v50  ;;  %v1102_v39 = vld [vmem:[%s6170_s20 + $0x16f8] sm:$0xff] }
 0x2bf   : > { %3173 = vmatpush.msra.mxu3 %v446_v51  ;;  %3115 = vmatpush.msra.mxu0 %v925_v27  ;;  %v1342_v46 = vld [vmem:[%s6170_s20 + $0x1e78] sm:$0xff] }
 0x2c0   : > { %3134 = vmatpush.msra.mxu1 %v1197_v52  ;;  %3155 = vmatpush.msra.mxu2 %v1437_v54  ;;  %v1614_v43 = vld [vmem:[%s6170_s20 + $0x26f8] sm:$0xff] }
 0x2c1   : > { %3174 = vmatpush.msra.mxu3 %v430_v17  ;;  %v2819_v63 = vpop.f32.mrf.mxu1  ;;  %3116 = vmatpush.msra.mxu0 %v909_v55  ;;  %v814_v45 = vld [vmem:[%s6170_s20 + $0xdf8] sm:$0xff] }
 0x2c2   : > { %3135 = vmatpush.msra.mxu1 %v1181_v56  ;;  %v2820_v2 = vadd.f32 %v2819_v63, %v2800_v57  ;;  %v2839_v5 = vpop.f32.mrf.mxu2  ;;  %3156 = vmatpush.msra.mxu2 %v1421_v60  ;;  %v1086_v47 = vld [vmem:[%s6170_s20 + $0x1678] sm:$0xff] }
 0x2c3   : > { %3175 = vmatpush.msra.mxu3 %v414_v25  ;;  %3078 = vmatmul.f32.vlgmr.msrb.gmra.mxu2 %v7417_v33  ;;  %v1326_v48 = vld [vmem:[%s6170_s20 + $0x1df8] sm:$0xff] }
 0x2c4   : > { %3117 = vmatpush.msra.mxu0 %v893_v62  ;;  %v2840_v11 = vadd.f32 %v2839_v5, %v2820_v2  ;;  %3136 = vmatpush.msra.mxu1 %v1165_v0  ;;  %v1070_v50 = vld [vmem:[%s6170_s20 + $0x15f8] sm:$0xff] }
 0x2c5   : > { %3157 = vmatpush.msra.mxu2 %v1405_v4  ;;  %v2859_v14 = vpop.f32.mrf.mxu3  ;;  %3176 = vmatpush.msra.mxu3 %v398_v6  ;;  %v1310_v51 = vld [vmem:[%s6170_s20 + $0x1d78] sm:$0xff] }
 0x2c6   : > { %3182 = vmatpush.msrb.mxu0 %v878_v7  ;;  %v2860_v18 = vadd.f32 %v2859_v14, %v2840_v11  ;;  %3098 = vmatmul.f32.vlgmr.msrb.gmra.mxu3 %v7428_v38  ;;  %v1582_v15 = vld [vmem:[%s6170_s20 + $0x25f8] sm:$0xff] }
 0x2c7   : > { %3222 = vmatpush.msrb.mxu2 %v1390_v1  ;;  %3137 = vmatpush.msra.mxu1 %v1149_v12  ;;  %v782_v27 = vld [vmem:[%s6170_s20 + $0xcf8] sm:$0xff] }
 0x2c8   : > { %3177 = vmatpush.msra.mxu3 %v382_v32  ;;  %v3286_v21 = vrot.slane %v2860_v18, 2  ;;  %3183 = vmatpush.msrb.mxu0 %v862_v16  ;;  %v1054_v52 = vld [vmem:[%s6170_s20 + $0x1578] sm:$0xff] }
 0x2c9   : > { %3202 = vmatpush.msrb.mxu1 %v1134_v40  ;;  %3223 = vmatpush.msrb.mxu2 %v1374_v19  ;;  %v1294_v53 = vld [vmem:[%s6170_s20 + $0x1cf8] sm:$0xff] }
 0x2ca   : > { %3242 = vmatpush.msrb.mxu3 %v1646_v22  ;;  %v3300_v34 = vsel %vm3292_vm8, %v3285_v3, %v3286_v21  ;;  %3184 = vmatpush.msrb.mxu0 %v846_v28  ;;  %v1566_v54 = vld [vmem:[%s6170_s20 + $0x2578] sm:$0xff] }
 0x2cb   : > { %3203 = vmatpush.msrb.mxu1 %v1118_v26  ;;  %v3301_v42 = vsel %vm3294_vm9, %v3299_v37, %v3300_v34  ;;  %3224 = vmatpush.msrb.mxu2 %v1358_v35  ;;  %v766_v17 = vld [vmem:[%s6170_s20 + $0xc78] sm:$0xff] }
 0x2cc   : > { %3243 = vmatpush.msrb.mxu3 %v1630_v8  ;;  %v3311_v44 = vadd.f32 %v3301_v42, %v363_v41  ;;  %3158 = vmatmul.f32.vlgmr.msra.gmra.mxu2 %v7444_v49  ;;  %v1038_v31 = vld [vmem:[%s6170_s20 + $0x14f8] sm:$0xff] }
 0x2cd   : > { %3185 = vmatpush.msrb.mxu0 %v830_v24  ;;  %3204 = vmatpush.msrb.mxu1 %v1102_v39  ;;  %v1278_v55 = vld [vmem:[%s6170_s20 + $0x1c78] sm:$0xff] }
 0x2ce   : > { %3225 = vmatpush.msrb.mxu2 %v1342_v46  ;;  %3315 = vst [vmem:[#allocation2 + $0x10] sm:$0xff] %v3311_v44  ;;  %3244 = vmatpush.msrb.mxu3 %v1614_v43  ;;  %v1550_v56 = vld [vmem:[%s6170_s20 + $0x24f8] sm:$0xff] }
 0x2cf   : > { %3118 = vmatmul.f32.vlgmr.msra.gmra.mxu0 %v7411_v29  ;;  %3205 = vmatpush.msrb.mxu1 %v1086_v47  ;;  %v750_v57 = vld [vmem:[%s6170_s20 + $0xbf8] sm:$0xff] }
 0x2d0   : > { %3186 = vmatpush.msrb.mxu0 %v814_v45  ;;  %3226 = vmatpush.msrb.mxu2 %v1326_v48  ;;  %v1022_v58 = vld [vmem:[%s6170_s20 + $0x1478] sm:$0xff] }
 0x2d1   : > { %3245 = vmatpush.msrb.mxu3 %v1598_v13  ;;  %3138 = vmatmul.f32.vlgmr.msra.gmra.mxu1 %v7421_v30  ;;  %v1262_v59 = vld [vmem:[%s6170_s20 + $0x1bf8] sm:$0xff] }
 0x2d2   : > { %3187 = vmatpush.msrb.mxu0 %v798_v20  ;;  %3206 = vmatpush.msrb.mxu1 %v1070_v50  ;;  %v1534_v60 = vld [vmem:[%s6170_s20 + $0x2478] sm:$0xff] }
 0x2d3   : > { %3227 = vmatpush.msrb.mxu2 %v1310_v51  ;;  %3246 = vmatpush.msrb.mxu3 %v1582_v15  ;;  %v734_v25 = vld [vmem:[%s6170_s20 + $0xb78] sm:$0xff] }
 0x2d4   : > { %3188 = vmatpush.msrb.mxu0 %v782_v27  ;;  %3207 = vmatpush.msrb.mxu1 %v1054_v52  ;;  %v1006_v62 = vld [vmem:[%s6170_s20 + $0x13f8] sm:$0xff] }
 0x2d5   : > { %3228 = vmatpush.msrb.mxu2 %v1294_v53  ;;  %3247 = vmatpush.msrb.mxu3 %v1566_v54  ;;  %v1246_v63 = vld [vmem:[%s6170_s20 + $0x1b78] sm:$0xff] }
 0x2d6   : > { %3189 = vmatpush.msrb.mxu0 %v766_v17  ;;  %3208 = vmatpush.msrb.mxu1 %v1038_v31  ;;  %v1518_v61 = vld [vmem:[%s6170_s20 + $0x23f8] sm:$0xff] }
 0x2d7   : > { %3229 = vmatpush.msrb.mxu2 %v1278_v55  ;;  %3248 = vmatpush.msrb.mxu3 %v1550_v56  ;;  %v718_v0 = vld [vmem:[%s6170_s20 + $0xaf8] sm:$0xff] }
 0x2d8   : > { %3190 = vmatpush.msrb.mxu0 %v750_v57  ;;  %3209 = vmatpush.msrb.mxu1 %v1022_v58  ;;  %v990_v4 = vld [vmem:[%s6170_s20 + $0x1378] sm:$0xff] }
 0x2d9   : > { %3230 = vmatpush.msrb.mxu2 %v1262_v59  ;;  %3249 = vmatpush.msrb.mxu3 %v1534_v60  ;;  %v1230_v2 = vld [vmem:[%s6170_s20 + $0x1af8] sm:$0xff] }
 0x2da   : > { %3191 = vmatpush.msrb.mxu0 %v734_v25  ;;  %3210 = vmatpush.msrb.mxu1 %v1006_v62  ;;  %v1502_v5 = vld [vmem:[%s6170_s20 + $0x2378] sm:$0xff] }
 0x2db   : > { %3231 = vmatpush.msrb.mxu2 %v1246_v63  ;;  %v702_v6 = vld [vmem:[%s6170_s20 + $0xa78] sm:$0xff]  ;;  %3250 = vmatpush.msrb.mxu3 %v1518_v61 }
 0x2dc   : > { %3192 = vmatpush.msrb.mxu0 %v718_v0  ;;  %v974_v7 = vld [vmem:[%s6170_s20 + $0x12f8] sm:$0xff]  ;;  %3211 = vmatpush.msrb.mxu1 %v990_v4  ;;  %v364_v4 = vld [vmem:[#allocation2 + $0x18] sm:$0xff] }
 0x2dd   : > { %v1214_v9 = vld [vmem:[%s6170_s20 + $0x1a78] sm:$0xff]  ;;  %3232 = vmatpush.msrb.mxu2 %v1230_v2  ;;  %3251 = vmatpush.msrb.mxu3 %v1502_v5 }
 0x2de   : > { %v1486_v10 = vld [vmem:[%s6170_s20 + $0x22f8] sm:$0xff]  ;;  %3193 = vmatpush.msrb.mxu0 %v702_v6  ;;  %3212 = vmatpush.msrb.mxu1 %v974_v7 }
 0x2df   : > { %v686_v1 = vld [vmem:[%s6170_s20 + $0x9f8] sm:$0xff]  ;;  %3233 = vmatpush.msrb.mxu2 %v1214_v9  ;;  %3252 = vmatpush.msrb.mxu3 %v1486_v10 }
 0x2e0   : > { %v958_v11 = vld [vmem:[%s6170_s20 + $0x1278] sm:$0xff]  ;;  %3194 = vmatpush.msrb.mxu0 %v686_v1  ;;  %3178 = vmatmul.f32.vlgmr.msra.gmra.mxu3 %v7417_v33 }
 0x2e1   : > { %v1198_v12 = vld [vmem:[%s6170_s20 + $0x19f8] sm:$0xff]  ;;  %3213 = vmatpush.msrb.mxu1 %v958_v11 }
 0x2e2   : > { %v1470_v32 = vld [vmem:[%s6170_s20 + $0x2278] sm:$0xff]  ;;  %3234 = vmatpush.msrb.mxu2 %v1198_v12 }
 0x2e3   : > { %v670_v14 = vld [vmem:[%s6170_s20 + $0x978] sm:$0xff]  ;;  %3253 = vmatpush.msrb.mxu3 %v1470_v32 }
 0x2e4   : > { %v942_v36 = vld [vmem:[%s6170_s20 + $0x11f8] sm:$0xff]  ;;  %3195 = vmatpush.msrb.mxu0 %v670_v14 }
 0x2e5   : > { %v1182_v16 = vld [vmem:[%s6170_s20 + $0x1978] sm:$0xff]  ;;  %3214 = vmatpush.msrb.mxu1 %v942_v36 }
 0x2e6   : > { %v1454_v40 = vld [vmem:[%s6170_s20 + $0x21f8] sm:$0xff]  ;;  %3235 = vmatpush.msrb.mxu2 %v1182_v16 }
 0x2e7   : > { %v654_v18 = vld [vmem:[%s6170_s20 + $0x8f8] sm:$0xff]  ;;  %3254 = vmatpush.msrb.mxu3 %v1454_v40 }
 0x2e8   : > { %v926_v19 = vld [vmem:[%s6170_s20 + $0x1178] sm:$0xff]  ;;  %3196 = vmatpush.msrb.mxu0 %v654_v18 }
 0x2e9   : > { %v1166_v22 = vld [vmem:[%s6170_s20 + $0x18f8] sm:$0xff]  ;;  %3215 = vmatpush.msrb.mxu1 %v926_v19 }
 0x2ea   : > { %v1438_v23 = vld [vmem:[%s6170_s20 + $0x2178] sm:$0xff]  ;;  %3236 = vmatpush.msrb.mxu2 %v1166_v22 }
 0x2eb   : > { %v638_v3 = vld [vmem:[%s6170_s20 + $0x878] sm:$0xff]  ;;  %3255 = vmatpush.msrb.mxu3 %v1438_v23 }
 0x2ec   : > { %v910_v28 = vld [vmem:[%s6170_s20 + $0x10f8] sm:$0xff]  ;;  %3197 = vmatpush.msrb.mxu0 %v638_v3 }
 0x2ed   : > { %v1150_v26 = vld [vmem:[%s6170_s20 + $0x1878] sm:$0xff]  ;;  %3216 = vmatpush.msrb.mxu1 %v910_v28  ;;  %3198 = vmatmul.f32.vlgmr.msrb.gmra.mxu0 %v7428_v38 }
 0x2ee   : > { %v1422_v21 = vld [vmem:[%s6170_s20 + $0x20f8] sm:$0xff]  ;;  %3237 = vmatpush.msrb.mxu2 %v1150_v26 }
 0x2ef   : > { %v894_v35 = vld [vmem:[%s6170_s20 + $0x1078] sm:$0xff]  ;;  %3256 = vmatpush.msrb.mxu3 %v1422_v21  ;;  %3238 = vmatmul.f32.vlgmr.msrb.gmra.mxu2 %v7421_v30 }
 0x2f0   : > { %v1406_v8 = vld [vmem:[%s6170_s20 + $0x2078] sm:$0xff]  ;;  %3217 = vmatpush.msrb.mxu1 %v894_v35 }
 0x2f1   : > { %3257 = vmatpush.msrb.mxu3 %v1406_v8  ;;  %3218 = vmatmul.f32.vlgmr.msrb.gmra.mxu1 %v7411_v29 }
 0x2f2   : > { %3258 = vmatmul.f32.vlgmr.msrb.gmra.mxu3 %v7444_v49 }
 0x2fe   : > { %v2879_v33 = vpop.f32.mrf.mxu0 }
 0x301   : > { %v2899_v41 = vpop.f32.mrf.mxu1  ;;  %v2919_v37 = vpop.f32.mrf.mxu2 }
 0x302   : > { %v2900_v50 = vadd.f32 %v2899_v41, %v2879_v33 }
 0x304   : > { %v2939_v24 = vpop.f32.mrf.mxu3  ;;  %v2920_v54 = vadd.f32 %v2919_v37, %v2900_v50 }
 0x306   : > { %v2940_v57 = vadd.f32 %v2939_v24, %v2920_v54 }
 0x307   : > { %v2959_v34 = vpop.f32.mrf.mxu0 }
 0x308   : > { %v2960_v63 = vadd.f32 %v2959_v34, %v2940_v57 }
 0x31b   : > { %v2979_v39 = vpop.f32.mrf.mxu1 }
 0x31c   : > { %v2999_v46 = vpop.f32.mrf.mxu2 }
 0x31d   : > { %v3000_v30 = vadd.f32 %v2999_v46, %v2979_v39 }
 0x31f   : > { %v3019_v42 = vpop.f32.mrf.mxu3 }
 0x320   : > { %v3020_v20 = vadd.f32 %v3019_v42, %v3000_v30 }
 0x321   : > { %v3039_v43 = vpop.f32.mrf.mxu0 }
 0x322   : > { %v3040_v27 = vadd.f32 %v3039_v43, %v3020_v20 }
 0x324   : > { %v3059_v44 = vpop.f32.mrf.mxu1 }
 0x325   : > { %v3060_v31 = vadd.f32 %v3059_v44, %v3040_v27 }
 0x327   : > { %v3287_v25 = vrot.slane %v3060_v31, 6 }
 0x329   : > { %v3302_v2 = vsel %vm3290_vm7, %v2960_v63, %v3287_v25 }
 0x346   : > { %v3079_v45 = vpop.f32.mrf.mxu2 }
 0x349   : > { %v3099_v38 = vpop.f32.mrf.mxu3 }
 0x34a   : > { %v3100_v13 = vadd.f32 %v3099_v38, %v3079_v45 }
 0x34c   : > { %v3119_v47 = vpop.f32.mrf.mxu0 }
 0x34d   : > { %v3120_v49 = vadd.f32 %v3119_v47, %v3100_v13 }
 0x34e   : > { %v3139_v48 = vpop.f32.mrf.mxu1 }
 0x34f   : > { %v3159_v29 = vpop.f32.mrf.mxu2  ;;  %v3140_v17 = vadd.f32 %v3139_v48, %v3120_v49 }
 0x351   : > { %v3160_v58 = vadd.f32 %v3159_v29, %v3140_v17 }
 0x353   : > { %v3288_v61 = vrot.slane %v3160_v58, 4 }
 0x363   : > { %v3179_v51 = vpop.f32.mrf.mxu3 }
 0x36a   : > { %v3199_v15 = vpop.f32.mrf.mxu0 }
 0x36b   : > { %v3200_v52 = vadd.f32 %v3199_v15, %v3179_v51 }
 0x36e   : > { %v3219_v53 = vpop.f32.mrf.mxu1 }
 0x36f   : > { %v3220_v55 = vadd.f32 %v3219_v53, %v3200_v52 }
 0x372   : > { %v3239_v56 = vpop.f32.mrf.mxu2 }
 0x373   : > { %v3240_v59 = vadd.f32 %v3239_v56, %v3220_v55 }
 0x375   : > { %v3259_v60 = vpop.f32.mrf.mxu3 }
 0x376   : > { %v3260_v62 = vadd.f32 %v3259_v60, %v3240_v59 }
 0x378   : > { %v3289_v0 = vrot.slane %v3260_v62, 2 }
 0x37a   : > { %v3303_v5 = vsel %vm3292_vm8, %v3288_v61, %v3289_v0  ;;  %3325 = sbr.rel (%p5992_p6) target bundleno = 2143 (0x85f), region = 64 }
 0x37b   : > { %v3304_v6 = vsel %vm3294_vm9, %v3302_v2, %v3303_v5 }
 0x37c   : > { %v3312_v7 = vadd.f32 %v3304_v6, %v364_v4 }
 0x37e   : > { %3321 = vst.msk [vmem:[#allocation2 + $0x18] sm:$0xff] %vm3320_vm14, %v3312_v7 }
 0x37f   : > { %v3446_v9 = vld [vmem:[%s11089_s3 + $0x1e0] sm:$0xff]  ;;  %vm4436_vm15 = vcmask 654336   ;;  %vm5790_vm0 = vcmask 949248   ;;  %vm5895_vm1 = vcmask 818176   ;;  %vm5922_vm2 = vcmask 9216  }
 0x380   : > { %v3510_v10 = vld [vmem:[%s11089_s3 + $0x3e0] sm:$0xff]  ;;  %4439 = vmatpush.msra.mxu0 %v3446_v9 }
 0x381   : > { %v3574_v1 = vld [vmem:[%s11089_s3 + $0x5e0] sm:$0xff]  ;;  %4459 = vmatpush.msra.mxu1 %v3510_v10 }
 0x382   : > { %v3442_v11 = vld [vmem:[%s11089_s3 + $0x1c0] sm:$0xff]  ;;  %4479 = vmatpush.msra.mxu2 %v3574_v1 }
 0x383   : > { %v3506_v12 = vld [vmem:[%s11089_s3 + $0x3c0] sm:$0xff]  ;;  %4440 = vmatpush.msra.mxu0 %v3442_v11 }
 0x384   : > { %v3570_v32 = vld [vmem:[%s11089_s3 + $0x5c0] sm:$0xff]  ;;  %4460 = vmatpush.msra.mxu1 %v3506_v12 }
 0x385   : > { %v3638_v14 = vld [vmem:[%s11089_s3 + $0x7e0] sm:$0xff]  ;;  %4480 = vmatpush.msra.mxu2 %v3570_v32 }
 0x386   : > { %v3438_v36 = vld [vmem:[%s11089_s3 + $0x1a0] sm:$0xff]  ;;  %4499 = vmatpush.msra.mxu3 %v3638_v14 }
 0x387   : > { %v3502_v16 = vld [vmem:[%s11089_s3 + $0x3a0] sm:$0xff]  ;;  %4441 = vmatpush.msra.mxu0 %v3438_v36 }
 0x388   : > { %v3566_v40 = vld [vmem:[%s11089_s3 + $0x5a0] sm:$0xff]  ;;  %4461 = vmatpush.msra.mxu1 %v3502_v16 }
 0x389   : > { %v3634_v18 = vld [vmem:[%s11089_s3 + $0x7c0] sm:$0xff]  ;;  %4481 = vmatpush.msra.mxu2 %v3566_v40 }
 0x38a   : > { %v3434_v19 = vld [vmem:[%s11089_s3 + $0x180] sm:$0xff]  ;;  %4500 = vmatpush.msra.mxu3 %v3634_v18 }
 0x38b   : > { %v3498_v22 = vld [vmem:[%s11089_s3 + $0x380] sm:$0xff]  ;;  %4442 = vmatpush.msra.mxu0 %v3434_v19 }
 0x38c   : > { %v3562_v23 = vld [vmem:[%s11089_s3 + $0x580] sm:$0xff]  ;;  %4462 = vmatpush.msra.mxu1 %v3498_v22 }
 0x38d   : > { %v3630_v3 = vld [vmem:[%s11089_s3 + $0x7a0] sm:$0xff]  ;;  %4482 = vmatpush.msra.mxu2 %v3562_v23 }
 0x38e   : > { %v3430_v28 = vld [vmem:[%s11089_s3 + $0x160] sm:$0xff]  ;;  %4501 = vmatpush.msra.mxu3 %v3630_v3 }
 0x38f   : > { %v3494_v26 = vld [vmem:[%s11089_s3 + $0x360] sm:$0xff]  ;;  %4443 = vmatpush.msra.mxu0 %v3430_v28 }
 0x390   : > { %v3558_v21 = vld [vmem:[%s11089_s3 + $0x560] sm:$0xff]  ;;  %4463 = vmatpush.msra.mxu1 %v3494_v26 }
 0x391   : > { %v3626_v35 = vld [vmem:[%s11089_s3 + $0x780] sm:$0xff]  ;;  %4483 = vmatpush.msra.mxu2 %v3558_v21 }
 0x392   : > { %v3426_v8 = vld [vmem:[%s11089_s3 + $0x140] sm:$0xff]  ;;  %4502 = vmatpush.msra.mxu3 %v3626_v35 }
 0x393   : > { %v3490_v33 = vld [vmem:[%s11089_s3 + $0x340] sm:$0xff]  ;;  %4444 = vmatpush.msra.mxu0 %v3426_v8 }
 0x394   : > { %v3554_v41 = vld [vmem:[%s11089_s3 + $0x540] sm:$0xff]  ;;  %4464 = vmatpush.msra.mxu1 %v3490_v33 }
 0x395   : > { %v3622_v37 = vld [vmem:[%s11089_s3 + $0x760] sm:$0xff]  ;;  %4484 = vmatpush.msra.mxu2 %v3554_v41 }
 0x396   : > { %v3422_v24 = vld [vmem:[%s11089_s3 + $0x120] sm:$0xff]  ;;  %4503 = vmatpush.msra.mxu3 %v3622_v37 }
 0x397   : > { %v3486_v34 = vld [vmem:[%s11089_s3 + $0x320] sm:$0xff]  ;;  %4445 = vmatpush.msra.mxu0 %v3422_v24 }
 0x398   : > { %v3550_v39 = vld [vmem:[%s11089_s3 + $0x520] sm:$0xff]  ;;  %4465 = vmatpush.msra.mxu1 %v3486_v34 }
 0x399   : > { %v3618_v46 = vld [vmem:[%s11089_s3 + $0x740] sm:$0xff]  ;;  %4485 = vmatpush.msra.mxu2 %v3550_v39 }
 0x39a   : > { %v3418_v42 = vld [vmem:[%s11089_s3 + $0x100] sm:$0xff]  ;;  %4504 = vmatpush.msra.mxu3 %v3618_v46 }
 0x39b   : > { %v3482_v43 = vld [vmem:[%s11089_s3 + $0x300] sm:$0xff]  ;;  %4446 = vmatpush.msra.mxu0 %v3418_v42 }
 0x39c   : > { %v3546_v44 = vld [vmem:[%s11089_s3 + $0x500] sm:$0xff]  ;;  %4466 = vmatpush.msra.mxu1 %v3482_v43 }
 0x39d   : > { %v3614_v45 = vld [vmem:[%s11089_s3 + $0x720] sm:$0xff]  ;;  %4486 = vmatpush.msra.mxu2 %v3546_v44 }
 0x39e   : > { %v3414_v38 = vld [vmem:[%s11089_s3 + $0xe0] sm:$0xff]  ;;  %4505 = vmatpush.msra.mxu3 %v3614_v45 }
 0x39f   : > { %v3478_v47 = vld [vmem:[%s11089_s3 + $0x2e0] sm:$0xff]  ;;  %4447 = vmatpush.msra.mxu0 %v3414_v38 }
 0x3a0   : > { %v3542_v30 = vld [vmem:[%s11089_s3 + $0x4e0] sm:$0xff]  ;;  %4467 = vmatpush.msra.mxu1 %v3478_v47 }
 0x3a1   : > { %v3610_v48 = vld [vmem:[%s11089_s3 + $0x700] sm:$0xff]  ;;  %4487 = vmatpush.msra.mxu2 %v3542_v30  ;;  %v7953_v30 = vld [vmem:[%s11088_s2 + $0x8] sm:$0xff] }
 0x3a2   : > { %v3410_v13 = vld [vmem:[%s11089_s3 + $0xc0] sm:$0xff]  ;;  %4506 = vmatpush.msra.mxu3 %v3610_v48 }
 0x3a3   : > { %v3474_v20 = vld [vmem:[%s11089_s3 + $0x2c0] sm:$0xff]  ;;  %4448 = vmatpush.msra.mxu0 %v3410_v13 }
 0x3a4   : > { %v3538_v29 = vld [vmem:[%s11089_s3 + $0x4c0] sm:$0xff]  ;;  %4468 = vmatpush.msra.mxu1 %v3474_v20 }
 0x3a5   : > { %v3606_v50 = vld [vmem:[%s11089_s3 + $0x6e0] sm:$0xff]  ;;  %4488 = vmatpush.msra.mxu2 %v3538_v29 }
 0x3a6   : > { %v3406_v49 = vld [vmem:[%s11089_s3 + $0xa0] sm:$0xff]  ;;  %4507 = vmatpush.msra.mxu3 %v3606_v50 }
 0x3a7   : > { %v3470_v51 = vld [vmem:[%s11089_s3 + $0x2a0] sm:$0xff]  ;;  %4449 = vmatpush.msra.mxu0 %v3406_v49 }
 0x3a8   : > { %v3534_v15 = vld [vmem:[%s11089_s3 + $0x4a0] sm:$0xff]  ;;  %4469 = vmatpush.msra.mxu1 %v3470_v51 }
 0x3a9   : > { %v3602_v27 = vld [vmem:[%s11089_s3 + $0x6c0] sm:$0xff]  ;;  %4489 = vmatpush.msra.mxu2 %v3534_v15 }
 0x3aa   : > { %v3402_v52 = vld [vmem:[%s11089_s3 + $0x80] sm:$0xff]  ;;  %4508 = vmatpush.msra.mxu3 %v3602_v27 }
 0x3ab   : > { %v3466_v53 = vld [vmem:[%s11089_s3 + $0x280] sm:$0xff]  ;;  %4450 = vmatpush.msra.mxu0 %v3402_v52  ;;  %v3326_v52 = vld [vmem:[#allocation2] sm:$0xff] }
 0x3ac   : > { %v3530_v54 = vld [vmem:[%s11089_s3 + $0x480] sm:$0xff]  ;;  %4470 = vmatpush.msra.mxu1 %v3466_v53  ;;  %v3342_v53 = vperm.slane %v7953_v30, 0 }
 0x3ad   : > { %v3598_v17 = vld [vmem:[%s11089_s3 + $0x6a0] sm:$0xff]  ;;  %4490 = vmatpush.msra.mxu2 %v3530_v54  ;;  %v3343_v54 = vperm.slane %v7953_v30, 1 }
 0x3ae   : > { %v3398_v31 = vld [vmem:[%s11089_s3 + $0x60] sm:$0xff]  ;;  %4509 = vmatpush.msra.mxu3 %v3598_v17  ;;  %v3344_v17 = vperm.slane %v7953_v30, 2 }
 0x3af   : > { %v3462_v55 = vld [vmem:[%s11089_s3 + $0x260] sm:$0xff]  ;;  %4451 = vmatpush.msra.mxu0 %v3398_v31  ;;  %v3345_v31 = vperm.slane %v7953_v30, 3 }
 0x3b0   : > { %v3526_v56 = vld [vmem:[%s11089_s3 + $0x460] sm:$0xff]  ;;  %4471 = vmatpush.msra.mxu1 %v3462_v55 }
 0x3b1   : > { %v3594_v57 = vld [vmem:[%s11089_s3 + $0x680] sm:$0xff]  ;;  %4491 = vmatpush.msra.mxu2 %v3526_v56 }
 0x3b2   : > { %v3394_v58 = vld [vmem:[%s11089_s3 + $0x40] sm:$0xff]  ;;  %4510 = vmatpush.msra.mxu3 %v3594_v57 }
 0x3b3   : > { %v3458_v59 = vld [vmem:[%s11089_s3 + $0x240] sm:$0xff]  ;;  %4452 = vmatpush.msra.mxu0 %v3394_v58 }
 0x3b4   : > { %v3522_v60 = vld [vmem:[%s11089_s3 + $0x440] sm:$0xff]  ;;  %4472 = vmatpush.msra.mxu1 %v3458_v59 }
 0x3b5   : > { %v3590_v25 = vld [vmem:[%s11089_s3 + $0x660] sm:$0xff]  ;;  %4492 = vmatpush.msra.mxu2 %v3522_v60 }
 0x3b6   : > { %v3390_v62 = vld [vmem:[%s11089_s3 + $0x20] sm:$0xff]  ;;  %4511 = vmatpush.msra.mxu3 %v3590_v25 }
 0x3b7   : > { %v3454_v63 = vld [vmem:[%s11089_s3 + $0x220] sm:$0xff]  ;;  %4453 = vmatpush.msra.mxu0 %v3390_v62 }
 0x3b8   : > { %v3518_v61 = vld [vmem:[%s11089_s3 + $0x420] sm:$0xff]  ;;  %4473 = vmatpush.msra.mxu1 %v3454_v63 }
 0x3b9   : > { %v3586_v0 = vld [vmem:[%s11089_s3 + $0x640] sm:$0xff]  ;;  %4493 = vmatpush.msra.mxu2 %v3518_v61  ;;  %v3356_v61 = vrot.slane %v3343_v54, 6 }
 0x3ba   : > { %v3386_v4 = vld [vmem:[%s11089_s3] sm:$0xff]  ;;  %4512 = vmatpush.msra.mxu3 %v3586_v0  ;;  %v3357_v0 = vrot.slane %v3344_v17, 4 }
 0x3bb   : > { %v3450_v2 = vld [vmem:[%s11089_s3 + $0x200] sm:$0xff]  ;;  %4454 = vmatpush.msra.mxu0 %v3386_v4  ;;  %v3358_v4 = vrot.slane %v3345_v31, 2 }
 0x3bc   : > { %v3514_v5 = vld [vmem:[%s11089_s3 + $0x400] sm:$0xff]  ;;  %4474 = vmatpush.msra.mxu1 %v3450_v2 }
 0x3bd   : > { %v3582_v6 = vld [vmem:[%s11089_s3 + $0x620] sm:$0xff]  ;;  %4494 = vmatpush.msra.mxu2 %v3514_v5 }
 0x3be   : > { %v3702_v7 = vld [vmem:[%s11089_s3 + $0x9e0] sm:$0xff]  ;;  %4513 = vmatpush.msra.mxu3 %v3582_v6 }
 0x3bf   : > { %v3766_v9 = vld [vmem:[%s11089_s3 + $0xbe0] sm:$0xff]  ;;  %4519 = vmatpush.msrb.mxu0 %v3702_v7 }
 0x3c0   : > { %v3830_v10 = vld [vmem:[%s11089_s3 + $0xde0] sm:$0xff]  ;;  %4539 = vmatpush.msrb.mxu1 %v3766_v9 }
 0x3c1   : > { %v3578_v1 = vld [vmem:[%s11089_s3 + $0x600] sm:$0xff]  ;;  %4559 = vmatpush.msrb.mxu2 %v3830_v10 }
 0x3c2   : > { %v3698_v11 = vld [vmem:[%s11089_s3 + $0x9c0] sm:$0xff]  ;;  %4514 = vmatpush.msra.mxu3 %v3578_v1 }
 0x3c3   : > { %v3762_v12 = vld [vmem:[%s11089_s3 + $0xbc0] sm:$0xff]  ;;  %4520 = vmatpush.msrb.mxu0 %v3698_v11 }
 0x3c4   : > { %v3826_v32 = vld [vmem:[%s11089_s3 + $0xdc0] sm:$0xff]  ;;  %4540 = vmatpush.msrb.mxu1 %v3762_v12  ;;  %v3368_v12 = vsel %vm3290_vm7, %v3342_v53, %v3356_v61 }
 0x3c5   : > { %v3894_v14 = vld [vmem:[%s11089_s3 + $0xfe0] sm:$0xff]  ;;  %4560 = vmatpush.msrb.mxu2 %v3826_v32  ;;  %v3369_v32 = vsel %vm3292_vm8, %v3357_v0, %v3358_v4 }
 0x3c6   : > { %v3694_v36 = vld [vmem:[%s11089_s3 + $0x9a0] sm:$0xff]  ;;  %4579 = vmatpush.msrb.mxu3 %v3894_v14  ;;  %v3327_v14 = vld [vmem:[#allocation2 + $0x8] sm:$0xff] }
 0x3c7   : > { %v3758_v16 = vld [vmem:[%s11089_s3 + $0xba0] sm:$0xff]  ;;  %4521 = vmatpush.msrb.mxu0 %v3694_v36  ;;  %v3346_v36 = vperm.slane %v7953_v30, 4 }
 0x3c8   : > { %v3822_v40 = vld [vmem:[%s11089_s3 + $0xda0] sm:$0xff]  ;;  %4541 = vmatpush.msrb.mxu1 %v3758_v16  ;;  %v3347_v16 = vperm.slane %v7953_v30, 5 }
 0x3c9   : > { %v3890_v18 = vld [vmem:[%s11089_s3 + $0xfc0] sm:$0xff]  ;;  %4561 = vmatpush.msrb.mxu2 %v3822_v40 }
 0x3ca   : > { %v3690_v19 = vld [vmem:[%s11089_s3 + $0x980] sm:$0xff]  ;;  %4580 = vmatpush.msrb.mxu3 %v3890_v18 }
 0x3cb   : > { %v3754_v22 = vld [vmem:[%s11089_s3 + $0xb80] sm:$0xff]  ;;  %4522 = vmatpush.msrb.mxu0 %v3690_v19 }
 0x3cc   : > { %v3818_v23 = vld [vmem:[%s11089_s3 + $0xd80] sm:$0xff]  ;;  %4542 = vmatpush.msrb.mxu1 %v3754_v22  ;;  %v3328_v22 = vld [vmem:[#allocation2 + $0x10] sm:$0xff] }
 0x3cd   : > { %v3886_v3 = vld [vmem:[%s11089_s3 + $0xfa0] sm:$0xff]  ;;  %4562 = vmatpush.msrb.mxu2 %v3818_v23  ;;  %v3370_v23 = vsel %vm3294_vm9, %v3368_v12, %v3369_v32 }
 0x3ce   : > { %v3686_v28 = vld [vmem:[%s11089_s3 + $0x960] sm:$0xff]  ;;  %4581 = vmatpush.msrb.mxu3 %v3886_v3 }
 0x3cf   : > { %v3750_v26 = vld [vmem:[%s11089_s3 + $0xb60] sm:$0xff]  ;;  %4523 = vmatpush.msrb.mxu0 %v3686_v28  ;;  %v3348_v28 = vperm.slane %v7953_v30, 6 }
 0x3d0   : > { %v3814_v21 = vld [vmem:[%s11089_s3 + $0xd60] sm:$0xff]  ;;  %4543 = vmatpush.msrb.mxu1 %v3750_v26 }
 0x3d1   : > { %v3882_v35 = vld [vmem:[%s11089_s3 + $0xf80] sm:$0xff]  ;;  %4563 = vmatpush.msrb.mxu2 %v3814_v21 }
 0x3d2   : > { %v3682_v8 = vld [vmem:[%s11089_s3 + $0x940] sm:$0xff]  ;;  %4582 = vmatpush.msrb.mxu3 %v3882_v35 }
 0x3d3   : > { %v3746_v33 = vld [vmem:[%s11089_s3 + $0xb40] sm:$0xff]  ;;  %4524 = vmatpush.msrb.mxu0 %v3682_v8  ;;  %v3349_v8 = vperm.slane %v7953_v30, 7 }
 0x3d4   : > { %v3810_v41 = vld [vmem:[%s11089_s3 + $0xd40] sm:$0xff]  ;;  %4544 = vmatpush.msrb.mxu1 %v3746_v33  ;;  %v3359_v33 = vrot.slane %v3347_v16, 6 }
 0x3d5   : > { %v3878_v37 = vld [vmem:[%s11089_s3 + $0xf60] sm:$0xff]  ;;  %4564 = vmatpush.msrb.mxu2 %v3810_v41 }
 0x3d6   : > { %v3678_v24 = vld [vmem:[%s11089_s3 + $0x920] sm:$0xff]  ;;  %4583 = vmatpush.msrb.mxu3 %v3878_v37 }
 0x3d7   : > { %v3330_v34 = vld [vmem:[%s11088_s2] sm:$0xff]  ;;  %4525 = vmatpush.msrb.mxu0 %v3678_v24 }
 0x3d8   : > { %v3742_v39 = vld [vmem:[%s11089_s3 + $0xb20] sm:$0xff]  ;;  %v3334_v42 = vperm.slane %v3330_v34, 0  ;;  %v3335_v43 = vperm.slane %v3330_v34, 1  ;;  %v3336_v44 = vperm.slane %v3330_v34, 2  ;;  %v3337_v45 = vperm.slane %v3330_v34, 3 }
 0x3d9   : > { %v3806_v46 = vld [vmem:[%s11089_s3 + $0xd20] sm:$0xff]  ;;  %v3338_v48 = vperm.slane %v3330_v34, 4  ;;  %v3339_v13 = vperm.slane %v3330_v34, 5  ;;  %v3340_v15 = vperm.slane %v3330_v34, 6  ;;  %4545 = vmatpush.msrb.mxu1 %v3742_v39  ;;  %v3341_v59 = vperm.slane %v3330_v34, 7 }
 0x3da   : > { %v3874_v38 = vld [vmem:[%s11089_s3 + $0xf40] sm:$0xff]  ;;  %v3350_v50 = vrot.slane %v3335_v43, 6  ;;  %v3351_v49 = vrot.slane %v3336_v44, 4  ;;  %v3352_v51 = vrot.slane %v3337_v45, 2  ;;  %4565 = vmatpush.msrb.mxu2 %v3806_v46  ;;  %v3360_v34 = vrot.slane %v3348_v28, 4 }
 0x3db   : > { %v3674_v47 = vld [vmem:[%s11089_s3 + $0x900] sm:$0xff]  ;;  %4584 = vmatpush.msrb.mxu3 %v3874_v38  ;;  %v3353_v60 = vrot.slane %v3339_v13, 6  ;;  %v3354_v7 = vrot.slane %v3340_v15, 4  ;;  %v3355_v9 = vrot.slane %v3341_v59, 2  ;;  %v3361_v43 = vrot.slane %v3349_v8, 2 }
 0x3dc   : > { %v3738_v20 = vld [vmem:[%s11089_s3 + $0xb00] sm:$0xff]  ;;  %v3362_v57 = vsel %vm3290_vm7, %v3334_v42, %v3350_v50  ;;  %v3363_v58 = vsel %vm3292_vm8, %v3351_v49, %v3352_v51  ;;  %4526 = vmatpush.msrb.mxu0 %v3674_v47  ;;  %v3380_v42 = vadd.f32 %v3370_v23, %v3328_v22  ;;  %v3371_v44 = vsel %vm3290_vm7, %v3346_v36, %v3359_v33 }
 0x3dd   : > { %v3802_v29 = vld [vmem:[%s11089_s3 + $0xd00] sm:$0xff]  ;;  %4546 = vmatpush.msrb.mxu1 %v3738_v20  ;;  %v3364_v63 = vsel %vm3294_vm9, %v3362_v57, %v3363_v58  ;;  %v3365_v10 = vsel %vm3290_vm7, %v3338_v48, %v3353_v60  ;;  %v3366_v3 = vsel %vm3292_vm8, %v3354_v7, %v3355_v9  ;;  %v3372_v20 = vsel %vm3292_vm8, %v3360_v34, %v3361_v43 }
 0x3de   : > { %v3870_v27 = vld [vmem:[%s11089_s3 + $0xf20] sm:$0xff]  ;;  %4566 = vmatpush.msrb.mxu2 %v3802_v29  ;;  %v3378_v6 = vadd.f32 %v3364_v63, %v3326_v52  ;;  %v3367_v35 = vsel %vm3294_vm9, %v3365_v10, %v3366_v3  ;;  %v3373_v51 = vsel %vm3294_vm9, %v3371_v44, %v3372_v20  ;;  %v3384_v53 = vmax.f32 %v3380_v42, 0.0 }
 0x3df   : > { %v3670_v55 = vld [vmem:[%s11089_s3 + $0x8e0] sm:$0xff]  ;;  %4585 = vmatpush.msrb.mxu3 %v3870_v27  ;;  %v3379_v24 = vadd.f32 %v3367_v35, %v3327_v14 }
 0x3e0   : > { %v3734_v56 = vld [vmem:[%s11089_s3 + $0xae0] sm:$0xff]  ;;  %4527 = vmatpush.msrb.mxu0 %v3670_v55  ;;  %v3382_v19 = vmax.f32 %v3378_v6, 0.0 }
 0x3e1   : > { %v3798_v25 = vld [vmem:[%s11089_s3 + $0xce0] sm:$0xff]  ;;  %4547 = vmatpush.msrb.mxu1 %v3734_v56  ;;  %v3383_v47 = vmax.f32 %v3379_v24, 0.0 }
 0x3e2   : > { %v3866_v62 = vld [vmem:[%s11089_s3 + $0xf00] sm:$0xff]  ;;  %4567 = vmatpush.msrb.mxu2 %v3798_v25  ;;  %4400 = vst [vmem:[#allocation1] ss:$4 sm:$0xff] %v3382_v19 }
 0x3e3   : > { %v3666_v2 = vld [vmem:[%s11089_s3 + $0x8c0] sm:$0xff]  ;;  %4586 = vmatpush.msrb.mxu3 %v3866_v62  ;;  %4402 = vst [vmem:[#allocation1 + $0x20] ss:$4 sm:$0xff] %v3383_v47 }
 0x3e4   : > { %v3730_v5 = vld [vmem:[%s11089_s3 + $0xac0] sm:$0xff]  ;;  %4528 = vmatpush.msrb.mxu0 %v3666_v2 }
 0x3e5   : > { %v3794_v1 = vld [vmem:[%s11089_s3 + $0xcc0] sm:$0xff]  ;;  %4548 = vmatpush.msrb.mxu1 %v3730_v5 }
 0x3e6   : > { %v3862_v11 = vld [vmem:[%s11089_s3 + $0xee0] sm:$0xff]  ;;  %4568 = vmatpush.msrb.mxu2 %v3794_v1 }
 0x3e7   : > { %v3662_v40 = vld [vmem:[%s11089_s3 + $0x8a0] sm:$0xff]  ;;  %4587 = vmatpush.msrb.mxu3 %v3862_v11 }
 0x3e8   : > { %v3726_v18 = vld [vmem:[%s11089_s3 + $0xaa0] sm:$0xff]  ;;  %4529 = vmatpush.msrb.mxu0 %v3662_v40 }
 0x3e9   : > { %v3790_v26 = vld [vmem:[%s11089_s3 + $0xca0] sm:$0xff]  ;;  %4549 = vmatpush.msrb.mxu1 %v3726_v18  ;;  %v8071_v56 = vld.sshfl [vmem:[#allocation1 + $0x10] sm:$0xff pattern:$0x73625140] }
 0x3ea   : > { %v3858_v21 = vld [vmem:[%s11089_s3 + $0xec0] sm:$0xff]  ;;  %4569 = vmatpush.msrb.mxu2 %v3790_v26  ;;  %v8075_v58 = vld.sshfl [vmem:[#allocation1 + $0x8] sm:$0xff pattern:$0x73625140] }
 0x3eb   : > { %v3658_v41 = vld [vmem:[%s11089_s3 + $0x880] sm:$0xff]  ;;  %4588 = vmatpush.msrb.mxu3 %v3858_v21  ;;  %v8077_v59 = vld.sshfl [vmem:[#allocation1 + $0x18] sm:$0xff pattern:$0x73625140]  ;;  %4495 = vmatmul.f32.vlgmr.msra.gmra.mxu2 %v8071_v56 }
 0x3ec   : > { %v3722_v37 = vld [vmem:[%s11089_s3 + $0xa80] sm:$0xff]  ;;  %4530 = vmatpush.msrb.mxu0 %v3658_v41  ;;  %v8095_v4 = vld.sshfl [vmem:[#allocation1 + $0x30] sm:$0xff pattern:$0x73625140]  ;;  %4475 = vmatmul.f32.vlgmr.msra.gmra.mxu1 %v8075_v58 }
 0x3ed   : > { %v3786_v39 = vld [vmem:[%s11089_s3 + $0xc80] sm:$0xff]  ;;  %4550 = vmatpush.msrb.mxu1 %v3722_v37  ;;  %v8099_v5 = vld.sshfl [vmem:[#allocation1 + $0x38] sm:$0xff pattern:$0x73625140]  ;;  %4515 = vmatmul.f32.vlgmr.msra.gmra.mxu3 %v8077_v59 }
 0x3ee   : > { %v3854_v46 = vld [vmem:[%s11089_s3 + $0xea0] sm:$0xff]  ;;  %4570 = vmatpush.msrb.mxu2 %v3786_v39  ;;  %v8101_v6 = vld.sshfl [vmem:[#allocation1 + $0x28] sm:$0xff pattern:$0x73625140] }
 0x3ef   : > { %v3654_v45 = vld [vmem:[%s11089_s3 + $0x860] sm:$0xff]  ;;  %4589 = vmatpush.msrb.mxu3 %v3854_v46 }
 0x3f0   : > { %v3718_v38 = vld [vmem:[%s11089_s3 + $0xa60] sm:$0xff]  ;;  %4531 = vmatpush.msrb.mxu0 %v3654_v45 }
 0x3f1   : > { %v3329_v30 = vld [vmem:[#allocation2 + $0x18] sm:$0xff]  ;;  %4551 = vmatpush.msrb.mxu1 %v3718_v38 }
 0x3f2   : > { %v3782_v48 = vld [vmem:[%s11089_s3 + $0xc60] sm:$0xff]  ;;  %v3381_v54 = vadd.f32 %v3373_v51, %v3329_v30 }
 0x3f3   : > { %v3850_v13 = vld [vmem:[%s11089_s3 + $0xe80] sm:$0xff]  ;;  %4571 = vmatpush.msrb.mxu2 %v3782_v48 }
 0x3f4   : > { %v3650_v29 = vld [vmem:[%s11089_s3 + $0x840] sm:$0xff]  ;;  %4590 = vmatpush.msrb.mxu3 %v3850_v13  ;;  %v3385_v62 = vmax.f32 %v3381_v54, 0.0 }
 0x3f5   : > { %v3714_v50 = vld [vmem:[%s11089_s3 + $0xa40] sm:$0xff]  ;;  %4532 = vmatpush.msrb.mxu0 %v3650_v29 }
 0x3f6   : > { %v3778_v49 = vld [vmem:[%s11089_s3 + $0xc40] sm:$0xff]  ;;  %4552 = vmatpush.msrb.mxu1 %v3714_v50 }
 0x3f7   : > { %v3846_v15 = vld [vmem:[%s11089_s3 + $0xe60] sm:$0xff]  ;;  %4572 = vmatpush.msrb.mxu2 %v3778_v49 }
 0x3f8   : > { %v3646_v27 = vld [vmem:[%s11089_s3 + $0x820] sm:$0xff]  ;;  %4591 = vmatpush.msrb.mxu3 %v3846_v15 }
 0x3f9   : > { %v3710_v52 = vld [vmem:[%s11089_s3 + $0xa20] sm:$0xff]  ;;  %4533 = vmatpush.msrb.mxu0 %v3646_v27 }
 0x3fa   : > { %v3774_v17 = vld [vmem:[%s11089_s3 + $0xc20] sm:$0xff]  ;;  %4553 = vmatpush.msrb.mxu1 %v3710_v52 }
 0x3fb   : > { %v3842_v31 = vld [vmem:[%s11089_s3 + $0xe40] sm:$0xff]  ;;  %4573 = vmatpush.msrb.mxu2 %v3774_v17 }
 0x3fc   : > { %v3642_v55 = vld [vmem:[%s11089_s3 + $0x800] sm:$0xff]  ;;  %4592 = vmatpush.msrb.mxu3 %v3842_v31 }
 0x3fd   : > { %v8073_v57 = vld.sshfl [vmem:[#allocation1] sm:$0xff pattern:$0x73625140]  ;;  %4534 = vmatpush.msrb.mxu0 %v3642_v55 }
 0x3fe   : > { %v3706_v60 = vld [vmem:[%s11089_s3 + $0xa00] sm:$0xff]  ;;  %4411 = vst [vmem:[#allocation1] ss:$4 sm:$0xff] %v3384_v53  ;;  %4455 = vmatmul.f32.vlgmr.msra.gmra.mxu0 %v8073_v57 }
 0x3ff   : > { %v3770_v25 = vld [vmem:[%s11089_s3 + $0xc00] sm:$0xff]  ;;  %4554 = vmatpush.msrb.mxu1 %v3706_v60 }
 0x400   : > { %v3838_v63 = vld [vmem:[%s11089_s3 + $0xe20] sm:$0xff]  ;;  %4574 = vmatpush.msrb.mxu2 %v3770_v25  ;;  %4555 = vmatmul.f32.vlgmr.msrb.gmra.mxu1 %v8101_v6 }
 0x401   : > { %v3958_v61 = vld [vmem:[%s11089_s3 + $0x11e0] sm:$0xff]  ;;  %4593 = vmatpush.msrb.mxu3 %v3838_v63  ;;  %4575 = vmatmul.f32.vlgmr.msrb.gmra.mxu2 %v8095_v4 }
 0x402   : > { %v4022_v0 = vld [vmem:[%s11089_s3 + $0x13e0] sm:$0xff]  ;;  %4599 = vmatpush.msra.mxu0 %v3958_v61 }
 0x403   : > { %v8097_v2 = vld.sshfl [vmem:[#allocation1 + $0x20] sm:$0xff pattern:$0x73625140]  ;;  %4619 = vmatpush.msra.mxu1 %v4022_v0 }
 0x404   : > { %v4086_v7 = vld [vmem:[%s11089_s3 + $0x15e0] sm:$0xff]  ;;  %4412 = vst [vmem:[#allocation1 + $0x20] ss:$4 sm:$0xff] %v3385_v62 }
 0x405   : > { %v3834_v9 = vld [vmem:[%s11089_s3 + $0xe00] sm:$0xff]  ;;  %4639 = vmatpush.msra.mxu2 %v4086_v7 }
 0x406   : > { %v3954_v10 = vld [vmem:[%s11089_s3 + $0x11c0] sm:$0xff]  ;;  %4594 = vmatpush.msrb.mxu3 %v3834_v9  ;;  %4535 = vmatmul.f32.vlgmr.msrb.gmra.mxu0 %v8097_v2 }
 0x407   : > { %v4018_v1 = vld [vmem:[%s11089_s3 + $0x13c0] sm:$0xff]  ;;  %4600 = vmatpush.msra.mxu0 %v3954_v10  ;;  %4595 = vmatmul.f32.vlgmr.msrb.gmra.mxu3 %v8099_v5 }
 0x408   : > { %v4082_v11 = vld [vmem:[%s11089_s3 + $0x15c0] sm:$0xff]  ;;  %4620 = vmatpush.msra.mxu1 %v4018_v1 }
 0x409   : > { %v4150_v12 = vld [vmem:[%s11089_s3 + $0x17e0] sm:$0xff]  ;;  %4640 = vmatpush.msra.mxu2 %v4082_v11 }
 0x40a   : > { %v3950_v32 = vld [vmem:[%s11089_s3 + $0x11a0] sm:$0xff]  ;;  %4659 = vmatpush.msra.mxu3 %v4150_v12 }
 0x40b   : > { %v4014_v14 = vld [vmem:[%s11089_s3 + $0x13a0] sm:$0xff]  ;;  %4601 = vmatpush.msra.mxu0 %v3950_v32 }
 0x40c   : > { %v4078_v36 = vld [vmem:[%s11089_s3 + $0x15a0] sm:$0xff]  ;;  %4621 = vmatpush.msra.mxu1 %v4014_v14  ;;  %v4415_v14 = vld.sshfl [vmem:[#allocation1 + $0x10] sm:$0xff pattern:$0x73625140] }
 0x40d   : > { %v4146_v16 = vld [vmem:[%s11089_s3 + $0x17c0] sm:$0xff]  ;;  %4641 = vmatpush.msra.mxu2 %v4078_v36 }
 0x40e   : > { %v3946_v40 = vld [vmem:[%s11089_s3 + $0x1180] sm:$0xff]  ;;  %4660 = vmatpush.msra.mxu3 %v4146_v16 }
 0x40f   : > { %v4010_v18 = vld [vmem:[%s11089_s3 + $0x1380] sm:$0xff]  ;;  %4602 = vmatpush.msra.mxu0 %v3946_v40 }
 0x410   : > { %v4074_v19 = vld [vmem:[%s11089_s3 + $0x1580] sm:$0xff]  ;;  %4622 = vmatpush.msra.mxu1 %v4010_v18 }
 0x411   : > { %v4142_v22 = vld [vmem:[%s11089_s3 + $0x17a0] sm:$0xff]  ;;  %4642 = vmatpush.msra.mxu2 %v4074_v19  ;;  %v4414_v19 = vld.sshfl [vmem:[#allocation1 + $0x8] sm:$0xff pattern:$0x73625140] }
 0x412   : > { %v3942_v23 = vld [vmem:[%s11089_s3 + $0x1160] sm:$0xff]  ;;  %4661 = vmatpush.msra.mxu3 %v4142_v22  ;;  %v4416_v22 = vld.sshfl [vmem:[#allocation1 + $0x18] sm:$0xff pattern:$0x73625140] }
 0x413   : > { %v4006_v3 = vld [vmem:[%s11089_s3 + $0x1360] sm:$0xff]  ;;  %4603 = vmatpush.msra.mxu0 %v3942_v23 }
 0x414   : > { %v4070_v28 = vld [vmem:[%s11089_s3 + $0x1560] sm:$0xff]  ;;  %4623 = vmatpush.msra.mxu1 %v4006_v3 }
 0x415   : > { %v4138_v26 = vld [vmem:[%s11089_s3 + $0x1780] sm:$0xff]  ;;  %4643 = vmatpush.msra.mxu2 %v4070_v28 }
 0x416   : > { %v3938_v21 = vld [vmem:[%s11089_s3 + $0x1140] sm:$0xff]  ;;  %4662 = vmatpush.msra.mxu3 %v4138_v26  ;;  %v3447_v26 = vld [vmem:[%s11089_s3 + $0x1e8] sm:$0xff] }
 0x417   : > { %v4002_v35 = vld [vmem:[%s11089_s3 + $0x1340] sm:$0xff]  ;;  %4604 = vmatpush.msra.mxu0 %v3938_v21 }
 0x418   : > { %v4066_v8 = vld [vmem:[%s11089_s3 + $0x1540] sm:$0xff]  ;;  %4624 = vmatpush.msra.mxu1 %v4002_v35 }
 0x419   : > { %v4134_v33 = vld [vmem:[%s11089_s3 + $0x1760] sm:$0xff]  ;;  %4644 = vmatpush.msra.mxu2 %v4066_v8 }
 0x41a   : > { %v3934_v41 = vld [vmem:[%s11089_s3 + $0x1120] sm:$0xff]  ;;  %4663 = vmatpush.msra.mxu3 %v4134_v33  ;;  %v3443_v33 = vld [vmem:[%s11089_s3 + $0x1c8] sm:$0xff] }
 0x41b   : > { %v3998_v37 = vld [vmem:[%s11089_s3 + $0x1320] sm:$0xff]  ;;  %4605 = vmatpush.msra.mxu0 %v3934_v41 }
 0x41c   : > { %v4062_v24 = vld [vmem:[%s11089_s3 + $0x1520] sm:$0xff]  ;;  %4625 = vmatpush.msra.mxu1 %v3998_v37 }
 0x41d   : > { %v4130_v34 = vld [vmem:[%s11089_s3 + $0x1740] sm:$0xff]  ;;  %4645 = vmatpush.msra.mxu2 %v4062_v24 }
 0x41e   : > { %v3930_v39 = vld [vmem:[%s11089_s3 + $0x1100] sm:$0xff]  ;;  %4664 = vmatpush.msra.mxu3 %v4130_v34  ;;  %v3439_v34 = vld [vmem:[%s11089_s3 + $0x1a8] sm:$0xff] }
 0x41f   : > { %v3994_v46 = vld [vmem:[%s11089_s3 + $0x1300] sm:$0xff]  ;;  %4606 = vmatpush.msra.mxu0 %v3930_v39 }
 0x420   : > { %v4058_v42 = vld [vmem:[%s11089_s3 + $0x1500] sm:$0xff]  ;;  %4626 = vmatpush.msra.mxu1 %v3994_v46 }
 0x421   : > { %v4126_v43 = vld [vmem:[%s11089_s3 + $0x1720] sm:$0xff]  ;;  %4646 = vmatpush.msra.mxu2 %v4058_v42 }
 0x422   : > { %v3926_v44 = vld [vmem:[%s11089_s3 + $0x10e0] sm:$0xff]  ;;  %4665 = vmatpush.msra.mxu3 %v4126_v43  ;;  %v3435_v43 = vld [vmem:[%s11089_s3 + $0x188] sm:$0xff] }
 0x423   : > { %v3990_v45 = vld [vmem:[%s11089_s3 + $0x12e0] sm:$0xff]  ;;  %4607 = vmatpush.msra.mxu0 %v3926_v44 }
 0x424   : > { %v4054_v38 = vld [vmem:[%s11089_s3 + $0x14e0] sm:$0xff]  ;;  %4627 = vmatpush.msra.mxu1 %v3990_v45 }
 0x425   : > { %v4122_v47 = vld [vmem:[%s11089_s3 + $0x1700] sm:$0xff]  ;;  %4647 = vmatpush.msra.mxu2 %v4054_v38 }
 0x426   : > { %v3922_v30 = vld [vmem:[%s11089_s3 + $0x10c0] sm:$0xff]  ;;  %4666 = vmatpush.msra.mxu3 %v4122_v47  ;;  %v3431_v47 = vld [vmem:[%s11089_s3 + $0x168] sm:$0xff] }
 0x427   : > { %v3986_v48 = vld [vmem:[%s11089_s3 + $0x12c0] sm:$0xff]  ;;  %4608 = vmatpush.msra.mxu0 %v3922_v30 }
 0x428   : > { %v4050_v13 = vld [vmem:[%s11089_s3 + $0x14c0] sm:$0xff]  ;;  %4628 = vmatpush.msra.mxu1 %v3986_v48 }
 0x429   : > { %v4118_v20 = vld [vmem:[%s11089_s3 + $0x16e0] sm:$0xff]  ;;  %4648 = vmatpush.msra.mxu2 %v4050_v13 }
 0x42a   : > { %v3918_v29 = vld [vmem:[%s11089_s3 + $0x10a0] sm:$0xff]  ;;  %4667 = vmatpush.msra.mxu3 %v4118_v20  ;;  %v3427_v20 = vld [vmem:[%s11089_s3 + $0x148] sm:$0xff] }
 0x42b   : > { %v3982_v50 = vld [vmem:[%s11089_s3 + $0x12a0] sm:$0xff]  ;;  %4609 = vmatpush.msra.mxu0 %v3918_v29 }
 0x42c   : > { %v4046_v49 = vld [vmem:[%s11089_s3 + $0x14a0] sm:$0xff]  ;;  %4629 = vmatpush.msra.mxu1 %v3982_v50 }
 0x42d   : > { %v4114_v51 = vld [vmem:[%s11089_s3 + $0x16c0] sm:$0xff]  ;;  %4649 = vmatpush.msra.mxu2 %v4046_v49 }
 0x42e   : > { %v3914_v15 = vld [vmem:[%s11089_s3 + $0x1080] sm:$0xff]  ;;  %4668 = vmatpush.msra.mxu3 %v4114_v51  ;;  %v3423_v51 = vld [vmem:[%s11089_s3 + $0x128] sm:$0xff] }
 0x42f   : > { %v3978_v27 = vld [vmem:[%s11089_s3 + $0x1280] sm:$0xff]  ;;  %4610 = vmatpush.msra.mxu0 %v3914_v15 }
 0x430   : > { %v4042_v52 = vld [vmem:[%s11089_s3 + $0x1480] sm:$0xff]  ;;  %4630 = vmatpush.msra.mxu1 %v3978_v27 }
 0x431   : > { %v4110_v53 = vld [vmem:[%s11089_s3 + $0x16a0] sm:$0xff]  ;;  %4650 = vmatpush.msra.mxu2 %v4042_v52 }
 0x432   : > { %v3910_v54 = vld [vmem:[%s11089_s3 + $0x1060] sm:$0xff]  ;;  %4669 = vmatpush.msra.mxu3 %v4110_v53  ;;  %v3419_v53 = vld [vmem:[%s11089_s3 + $0x108] sm:$0xff] }
 0x433   : > { %v3974_v17 = vld [vmem:[%s11089_s3 + $0x1260] sm:$0xff]  ;;  %4611 = vmatpush.msra.mxu0 %v3910_v54 }
 0x434   : > { %v4038_v31 = vld [vmem:[%s11089_s3 + $0x1460] sm:$0xff]  ;;  %4631 = vmatpush.msra.mxu1 %v3974_v17 }
 0x435   : > { %v4106_v55 = vld [vmem:[%s11089_s3 + $0x1680] sm:$0xff]  ;;  %4651 = vmatpush.msra.mxu2 %v4038_v31 }
 0x436   : > { %v3906_v60 = vld [vmem:[%s11089_s3 + $0x1040] sm:$0xff]  ;;  %4670 = vmatpush.msra.mxu3 %v4106_v55  ;;  %v3415_v55 = vld [vmem:[%s11089_s3 + $0xe8] sm:$0xff] }
 0x437   : > { %v3970_v25 = vld [vmem:[%s11089_s3 + $0x1240] sm:$0xff]  ;;  %4612 = vmatpush.msra.mxu0 %v3906_v60 }
 0x438   : > { %v4034_v62 = vld [vmem:[%s11089_s3 + $0x1440] sm:$0xff]  ;;  %4632 = vmatpush.msra.mxu1 %v3970_v25 }
 0x439   : > { %v4102_v63 = vld [vmem:[%s11089_s3 + $0x1660] sm:$0xff]  ;;  %4652 = vmatpush.msra.mxu2 %v4034_v62 }
 0x43a   : > { %v3902_v61 = vld [vmem:[%s11089_s3 + $0x1020] sm:$0xff]  ;;  %4671 = vmatpush.msra.mxu3 %v4102_v63  ;;  %v3411_v63 = vld [vmem:[%s11089_s3 + $0xc8] sm:$0xff] }
 0x43b   : > { %v3966_v0 = vld [vmem:[%s11089_s3 + $0x1220] sm:$0xff]  ;;  %4613 = vmatpush.msra.mxu0 %v3902_v61 }
 0x43c   : > { %v4030_v7 = vld [vmem:[%s11089_s3 + $0x1420] sm:$0xff]  ;;  %4633 = vmatpush.msra.mxu1 %v3966_v0 }
 0x43d   : > { %v4098_v9 = vld [vmem:[%s11089_s3 + $0x1640] sm:$0xff]  ;;  %4653 = vmatpush.msra.mxu2 %v4030_v7 }
 0x43e   : > { %v3898_v10 = vld [vmem:[%s11089_s3 + $0x1000] sm:$0xff]  ;;  %4672 = vmatpush.msra.mxu3 %v4098_v9  ;;  %v3407_v9 = vld [vmem:[%s11089_s3 + $0xa8] sm:$0xff] }
 0x43f   : > { %v3962_v1 = vld [vmem:[%s11089_s3 + $0x1200] sm:$0xff]  ;;  %4614 = vmatpush.msra.mxu0 %v3898_v10 }
 0x440   : > { %v4026_v11 = vld [vmem:[%s11089_s3 + $0x1400] sm:$0xff]  ;;  %4634 = vmatpush.msra.mxu1 %v3962_v1 }
 0x441   : > { %v4094_v12 = vld [vmem:[%s11089_s3 + $0x1620] sm:$0xff]  ;;  %4654 = vmatpush.msra.mxu2 %v4026_v11  ;;  %4635 = vmatmul.f32.vlgmr.msra.gmra.mxu1 %v4414_v19 }
 0x442   : > { %v8296_v32 = vld.sshfl [vmem:[#allocation1] sm:$0xff pattern:$0x73625140]  ;;  %4673 = vmatpush.msra.mxu3 %v4094_v12  ;;  %4655 = vmatmul.f32.vlgmr.msra.gmra.mxu2 %v4415_v14  ;;  %v3403_v12 = vld [vmem:[%s11089_s3 + $0x88] sm:$0xff] }
 0x443   : > { %v4214_v36 = vld [vmem:[%s11089_s3 + $0x19e0] sm:$0xff]  ;;  %4615 = vmatmul.f32.vlgmr.msra.gmra.mxu0 %v8296_v32 }
 0x444   : > { %v4278_v16 = vld [vmem:[%s11089_s3 + $0x1be0] sm:$0xff]  ;;  %4679 = vmatpush.msrb.mxu0 %v4214_v36 }
 0x445   : > { %v4342_v40 = vld [vmem:[%s11089_s3 + $0x1de0] sm:$0xff]  ;;  %4699 = vmatpush.msrb.mxu1 %v4278_v16 }
 0x446   : > { %v4090_v18 = vld [vmem:[%s11089_s3 + $0x1600] sm:$0xff]  ;;  %4719 = vmatpush.msrb.mxu2 %v4342_v40  ;;  %v3399_v40 = vld [vmem:[%s11089_s3 + $0x68] sm:$0xff] }
 0x447   : > { %v4210_v23 = vld [vmem:[%s11089_s3 + $0x19c0] sm:$0xff]  ;;  %4674 = vmatpush.msra.mxu3 %v4090_v18 }
 0x448   : > { %v4274_v3 = vld [vmem:[%s11089_s3 + $0x1bc0] sm:$0xff]  ;;  %4675 = vmatmul.f32.vlgmr.msra.gmra.mxu3 %v4416_v22  ;;  %4680 = vmatpush.msrb.mxu0 %v4210_v23  ;;  %v3395_v23 = vld [vmem:[%s11089_s3 + $0x48] sm:$0xff] }
 0x449   : > { %v4338_v28 = vld [vmem:[%s11089_s3 + $0x1dc0] sm:$0xff]  ;;  %4700 = vmatpush.msrb.mxu1 %v4274_v3  ;;  %4759 = vmatpush.msrb.mxu3 %v3447_v26 }
 0x44a   : > { %v4206_v21 = vld [vmem:[%s11089_s3 + $0x19a0] sm:$0xff]  ;;  %4720 = vmatpush.msrb.mxu2 %v4338_v28 }
 0x44b   : > { %v4270_v35 = vld [vmem:[%s11089_s3 + $0x1ba0] sm:$0xff]  ;;  %4681 = vmatpush.msrb.mxu0 %v4206_v21  ;;  %4760 = vmatpush.msrb.mxu3 %v3443_v33  ;;  %v3575_v33 = vld [vmem:[%s11089_s3 + $0x5e8] sm:$0xff] }
 0x44c   : > { %v4334_v8 = vld [vmem:[%s11089_s3 + $0x1da0] sm:$0xff]  ;;  %4701 = vmatpush.msrb.mxu1 %v4270_v35  ;;  %v4419_v35 = vld.sshfl [vmem:[#allocation1 + $0x30] sm:$0xff pattern:$0x73625140] }
 0x44d   : > { %v4202_v41 = vld [vmem:[%s11089_s3 + $0x1980] sm:$0xff]  ;;  %4721 = vmatpush.msrb.mxu2 %v4334_v8  ;;  %4761 = vmatpush.msrb.mxu3 %v3439_v34  ;;  %v3571_v34 = vld [vmem:[%s11089_s3 + $0x5c8] sm:$0xff] }
 0x44e   : > { %v4266_v37 = vld [vmem:[%s11089_s3 + $0x1b80] sm:$0xff]  ;;  %4682 = vmatpush.msrb.mxu0 %v4202_v41  ;;  %v3639_v41 = vld [vmem:[%s11089_s3 + $0x7e8] sm:$0xff] }
 0x44f   : > { %v4330_v24 = vld [vmem:[%s11089_s3 + $0x1d80] sm:$0xff]  ;;  %4702 = vmatpush.msrb.mxu1 %v4266_v37  ;;  %4762 = vmatpush.msrb.mxu3 %v3435_v43  ;;  %v4418_v37 = vld.sshfl [vmem:[#allocation1 + $0x28] sm:$0xff pattern:$0x73625140] }
 0x450   : > { %v4198_v39 = vld [vmem:[%s11089_s3 + $0x1960] sm:$0xff]  ;;  %4722 = vmatpush.msrb.mxu2 %v4330_v24  ;;  %v3567_v43 = vld [vmem:[%s11089_s3 + $0x5a8] sm:$0xff] }
 0x451   : > { %v4262_v46 = vld [vmem:[%s11089_s3 + $0x1b60] sm:$0xff]  ;;  %4683 = vmatpush.msrb.mxu0 %v4198_v39  ;;  %4763 = vmatpush.msrb.mxu3 %v3431_v47  ;;  %v3635_v39 = vld [vmem:[%s11089_s3 + $0x7c8] sm:$0xff] }
 0x452   : > { %v4326_v42 = vld [vmem:[%s11089_s3 + $0x1d60] sm:$0xff]  ;;  %4703 = vmatpush.msrb.mxu1 %v4262_v46  ;;  %v3563_v47 = vld [vmem:[%s11089_s3 + $0x588] sm:$0xff] }
 0x453   : > { %v4194_v44 = vld [vmem:[%s11089_s3 + $0x1940] sm:$0xff]  ;;  %4723 = vmatpush.msrb.mxu2 %v4326_v42  ;;  %4764 = vmatpush.msrb.mxu3 %v3427_v20  ;;  %v3391_v42 = vld [vmem:[%s11089_s3 + $0x28] sm:$0xff] }
 0x454   : > { %v4258_v45 = vld [vmem:[%s11089_s3 + $0x1b40] sm:$0xff]  ;;  %4684 = vmatpush.msrb.mxu0 %v4194_v44  ;;  %v3631_v44 = vld [vmem:[%s11089_s3 + $0x7a8] sm:$0xff] }
 0x455   : > { %v4322_v38 = vld [vmem:[%s11089_s3 + $0x1d40] sm:$0xff]  ;;  %4704 = vmatpush.msrb.mxu1 %v4258_v45  ;;  %4765 = vmatpush.msrb.mxu3 %v3423_v51  ;;  %v3559_v20 = vld [vmem:[%s11089_s3 + $0x568] sm:$0xff] }
 0x456   : > { %v4190_v30 = vld [vmem:[%s11089_s3 + $0x1920] sm:$0xff]  ;;  %4724 = vmatpush.msrb.mxu2 %v4322_v38  ;;  %v3387_v38 = vld [vmem:[%s11089_s3 + $0x8] sm:$0xff] }
 0x457   : > { %v4254_v48 = vld [vmem:[%s11089_s3 + $0x1b20] sm:$0xff]  ;;  %4685 = vmatpush.msrb.mxu0 %v4190_v30  ;;  %4766 = vmatpush.msrb.mxu3 %v3419_v53  ;;  %v3627_v30 = vld [vmem:[%s11089_s3 + $0x788] sm:$0xff] }
 0x458   : > { %v4318_v13 = vld [vmem:[%s11089_s3 + $0x1d20] sm:$0xff]  ;;  %4705 = vmatpush.msrb.mxu1 %v4254_v48  ;;  %v3555_v51 = vld [vmem:[%s11089_s3 + $0x548] sm:$0xff] }
 0x459   : > { %v4186_v29 = vld [vmem:[%s11089_s3 + $0x1900] sm:$0xff]  ;;  %4725 = vmatpush.msrb.mxu2 %v4318_v13  ;;  %4767 = vmatpush.msrb.mxu3 %v3415_v55  ;;  %v3703_v13 = vld [vmem:[%s11089_s3 + $0x9e8] sm:$0xff] }
 0x45a   : > { %v4250_v50 = vld [vmem:[%s11089_s3 + $0x1b00] sm:$0xff]  ;;  %4686 = vmatpush.msrb.mxu0 %v4186_v29  ;;  %v3623_v29 = vld [vmem:[%s11089_s3 + $0x768] sm:$0xff] }
 0x45b   : > { %v4314_v49 = vld [vmem:[%s11089_s3 + $0x1d00] sm:$0xff]  ;;  %4706 = vmatpush.msrb.mxu1 %v4250_v50  ;;  %4768 = vmatpush.msrb.mxu3 %v3411_v63  ;;  %v3551_v53 = vld [vmem:[%s11089_s3 + $0x528] sm:$0xff] }
 0x45c   : > { %v4182_v15 = vld [vmem:[%s11089_s3 + $0x18e0] sm:$0xff]  ;;  %4726 = vmatpush.msrb.mxu2 %v4314_v49  ;;  %v3699_v49 = vld [vmem:[%s11089_s3 + $0x9c8] sm:$0xff] }
 0x45d   : > { %v4246_v27 = vld [vmem:[%s11089_s3 + $0x1ae0] sm:$0xff]  ;;  %4687 = vmatpush.msrb.mxu0 %v4182_v15  ;;  %4769 = vmatpush.msrb.mxu3 %v3407_v9  ;;  %v3619_v15 = vld [vmem:[%s11089_s3 + $0x748] sm:$0xff] }
 0x45e   : > { %v4310_v52 = vld [vmem:[%s11089_s3 + $0x1ce0] sm:$0xff]  ;;  %4707 = vmatpush.msrb.mxu1 %v4246_v27  ;;  %v3547_v55 = vld [vmem:[%s11089_s3 + $0x508] sm:$0xff] }
 0x45f   : > { %v4178_v54 = vld [vmem:[%s11089_s3 + $0x18c0] sm:$0xff]  ;;  %4727 = vmatpush.msrb.mxu2 %v4310_v52  ;;  %4770 = vmatpush.msrb.mxu3 %v3403_v12  ;;  %v3695_v52 = vld [vmem:[%s11089_s3 + $0x9a8] sm:$0xff] }
 0x460   : > { %v4242_v17 = vld [vmem:[%s11089_s3 + $0x1ac0] sm:$0xff]  ;;  %4688 = vmatpush.msrb.mxu0 %v4178_v54  ;;  %v3615_v54 = vld [vmem:[%s11089_s3 + $0x728] sm:$0xff] }
 0x461   : > { %v4306_v31 = vld [vmem:[%s11089_s3 + $0x1cc0] sm:$0xff]  ;;  %4708 = vmatpush.msrb.mxu1 %v4242_v17  ;;  %4771 = vmatpush.msrb.mxu3 %v3399_v40  ;;  %v3543_v63 = vld [vmem:[%s11089_s3 + $0x4e8] sm:$0xff] }
 0x462   : > { %v4174_v60 = vld [vmem:[%s11089_s3 + $0x18a0] sm:$0xff]  ;;  %4728 = vmatpush.msrb.mxu2 %v4306_v31  ;;  %v3691_v31 = vld [vmem:[%s11089_s3 + $0x988] sm:$0xff] }
 0x463   : > { %v4238_v25 = vld [vmem:[%s11089_s3 + $0x1aa0] sm:$0xff]  ;;  %4689 = vmatpush.msrb.mxu0 %v4174_v60  ;;  %4772 = vmatpush.msrb.mxu3 %v3395_v23  ;;  %v3611_v60 = vld [vmem:[%s11089_s3 + $0x708] sm:$0xff] }
 0x464   : > { %v4302_v62 = vld [vmem:[%s11089_s3 + $0x1ca0] sm:$0xff]  ;;  %4709 = vmatpush.msrb.mxu1 %v4238_v25  ;;  %v3539_v9 = vld [vmem:[%s11089_s3 + $0x4c8] sm:$0xff] }
 0x465   : > { %v4170_v61 = vld [vmem:[%s11089_s3 + $0x1880] sm:$0xff]  ;;  %4729 = vmatpush.msrb.mxu2 %v4302_v62  ;;  %4773 = vmatpush.msrb.mxu3 %v3391_v42  ;;  %v3687_v62 = vld [vmem:[%s11089_s3 + $0x968] sm:$0xff] }
 0x466   : > { %v4234_v0 = vld [vmem:[%s11089_s3 + $0x1a80] sm:$0xff]  ;;  %4690 = vmatpush.msrb.mxu0 %v4170_v61  ;;  %v3607_v61 = vld [vmem:[%s11089_s3 + $0x6e8] sm:$0xff] }
 0x467   : > { %v4298_v7 = vld [vmem:[%s11089_s3 + $0x1c80] sm:$0xff]  ;;  %4710 = vmatpush.msrb.mxu1 %v4234_v0  ;;  %4774 = vmatpush.msrb.mxu3 %v3387_v38  ;;  %v3511_v12 = vld [vmem:[%s11089_s3 + $0x3e8] sm:$0xff] }
 0x468   : > { %v4166_v10 = vld [vmem:[%s11089_s3 + $0x1860] sm:$0xff]  ;;  %4730 = vmatpush.msrb.mxu2 %v4298_v7  ;;  %v3683_v7 = vld [vmem:[%s11089_s3 + $0x948] sm:$0xff]  ;;  %4775 = vmatmul.f32.vlgmr.msrb.gmra.mxu3 %v8073_v57 }
 0x469   : > { %v4230_v1 = vld [vmem:[%s11089_s3 + $0x1a60] sm:$0xff]  ;;  %4691 = vmatpush.msrb.mxu0 %v4166_v10  ;;  %4839 = vmatpush.msra.mxu3 %v3703_v13  ;;  %v3603_v10 = vld [vmem:[%s11089_s3 + $0x6c8] sm:$0xff] }
 0x46a   : > { %v4294_v11 = vld [vmem:[%s11089_s3 + $0x1c60] sm:$0xff]  ;;  %4711 = vmatpush.msrb.mxu1 %v4230_v1  ;;  %v4420_v1 = vld.sshfl [vmem:[#allocation1 + $0x38] sm:$0xff pattern:$0x73625140]  ;;  %v3507_v40 = vld [vmem:[%s11089_s3 + $0x3c8] sm:$0xff] }
 0x46b   : > { %v4162_v14 = vld [vmem:[%s11089_s3 + $0x1840] sm:$0xff]  ;;  %4731 = vmatpush.msrb.mxu2 %v4294_v11  ;;  %4840 = vmatpush.msra.mxu3 %v3699_v49  ;;  %v3679_v11 = vld [vmem:[%s11089_s3 + $0x928] sm:$0xff] }
 0x46c   : > { %v4226_v36 = vld [vmem:[%s11089_s3 + $0x1a40] sm:$0xff]  ;;  %4692 = vmatpush.msrb.mxu0 %v4162_v14  ;;  %v3535_v14 = vld [vmem:[%s11089_s3 + $0x4a8] sm:$0xff] }
 0x46d   : > { %v4290_v16 = vld [vmem:[%s11089_s3 + $0x1c40] sm:$0xff]  ;;  %4712 = vmatpush.msrb.mxu1 %v4226_v36  ;;  %4841 = vmatpush.msra.mxu3 %v3695_v52  ;;  %v3599_v36 = vld [vmem:[%s11089_s3 + $0x6a8] sm:$0xff] }
 0x46e   : > { %v4158_v18 = vld [vmem:[%s11089_s3 + $0x1820] sm:$0xff]  ;;  %4732 = vmatpush.msrb.mxu2 %v4290_v16  ;;  %v3675_v16 = vld [vmem:[%s11089_s3 + $0x908] sm:$0xff] }
 0x46f   : > { %v4222_v19 = vld [vmem:[%s11089_s3 + $0x1a20] sm:$0xff]  ;;  %4693 = vmatpush.msrb.mxu0 %v4158_v18  ;;  %4842 = vmatpush.msra.mxu3 %v3691_v31  ;;  %v3531_v18 = vld [vmem:[%s11089_s3 + $0x488] sm:$0xff] }
 0x470   : > { %v4286_v22 = vld [vmem:[%s11089_s3 + $0x1c20] sm:$0xff]  ;;  %4713 = vmatpush.msrb.mxu1 %v4222_v19  ;;  %v3595_v19 = vld [vmem:[%s11089_s3 + $0x688] sm:$0xff] }
 0x471   : > { %v4154_v3 = vld [vmem:[%s11089_s3 + $0x1800] sm:$0xff]  ;;  %4733 = vmatpush.msrb.mxu2 %v4286_v22  ;;  %4843 = vmatpush.msra.mxu3 %v3687_v62  ;;  %v3671_v22 = vld [vmem:[%s11089_s3 + $0x8e8] sm:$0xff] }
 0x472   : > { %v4218_v28 = vld [vmem:[%s11089_s3 + $0x1a00] sm:$0xff]  ;;  %4694 = vmatpush.msrb.mxu0 %v4154_v3  ;;  %v3503_v23 = vld [vmem:[%s11089_s3 + $0x3a8] sm:$0xff] }
 0x473   : > { %v4282_v26 = vld [vmem:[%s11089_s3 + $0x1c00] sm:$0xff]  ;;  %4714 = vmatpush.msrb.mxu1 %v4218_v28  ;;  %4844 = vmatpush.msra.mxu3 %v3683_v7  ;;  %v3527_v3 = vld [vmem:[%s11089_s3 + $0x468] sm:$0xff] }
 0x474   : > { %v8488_v21 = vld.sshfl [vmem:[#allocation1 + $0x20] sm:$0xff pattern:$0x73625140]  ;;  %4734 = vmatpush.msrb.mxu2 %v4282_v26  ;;  %4715 = vmatmul.f32.vlgmr.msrb.gmra.mxu1 %v4418_v37  ;;  %v3591_v28 = vld [vmem:[%s11089_s3 + $0x668] sm:$0xff] }
 0x475   : > { %v4382_v8 = vld [vmem:[%s11089_s3 + $0x1f20] sm:$0xff]  ;;  %4695 = vmatmul.f32.vlgmr.msrb.gmra.mxu0 %v8488_v21  ;;  %4735 = vmatmul.f32.vlgmr.msrb.gmra.mxu2 %v4419_v35  ;;  %v3667_v26 = vld [vmem:[%s11089_s3 + $0x8c8] sm:$0xff] }
 0x476   : > { %v4378_v24 = vld [vmem:[%s11089_s3 + $0x1f00] sm:$0xff]  ;;  %4745 = vmatpush.msra.mxu0 %v4382_v8  ;;  %4799 = vmatpush.msra.mxu1 %v3575_v33  ;;  %v3499_v35 = vld [vmem:[%s11089_s3 + $0x388] sm:$0xff] }
 0x477   : > { %4819 = vmatpush.msra.mxu2 %v3639_v41  ;;  %v4374_v46 = vld [vmem:[%s11089_s3 + $0x1ee0] sm:$0xff]  ;;  %4845 = vmatpush.msra.mxu3 %v3679_v11  ;;  %v3523_v8 = vld [vmem:[%s11089_s3 + $0x448] sm:$0xff] }
 0x478   : > { %4746 = vmatpush.msra.mxu0 %v4378_v24  ;;  %4800 = vmatpush.msra.mxu1 %v3571_v34  ;;  %v4370_v45 = vld [vmem:[%s11089_s3 + $0x1ec0] sm:$0xff]  ;;  %v3587_v33 = vld [vmem:[%s11089_s3 + $0x648] sm:$0xff] }
 0x479   : > { %4820 = vmatpush.msra.mxu2 %v3635_v39  ;;  %v4366_v48 = vld [vmem:[%s11089_s3 + $0x1ea0] sm:$0xff]  ;;  %4846 = vmatpush.msra.mxu3 %v3675_v16  ;;  %v3663_v41 = vld [vmem:[%s11089_s3 + $0x8a8] sm:$0xff] }
 0x47a   : > { %4747 = vmatpush.msra.mxu0 %v4374_v46  ;;  %4801 = vmatpush.msra.mxu1 %v3567_v43  ;;  %v4362_v50 = vld [vmem:[%s11089_s3 + $0x1e80] sm:$0xff]  ;;  %v3495_v37 = vld [vmem:[%s11089_s3 + $0x368] sm:$0xff] }
 0x47b   : > { %4821 = vmatpush.msra.mxu2 %v3631_v44  ;;  %v4358_v27 = vld [vmem:[%s11089_s3 + $0x1e60] sm:$0xff]  ;;  %4847 = vmatpush.msra.mxu3 %v3671_v22  ;;  %v3519_v24 = vld [vmem:[%s11089_s3 + $0x428] sm:$0xff] }
 0x47c   : > { %4748 = vmatpush.msra.mxu0 %v4370_v45  ;;  %4802 = vmatpush.msra.mxu1 %v3563_v47  ;;  %v4354_v17 = vld [vmem:[%s11089_s3 + $0x1e40] sm:$0xff]  ;;  %v3583_v34 = vld [vmem:[%s11089_s3 + $0x628] sm:$0xff] }
 0x47d   : > { %4822 = vmatpush.msra.mxu2 %v3627_v30  ;;  %v4350_v25 = vld [vmem:[%s11089_s3 + $0x1e20] sm:$0xff]  ;;  %4848 = vmatpush.msra.mxu3 %v3667_v26  ;;  %v3659_v39 = vld [vmem:[%s11089_s3 + $0x888] sm:$0xff] }
 0x47e   : > { %4749 = vmatpush.msra.mxu0 %v4366_v48  ;;  %4803 = vmatpush.msra.mxu1 %v3559_v20  ;;  %v4346_v0 = vld [vmem:[%s11089_s3 + $0x1e00] sm:$0xff]  ;;  %v3491_v46 = vld [vmem:[%s11089_s3 + $0x348] sm:$0xff] }
 0x47f   : > { %4823 = vmatpush.msra.mxu2 %v3623_v29  ;;  %v3515_v42 = vld [vmem:[%s11089_s3 + $0x408] sm:$0xff]  ;;  %4849 = vmatpush.msra.mxu3 %v3663_v41 }
 0x480   : > { %4750 = vmatpush.msra.mxu0 %v4362_v50  ;;  %4804 = vmatpush.msra.mxu1 %v3555_v51  ;;  %v3579_v43 = vld [vmem:[%s11089_s3 + $0x608] sm:$0xff] }
 0x481   : > { %4824 = vmatpush.msra.mxu2 %v3619_v15  ;;  %v3831_v44 = vld [vmem:[%s11089_s3 + $0xde8] sm:$0xff]  ;;  %4850 = vmatpush.msra.mxu3 %v3659_v39 }
 0x482   : > { %4751 = vmatpush.msra.mxu0 %v4358_v27  ;;  %4805 = vmatpush.msra.mxu1 %v3551_v53  ;;  %v3487_v45 = vld [vmem:[%s11089_s3 + $0x328] sm:$0xff] }
 0x483   : > { %4825 = vmatpush.msra.mxu2 %v3615_v54  ;;  %v3895_v38 = vld [vmem:[%s11089_s3 + $0xfe8] sm:$0xff] }
 0x484   : > { %4752 = vmatpush.msra.mxu0 %v4354_v17  ;;  %4806 = vmatpush.msra.mxu1 %v3547_v55  ;;  %v3827_v47 = vld [vmem:[%s11089_s3 + $0xdc8] sm:$0xff] }
 0x485   : > { %4826 = vmatpush.msra.mxu2 %v3611_v60  ;;  %v3655_v30 = vld [vmem:[%s11089_s3 + $0x868] sm:$0xff] }
 0x486   : > { %4753 = vmatpush.msra.mxu0 %v4350_v25  ;;  %4807 = vmatpush.msra.mxu1 %v3543_v63  ;;  %v3483_v48 = vld [vmem:[%s11089_s3 + $0x308] sm:$0xff] }
 0x487   : > { %4827 = vmatpush.msra.mxu2 %v3607_v61  ;;  %v3891_v13 = vld [vmem:[%s11089_s3 + $0xfc8] sm:$0xff]  ;;  %4851 = vmatpush.msra.mxu3 %v3655_v30 }
 0x488   : > { %4754 = vmatpush.msra.mxu0 %v4346_v0  ;;  %4808 = vmatpush.msra.mxu1 %v3539_v9  ;;  %v3823_v20 = vld [vmem:[%s11089_s3 + $0xda8] sm:$0xff] }
 0x489   : > { %4828 = vmatpush.msra.mxu2 %v3603_v10  ;;  %5993 = vmatmul.msk.f32.vlgmr.msra.gmra.mxu0 %vm4436_vm15, %v4420_v1  ;;  %v3651_v29 = vld [vmem:[%s11089_s3 + $0x848] sm:$0xff] }
 0x48a   : > { %4779 = vmatpush.msrb.mxu0 %v3511_v12  ;;  %4809 = vmatpush.msra.mxu1 %v3535_v14  ;;  %v3479_v50 = vld [vmem:[%s11089_s3 + $0x2e8] sm:$0xff] }
 0x48b   : > { %4829 = vmatpush.msra.mxu2 %v3599_v36  ;;  %v3887_v49 = vld [vmem:[%s11089_s3 + $0xfa8] sm:$0xff]  ;;  %4852 = vmatpush.msra.mxu3 %v3651_v29 }
 0x48c   : > { %4780 = vmatpush.msrb.mxu0 %v3507_v40  ;;  %4810 = vmatpush.msra.mxu1 %v3531_v18  ;;  %v3819_v51 = vld [vmem:[%s11089_s3 + $0xd88] sm:$0xff] }
 0x48d   : > { %4830 = vmatpush.msra.mxu2 %v3595_v19  ;;  %v3647_v15 = vld [vmem:[%s11089_s3 + $0x828] sm:$0xff] }
 0x48e   : > { %4781 = vmatpush.msrb.mxu0 %v3503_v23  ;;  %4811 = vmatpush.msra.mxu1 %v3527_v3  ;;  %v3475_v27 = vld [vmem:[%s11089_s3 + $0x2c8] sm:$0xff]  ;;  %v4386_v3 = vld [vmem:[%s11090_s4] sm:$0xf] }
 0x48f   : > { %4831 = vmatpush.msra.mxu2 %v3591_v28  ;;  %v3883_v52 = vld [vmem:[%s11089_s3 + $0xf88] sm:$0xff]  ;;  %4853 = vmatpush.msra.mxu3 %v3647_v15 }
 0x490   : > { %4782 = vmatpush.msrb.mxu0 %v3499_v35  ;;  %4812 = vmatpush.msra.mxu1 %v3523_v8  ;;  %v3815_v53 = vld [vmem:[%s11089_s3 + $0xd68] sm:$0xff] }
 0x491   : > { %4832 = vmatpush.msra.mxu2 %v3587_v33  ;;  %v3643_v54 = vld [vmem:[%s11089_s3 + $0x808] sm:$0xff] }
 0x492   : > { %4783 = vmatpush.msrb.mxu0 %v3495_v37  ;;  %4813 = vmatpush.msra.mxu1 %v3519_v24  ;;  %v3471_v17 = vld [vmem:[%s11089_s3 + $0x2a8] sm:$0xff]  ;;  %v4388_v37 = vperm.slane %v4386_v3, 0 }
 0x493   : > { %4833 = vmatpush.msra.mxu2 %v3583_v34  ;;  %v3879_v31 = vld [vmem:[%s11089_s3 + $0xf68] sm:$0xff]  ;;  %4854 = vmatpush.msra.mxu3 %v3643_v54 }
 0x494   : > { %4784 = vmatpush.msrb.mxu0 %v3491_v46  ;;  %4814 = vmatpush.msra.mxu1 %v3515_v42  ;;  %v3811_v55 = vld [vmem:[%s11089_s3 + $0xd48] sm:$0xff] }
 0x495   : > { %4834 = vmatpush.msra.mxu2 %v3579_v43  ;;  %v3467_v60 = vld [vmem:[%s11089_s3 + $0x288] sm:$0xff]  ;;  %v4456_v43 = vpop.f32.mrf.mxu0  ;;  %4815 = vmatmul.f32.vlgmr.msra.gmra.mxu1 %v8071_v56 }
 0x496   : > { %4879 = vmatpush.msrb.mxu1 %v3831_v44  ;;  %4785 = vmatpush.msrb.mxu0 %v3487_v45  ;;  %v3875_v25 = vld [vmem:[%s11089_s3 + $0xf48] sm:$0xff] }
 0x497   : > { %4899 = vmatpush.msrb.mxu2 %v3895_v38  ;;  %v3807_v62 = vld [vmem:[%s11089_s3 + $0xd28] sm:$0xff]  ;;  %v4457_v38 = vadd.f32 %v4456_v43, %v4388_v37  ;;  %4855 = vmatmul.f32.vlgmr.msra.gmra.mxu3 %v8097_v2 }
 0x498   : > { %4880 = vmatpush.msrb.mxu1 %v3827_v47  ;;  %4786 = vmatpush.msrb.mxu0 %v3483_v48  ;;  %v3959_v63 = vld [vmem:[%s11089_s3 + $0x11e8] sm:$0xff]  ;;  %v4476_v47 = vpop.f32.mrf.mxu1 }
 0x499   : > { %4900 = vmatpush.msrb.mxu2 %v3891_v13  ;;  %v3463_v61 = vld [vmem:[%s11089_s3 + $0x268] sm:$0xff]  ;;  %4919 = vmatpush.msrb.mxu3 %v3959_v63  ;;  %v4477_v29 = vadd.f32 %v4476_v47, %v4457_v38 }
 0x49a   : > { %4881 = vmatpush.msrb.mxu1 %v3823_v20  ;;  %4787 = vmatpush.msrb.mxu0 %v3479_v50  ;;  %v3871_v0 = vld [vmem:[%s11089_s3 + $0xf28] sm:$0xff] }
 0x49b   : > { %4901 = vmatpush.msrb.mxu2 %v3887_v49  ;;  %v3803_v7 = vld [vmem:[%s11089_s3 + $0xd08] sm:$0xff] }
 0x49c   : > { %4882 = vmatpush.msrb.mxu1 %v3819_v51  ;;  %4788 = vmatpush.msrb.mxu0 %v3475_v27  ;;  %v3955_v9 = vld [vmem:[%s11089_s3 + $0x11c8] sm:$0xff]  ;;  %v4496_v51 = vpop.f32.mrf.mxu2 }
 0x49d   : > { %4902 = vmatpush.msrb.mxu2 %v3883_v52  ;;  %v3459_v10 = vld [vmem:[%s11089_s3 + $0x248] sm:$0xff]  ;;  %4920 = vmatpush.msrb.mxu3 %v3955_v9  ;;  %v4497_v52 = vadd.f32 %v4496_v51, %v4477_v29 }
 0x49e   : > { %4883 = vmatpush.msrb.mxu1 %v3815_v53  ;;  %4789 = vmatpush.msrb.mxu0 %v3471_v17  ;;  %v3867_v1 = vld [vmem:[%s11089_s3 + $0xf08] sm:$0xff] }
 0x49f   : > { %4903 = vmatpush.msrb.mxu2 %v3879_v31  ;;  %v3799_v11 = vld [vmem:[%s11089_s3 + $0xce8] sm:$0xff]  ;;  %v4516_v31 = vpop.f32.mrf.mxu3 }
 0x4a0   : > { %4884 = vmatpush.msrb.mxu1 %v3811_v55  ;;  %4790 = vmatpush.msrb.mxu0 %v3467_v60  ;;  %v3951_v12 = vld [vmem:[%s11089_s3 + $0x11a8] sm:$0xff] }
 0x4a1   : > { %4904 = vmatpush.msrb.mxu2 %v3875_v25  ;;  %v3455_v14 = vld [vmem:[%s11089_s3 + $0x228] sm:$0xff]  ;;  %4921 = vmatpush.msrb.mxu3 %v3951_v12  ;;  %v4517_v25 = vadd.f32 %v4516_v31, %v4497_v52 }
 0x4a2   : > { %4885 = vmatpush.msrb.mxu1 %v3807_v62  ;;  %4791 = vmatpush.msrb.mxu0 %v3463_v61  ;;  %v3863_v36 = vld [vmem:[%s11089_s3 + $0xee8] sm:$0xff] }
 0x4a3   : > { %4905 = vmatpush.msrb.mxu2 %v3871_v0  ;;  %v3795_v16 = vld [vmem:[%s11089_s3 + $0xcc8] sm:$0xff] }
 0x4a4   : > { %4886 = vmatpush.msrb.mxu1 %v3803_v7  ;;  %4792 = vmatpush.msrb.mxu0 %v3459_v10  ;;  %v3947_v40 = vld [vmem:[%s11089_s3 + $0x1188] sm:$0xff]  ;;  %v4536_v7 = vpop.f32.mrf.mxu0 }
 0x4a5   : > { %4906 = vmatpush.msrb.mxu2 %v3867_v1  ;;  %v3451_v18 = vld [vmem:[%s11089_s3 + $0x208] sm:$0xff]  ;;  %4922 = vmatpush.msrb.mxu3 %v3947_v40  ;;  %v4537_v1 = vadd.f32 %v4536_v7, %v4517_v25 }
 0x4a6   : > { %4887 = vmatpush.msrb.mxu1 %v3799_v11  ;;  %v3859_v19 = vld [vmem:[%s11089_s3 + $0xec8] sm:$0xff]  ;;  %4793 = vmatpush.msrb.mxu0 %v3455_v14  ;;  %v4556_v14 = vpop.f32.mrf.mxu1 }
 0x4a7   : > { %4907 = vmatpush.msrb.mxu2 %v3863_v36  ;;  %v3767_v22 = vld [vmem:[%s11089_s3 + $0xbe8] sm:$0xff]  ;;  %v4557_v40 = vadd.f32 %v4556_v14, %v4537_v1 }
 0x4a8   : > { %v3791_v23 = vld [vmem:[%s11089_s3 + $0xca8] sm:$0xff]  ;;  %4888 = vmatpush.msrb.mxu1 %v3795_v16  ;;  %4794 = vmatpush.msrb.mxu0 %v3451_v18  ;;  %v4576_v18 = vpop.f32.mrf.mxu2 }
 0x4a9   : > { %v3855_v28 = vld [vmem:[%s11089_s3 + $0xea8] sm:$0xff]  ;;  %4908 = vmatpush.msrb.mxu2 %v3859_v19  ;;  %4795 = vmatmul.f32.vlgmr.msrb.gmra.mxu0 %v8075_v58 }
 0x4aa   : > { %v3943_v26 = vld [vmem:[%s11089_s3 + $0x1168] sm:$0xff]  ;;  %4859 = vmatpush.msra.mxu0 %v3767_v22  ;;  %4889 = vmatpush.msrb.mxu1 %v3791_v23 }
 0x4ab   : > { %v3763_v35 = vld [vmem:[%s11089_s3 + $0xbc8] sm:$0xff]  ;;  %4909 = vmatpush.msrb.mxu2 %v3855_v28  ;;  %4923 = vmatpush.msrb.mxu3 %v3943_v26  ;;  %v4577_v28 = vadd.f32 %v4576_v18, %v4557_v40 }
 0x4ac   : > { %v3787_v8 = vld [vmem:[%s11089_s3 + $0xc88] sm:$0xff]  ;;  %4860 = vmatpush.msra.mxu0 %v3763_v35  ;;  %4835 = vmatmul.f32.vlgmr.msra.gmra.mxu2 %v8077_v59 }
 0x4ad   : > { %v3851_v33 = vld [vmem:[%s11089_s3 + $0xe88] sm:$0xff]  ;;  %4890 = vmatpush.msrb.mxu1 %v3787_v8  ;;  %v4596_v8 = vpop.f32.mrf.mxu3 }
 0x4ae   : > { %v3939_v41 = vld [vmem:[%s11089_s3 + $0x1148] sm:$0xff]  ;;  %4910 = vmatpush.msrb.mxu2 %v3851_v33  ;;  %v8938_v37 = vadd.f32 %v4596_v8, %v4577_v28 }
 0x4af   : > { %v3759_v24 = vld [vmem:[%s11089_s3 + $0xba8] sm:$0xff]  ;;  %4924 = vmatpush.msrb.mxu3 %v3939_v41 }
 0x4b0   : > { %v3783_v34 = vld [vmem:[%s11089_s3 + $0xc68] sm:$0xff]  ;;  %4861 = vmatpush.msra.mxu0 %v3759_v24 }
 0x4b1   : > { %v3847_v39 = vld [vmem:[%s11089_s3 + $0xe68] sm:$0xff]  ;;  %4891 = vmatpush.msrb.mxu1 %v3783_v34 }
 0x4b2   : > { %v3755_v46 = vld [vmem:[%s11089_s3 + $0xb88] sm:$0xff]  ;;  %4911 = vmatpush.msrb.mxu2 %v3847_v39 }
 0x4b3   : > { %v3779_v42 = vld [vmem:[%s11089_s3 + $0xc48] sm:$0xff]  ;;  %4862 = vmatpush.msra.mxu0 %v3755_v46 }
 0x4b4   : > { %v3843_v44 = vld [vmem:[%s11089_s3 + $0xe48] sm:$0xff]  ;;  %4892 = vmatpush.msrb.mxu1 %v3779_v42 }
 0x4b5   : > { %v3935_v45 = vld [vmem:[%s11089_s3 + $0x1128] sm:$0xff]  ;;  %4912 = vmatpush.msrb.mxu2 %v3843_v44 }
 0x4b6   : > { %v3751_v30 = vld [vmem:[%s11089_s3 + $0xb68] sm:$0xff]  ;;  %4925 = vmatpush.msrb.mxu3 %v3935_v45 }
 0x4b7   : > { %v3775_v48 = vld [vmem:[%s11089_s3 + $0xc28] sm:$0xff]  ;;  %4863 = vmatpush.msra.mxu0 %v3751_v30 }
 0x4b8   : > { %v3839_v13 = vld [vmem:[%s11089_s3 + $0xe28] sm:$0xff]  ;;  %4893 = vmatpush.msrb.mxu1 %v3775_v48 }
 0x4b9   : > { %v3931_v20 = vld [vmem:[%s11089_s3 + $0x1108] sm:$0xff]  ;;  %4913 = vmatpush.msrb.mxu2 %v3839_v13 }
 0x4ba   : > { %v3747_v50 = vld [vmem:[%s11089_s3 + $0xb48] sm:$0xff]  ;;  %4926 = vmatpush.msrb.mxu3 %v3931_v20 }
 0x4bb   : > { %v3771_v49 = vld [vmem:[%s11089_s3 + $0xc08] sm:$0xff]  ;;  %4864 = vmatpush.msra.mxu0 %v3747_v50 }
 0x4bc   : > { %v3835_v15 = vld [vmem:[%s11089_s3 + $0xe08] sm:$0xff]  ;;  %4894 = vmatpush.msrb.mxu1 %v3771_v49 }
 0x4bd   : > { %v4087_v27 = vld [vmem:[%s11089_s3 + $0x15e8] sm:$0xff]  ;;  %4914 = vmatpush.msrb.mxu2 %v3835_v15  ;;  %4895 = vmatmul.f32.vlgmr.msrb.gmra.mxu1 %v8095_v4 }
 0x4be   : > { %v3743_v53 = vld [vmem:[%s11089_s3 + $0xb28] sm:$0xff]  ;;  %4959 = vmatpush.msra.mxu1 %v4087_v27  ;;  %4915 = vmatmul.f32.vlgmr.msrb.gmra.mxu2 %v8099_v5 }
 0x4bf   : > { %v4151_v54 = vld [vmem:[%s11089_s3 + $0x17e8] sm:$0xff]  ;;  %4865 = vmatpush.msra.mxu0 %v3743_v53 }
 0x4c0   : > { %v4083_v17 = vld [vmem:[%s11089_s3 + $0x15c8] sm:$0xff]  ;;  %4979 = vmatpush.msra.mxu2 %v4151_v54 }
 0x4c1   : > { %v3739_v55 = vld [vmem:[%s11089_s3 + $0xb08] sm:$0xff]  ;;  %4960 = vmatpush.msra.mxu1 %v4083_v17 }
 0x4c2   : > { %v3927_v60 = vld [vmem:[%s11089_s3 + $0x10e8] sm:$0xff]  ;;  %4866 = vmatpush.msra.mxu0 %v3739_v55 }
 0x4c3   : > { %v4147_v62 = vld [vmem:[%s11089_s3 + $0x17c8] sm:$0xff]  ;;  %4927 = vmatpush.msrb.mxu3 %v3927_v60 }
 0x4c4   : > { %v4079_v63 = vld [vmem:[%s11089_s3 + $0x15a8] sm:$0xff]  ;;  %4980 = vmatpush.msra.mxu2 %v4147_v62 }
 0x4c5   : > { %v3735_v61 = vld [vmem:[%s11089_s3 + $0xae8] sm:$0xff]  ;;  %4961 = vmatpush.msra.mxu1 %v4079_v63  ;;  %v4656_v28 = vpop.f32.mrf.mxu2 }
 0x4c6   : > { %v3923_v0 = vld [vmem:[%s11089_s3 + $0x10c8] sm:$0xff]  ;;  %4867 = vmatpush.msra.mxu0 %v3735_v61 }
 0x4c7   : > { %v4143_v9 = vld [vmem:[%s11089_s3 + $0x17a8] sm:$0xff]  ;;  %4928 = vmatpush.msrb.mxu3 %v3923_v0  ;;  %v4616_v0 = vpop.f32.mrf.mxu0 }
 0x4c8   : > { %v4075_v10 = vld [vmem:[%s11089_s3 + $0x1588] sm:$0xff]  ;;  %4981 = vmatpush.msra.mxu2 %v4143_v9 }
 0x4c9   : > { %v3731_v11 = vld [vmem:[%s11089_s3 + $0xac8] sm:$0xff]  ;;  %4962 = vmatpush.msra.mxu1 %v4075_v10  ;;  %v4617_v10 = vadd.f32 %v4616_v0, %v8938_v37 }
 0x4ca   : > { %v4139_v12 = vld [vmem:[%s11089_s3 + $0x1788] sm:$0xff]  ;;  %4868 = vmatpush.msra.mxu0 %v3731_v11 }
 0x4cb   : > { %v3727_v36 = vld [vmem:[%s11089_s3 + $0xaa8] sm:$0xff]  ;;  %4982 = vmatpush.msra.mxu2 %v4139_v12 }
 0x4cc   : > { %v3919_v16 = vld [vmem:[%s11089_s3 + $0x10a8] sm:$0xff]  ;;  %4869 = vmatpush.msra.mxu0 %v3727_v36  ;;  %v4636_v36 = vpop.f32.mrf.mxu1 }
 0x4cd   : > { %v4071_v19 = vld [vmem:[%s11089_s3 + $0x1568] sm:$0xff]  ;;  %4929 = vmatpush.msrb.mxu3 %v3919_v16  ;;  %v4637_v18 = vadd.f32 %v4636_v36, %v4617_v10  ;;  %v3444_v10 = vld [vmem:[%s11089_s3 + $0x1d0] sm:$0xff] }
 0x4ce   : > { %v4135_v22 = vld [vmem:[%s11089_s3 + $0x1768] sm:$0xff]  ;;  %4963 = vmatpush.msra.mxu1 %v4071_v19  ;;  %v3440_v36 = vld [vmem:[%s11089_s3 + $0x1b0] sm:$0xff] }
 0x4cf   : > { %v3723_v23 = vld [vmem:[%s11089_s3 + $0xa88] sm:$0xff]  ;;  %4983 = vmatpush.msra.mxu2 %v4135_v22  ;;  %v9083_v8 = vadd.f32 %v4656_v28, %v4637_v18 }
 0x4d0   : > { %v3915_v3 = vld [vmem:[%s11089_s3 + $0x1088] sm:$0xff]  ;;  %4870 = vmatpush.msra.mxu0 %v3723_v23 }
 0x4d1   : > { %v4067_v26 = vld [vmem:[%s11089_s3 + $0x1548] sm:$0xff]  ;;  %4930 = vmatpush.msrb.mxu3 %v3915_v3 }
 0x4d2   : > { %v4131_v35 = vld [vmem:[%s11089_s3 + $0x1748] sm:$0xff]  ;;  %4964 = vmatpush.msra.mxu1 %v4067_v26 }
 0x4d3   : > { %v3719_v33 = vld [vmem:[%s11089_s3 + $0xa68] sm:$0xff]  ;;  %4984 = vmatpush.msra.mxu2 %v4131_v35 }
 0x4d4   : > { %v3911_v41 = vld [vmem:[%s11089_s3 + $0x1068] sm:$0xff]  ;;  %4871 = vmatpush.msra.mxu0 %v3719_v33 }
 0x4d5   : > { %v4063_v24 = vld [vmem:[%s11089_s3 + $0x1528] sm:$0xff]  ;;  %4931 = vmatpush.msrb.mxu3 %v3911_v41 }
 0x4d6   : > { %v4127_v34 = vld [vmem:[%s11089_s3 + $0x1728] sm:$0xff]  ;;  %4965 = vmatpush.msra.mxu1 %v4063_v24 }
 0x4d7   : > { %v3715_v39 = vld [vmem:[%s11089_s3 + $0xa48] sm:$0xff]  ;;  %4985 = vmatpush.msra.mxu2 %v4127_v34 }
 0x4d8   : > { %v3907_v46 = vld [vmem:[%s11089_s3 + $0x1048] sm:$0xff]  ;;  %4872 = vmatpush.msra.mxu0 %v3715_v39 }
 0x4d9   : > { %v4059_v42 = vld [vmem:[%s11089_s3 + $0x1508] sm:$0xff]  ;;  %4932 = vmatpush.msrb.mxu3 %v3907_v46 }
 0x4da   : > { %v4123_v43 = vld [vmem:[%s11089_s3 + $0x1708] sm:$0xff]  ;;  %4966 = vmatpush.msra.mxu1 %v4059_v42 }
 0x4db   : > { %v3711_v44 = vld [vmem:[%s11089_s3 + $0xa28] sm:$0xff]  ;;  %4986 = vmatpush.msra.mxu2 %v4123_v43 }
 0x4dc   : > { %v3903_v45 = vld [vmem:[%s11089_s3 + $0x1028] sm:$0xff]  ;;  %4873 = vmatpush.msra.mxu0 %v3711_v44 }
 0x4dd   : > { %v4055_v38 = vld [vmem:[%s11089_s3 + $0x14e8] sm:$0xff]  ;;  %4933 = vmatpush.msrb.mxu3 %v3903_v45 }
 0x4de   : > { %v4119_v47 = vld [vmem:[%s11089_s3 + $0x16e8] sm:$0xff]  ;;  %4967 = vmatpush.msra.mxu1 %v4055_v38 }
 0x4df   : > { %v3707_v30 = vld [vmem:[%s11089_s3 + $0xa08] sm:$0xff]  ;;  %4987 = vmatpush.msra.mxu2 %v4119_v47 }
 0x4e0   : > { %v3899_v48 = vld [vmem:[%s11089_s3 + $0x1008] sm:$0xff]  ;;  %4874 = vmatpush.msra.mxu0 %v3707_v30 }
 0x4e1   : > { %v4051_v13 = vld [vmem:[%s11089_s3 + $0x14c8] sm:$0xff]  ;;  %4934 = vmatpush.msrb.mxu3 %v3899_v48  ;;  %4875 = vmatmul.f32.vlgmr.msra.gmra.mxu0 %v8101_v6 }
 0x4e2   : > { %v4115_v20 = vld [vmem:[%s11089_s3 + $0x16c8] sm:$0xff]  ;;  %4968 = vmatpush.msra.mxu1 %v4051_v13  ;;  %4935 = vmatmul.f32.vlgmr.msrb.gmra.mxu3 %v8296_v32 }
 0x4e3   : > { %v4023_v29 = vld [vmem:[%s11089_s3 + $0x13e8] sm:$0xff]  ;;  %4988 = vmatpush.msra.mxu2 %v4115_v20 }
 0x4e4   : > { %v4215_v50 = vld [vmem:[%s11089_s3 + $0x19e8] sm:$0xff]  ;;  %4939 = vmatpush.msrb.mxu0 %v4023_v29 }
 0x4e5   : > { %v4047_v49 = vld [vmem:[%s11089_s3 + $0x14a8] sm:$0xff]  ;;  %4999 = vmatpush.msra.mxu3 %v4215_v50 }
 0x4e6   : > { %v4111_v51 = vld [vmem:[%s11089_s3 + $0x16a8] sm:$0xff]  ;;  %4969 = vmatpush.msra.mxu1 %v4047_v49 }
 0x4e7   : > { %v4019_v15 = vld [vmem:[%s11089_s3 + $0x13c8] sm:$0xff]  ;;  %4989 = vmatpush.msra.mxu2 %v4111_v51 }
 0x4e8   : > { %v4211_v27 = vld [vmem:[%s11089_s3 + $0x19c8] sm:$0xff]  ;;  %4940 = vmatpush.msrb.mxu0 %v4019_v15 }
 0x4e9   : > { %v4043_v52 = vld [vmem:[%s11089_s3 + $0x1488] sm:$0xff]  ;;  %5000 = vmatpush.msra.mxu3 %v4211_v27 }
 0x4ea   : > { %v4107_v53 = vld [vmem:[%s11089_s3 + $0x1688] sm:$0xff]  ;;  %4970 = vmatpush.msra.mxu1 %v4043_v52 }
 0x4eb   : > { %v4015_v32 = vld [vmem:[%s11089_s3 + $0x13a8] sm:$0xff]  ;;  %4990 = vmatpush.msra.mxu2 %v4107_v53 }
 0x4ec   : > { %v4207_v54 = vld [vmem:[%s11089_s3 + $0x19a8] sm:$0xff]  ;;  %4941 = vmatpush.msrb.mxu0 %v4015_v32 }
 0x4ed   : > { %v4039_v17 = vld [vmem:[%s11089_s3 + $0x1468] sm:$0xff]  ;;  %5001 = vmatpush.msra.mxu3 %v4207_v54 }
 0x4ee   : > { %v4103_v31 = vld [vmem:[%s11089_s3 + $0x1668] sm:$0xff]  ;;  %4971 = vmatpush.msra.mxu1 %v4039_v17 }
 0x4ef   : > { %v4011_v55 = vld [vmem:[%s11089_s3 + $0x1388] sm:$0xff]  ;;  %4991 = vmatpush.msra.mxu2 %v4103_v31 }
 0x4f0   : > { %v4203_v60 = vld [vmem:[%s11089_s3 + $0x1988] sm:$0xff]  ;;  %4942 = vmatpush.msrb.mxu0 %v4011_v55 }
 0x4f1   : > { %v4035_v25 = vld [vmem:[%s11089_s3 + $0x1448] sm:$0xff]  ;;  %5002 = vmatpush.msra.mxu3 %v4203_v60 }
 0x4f2   : > { %v4099_v62 = vld [vmem:[%s11089_s3 + $0x1648] sm:$0xff]  ;;  %4972 = vmatpush.msra.mxu1 %v4035_v25 }
 0x4f3   : > { %v4007_v63 = vld [vmem:[%s11089_s3 + $0x1368] sm:$0xff]  ;;  %4992 = vmatpush.msra.mxu2 %v4099_v62  ;;  %v6039_v62 = vld.sshfl [vmem:[#allocation1 + $0x18] sm:$0xff pattern:$0x73625140] }
 0x4f4   : > { %v4199_v61 = vld [vmem:[%s11089_s3 + $0x1968] sm:$0xff]  ;;  %4943 = vmatpush.msrb.mxu0 %v4007_v63 }
 0x4f5   : > { %v4031_v7 = vld [vmem:[%s11089_s3 + $0x1428] sm:$0xff]  ;;  %5003 = vmatpush.msra.mxu3 %v4199_v61  ;;  %v3448_v61 = vld [vmem:[%s11089_s3 + $0x1f0] sm:$0xff] }
 0x4f6   : > { %v4095_v9 = vld [vmem:[%s11089_s3 + $0x1628] sm:$0xff]  ;;  %4973 = vmatpush.msra.mxu1 %v4031_v7 }
 0x4f7   : > { %v4003_v1 = vld [vmem:[%s11089_s3 + $0x1348] sm:$0xff]  ;;  %4993 = vmatpush.msra.mxu2 %v4095_v9 }
 0x4f8   : > { %v4195_v11 = vld [vmem:[%s11089_s3 + $0x1948] sm:$0xff]  ;;  %4944 = vmatpush.msrb.mxu0 %v4003_v1  ;;  %v3512_v1 = vld [vmem:[%s11089_s3 + $0x3f0] sm:$0xff] }
 0x4f9   : > { %v4027_v12 = vld [vmem:[%s11089_s3 + $0x1408] sm:$0xff]  ;;  %5004 = vmatpush.msra.mxu3 %v4195_v11  ;;  %v4676_v11 = vpop.f32.mrf.mxu3 }
 0x4fa   : > { %v4091_v14 = vld [vmem:[%s11089_s3 + $0x1608] sm:$0xff]  ;;  %4974 = vmatpush.msra.mxu1 %v4027_v12 }
 0x4fb   : > { %v3999_v16 = vld [vmem:[%s11089_s3 + $0x1328] sm:$0xff]  ;;  %4994 = vmatpush.msra.mxu2 %v4091_v14  ;;  %v6041_v14 = vld.sshfl [vmem:[#allocation1 + $0x10] sm:$0xff pattern:$0x73625140] }
 0x4fc   : > { %v4191_v40 = vld [vmem:[%s11089_s3 + $0x1928] sm:$0xff]  ;;  %4945 = vmatpush.msrb.mxu0 %v3999_v16  ;;  %4995 = vmatmul.f32.vlgmr.msra.gmra.mxu2 %v6039_v62  ;;  %v3508_v16 = vld [vmem:[%s11089_s3 + $0x3d0] sm:$0xff] }
 0x4fd   : > { %v4343_v19 = vld [vmem:[%s11089_s3 + $0x1de8] sm:$0xff]  ;;  %5005 = vmatpush.msra.mxu3 %v4191_v40  ;;  %4975 = vmatmul.f32.vlgmr.msra.gmra.mxu1 %v6041_v14  ;;  %v3472_v62 = vld [vmem:[%s11089_s3 + $0x2b0] sm:$0xff] }
 0x4fe   : > { %v4383_v22 = vld [vmem:[%s11089_s3 + $0x1f28] sm:$0xff]  ;;  %5039 = vmatpush.msrb.mxu1 %v4343_v19  ;;  %v4677_v19 = vadd.f32 %v4676_v11, %v9083_v8  ;;  %v3500_v8 = vld [vmem:[%s11089_s3 + $0x390] sm:$0xff] }
 0x4ff   : > { %v3995_v23 = vld [vmem:[%s11089_s3 + $0x1308] sm:$0xff]  ;;  %5065 = vmatpush.msrb.mxu2 %v4383_v22  ;;  %v3436_v22 = vld [vmem:[%s11089_s3 + $0x190] sm:$0xff] }
 0x500   : > { %v4187_v3 = vld [vmem:[%s11089_s3 + $0x1908] sm:$0xff]  ;;  %4946 = vmatpush.msrb.mxu0 %v3995_v23  ;;  %v3504_v23 = vld [vmem:[%s11089_s3 + $0x3b0] sm:$0xff] }
 0x501   : > { %v4339_v26 = vld [vmem:[%s11089_s3 + $0x1dc8] sm:$0xff]  ;;  %5006 = vmatpush.msra.mxu3 %v4187_v3  ;;  %v3396_v11 = vld [vmem:[%s11089_s3 + $0x50] sm:$0xff] }
 0x502   : > { %v4379_v35 = vld [vmem:[%s11089_s3 + $0x1f08] sm:$0xff]  ;;  %5040 = vmatpush.msrb.mxu1 %v4339_v26  ;;  %v4696_v26 = vpop.f32.mrf.mxu0 }
 0x503   : > { %v3991_v33 = vld [vmem:[%s11089_s3 + $0x12e8] sm:$0xff]  ;;  %5066 = vmatpush.msrb.mxu2 %v4379_v35  ;;  %v3432_v35 = vld [vmem:[%s11089_s3 + $0x170] sm:$0xff] }
 0x504   : > { %v4183_v41 = vld [vmem:[%s11089_s3 + $0x18e8] sm:$0xff]  ;;  %4947 = vmatpush.msrb.mxu0 %v3991_v33  ;;  %v4697_v33 = vadd.f32 %v4696_v26, %v4677_v19  ;;  %v6042_v26 = vld.sshfl [vmem:[#allocation1 + $0x38] sm:$0xff pattern:$0x73625140] }
 0x505   : > { %v4335_v37 = vld [vmem:[%s11089_s3 + $0x1da8] sm:$0xff]  ;;  %5007 = vmatpush.msra.mxu3 %v4183_v41 }
 0x506   : > { %v4375_v24 = vld [vmem:[%s11089_s3 + $0x1ee8] sm:$0xff]  ;;  %5041 = vmatpush.msrb.mxu1 %v4335_v37 }
 0x507   : > { %v3987_v34 = vld [vmem:[%s11089_s3 + $0x12c8] sm:$0xff]  ;;  %5067 = vmatpush.msrb.mxu2 %v4375_v24  ;;  %v3428_v24 = vld [vmem:[%s11089_s3 + $0x150] sm:$0xff] }
 0x508   : > { %v4179_v39 = vld [vmem:[%s11089_s3 + $0x18c8] sm:$0xff]  ;;  %4948 = vmatpush.msrb.mxu0 %v3987_v34  ;;  %v3496_v34 = vld [vmem:[%s11089_s3 + $0x370] sm:$0xff] }
 0x509   : > { %v4331_v46 = vld [vmem:[%s11089_s3 + $0x1d88] sm:$0xff]  ;;  %5008 = vmatpush.msra.mxu3 %v4179_v39  ;;  %v4716_v39 = vpop.f32.mrf.mxu1 }
 0x50a   : > { %v4371_v42 = vld [vmem:[%s11089_s3 + $0x1ec8] sm:$0xff]  ;;  %5042 = vmatpush.msrb.mxu1 %v4331_v46 }
 0x50b   : > { %v3983_v43 = vld [vmem:[%s11089_s3 + $0x12a8] sm:$0xff]  ;;  %5068 = vmatpush.msrb.mxu2 %v4371_v42 }
 0x50c   : > { %v4175_v44 = vld [vmem:[%s11089_s3 + $0x18a8] sm:$0xff]  ;;  %4949 = vmatpush.msrb.mxu0 %v3983_v43  ;;  %v4717_v43 = vadd.f32 %v4716_v39, %v4697_v33  ;;  %v3452_v33 = vld [vmem:[%s11089_s3 + $0x210] sm:$0xff] }
 0x50d   : > { %v4327_v45 = vld [vmem:[%s11089_s3 + $0x1d68] sm:$0xff]  ;;  %5009 = vmatpush.msra.mxu3 %v4175_v44  ;;  %v3424_v44 = vld [vmem:[%s11089_s3 + $0x130] sm:$0xff] }
 0x50e   : > { %v4367_v38 = vld [vmem:[%s11089_s3 + $0x1ea8] sm:$0xff]  ;;  %5043 = vmatpush.msrb.mxu1 %v4327_v45  ;;  %v3492_v45 = vld [vmem:[%s11089_s3 + $0x350] sm:$0xff] }
 0x50f   : > { %v3979_v47 = vld [vmem:[%s11089_s3 + $0x1288] sm:$0xff]  ;;  %5069 = vmatpush.msrb.mxu2 %v4367_v38  ;;  %v3640_v38 = vld [vmem:[%s11089_s3 + $0x7f0] sm:$0xff] }
 0x510   : > { %v4171_v30 = vld [vmem:[%s11089_s3 + $0x1888] sm:$0xff]  ;;  %4950 = vmatpush.msrb.mxu0 %v3979_v47  ;;  %v3768_v39 = vld [vmem:[%s11089_s3 + $0xbf0] sm:$0xff] }
 0x511   : > { %v4323_v48 = vld [vmem:[%s11089_s3 + $0x1d48] sm:$0xff]  ;;  %5010 = vmatpush.msra.mxu3 %v4171_v30  ;;  %v3420_v30 = vld [vmem:[%s11089_s3 + $0x110] sm:$0xff] }
 0x512   : > { %v4363_v13 = vld [vmem:[%s11089_s3 + $0x1e88] sm:$0xff]  ;;  %5044 = vmatpush.msrb.mxu1 %v4323_v48  ;;  %v3488_v48 = vld [vmem:[%s11089_s3 + $0x330] sm:$0xff] }
 0x513   : > { %v3975_v20 = vld [vmem:[%s11089_s3 + $0x1268] sm:$0xff]  ;;  %5070 = vmatpush.msrb.mxu2 %v4363_v13  ;;  %v4736_v13 = vpop.f32.mrf.mxu2 }
 0x514   : > { %v4167_v29 = vld [vmem:[%s11089_s3 + $0x1868] sm:$0xff]  ;;  %4951 = vmatpush.msrb.mxu0 %v3975_v20  ;;  %v3636_v20 = vld [vmem:[%s11089_s3 + $0x7d0] sm:$0xff] }
 0x515   : > { %v4319_v50 = vld [vmem:[%s11089_s3 + $0x1d28] sm:$0xff]  ;;  %5011 = vmatpush.msra.mxu3 %v4167_v29 }
 0x516   : > { %v4359_v49 = vld [vmem:[%s11089_s3 + $0x1e68] sm:$0xff]  ;;  %5045 = vmatpush.msrb.mxu1 %v4319_v50  ;;  %v4737_v50 = vadd.f32 %v4736_v13, %v4717_v43  ;;  %v3696_v43 = vld [vmem:[%s11089_s3 + $0x9b0] sm:$0xff] }
 0x517   : > { %v3971_v51 = vld [vmem:[%s11089_s3 + $0x1248] sm:$0xff]  ;;  %5071 = vmatpush.msrb.mxu2 %v4359_v49  ;;  %v3416_v49 = vld [vmem:[%s11089_s3 + $0xf0] sm:$0xff] }
 0x518   : > { %v4163_v15 = vld [vmem:[%s11089_s3 + $0x1848] sm:$0xff]  ;;  %4952 = vmatpush.msrb.mxu0 %v3971_v51  ;;  %v3484_v51 = vld [vmem:[%s11089_s3 + $0x310] sm:$0xff] }
 0x519   : > { %v4315_v27 = vld [vmem:[%s11089_s3 + $0x1d08] sm:$0xff]  ;;  %5012 = vmatpush.msra.mxu3 %v4163_v15  ;;  %v3632_v15 = vld [vmem:[%s11089_s3 + $0x7b0] sm:$0xff] }
 0x51a   : > { %v4355_v52 = vld [vmem:[%s11089_s3 + $0x1e48] sm:$0xff]  ;;  %5046 = vmatpush.msrb.mxu1 %v4315_v27  ;;  %v3588_v13 = vld [vmem:[%s11089_s3 + $0x650] sm:$0xff] }
 0x51b   : > { %v3967_v53 = vld [vmem:[%s11089_s3 + $0x1228] sm:$0xff]  ;;  %5072 = vmatpush.msrb.mxu2 %v4355_v52  ;;  %v3412_v52 = vld [vmem:[%s11089_s3 + $0xd0] sm:$0xff] }
 0x51c   : > { %v4159_v32 = vld [vmem:[%s11089_s3 + $0x1828] sm:$0xff]  ;;  %4953 = vmatpush.msrb.mxu0 %v3967_v53  ;;  %v3480_v53 = vld [vmem:[%s11089_s3 + $0x2f0] sm:$0xff] }
 0x51d   : > { %v4311_v54 = vld [vmem:[%s11089_s3 + $0x1ce8] sm:$0xff]  ;;  %5013 = vmatpush.msra.mxu3 %v4159_v32  ;;  %v3628_v32 = vld [vmem:[%s11089_s3 + $0x790] sm:$0xff] }
 0x51e   : > { %v4351_v17 = vld [vmem:[%s11089_s3 + $0x1e28] sm:$0xff]  ;;  %5047 = vmatpush.msrb.mxu1 %v4311_v54 }
 0x51f   : > { %v3963_v31 = vld [vmem:[%s11089_s3 + $0x1208] sm:$0xff]  ;;  %5073 = vmatpush.msrb.mxu2 %v4351_v17  ;;  %v3408_v17 = vld [vmem:[%s11089_s3 + $0xb0] sm:$0xff] }
 0x520   : > { %v4155_v55 = vld [vmem:[%s11089_s3 + $0x1808] sm:$0xff]  ;;  %4954 = vmatpush.msrb.mxu0 %v3963_v31  ;;  %v3476_v31 = vld [vmem:[%s11089_s3 + $0x2d0] sm:$0xff] }
 0x521   : > { %v4307_v60 = vld [vmem:[%s11089_s3 + $0x1cc8] sm:$0xff]  ;;  %5014 = vmatpush.msra.mxu3 %v4155_v55  ;;  %v3624_v55 = vld [vmem:[%s11089_s3 + $0x770] sm:$0xff] }
 0x522   : > { %v4347_v25 = vld [vmem:[%s11089_s3 + $0x1e08] sm:$0xff]  ;;  %5048 = vmatpush.msrb.mxu1 %v4307_v60  ;;  %5015 = vmatmul.f32.vlgmr.msra.gmra.mxu3 %v8488_v21 }
 0x523   : > { %v4279_v63 = vld [vmem:[%s11089_s3 + $0x1be8] sm:$0xff]  ;;  %5074 = vmatpush.msrb.mxu2 %v4347_v25  ;;  %5099 = vmatpush.msrb.mxu3 %v3512_v1  ;;  %v3404_v25 = vld [vmem:[%s11089_s3 + $0x90] sm:$0xff] }
 0x524   : > { %v4303_v0 = vld [vmem:[%s11089_s3 + $0x1ca8] sm:$0xff]  ;;  %5019 = vmatpush.msra.mxu0 %v4279_v63  ;;  %v3620_v63 = vld [vmem:[%s11089_s3 + $0x750] sm:$0xff]  ;;  %5994 = vmatmul.msk.f32.vlgmr.msrb.gmra.mxu2 %vm4436_vm15, %v6042_v26 }
 0x525   : > { %v9190_v7 = vld.sshfl [vmem:[#allocation1 + $0x8] sm:$0xff pattern:$0x73625140]  ;;  %5079 = vmatpush.msra.mxu2 %v3448_v61  ;;  %5049 = vmatpush.msrb.mxu1 %v4303_v0  ;;  %v3400_v0 = vld [vmem:[%s11089_s3 + $0x70] sm:$0xff] }
 0x526   : > { %4955 = vmatmul.f32.vlgmr.msrb.gmra.mxu0 %v9190_v7  ;;  %v4275_v9 = vld [vmem:[%s11089_s3 + $0x1bc8] sm:$0xff]  ;;  %5100 = vmatpush.msrb.mxu3 %v3508_v16  ;;  %v3460_v16 = vld [vmem:[%s11089_s3 + $0x250] sm:$0xff] }
 0x527   : > { %v4299_v12 = vld [vmem:[%s11089_s3 + $0x1c88] sm:$0xff]  ;;  %5020 = vmatpush.msra.mxu0 %v4275_v9  ;;  %5080 = vmatpush.msra.mxu2 %v3444_v10  ;;  %v3468_v9 = vld [vmem:[%s11089_s3 + $0x290] sm:$0xff] }
 0x528   : > { %v4271_v21 = vld [vmem:[%s11089_s3 + $0x1ba8] sm:$0xff]  ;;  %5050 = vmatpush.msrb.mxu1 %v4299_v12  ;;  %5101 = vmatpush.msrb.mxu3 %v3504_v23  ;;  %v3616_v10 = vld [vmem:[%s11089_s3 + $0x730] sm:$0xff] }
 0x529   : > { %v4295_v40 = vld [vmem:[%s11089_s3 + $0x1c68] sm:$0xff]  ;;  %5021 = vmatpush.msra.mxu0 %v4271_v21  ;;  %5081 = vmatpush.msra.mxu2 %v3440_v36  ;;  %v3464_v12 = vld [vmem:[%s11089_s3 + $0x270] sm:$0xff] }
 0x52a   : > { %v4267_v18 = vld [vmem:[%s11089_s3 + $0x1b88] sm:$0xff]  ;;  %5051 = vmatpush.msrb.mxu1 %v4295_v40  ;;  %5102 = vmatpush.msrb.mxu3 %v3500_v8  ;;  %v3612_v21 = vld [vmem:[%s11089_s3 + $0x710] sm:$0xff]  ;;  %v4756_v40 = vpop.f32.mrf.mxu0 }
 0x52b   : > { %v4291_v3 = vld [vmem:[%s11089_s3 + $0x1c48] sm:$0xff]  ;;  %5022 = vmatpush.msra.mxu0 %v4267_v18  ;;  %5082 = vmatpush.msra.mxu2 %v3436_v22  ;;  %v3392_v36 = vld [vmem:[%s11089_s3 + $0x30] sm:$0xff]  ;;  %v9363_v19 = vadd.f32 %v4756_v40, %v4737_v50 }
 0x52c   : > { %v4263_v28 = vld [vmem:[%s11089_s3 + $0x1b68] sm:$0xff]  ;;  %5052 = vmatpush.msrb.mxu1 %v4291_v3  ;;  %5103 = vmatpush.msrb.mxu3 %v3496_v34  ;;  %v3608_v18 = vld [vmem:[%s11089_s3 + $0x6f0] sm:$0xff] }
 0x52d   : > { %v4287_v41 = vld [vmem:[%s11089_s3 + $0x1c28] sm:$0xff]  ;;  %5023 = vmatpush.msra.mxu0 %v4263_v28  ;;  %5083 = vmatpush.msra.mxu2 %v3432_v35  ;;  %v3388_v23 = vld [vmem:[%s11089_s3 + $0x10] sm:$0xff] }
 0x52e   : > { %v4259_v37 = vld [vmem:[%s11089_s3 + $0x1b48] sm:$0xff]  ;;  %5053 = vmatpush.msrb.mxu1 %v4287_v41  ;;  %5104 = vmatpush.msrb.mxu3 %v3492_v45  ;;  %v3456_v3 = vld [vmem:[%s11089_s3 + $0x230] sm:$0xff] }
 0x52f   : > { %v4283_v46 = vld [vmem:[%s11089_s3 + $0x1c08] sm:$0xff]  ;;  %5024 = vmatpush.msra.mxu0 %v4259_v37  ;;  %5084 = vmatpush.msra.mxu2 %v3428_v24  ;;  %v3604_v28 = vld [vmem:[%s11089_s3 + $0x6d0] sm:$0xff] }
 0x530   : > { %v4255_v42 = vld [vmem:[%s11089_s3 + $0x1b28] sm:$0xff]  ;;  %5054 = vmatpush.msrb.mxu1 %v4283_v46  ;;  %5105 = vmatpush.msrb.mxu3 %v3488_v48  ;;  %v3704_v35 = vld [vmem:[%s11089_s3 + $0x9f0] sm:$0xff] }
 0x531   : > { %v4251_v47 = vld [vmem:[%s11089_s3 + $0x1b08] sm:$0xff]  ;;  %5025 = vmatpush.msra.mxu0 %v4255_v42  ;;  %5085 = vmatpush.msra.mxu2 %v3424_v44  ;;  %v3576_v8 = vld [vmem:[%s11089_s3 + $0x5f0] sm:$0xff] }
 0x532   : > { %v4247_v29 = vld [vmem:[%s11089_s3 + $0x1ae8] sm:$0xff]  ;;  %5139 = vmatpush.msra.mxu1 %v3640_v38  ;;  %5106 = vmatpush.msrb.mxu3 %v3484_v51  ;;  %v3600_v41 = vld [vmem:[%s11089_s3 + $0x6b0] sm:$0xff] }
 0x533   : > { %5026 = vmatpush.msra.mxu0 %v4251_v47  ;;  %5086 = vmatpush.msra.mxu2 %v3420_v30  ;;  %v4243_v27 = vld [vmem:[%s11089_s3 + $0x1ac8] sm:$0xff]  ;;  %v3700_v37 = vld [vmem:[%s11089_s3 + $0x9d0] sm:$0xff] }
 0x534   : > { %5140 = vmatpush.msra.mxu1 %v3636_v20  ;;  %v4239_v54 = vld [vmem:[%s11089_s3 + $0x1aa8] sm:$0xff]  ;;  %5107 = vmatpush.msrb.mxu3 %v3480_v53  ;;  %v3572_v34 = vld [vmem:[%s11089_s3 + $0x5d0] sm:$0xff] }
 0x535   : > { %5027 = vmatpush.msra.mxu0 %v4247_v29  ;;  %5087 = vmatpush.msra.mxu2 %v3416_v49  ;;  %v4235_v60 = vld [vmem:[%s11089_s3 + $0x1a88] sm:$0xff]  ;;  %v3596_v46 = vld [vmem:[%s11089_s3 + $0x690] sm:$0xff] }
 0x536   : > { %5141 = vmatpush.msra.mxu1 %v3632_v15  ;;  %5108 = vmatpush.msrb.mxu3 %v3476_v31  ;;  %v4231_v61 = vld [vmem:[%s11089_s3 + $0x1a68] sm:$0xff]  ;;  %v3568_v42 = vld [vmem:[%s11089_s3 + $0x5b0] sm:$0xff] }
 0x537   : > { %5028 = vmatpush.msra.mxu0 %v4243_v27  ;;  %5088 = vmatpush.msra.mxu2 %v3412_v52  ;;  %v4227_v1 = vld [vmem:[%s11089_s3 + $0x1a48] sm:$0xff]  ;;  %v6044_v44 = vld.sshfl [vmem:[#allocation1 + $0x30] sm:$0xff pattern:$0x73625140] }
 0x538   : > { %5142 = vmatpush.msra.mxu1 %v3628_v32  ;;  %5109 = vmatpush.msrb.mxu3 %v3472_v62  ;;  %v4223_v14 = vld [vmem:[%s11089_s3 + $0x1a28] sm:$0xff]  ;;  %v3764_v45 = vld [vmem:[%s11089_s3 + $0xbd0] sm:$0xff] }
 0x539   : > { %5029 = vmatpush.msra.mxu0 %v4239_v54  ;;  %5089 = vmatpush.msra.mxu2 %v3408_v17  ;;  %v4219_v22 = vld [vmem:[%s11089_s3 + $0x1a08] sm:$0xff]  ;;  %v3592_v38 = vld [vmem:[%s11089_s3 + $0x670] sm:$0xff] }
 0x53a   : > { %5143 = vmatpush.msra.mxu1 %v3624_v55  ;;  %5110 = vmatpush.msrb.mxu3 %v3468_v9  ;;  %v9393_v24 = vld.sshfl [vmem:[#allocation1 + $0x28] sm:$0xff pattern:$0x73625140]  ;;  %v3564_v47 = vld [vmem:[%s11089_s3 + $0x590] sm:$0xff] }
 0x53b   : > { %5030 = vmatpush.msra.mxu0 %v4235_v60  ;;  %5090 = vmatpush.msra.mxu2 %v3404_v25  ;;  %v3692_v30 = vld [vmem:[%s11089_s3 + $0x990] sm:$0xff] }
 0x53c   : > { %5144 = vmatpush.msra.mxu1 %v3620_v63  ;;  %5111 = vmatpush.msrb.mxu3 %v3464_v12  ;;  %v3760_v48 = vld [vmem:[%s11089_s3 + $0xbb0] sm:$0xff] }
 0x53d   : > { %5031 = vmatpush.msra.mxu0 %v4231_v61  ;;  %5091 = vmatpush.msra.mxu2 %v3400_v0  ;;  %v3560_v20 = vld [vmem:[%s11089_s3 + $0x570] sm:$0xff] }
 0x53e   : > { %5145 = vmatpush.msra.mxu1 %v3616_v10  ;;  %5112 = vmatpush.msrb.mxu3 %v3460_v16  ;;  %v3688_v29 = vld [vmem:[%s11089_s3 + $0x970] sm:$0xff] }
 0x53f   : > { %5032 = vmatpush.msra.mxu0 %v4227_v1  ;;  %5092 = vmatpush.msra.mxu2 %v3396_v11  ;;  %v3756_v50 = vld [vmem:[%s11089_s3 + $0xb90] sm:$0xff] }
 0x540   : > { %5146 = vmatpush.msra.mxu1 %v3612_v21  ;;  %5113 = vmatpush.msrb.mxu3 %v3456_v3  ;;  %v3584_v49 = vld [vmem:[%s11089_s3 + $0x630] sm:$0xff] }
 0x541   : > { %5033 = vmatpush.msra.mxu0 %v4223_v14  ;;  %5093 = vmatpush.msra.mxu2 %v3392_v36  ;;  %v3556_v51 = vld [vmem:[%s11089_s3 + $0x550] sm:$0xff] }
 0x542   : > { %5147 = vmatpush.msra.mxu1 %v3608_v18  ;;  %5114 = vmatpush.msrb.mxu3 %v3452_v33  ;;  %v3684_v15 = vld [vmem:[%s11089_s3 + $0x950] sm:$0xff] }
 0x543   : > { %5034 = vmatpush.msra.mxu0 %v4219_v22  ;;  %5094 = vmatpush.msra.mxu2 %v3388_v23  ;;  %v3752_v27 = vld [vmem:[%s11089_s3 + $0xb70] sm:$0xff] }
 0x544   : > { %5148 = vmatpush.msra.mxu1 %v3604_v28  ;;  %5035 = vmatmul.f32.vlgmr.msra.gmra.mxu0 %v9393_v24  ;;  %v3580_v52 = vld [vmem:[%s11089_s3 + $0x610] sm:$0xff] }
 0x545   : > { %5159 = vmatpush.msrb.mxu2 %v3704_v35  ;;  %5119 = vmatpush.msrb.mxu0 %v3576_v8  ;;  %v3552_v53 = vld [vmem:[%s11089_s3 + $0x530] sm:$0xff] }
 0x546   : > { %5149 = vmatpush.msra.mxu1 %v3600_v41  ;;  %5179 = vmatpush.msra.mxu3 %v3768_v39  ;;  %v3680_v32 = vld [vmem:[%s11089_s3 + $0x930] sm:$0xff] }
 0x547   : > { %5160 = vmatpush.msrb.mxu2 %v3700_v37  ;;  %5055 = vmatmul.f32.vlgmr.msrb.gmra.mxu1 %v6044_v44  ;;  %v3748_v54 = vld [vmem:[%s11089_s3 + $0xb50] sm:$0xff] }
 0x548   : > { %5120 = vmatpush.msrb.mxu0 %v3572_v34  ;;  %5150 = vmatpush.msra.mxu1 %v3596_v46  ;;  %v3896_v17 = vld [vmem:[%s11089_s3 + $0xff0] sm:$0xff] }
 0x549   : > { %5161 = vmatpush.msrb.mxu2 %v3696_v43  ;;  %5180 = vmatpush.msra.mxu3 %v3764_v45  ;;  %v3548_v31 = vld [vmem:[%s11089_s3 + $0x510] sm:$0xff] }
 0x54a   : > { %5121 = vmatpush.msrb.mxu0 %v3568_v42  ;;  %5151 = vmatpush.msra.mxu1 %v3592_v38  ;;  %v3676_v55 = vld [vmem:[%s11089_s3 + $0x910] sm:$0xff] }
 0x54b   : > { %5162 = vmatpush.msrb.mxu2 %v3692_v30  ;;  %5181 = vmatpush.msra.mxu3 %v3760_v48  ;;  %v3744_v60 = vld [vmem:[%s11089_s3 + $0xb30] sm:$0xff] }
 0x54c   : > { %5122 = vmatpush.msrb.mxu0 %v3564_v47  ;;  %5152 = vmatpush.msra.mxu1 %v3588_v13  ;;  %v3892_v25 = vld [vmem:[%s11089_s3 + $0xfd0] sm:$0xff] }
 0x54d   : > { %5163 = vmatpush.msrb.mxu2 %v3688_v29  ;;  %5182 = vmatpush.msra.mxu3 %v3756_v50  ;;  %v3544_v62 = vld [vmem:[%s11089_s3 + $0x4f0] sm:$0xff] }
 0x54e   : > { %5123 = vmatpush.msrb.mxu0 %v3560_v20  ;;  %5153 = vmatpush.msra.mxu1 %v3584_v49  ;;  %v3672_v63 = vld [vmem:[%s11089_s3 + $0x8f0] sm:$0xff] }
 0x54f   : > { %5164 = vmatpush.msrb.mxu2 %v3684_v15  ;;  %5183 = vmatpush.msra.mxu3 %v3752_v27  ;;  %v3740_v61 = vld [vmem:[%s11089_s3 + $0xb10] sm:$0xff] }
 0x550   : > { %5124 = vmatpush.msrb.mxu0 %v3556_v51  ;;  %5154 = vmatpush.msra.mxu1 %v3580_v52  ;;  %v3888_v0 = vld [vmem:[%s11089_s3 + $0xfb0] sm:$0xff] }
 0x551   : > { %5165 = vmatpush.msrb.mxu2 %v3680_v32  ;;  %5184 = vmatpush.msra.mxu3 %v3748_v54  ;;  %v3540_v9 = vld [vmem:[%s11089_s3 + $0x4d0] sm:$0xff] }
 0x552   : > { %5125 = vmatpush.msrb.mxu0 %v3552_v53  ;;  %5219 = vmatpush.msrb.mxu1 %v3896_v17  ;;  %v3668_v10 = vld [vmem:[%s11089_s3 + $0x8d0] sm:$0xff] }
 0x553   : > { %5166 = vmatpush.msrb.mxu2 %v3676_v55  ;;  %5185 = vmatpush.msra.mxu3 %v3744_v60  ;;  %v3736_v1 = vld [vmem:[%s11089_s3 + $0xaf0] sm:$0xff] }
 0x554   : > { %5126 = vmatpush.msrb.mxu0 %v3548_v31  ;;  %5220 = vmatpush.msrb.mxu1 %v3892_v25  ;;  %v3884_v11 = vld [vmem:[%s11089_s3 + $0xf90] sm:$0xff] }
 0x555   : > { %5167 = vmatpush.msrb.mxu2 %v3672_v63  ;;  %5186 = vmatpush.msra.mxu3 %v3740_v61  ;;  %v3536_v12 = vld [vmem:[%s11089_s3 + $0x4b0] sm:$0xff] }
 0x556   : > { %5127 = vmatpush.msrb.mxu0 %v3544_v62  ;;  %5221 = vmatpush.msrb.mxu1 %v3888_v0  ;;  %v3664_v21 = vld [vmem:[%s11089_s3 + $0x8b0] sm:$0xff] }
 0x557   : > { %5168 = vmatpush.msrb.mxu2 %v3668_v10  ;;  %v3732_v14 = vld [vmem:[%s11089_s3 + $0xad0] sm:$0xff]  ;;  %5187 = vmatpush.msra.mxu3 %v3736_v1 }
 0x558   : > { %5128 = vmatpush.msrb.mxu0 %v3540_v9  ;;  %v3880_v36 = vld [vmem:[%s11089_s3 + $0xf70] sm:$0xff]  ;;  %5222 = vmatpush.msrb.mxu1 %v3884_v11 }
 0x559   : > { %v3532_v16 = vld [vmem:[%s11089_s3 + $0x490] sm:$0xff]  ;;  %5169 = vmatpush.msrb.mxu2 %v3664_v21  ;;  %5188 = vmatpush.msra.mxu3 %v3732_v14 }
 0x55a   : > { %v3660_v40 = vld [vmem:[%s11089_s3 + $0x890] sm:$0xff]  ;;  %5129 = vmatpush.msrb.mxu0 %v3536_v12  ;;  %5223 = vmatpush.msrb.mxu1 %v3880_v36 }
 0x55b   : > { %v3728_v18 = vld [vmem:[%s11089_s3 + $0xab0] sm:$0xff]  ;;  %5170 = vmatpush.msrb.mxu2 %v3660_v40  ;;  %5115 = vmatmul.f32.vlgmr.msrb.gmra.mxu3 %v8075_v58 }
 0x55c   : > { %v3876_v22 = vld [vmem:[%s11089_s3 + $0xf50] sm:$0xff]  ;;  %5130 = vmatpush.msrb.mxu0 %v3532_v16  ;;  %5189 = vmatpush.msra.mxu3 %v3728_v18 }
 0x55d   : > { %v3528_v23 = vld [vmem:[%s11089_s3 + $0x470] sm:$0xff]  ;;  %5224 = vmatpush.msrb.mxu1 %v3876_v22  ;;  %5095 = vmatmul.f32.vlgmr.msra.gmra.mxu2 %v8073_v57 }
 0x55e   : > { %v3656_v3 = vld [vmem:[%s11089_s3 + $0x870] sm:$0xff]  ;;  %5131 = vmatpush.msrb.mxu0 %v3528_v23  ;;  %5155 = vmatmul.f32.vlgmr.msra.gmra.mxu1 %v8077_v59 }
 0x55f   : > { %v3724_v28 = vld [vmem:[%s11089_s3 + $0xa90] sm:$0xff]  ;;  %5171 = vmatpush.msrb.mxu2 %v3656_v3 }
 0x560   : > { %v3872_v26 = vld [vmem:[%s11089_s3 + $0xf30] sm:$0xff]  ;;  %5190 = vmatpush.msra.mxu3 %v3724_v28 }
 0x561   : > { %v3524_v35 = vld [vmem:[%s11089_s3 + $0x450] sm:$0xff]  ;;  %5225 = vmatpush.msrb.mxu1 %v3872_v26 }
 0x562   : > { %v3652_v8 = vld [vmem:[%s11089_s3 + $0x850] sm:$0xff]  ;;  %5132 = vmatpush.msrb.mxu0 %v3524_v35 }
 0x563   : > { %v3720_v33 = vld [vmem:[%s11089_s3 + $0xa70] sm:$0xff]  ;;  %5172 = vmatpush.msrb.mxu2 %v3652_v8 }
 0x564   : > { %v3868_v41 = vld [vmem:[%s11089_s3 + $0xf10] sm:$0xff]  ;;  %5191 = vmatpush.msra.mxu3 %v3720_v33 }
 0x565   : > { %v3520_v37 = vld [vmem:[%s11089_s3 + $0x430] sm:$0xff]  ;;  %5226 = vmatpush.msrb.mxu1 %v3868_v41 }
 0x566   : > { %v3648_v34 = vld [vmem:[%s11089_s3 + $0x830] sm:$0xff]  ;;  %5133 = vmatpush.msrb.mxu0 %v3520_v37 }
 0x567   : > { %v3716_v39 = vld [vmem:[%s11089_s3 + $0xa50] sm:$0xff]  ;;  %5173 = vmatpush.msrb.mxu2 %v3648_v34 }
 0x568   : > { %v3864_v46 = vld [vmem:[%s11089_s3 + $0xef0] sm:$0xff]  ;;  %5192 = vmatpush.msra.mxu3 %v3716_v39 }
 0x569   : > { %v3516_v42 = vld [vmem:[%s11089_s3 + $0x410] sm:$0xff]  ;;  %5227 = vmatpush.msrb.mxu1 %v3864_v46 }
 0x56a   : > { %v3644_v43 = vld [vmem:[%s11089_s3 + $0x810] sm:$0xff]  ;;  %5134 = vmatpush.msrb.mxu0 %v3516_v42 }
 0x56b   : > { %v3712_v44 = vld [vmem:[%s11089_s3 + $0xa30] sm:$0xff]  ;;  %5174 = vmatpush.msrb.mxu2 %v3644_v43  ;;  %5135 = vmatmul.f32.vlgmr.msrb.gmra.mxu0 %v8071_v56 }
 0x56c   : > { %v3860_v45 = vld [vmem:[%s11089_s3 + $0xed0] sm:$0xff]  ;;  %5193 = vmatpush.msra.mxu3 %v3712_v44  ;;  %5175 = vmatmul.f32.vlgmr.msrb.gmra.mxu2 %v8097_v2 }
 0x56d   : > { %v3832_v38 = vld [vmem:[%s11089_s3 + $0xdf0] sm:$0xff]  ;;  %5228 = vmatpush.msrb.mxu1 %v3860_v45 }
 0x56e   : > { %v3960_v47 = vld [vmem:[%s11089_s3 + $0x11f0] sm:$0xff]  ;;  %5199 = vmatpush.msra.mxu0 %v3832_v38 }
 0x56f   : > { %v3708_v30 = vld [vmem:[%s11089_s3 + $0xa10] sm:$0xff]  ;;  %5239 = vmatpush.msra.mxu2 %v3960_v47 }
 0x570   : > { %v3856_v48 = vld [vmem:[%s11089_s3 + $0xeb0] sm:$0xff]  ;;  %5194 = vmatpush.msra.mxu3 %v3708_v30 }
 0x571   : > { %v3828_v13 = vld [vmem:[%s11089_s3 + $0xdd0] sm:$0xff]  ;;  %5229 = vmatpush.msrb.mxu1 %v3856_v48  ;;  %5195 = vmatmul.f32.vlgmr.msra.gmra.mxu3 %v8101_v6 }
 0x572   : > { %v3956_v20 = vld [vmem:[%s11089_s3 + $0x11d0] sm:$0xff]  ;;  %5200 = vmatpush.msra.mxu0 %v3828_v13 }
 0x573   : > { %v4024_v29 = vld [vmem:[%s11089_s3 + $0x13f0] sm:$0xff]  ;;  %5240 = vmatpush.msra.mxu2 %v3956_v20 }
 0x574   : > { %v3852_v50 = vld [vmem:[%s11089_s3 + $0xe90] sm:$0xff]  ;;  %5259 = vmatpush.msrb.mxu3 %v4024_v29 }
 0x575   : > { %v3824_v49 = vld [vmem:[%s11089_s3 + $0xdb0] sm:$0xff]  ;;  %5230 = vmatpush.msrb.mxu1 %v3852_v50 }
 0x576   : > { %v3952_v51 = vld [vmem:[%s11089_s3 + $0x11b0] sm:$0xff]  ;;  %5201 = vmatpush.msra.mxu0 %v3824_v49 }
 0x577   : > { %v4020_v15 = vld [vmem:[%s11089_s3 + $0x13d0] sm:$0xff]  ;;  %5241 = vmatpush.msra.mxu2 %v3952_v51 }
 0x578   : > { %v3848_v27 = vld [vmem:[%s11089_s3 + $0xe70] sm:$0xff]  ;;  %5260 = vmatpush.msrb.mxu3 %v4020_v15 }
 0x579   : > { %v3820_v52 = vld [vmem:[%s11089_s3 + $0xd90] sm:$0xff]  ;;  %5231 = vmatpush.msrb.mxu1 %v3848_v27 }
 0x57a   : > { %v3948_v53 = vld [vmem:[%s11089_s3 + $0x1190] sm:$0xff]  ;;  %5202 = vmatpush.msra.mxu0 %v3820_v52 }
 0x57b   : > { %v4016_v32 = vld [vmem:[%s11089_s3 + $0x13b0] sm:$0xff]  ;;  %5242 = vmatpush.msra.mxu2 %v3948_v53 }
 0x57c   : > { %v3844_v54 = vld [vmem:[%s11089_s3 + $0xe50] sm:$0xff]  ;;  %5261 = vmatpush.msrb.mxu3 %v4016_v32 }
 0x57d   : > { %v3816_v17 = vld [vmem:[%s11089_s3 + $0xd70] sm:$0xff]  ;;  %5232 = vmatpush.msrb.mxu1 %v3844_v54  ;;  %v6045_v54 = vld.sshfl [vmem:[#allocation1] sm:$0xff pattern:$0x73625140] }
 0x57e   : > { %v3944_v31 = vld [vmem:[%s11089_s3 + $0x1170] sm:$0xff]  ;;  %5203 = vmatpush.msra.mxu0 %v3816_v17 }
 0x57f   : > { %v4012_v55 = vld [vmem:[%s11089_s3 + $0x1390] sm:$0xff]  ;;  %5243 = vmatpush.msra.mxu2 %v3944_v31 }
 0x580   : > { %v3840_v60 = vld [vmem:[%s11089_s3 + $0xe30] sm:$0xff]  ;;  %5262 = vmatpush.msrb.mxu3 %v4012_v55 }
 0x581   : > { %v3812_v25 = vld [vmem:[%s11089_s3 + $0xd50] sm:$0xff]  ;;  %5233 = vmatpush.msrb.mxu1 %v3840_v60 }
 0x582   : > { %v3940_v62 = vld [vmem:[%s11089_s3 + $0x1150] sm:$0xff]  ;;  %5204 = vmatpush.msra.mxu0 %v3812_v25 }
 0x583   : > { %v4008_v63 = vld [vmem:[%s11089_s3 + $0x1370] sm:$0xff]  ;;  %5244 = vmatpush.msra.mxu2 %v3940_v62 }
 0x584   : > { %v3836_v61 = vld [vmem:[%s11089_s3 + $0xe10] sm:$0xff]  ;;  %5263 = vmatpush.msrb.mxu3 %v4008_v63 }
 0x585   : > { %v3808_v0 = vld [vmem:[%s11089_s3 + $0xd30] sm:$0xff]  ;;  %5234 = vmatpush.msrb.mxu1 %v3836_v61 }
 0x586   : > { %v3936_v9 = vld [vmem:[%s11089_s3 + $0x1130] sm:$0xff]  ;;  %5205 = vmatpush.msra.mxu0 %v3808_v0  ;;  %5235 = vmatmul.f32.vlgmr.msrb.gmra.mxu1 %v8099_v5 }
 0x587   : > { %v4004_v10 = vld [vmem:[%s11089_s3 + $0x1350] sm:$0xff]  ;;  %5245 = vmatpush.msra.mxu2 %v3936_v9 }
 0x588   : > { %v4152_v1 = vld [vmem:[%s11089_s3 + $0x17f0] sm:$0xff]  ;;  %5264 = vmatpush.msrb.mxu3 %v4004_v10 }
 0x589   : > { %v3804_v11 = vld [vmem:[%s11089_s3 + $0xd10] sm:$0xff]  ;;  %5299 = vmatpush.msra.mxu1 %v4152_v1 }
 0x58a   : > { %v3932_v12 = vld [vmem:[%s11089_s3 + $0x1110] sm:$0xff]  ;;  %5206 = vmatpush.msra.mxu0 %v3804_v11 }
 0x58b   : > { %v4000_v21 = vld [vmem:[%s11089_s3 + $0x1330] sm:$0xff]  ;;  %5246 = vmatpush.msra.mxu2 %v3932_v12 }
 0x58c   : > { %v4148_v14 = vld [vmem:[%s11089_s3 + $0x17d0] sm:$0xff]  ;;  %5265 = vmatpush.msrb.mxu3 %v4000_v21 }
 0x58d   : > { %v3800_v36 = vld [vmem:[%s11089_s3 + $0xcf0] sm:$0xff]  ;;  %5300 = vmatpush.msra.mxu1 %v4148_v14 }
 0x58e   : > { %v3928_v16 = vld [vmem:[%s11089_s3 + $0x10f0] sm:$0xff]  ;;  %5207 = vmatpush.msra.mxu0 %v3800_v36 }
 0x58f   : > { %v3996_v40 = vld [vmem:[%s11089_s3 + $0x1310] sm:$0xff]  ;;  %5247 = vmatpush.msra.mxu2 %v3928_v16 }
 0x590   : > { %v4144_v18 = vld [vmem:[%s11089_s3 + $0x17b0] sm:$0xff]  ;;  %5266 = vmatpush.msrb.mxu3 %v3996_v40 }
 0x591   : > { %v3796_v22 = vld [vmem:[%s11089_s3 + $0xcd0] sm:$0xff]  ;;  %5301 = vmatpush.msra.mxu1 %v4144_v18 }
 0x592   : > { %v3924_v23 = vld [vmem:[%s11089_s3 + $0x10d0] sm:$0xff]  ;;  %5208 = vmatpush.msra.mxu0 %v3796_v22 }
 0x593   : > { %v3992_v3 = vld [vmem:[%s11089_s3 + $0x12f0] sm:$0xff]  ;;  %5248 = vmatpush.msra.mxu2 %v3924_v23 }
 0x594   : > { %v4140_v28 = vld [vmem:[%s11089_s3 + $0x1790] sm:$0xff]  ;;  %5267 = vmatpush.msrb.mxu3 %v3992_v3 }
 0x595   : > { %v3792_v26 = vld [vmem:[%s11089_s3 + $0xcb0] sm:$0xff]  ;;  %5302 = vmatpush.msra.mxu1 %v4140_v28 }
 0x596   : > { %v3920_v35 = vld [vmem:[%s11089_s3 + $0x10b0] sm:$0xff]  ;;  %5209 = vmatpush.msra.mxu0 %v3792_v26 }
 0x597   : > { %v3988_v8 = vld [vmem:[%s11089_s3 + $0x12d0] sm:$0xff]  ;;  %5249 = vmatpush.msra.mxu2 %v3920_v35 }
 0x598   : > { %v4136_v33 = vld [vmem:[%s11089_s3 + $0x1770] sm:$0xff]  ;;  %5268 = vmatpush.msrb.mxu3 %v3988_v8 }
 0x599   : > { %v3788_v41 = vld [vmem:[%s11089_s3 + $0xc90] sm:$0xff]  ;;  %5303 = vmatpush.msra.mxu1 %v4136_v33 }
 0x59a   : > { %v3916_v37 = vld [vmem:[%s11089_s3 + $0x1090] sm:$0xff]  ;;  %5210 = vmatpush.msra.mxu0 %v3788_v41 }
 0x59b   : > { %v3984_v34 = vld [vmem:[%s11089_s3 + $0x12b0] sm:$0xff]  ;;  %5250 = vmatpush.msra.mxu2 %v3916_v37 }
 0x59c   : > { %v4132_v39 = vld [vmem:[%s11089_s3 + $0x1750] sm:$0xff]  ;;  %5269 = vmatpush.msrb.mxu3 %v3984_v34 }
 0x59d   : > { %v3784_v46 = vld [vmem:[%s11089_s3 + $0xc70] sm:$0xff]  ;;  %5304 = vmatpush.msra.mxu1 %v4132_v39 }
 0x59e   : > { %v3912_v42 = vld [vmem:[%s11089_s3 + $0x1070] sm:$0xff]  ;;  %5211 = vmatpush.msra.mxu0 %v3784_v46 }
 0x59f   : > { %v3980_v43 = vld [vmem:[%s11089_s3 + $0x1290] sm:$0xff]  ;;  %5251 = vmatpush.msra.mxu2 %v3912_v42 }
 0x5a0   : > { %v4128_v44 = vld [vmem:[%s11089_s3 + $0x1730] sm:$0xff]  ;;  %5270 = vmatpush.msrb.mxu3 %v3980_v43 }
 0x5a1   : > { %v3780_v45 = vld [vmem:[%s11089_s3 + $0xc50] sm:$0xff]  ;;  %5305 = vmatpush.msra.mxu1 %v4128_v44 }
 0x5a2   : > { %v3908_v38 = vld [vmem:[%s11089_s3 + $0x1050] sm:$0xff]  ;;  %5212 = vmatpush.msra.mxu0 %v3780_v45 }
 0x5a3   : > { %v3976_v47 = vld [vmem:[%s11089_s3 + $0x1270] sm:$0xff]  ;;  %5252 = vmatpush.msra.mxu2 %v3908_v38 }
 0x5a4   : > { %v4124_v30 = vld [vmem:[%s11089_s3 + $0x1710] sm:$0xff]  ;;  %5271 = vmatpush.msrb.mxu3 %v3976_v47 }
 0x5a5   : > { %v3776_v48 = vld [vmem:[%s11089_s3 + $0xc30] sm:$0xff]  ;;  %5306 = vmatpush.msra.mxu1 %v4124_v30 }
 0x5a6   : > { %v3904_v13 = vld [vmem:[%s11089_s3 + $0x1030] sm:$0xff]  ;;  %5213 = vmatpush.msra.mxu0 %v3776_v48 }
 0x5a7   : > { %v3972_v20 = vld [vmem:[%s11089_s3 + $0x1250] sm:$0xff]  ;;  %5253 = vmatpush.msra.mxu2 %v3904_v13 }
 0x5a8   : > { %v4120_v29 = vld [vmem:[%s11089_s3 + $0x16f0] sm:$0xff]  ;;  %5272 = vmatpush.msrb.mxu3 %v3972_v20 }
 0x5a9   : > { %v3772_v50 = vld [vmem:[%s11089_s3 + $0xc10] sm:$0xff]  ;;  %5307 = vmatpush.msra.mxu1 %v4120_v29 }
 0x5aa   : > { %v3900_v49 = vld [vmem:[%s11089_s3 + $0x1010] sm:$0xff]  ;;  %5214 = vmatpush.msra.mxu0 %v3772_v50 }
 0x5ab   : > { %v3968_v51 = vld [vmem:[%s11089_s3 + $0x1230] sm:$0xff]  ;;  %5254 = vmatpush.msra.mxu2 %v3900_v49  ;;  %5215 = vmatmul.f32.vlgmr.msra.gmra.mxu0 %v8095_v4 }
 0x5ac   : > { %v4116_v15 = vld [vmem:[%s11089_s3 + $0x16d0] sm:$0xff]  ;;  %5273 = vmatpush.msrb.mxu3 %v3968_v51  ;;  %5255 = vmatmul.f32.vlgmr.msra.gmra.mxu2 %v6045_v54 }
 0x5ad   : > { %v4088_v27 = vld [vmem:[%s11089_s3 + $0x15f0] sm:$0xff]  ;;  %5308 = vmatpush.msra.mxu1 %v4116_v15 }
 0x5ae   : > { %v4216_v52 = vld [vmem:[%s11089_s3 + $0x19f0] sm:$0xff]  ;;  %5279 = vmatpush.msrb.mxu0 %v4088_v27 }
 0x5af   : > { %v3964_v53 = vld [vmem:[%s11089_s3 + $0x1210] sm:$0xff]  ;;  %5319 = vmatpush.msrb.mxu2 %v4216_v52 }
 0x5b0   : > { %v4112_v32 = vld [vmem:[%s11089_s3 + $0x16b0] sm:$0xff]  ;;  %5274 = vmatpush.msrb.mxu3 %v3964_v53 }
 0x5b1   : > { %v4084_v17 = vld [vmem:[%s11089_s3 + $0x15d0] sm:$0xff]  ;;  %5309 = vmatpush.msra.mxu1 %v4112_v32  ;;  %5275 = vmatmul.f32.vlgmr.msrb.gmra.mxu3 %v9190_v7 }
 0x5b2   : > { %v4212_v31 = vld [vmem:[%s11089_s3 + $0x19d0] sm:$0xff]  ;;  %5280 = vmatpush.msrb.mxu0 %v4084_v17 }
 0x5b3   : > { %v4280_v55 = vld [vmem:[%s11089_s3 + $0x1bf0] sm:$0xff]  ;;  %5320 = vmatpush.msrb.mxu2 %v4212_v31 }
 0x5b4   : > { %v4108_v60 = vld [vmem:[%s11089_s3 + $0x1690] sm:$0xff]  ;;  %5339 = vmatpush.msra.mxu3 %v4280_v55 }
 0x5b5   : > { %v4080_v25 = vld [vmem:[%s11089_s3 + $0x15b0] sm:$0xff]  ;;  %5310 = vmatpush.msra.mxu1 %v4108_v60 }
 0x5b6   : > { %v4208_v62 = vld [vmem:[%s11089_s3 + $0x19b0] sm:$0xff]  ;;  %5281 = vmatpush.msrb.mxu0 %v4080_v25 }
 0x5b7   : > { %v4276_v63 = vld [vmem:[%s11089_s3 + $0x1bd0] sm:$0xff]  ;;  %5321 = vmatpush.msrb.mxu2 %v4208_v62 }
 0x5b8   : > { %v4104_v61 = vld [vmem:[%s11089_s3 + $0x1670] sm:$0xff]  ;;  %5340 = vmatpush.msra.mxu3 %v4276_v63 }
 0x5b9   : > { %v4076_v7 = vld [vmem:[%s11089_s3 + $0x1590] sm:$0xff]  ;;  %5311 = vmatpush.msra.mxu1 %v4104_v61  ;;  %v3449_v61 = vld [vmem:[%s11089_s3 + $0x1f8] sm:$0xff] }
 0x5ba   : > { %v4204_v0 = vld [vmem:[%s11089_s3 + $0x1990] sm:$0xff]  ;;  %5282 = vmatpush.msrb.mxu0 %v4076_v7  ;;  %v3513_v7 = vld [vmem:[%s11089_s3 + $0x3f8] sm:$0xff] }
 0x5bb   : > { %v4272_v9 = vld [vmem:[%s11089_s3 + $0x1bb0] sm:$0xff]  ;;  %5322 = vmatpush.msrb.mxu2 %v4204_v0 }
 0x5bc   : > { %v4100_v10 = vld [vmem:[%s11089_s3 + $0x1650] sm:$0xff]  ;;  %5341 = vmatpush.msra.mxu3 %v4272_v9  ;;  %v6047_v9 = vld.sshfl [vmem:[#allocation1 + $0x18] sm:$0xff pattern:$0x73625140] }
 0x5bd   : > { %v4072_v1 = vld [vmem:[%s11089_s3 + $0x1570] sm:$0xff]  ;;  %5312 = vmatpush.msra.mxu1 %v4100_v10 }
 0x5be   : > { %v4200_v11 = vld [vmem:[%s11089_s3 + $0x1970] sm:$0xff]  ;;  %5283 = vmatpush.msrb.mxu0 %v4072_v1 }
 0x5bf   : > { %v4268_v12 = vld [vmem:[%s11089_s3 + $0x1b90] sm:$0xff]  ;;  %5323 = vmatpush.msrb.mxu2 %v4200_v11  ;;  %v6048_v11 = vld.sshfl [vmem:[#allocation1 + $0x20] sm:$0xff pattern:$0x73625140] }
 0x5c0   : > { %v4096_v21 = vld [vmem:[%s11089_s3 + $0x1630] sm:$0xff]  ;;  %5342 = vmatpush.msra.mxu3 %v4268_v12  ;;  %v3445_v12 = vld [vmem:[%s11089_s3 + $0x1d8] sm:$0xff] }
 0x5c1   : > { %v4068_v14 = vld [vmem:[%s11089_s3 + $0x1550] sm:$0xff]  ;;  %5313 = vmatpush.msra.mxu1 %v4096_v21  ;;  %v3509_v21 = vld [vmem:[%s11089_s3 + $0x3d8] sm:$0xff] }
 0x5c2   : > { %v4196_v36 = vld [vmem:[%s11089_s3 + $0x1950] sm:$0xff]  ;;  %5284 = vmatpush.msrb.mxu0 %v4068_v14  ;;  %v3577_v14 = vld [vmem:[%s11089_s3 + $0x5f8] sm:$0xff] }
 0x5c3   : > { %v4264_v16 = vld [vmem:[%s11089_s3 + $0x1b70] sm:$0xff]  ;;  %5324 = vmatpush.msrb.mxu2 %v4196_v36 }
 0x5c4   : > { %v4092_v40 = vld [vmem:[%s11089_s3 + $0x1610] sm:$0xff]  ;;  %5343 = vmatpush.msra.mxu3 %v4264_v16  ;;  %v3441_v16 = vld [vmem:[%s11089_s3 + $0x1b8] sm:$0xff] }
 0x5c5   : > { %v4064_v18 = vld [vmem:[%s11089_s3 + $0x1530] sm:$0xff]  ;;  %5314 = vmatpush.msra.mxu1 %v4092_v40  ;;  %v3505_v40 = vld [vmem:[%s11089_s3 + $0x3b8] sm:$0xff] }
 0x5c6   : > { %v4192_v22 = vld [vmem:[%s11089_s3 + $0x1930] sm:$0xff]  ;;  %5285 = vmatpush.msrb.mxu0 %v4064_v18  ;;  %5315 = vmatmul.f32.vlgmr.msra.gmra.mxu1 %v6047_v9  ;;  %v3573_v18 = vld [vmem:[%s11089_s3 + $0x5d8] sm:$0xff] }
 0x5c7   : > { %v4260_v23 = vld [vmem:[%s11089_s3 + $0x1b50] sm:$0xff]  ;;  %5325 = vmatpush.msrb.mxu2 %v4192_v22  ;;  %v3529_v9 = vld [vmem:[%s11089_s3 + $0x478] sm:$0xff] }
 0x5c8   : > { %v4384_v3 = vld [vmem:[%s11089_s3 + $0x1f30] sm:$0xff]  ;;  %5344 = vmatpush.msra.mxu3 %v4260_v23  ;;  %v3437_v23 = vld [vmem:[%s11089_s3 + $0x198] sm:$0xff] }
 0x5c9   : > { %v4060_v28 = vld [vmem:[%s11089_s3 + $0x1510] sm:$0xff]  ;;  %5385 = vmatpush.msrb.mxu1 %v4384_v3  ;;  %v3569_v3 = vld [vmem:[%s11089_s3 + $0x5b8] sm:$0xff] }
 0x5ca   : > { %v4188_v26 = vld [vmem:[%s11089_s3 + $0x1910] sm:$0xff]  ;;  %5286 = vmatpush.msrb.mxu0 %v4060_v28 }
 0x5cb   : > { %v4256_v35 = vld [vmem:[%s11089_s3 + $0x1b30] sm:$0xff]  ;;  %5326 = vmatpush.msrb.mxu2 %v4188_v26  ;;  %v3433_v26 = vld [vmem:[%s11089_s3 + $0x178] sm:$0xff] }
 0x5cc   : > { %v4380_v8 = vld [vmem:[%s11089_s3 + $0x1f10] sm:$0xff]  ;;  %5345 = vmatpush.msra.mxu3 %v4256_v35  ;;  %v3497_v35 = vld [vmem:[%s11089_s3 + $0x378] sm:$0xff] }
 0x5cd   : > { %v4056_v33 = vld [vmem:[%s11089_s3 + $0x14f0] sm:$0xff]  ;;  %5386 = vmatpush.msrb.mxu1 %v4380_v8  ;;  %v3565_v8 = vld [vmem:[%s11089_s3 + $0x598] sm:$0xff] }
 0x5ce   : > { %v4184_v41 = vld [vmem:[%s11089_s3 + $0x18f0] sm:$0xff]  ;;  %5287 = vmatpush.msrb.mxu0 %v4056_v33 }
 0x5cf   : > { %v4252_v37 = vld [vmem:[%s11089_s3 + $0x1b10] sm:$0xff]  ;;  %5327 = vmatpush.msrb.mxu2 %v4184_v41  ;;  %v3429_v41 = vld [vmem:[%s11089_s3 + $0x158] sm:$0xff] }
 0x5d0   : > { %v4376_v34 = vld [vmem:[%s11089_s3 + $0x1ef0] sm:$0xff]  ;;  %5346 = vmatpush.msra.mxu3 %v4252_v37  ;;  %v3493_v37 = vld [vmem:[%s11089_s3 + $0x358] sm:$0xff] }
 0x5d1   : > { %v4052_v39 = vld [vmem:[%s11089_s3 + $0x14d0] sm:$0xff]  ;;  %5387 = vmatpush.msrb.mxu1 %v4376_v34  ;;  %v3561_v34 = vld [vmem:[%s11089_s3 + $0x578] sm:$0xff] }
 0x5d2   : > { %v4180_v46 = vld [vmem:[%s11089_s3 + $0x18d0] sm:$0xff]  ;;  %5288 = vmatpush.msrb.mxu0 %v4052_v39 }
 0x5d3   : > { %v4248_v42 = vld [vmem:[%s11089_s3 + $0x1af0] sm:$0xff]  ;;  %5328 = vmatpush.msrb.mxu2 %v4180_v46  ;;  %v3425_v46 = vld [vmem:[%s11089_s3 + $0x138] sm:$0xff] }
 0x5d4   : > { %v4372_v43 = vld [vmem:[%s11089_s3 + $0x1ed0] sm:$0xff]  ;;  %5347 = vmatpush.msra.mxu3 %v4248_v42  ;;  %v3489_v42 = vld [vmem:[%s11089_s3 + $0x338] sm:$0xff] }
 0x5d5   : > { %v4048_v44 = vld [vmem:[%s11089_s3 + $0x14b0] sm:$0xff]  ;;  %5388 = vmatpush.msrb.mxu1 %v4372_v43  ;;  %v3557_v43 = vld [vmem:[%s11089_s3 + $0x558] sm:$0xff] }
 0x5d6   : > { %v4176_v45 = vld [vmem:[%s11089_s3 + $0x18b0] sm:$0xff]  ;;  %5289 = vmatpush.msrb.mxu0 %v4048_v44 }
 0x5d7   : > { %v4244_v38 = vld [vmem:[%s11089_s3 + $0x1ad0] sm:$0xff]  ;;  %5329 = vmatpush.msrb.mxu2 %v4176_v45  ;;  %v3421_v45 = vld [vmem:[%s11089_s3 + $0x118] sm:$0xff] }
 0x5d8   : > { %v4368_v47 = vld [vmem:[%s11089_s3 + $0x1eb0] sm:$0xff]  ;;  %5348 = vmatpush.msra.mxu3 %v4244_v38  ;;  %v3485_v38 = vld [vmem:[%s11089_s3 + $0x318] sm:$0xff] }
 0x5d9   : > { %v4044_v30 = vld [vmem:[%s11089_s3 + $0x1490] sm:$0xff]  ;;  %5389 = vmatpush.msrb.mxu1 %v4368_v47  ;;  %v3553_v47 = vld [vmem:[%s11089_s3 + $0x538] sm:$0xff] }
 0x5da   : > { %v4172_v48 = vld [vmem:[%s11089_s3 + $0x1890] sm:$0xff]  ;;  %5290 = vmatpush.msrb.mxu0 %v4044_v30 }
 0x5db   : > { %v4240_v13 = vld [vmem:[%s11089_s3 + $0x1ab0] sm:$0xff]  ;;  %5330 = vmatpush.msrb.mxu2 %v4172_v48  ;;  %v3417_v48 = vld [vmem:[%s11089_s3 + $0xf8] sm:$0xff] }
 0x5dc   : > { %v4364_v20 = vld [vmem:[%s11089_s3 + $0x1e90] sm:$0xff]  ;;  %5349 = vmatpush.msra.mxu3 %v4240_v13  ;;  %v3481_v13 = vld [vmem:[%s11089_s3 + $0x2f8] sm:$0xff] }
 0x5dd   : > { %v4040_v29 = vld [vmem:[%s11089_s3 + $0x1470] sm:$0xff]  ;;  %5390 = vmatpush.msrb.mxu1 %v4364_v20  ;;  %v3549_v20 = vld [vmem:[%s11089_s3 + $0x518] sm:$0xff] }
 0x5de   : > { %v4168_v50 = vld [vmem:[%s11089_s3 + $0x1870] sm:$0xff]  ;;  %5291 = vmatpush.msrb.mxu0 %v4040_v29 }
 0x5df   : > { %v4236_v49 = vld [vmem:[%s11089_s3 + $0x1a90] sm:$0xff]  ;;  %5331 = vmatpush.msrb.mxu2 %v4168_v50  ;;  %v3413_v50 = vld [vmem:[%s11089_s3 + $0xd8] sm:$0xff] }
 0x5e0   : > { %v4360_v51 = vld [vmem:[%s11089_s3 + $0x1e70] sm:$0xff]  ;;  %5350 = vmatpush.msra.mxu3 %v4236_v49  ;;  %v3477_v49 = vld [vmem:[%s11089_s3 + $0x2d8] sm:$0xff] }
 0x5e1   : > { %v4036_v15 = vld [vmem:[%s11089_s3 + $0x1450] sm:$0xff]  ;;  %5391 = vmatpush.msrb.mxu1 %v4360_v51  ;;  %v3545_v51 = vld [vmem:[%s11089_s3 + $0x4f8] sm:$0xff] }
 0x5e2   : > { %v4164_v27 = vld [vmem:[%s11089_s3 + $0x1850] sm:$0xff]  ;;  %5292 = vmatpush.msrb.mxu0 %v4036_v15 }
 0x5e3   : > { %v4232_v52 = vld [vmem:[%s11089_s3 + $0x1a70] sm:$0xff]  ;;  %5332 = vmatpush.msrb.mxu2 %v4164_v27  ;;  %v3409_v27 = vld [vmem:[%s11089_s3 + $0xb8] sm:$0xff] }
 0x5e4   : > { %v4356_v53 = vld [vmem:[%s11089_s3 + $0x1e50] sm:$0xff]  ;;  %5351 = vmatpush.msra.mxu3 %v4232_v52  ;;  %v3473_v52 = vld [vmem:[%s11089_s3 + $0x2b8] sm:$0xff] }
 0x5e5   : > { %v4032_v32 = vld [vmem:[%s11089_s3 + $0x1430] sm:$0xff]  ;;  %5392 = vmatpush.msrb.mxu1 %v4356_v53  ;;  %v3541_v53 = vld [vmem:[%s11089_s3 + $0x4d8] sm:$0xff] }
 0x5e6   : > { %v4160_v54 = vld [vmem:[%s11089_s3 + $0x1830] sm:$0xff]  ;;  %5293 = vmatpush.msrb.mxu0 %v4032_v32 }
 0x5e7   : > { %v4228_v17 = vld [vmem:[%s11089_s3 + $0x1a50] sm:$0xff]  ;;  %5333 = vmatpush.msrb.mxu2 %v4160_v54  ;;  %v3405_v54 = vld [vmem:[%s11089_s3 + $0x98] sm:$0xff] }
 0x5e8   : > { %v4352_v31 = vld [vmem:[%s11089_s3 + $0x1e30] sm:$0xff]  ;;  %5352 = vmatpush.msra.mxu3 %v4228_v17  ;;  %v3469_v17 = vld [vmem:[%s11089_s3 + $0x298] sm:$0xff] }
 0x5e9   : > { %v4028_v55 = vld [vmem:[%s11089_s3 + $0x1410] sm:$0xff]  ;;  %5393 = vmatpush.msrb.mxu1 %v4352_v31  ;;  %v3537_v31 = vld [vmem:[%s11089_s3 + $0x4b8] sm:$0xff] }
 0x5ea   : > { %v4156_v60 = vld [vmem:[%s11089_s3 + $0x1810] sm:$0xff]  ;;  %5294 = vmatpush.msrb.mxu0 %v4028_v55 }
 0x5eb   : > { %v4224_v25 = vld [vmem:[%s11089_s3 + $0x1a30] sm:$0xff]  ;;  %5334 = vmatpush.msrb.mxu2 %v4156_v60  ;;  %v3401_v60 = vld [vmem:[%s11089_s3 + $0x78] sm:$0xff] }
 0x5ec   : > { %v4348_v62 = vld [vmem:[%s11089_s3 + $0x1e10] sm:$0xff]  ;;  %5353 = vmatpush.msra.mxu3 %v4224_v25  ;;  %5335 = vmatmul.f32.vlgmr.msrb.gmra.mxu2 %v6048_v11  ;;  %v3465_v25 = vld [vmem:[%s11089_s3 + $0x278] sm:$0xff] }
 0x5ed   : > { %v4344_v63 = vld [vmem:[%s11089_s3 + $0x1df0] sm:$0xff]  ;;  %5394 = vmatpush.msrb.mxu1 %v4348_v62  ;;  %5419 = vmatpush.msra.mxu2 %v3513_v7  ;;  %v3533_v62 = vld [vmem:[%s11089_s3 + $0x498] sm:$0xff] }
 0x5ee   : > { %v9975_v0 = vld.sshfl [vmem:[#allocation1 + $0x10] sm:$0xff pattern:$0x73625140]  ;;  %5359 = vmatpush.msra.mxu0 %v4344_v63  ;;  %v3461_v7 = vld [vmem:[%s11089_s3 + $0x258] sm:$0xff] }
 0x5ef   : > { %5295 = vmatmul.f32.vlgmr.msrb.gmra.mxu0 %v9975_v0  ;;  %v4220_v10 = vld [vmem:[%s11089_s3 + $0x1a10] sm:$0xff]  ;;  %5399 = vmatpush.msra.mxu1 %v3449_v61  ;;  %v3397_v61 = vld [vmem:[%s11089_s3 + $0x58] sm:$0xff] }
 0x5f0   : > { %v4340_v1 = vld [vmem:[%s11089_s3 + $0x1dd0] sm:$0xff]  ;;  %5354 = vmatpush.msra.mxu3 %v4220_v10  ;;  %5420 = vmatpush.msra.mxu2 %v3509_v21  ;;  %v3457_v11 = vld [vmem:[%s11089_s3 + $0x238] sm:$0xff] }
 0x5f1   : > { %5360 = vmatpush.msra.mxu0 %v4340_v1  ;;  %v4336_v36 = vld [vmem:[%s11089_s3 + $0x1db0] sm:$0xff]  ;;  %5355 = vmatmul.f32.vlgmr.msra.gmra.mxu3 %v9393_v24  ;;  %v3501_v24 = vld [vmem:[%s11089_s3 + $0x398] sm:$0xff] }
 0x5f2   : > { %5400 = vmatpush.msra.mxu1 %v3445_v12  ;;  %5439 = vmatpush.msrb.mxu3 %v3577_v14  ;;  %v4332_v22 = vld [vmem:[%s11089_s3 + $0x1d90] sm:$0xff]  ;;  %v3393_v1 = vld [vmem:[%s11089_s3 + $0x38] sm:$0xff] }
 0x5f3   : > { %5361 = vmatpush.msra.mxu0 %v4336_v36  ;;  %5421 = vmatpush.msra.mxu2 %v3505_v40  ;;  %v4328_v28 = vld [vmem:[%s11089_s3 + $0x1d70] sm:$0xff]  ;;  %v3525_v12 = vld [vmem:[%s11089_s3 + $0x458] sm:$0xff] }
 0x5f4   : > { %5401 = vmatpush.msra.mxu1 %v3441_v16  ;;  %5440 = vmatpush.msrb.mxu3 %v3573_v18  ;;  %v4324_v33 = vld [vmem:[%s11089_s3 + $0x1d50] sm:$0xff]  ;;  %v3389_v14 = vld [vmem:[%s11089_s3 + $0x18] sm:$0xff] }
 0x5f5   : > { %5362 = vmatpush.msra.mxu0 %v4332_v22  ;;  %5422 = vmatpush.msra.mxu2 %v3501_v24  ;;  %v4320_v39 = vld [vmem:[%s11089_s3 + $0x1d30] sm:$0xff]  ;;  %v3453_v36 = vld [vmem:[%s11089_s3 + $0x218] sm:$0xff] }
 0x5f6   : > { %5402 = vmatpush.msra.mxu1 %v3437_v23  ;;  %5441 = vmatpush.msrb.mxu3 %v3569_v3  ;;  %v4316_v44 = vld [vmem:[%s11089_s3 + $0x1d10] sm:$0xff]  ;;  %v3521_v16 = vld [vmem:[%s11089_s3 + $0x438] sm:$0xff] }
 0x5f7   : > { %5363 = vmatpush.msra.mxu0 %v4328_v28  ;;  %5423 = vmatpush.msra.mxu2 %v3497_v35  ;;  %v4312_v30 = vld [vmem:[%s11089_s3 + $0x1cf0] sm:$0xff]  ;;  %v3641_v40 = vld [vmem:[%s11089_s3 + $0x7f8] sm:$0xff] }
 0x5f8   : > { %5403 = vmatpush.msra.mxu1 %v3433_v26  ;;  %5442 = vmatpush.msrb.mxu3 %v3565_v8  ;;  %v4308_v29 = vld [vmem:[%s11089_s3 + $0x1cd0] sm:$0xff]  ;;  %v3705_v18 = vld [vmem:[%s11089_s3 + $0x9f8] sm:$0xff] }
 0x5f9   : > { %5364 = vmatpush.msra.mxu0 %v4324_v33  ;;  %5424 = vmatpush.msra.mxu2 %v3493_v37  ;;  %v4304_v15 = vld [vmem:[%s11089_s3 + $0x1cb0] sm:$0xff]  ;;  %v3769_v22 = vld [vmem:[%s11089_s3 + $0xbf8] sm:$0xff] }
 0x5fa   : > { %5404 = vmatpush.msra.mxu1 %v3429_v41  ;;  %5443 = vmatpush.msrb.mxu3 %v3561_v34  ;;  %v4300_v32 = vld [vmem:[%s11089_s3 + $0x1c90] sm:$0xff]  ;;  %v3517_v23 = vld [vmem:[%s11089_s3 + $0x418] sm:$0xff] }
 0x5fb   : > { %5365 = vmatpush.msra.mxu0 %v4320_v39  ;;  %5425 = vmatpush.msra.mxu2 %v3489_v42  ;;  %v4296_v55 = vld [vmem:[%s11089_s3 + $0x1c70] sm:$0xff]  ;;  %v6050_v3 = vld.sshfl [vmem:[#allocation1 + $0x38] sm:$0xff pattern:$0x73625140] }
 0x5fc   : > { %5405 = vmatpush.msra.mxu1 %v3425_v46  ;;  %5444 = vmatpush.msrb.mxu3 %v3557_v43  ;;  %v4292_v63 = vld [vmem:[%s11089_s3 + $0x1c50] sm:$0xff]  ;;  %v3637_v28 = vld [vmem:[%s11089_s3 + $0x7d8] sm:$0xff] }
 0x5fd   : > { %5366 = vmatpush.msra.mxu0 %v4316_v44  ;;  %5426 = vmatpush.msra.mxu2 %v3485_v38  ;;  %v4288_v10 = vld [vmem:[%s11089_s3 + $0x1c30] sm:$0xff]  ;;  %v3701_v26 = vld [vmem:[%s11089_s3 + $0x9d8] sm:$0xff] }
 0x5fe   : > { %5406 = vmatpush.msra.mxu1 %v3421_v45  ;;  %5445 = vmatpush.msrb.mxu3 %v3553_v47  ;;  %v4284_v21 = vld [vmem:[%s11089_s3 + $0x1c10] sm:$0xff]  ;;  %v3765_v35 = vld [vmem:[%s11089_s3 + $0xbd8] sm:$0xff] }
 0x5ff   : > { %5367 = vmatpush.msra.mxu0 %v4312_v30  ;;  %5427 = vmatpush.msra.mxu2 %v3481_v13  ;;  %v10174_v24 = vld.sshfl [vmem:[#allocation1 + $0x30] sm:$0xff pattern:$0x73625140]  ;;  %v3833_v8 = vld [vmem:[%s11089_s3 + $0xdf8] sm:$0xff] }
 0x600   : > { %5407 = vmatpush.msra.mxu1 %v3417_v48  ;;  %5446 = vmatpush.msrb.mxu3 %v3549_v20  ;;  %v3633_v33 = vld [vmem:[%s11089_s3 + $0x7b8] sm:$0xff] }
 0x601   : > { %5368 = vmatpush.msra.mxu0 %v4308_v29  ;;  %5428 = vmatpush.msra.mxu2 %v3477_v49  ;;  %v3697_v41 = vld [vmem:[%s11089_s3 + $0x9b8] sm:$0xff] }
 0x602   : > { %5408 = vmatpush.msra.mxu1 %v3413_v50  ;;  %5447 = vmatpush.msrb.mxu3 %v3545_v51  ;;  %v3761_v37 = vld [vmem:[%s11089_s3 + $0xbb8] sm:$0xff] }
 0x603   : > { %5369 = vmatpush.msra.mxu0 %v4304_v15  ;;  %5429 = vmatpush.msra.mxu2 %v3473_v52  ;;  %v3829_v34 = vld [vmem:[%s11089_s3 + $0xdd8] sm:$0xff] }
 0x604   : > { %5409 = vmatpush.msra.mxu1 %v3409_v27  ;;  %5448 = vmatpush.msrb.mxu3 %v3541_v53  ;;  %v3629_v39 = vld [vmem:[%s11089_s3 + $0x798] sm:$0xff] }
 0x605   : > { %5370 = vmatpush.msra.mxu0 %v4300_v32  ;;  %5430 = vmatpush.msra.mxu2 %v3469_v17  ;;  %v3693_v46 = vld [vmem:[%s11089_s3 + $0x998] sm:$0xff] }
 0x606   : > { %5410 = vmatpush.msra.mxu1 %v3405_v54  ;;  %5449 = vmatpush.msrb.mxu3 %v3537_v31  ;;  %v3757_v42 = vld [vmem:[%s11089_s3 + $0xb98] sm:$0xff] }
 0x607   : > { %5371 = vmatpush.msra.mxu0 %v4296_v55  ;;  %5431 = vmatpush.msra.mxu2 %v3465_v25  ;;  %v3825_v43 = vld [vmem:[%s11089_s3 + $0xdb8] sm:$0xff] }
 0x608   : > { %5411 = vmatpush.msra.mxu1 %v3401_v60  ;;  %5450 = vmatpush.msrb.mxu3 %v3533_v62  ;;  %v3625_v44 = vld [vmem:[%s11089_s3 + $0x778] sm:$0xff] }
 0x609   : > { %5372 = vmatpush.msra.mxu0 %v4292_v63  ;;  %5432 = vmatpush.msra.mxu2 %v3461_v7  ;;  %v3689_v45 = vld [vmem:[%s11089_s3 + $0x978] sm:$0xff] }
 0x60a   : > { %5412 = vmatpush.msra.mxu1 %v3397_v61  ;;  %5451 = vmatpush.msrb.mxu3 %v3529_v9  ;;  %v3753_v38 = vld [vmem:[%s11089_s3 + $0xb78] sm:$0xff] }
 0x60b   : > { %5373 = vmatpush.msra.mxu0 %v4288_v10  ;;  %5433 = vmatpush.msra.mxu2 %v3457_v11  ;;  %v3821_v47 = vld [vmem:[%s11089_s3 + $0xd98] sm:$0xff] }
 0x60c   : > { %5413 = vmatpush.msra.mxu1 %v3393_v1  ;;  %5452 = vmatpush.msrb.mxu3 %v3525_v12  ;;  %v3621_v30 = vld [vmem:[%s11089_s3 + $0x758] sm:$0xff] }
 0x60d   : > { %5374 = vmatpush.msra.mxu0 %v4284_v21  ;;  %5434 = vmatpush.msra.mxu2 %v3453_v36  ;;  %v3685_v48 = vld [vmem:[%s11089_s3 + $0x958] sm:$0xff] }
 0x60e   : > { %5414 = vmatpush.msra.mxu1 %v3389_v14  ;;  %5453 = vmatpush.msrb.mxu3 %v3521_v16  ;;  %v3749_v13 = vld [vmem:[%s11089_s3 + $0xb58] sm:$0xff] }
 0x60f   : > { %5375 = vmatmul.f32.vlgmr.msra.gmra.mxu0 %v10174_v24  ;;  %5995 = vmatmul.msk.f32.vlgmr.msrb.gmra.mxu1 %vm4436_vm15, %v6050_v3  ;;  %v3817_v20 = vld [vmem:[%s11089_s3 + $0xd78] sm:$0xff] }
 0x610   : > { %5459 = vmatpush.msrb.mxu0 %v3641_v40  ;;  %5479 = vmatpush.msrb.mxu1 %v3705_v18  ;;  %v3617_v29 = vld [vmem:[%s11089_s3 + $0x738] sm:$0xff] }
 0x611   : > { %5499 = vmatpush.msrb.mxu2 %v3769_v22  ;;  %5454 = vmatpush.msrb.mxu3 %v3517_v23  ;;  %v3681_v50 = vld [vmem:[%s11089_s3 + $0x938] sm:$0xff] }
 0x612   : > { %5460 = vmatpush.msrb.mxu0 %v3637_v28  ;;  %5480 = vmatpush.msrb.mxu1 %v3701_v26  ;;  %v3745_v49 = vld [vmem:[%s11089_s3 + $0xb38] sm:$0xff] }
 0x613   : > { %5500 = vmatpush.msrb.mxu2 %v3765_v35  ;;  %5519 = vmatpush.msra.mxu3 %v3833_v8  ;;  %v3813_v51 = vld [vmem:[%s11089_s3 + $0xd58] sm:$0xff] }
 0x614   : > { %5461 = vmatpush.msrb.mxu0 %v3633_v33  ;;  %5481 = vmatpush.msrb.mxu1 %v3697_v41  ;;  %v3613_v15 = vld [vmem:[%s11089_s3 + $0x718] sm:$0xff] }
 0x615   : > { %5501 = vmatpush.msrb.mxu2 %v3761_v37  ;;  %5520 = vmatpush.msra.mxu3 %v3829_v34  ;;  %v3677_v27 = vld [vmem:[%s11089_s3 + $0x918] sm:$0xff] }
 0x616   : > { %5462 = vmatpush.msrb.mxu0 %v3629_v39  ;;  %5482 = vmatpush.msrb.mxu1 %v3693_v46  ;;  %v3741_v52 = vld [vmem:[%s11089_s3 + $0xb18] sm:$0xff] }
 0x617   : > { %5502 = vmatpush.msrb.mxu2 %v3757_v42  ;;  %5521 = vmatpush.msra.mxu3 %v3825_v43  ;;  %v3809_v53 = vld [vmem:[%s11089_s3 + $0xd38] sm:$0xff] }
 0x618   : > { %5463 = vmatpush.msrb.mxu0 %v3625_v44  ;;  %5483 = vmatpush.msrb.mxu1 %v3689_v45  ;;  %v3609_v32 = vld [vmem:[%s11089_s3 + $0x6f8] sm:$0xff] }
 0x619   : > { %5503 = vmatpush.msrb.mxu2 %v3753_v38  ;;  %5522 = vmatpush.msra.mxu3 %v3821_v47  ;;  %v3673_v54 = vld [vmem:[%s11089_s3 + $0x8f8] sm:$0xff] }
 0x61a   : > { %5464 = vmatpush.msrb.mxu0 %v3621_v30  ;;  %5484 = vmatpush.msrb.mxu1 %v3685_v48  ;;  %v3737_v17 = vld [vmem:[%s11089_s3 + $0xaf8] sm:$0xff] }
 0x61b   : > { %5504 = vmatpush.msrb.mxu2 %v3749_v13  ;;  %5523 = vmatpush.msra.mxu3 %v3817_v20  ;;  %v3805_v31 = vld [vmem:[%s11089_s3 + $0xd18] sm:$0xff] }
 0x61c   : > { %5465 = vmatpush.msrb.mxu0 %v3617_v29  ;;  %5485 = vmatpush.msrb.mxu1 %v3681_v50  ;;  %v3605_v55 = vld [vmem:[%s11089_s3 + $0x6d8] sm:$0xff] }
 0x61d   : > { %5505 = vmatpush.msrb.mxu2 %v3745_v49  ;;  %5524 = vmatpush.msra.mxu3 %v3813_v51  ;;  %v3669_v60 = vld [vmem:[%s11089_s3 + $0x8d8] sm:$0xff] }
 0x61e   : > { %5466 = vmatpush.msrb.mxu0 %v3613_v15  ;;  %5486 = vmatpush.msrb.mxu1 %v3677_v27  ;;  %v3733_v25 = vld [vmem:[%s11089_s3 + $0xad8] sm:$0xff] }
 0x61f   : > { %5506 = vmatpush.msrb.mxu2 %v3741_v52  ;;  %5525 = vmatpush.msra.mxu3 %v3809_v53  ;;  %v3801_v62 = vld [vmem:[%s11089_s3 + $0xcf8] sm:$0xff] }
 0x620   : > { %5467 = vmatpush.msrb.mxu0 %v3609_v32  ;;  %5487 = vmatpush.msrb.mxu1 %v3673_v54  ;;  %v3601_v63 = vld [vmem:[%s11089_s3 + $0x6b8] sm:$0xff] }
 0x621   : > { %5507 = vmatpush.msrb.mxu2 %v3737_v17  ;;  %5526 = vmatpush.msra.mxu3 %v3805_v31  ;;  %v3665_v61 = vld [vmem:[%s11089_s3 + $0x8b8] sm:$0xff]  ;;  %v10442_v31 = vpop.f32.mrf.mxu2 }
 0x622   : > { %5468 = vmatpush.msrb.mxu0 %v3605_v55  ;;  %5488 = vmatpush.msrb.mxu1 %v3669_v60  ;;  %v3729_v7 = vld [vmem:[%s11089_s3 + $0xab8] sm:$0xff] }
 0x623   : > { %v3797_v9 = vld [vmem:[%s11089_s3 + $0xcd8] sm:$0xff]  ;;  %5508 = vmatpush.msrb.mxu2 %v3733_v25  ;;  %5527 = vmatpush.msra.mxu3 %v3801_v62 }
 0x624   : > { %v3597_v10 = vld [vmem:[%s11089_s3 + $0x698] sm:$0xff]  ;;  %5469 = vmatpush.msrb.mxu0 %v3601_v63  ;;  %5489 = vmatpush.msrb.mxu1 %v3665_v61  ;;  %v10456_v63 = vpop.f32.mrf.mxu3 }
 0x625   : > { %v3661_v1 = vld [vmem:[%s11089_s3 + $0x898] sm:$0xff]  ;;  %5509 = vmatpush.msrb.mxu2 %v3729_v7  ;;  %5528 = vmatpush.msra.mxu3 %v3797_v9 }
 0x626   : > { %v3725_v11 = vld [vmem:[%s11089_s3 + $0xa98] sm:$0xff]  ;;  %5470 = vmatpush.msrb.mxu0 %v3597_v10  ;;  %5490 = vmatpush.msrb.mxu1 %v3661_v1 }
 0x627   : > { %v3793_v12 = vld [vmem:[%s11089_s3 + $0xcb8] sm:$0xff]  ;;  %5510 = vmatpush.msrb.mxu2 %v3725_v11  ;;  %5415 = vmatmul.f32.vlgmr.msra.gmra.mxu1 %v8073_v57 }
 0x628   : > { %v3593_v21 = vld [vmem:[%s11089_s3 + $0x678] sm:$0xff]  ;;  %5529 = vmatpush.msra.mxu3 %v3793_v12  ;;  %5435 = vmatmul.f32.vlgmr.msra.gmra.mxu2 %v8075_v58 }
 0x629   : > { %v3657_v14 = vld [vmem:[%s11089_s3 + $0x878] sm:$0xff]  ;;  %5471 = vmatpush.msrb.mxu0 %v3593_v21  ;;  %5455 = vmatmul.f32.vlgmr.msrb.gmra.mxu3 %v8071_v56 }
 0x62a   : > { %v3721_v36 = vld [vmem:[%s11089_s3 + $0xa78] sm:$0xff]  ;;  %5491 = vmatpush.msrb.mxu1 %v3657_v14 }
 0x62b   : > { %v3789_v16 = vld [vmem:[%s11089_s3 + $0xc98] sm:$0xff]  ;;  %5511 = vmatpush.msrb.mxu2 %v3721_v36  ;;  %v10486_v36 = vpop.f32.mrf.mxu0 }
 0x62c   : > { %v3589_v40 = vld [vmem:[%s11089_s3 + $0x658] sm:$0xff]  ;;  %5530 = vmatpush.msra.mxu3 %v3789_v16  ;;  %v10488_v16 = vpop.f32.mrf.mxu2 }
 0x62d   : > { %v3653_v18 = vld [vmem:[%s11089_s3 + $0x858] sm:$0xff]  ;;  %5472 = vmatpush.msrb.mxu0 %v3589_v40 }
 0x62e   : > { %v3717_v22 = vld [vmem:[%s11089_s3 + $0xa58] sm:$0xff]  ;;  %5492 = vmatpush.msrb.mxu1 %v3653_v18 }
 0x62f   : > { %v3785_v23 = vld [vmem:[%s11089_s3 + $0xc78] sm:$0xff]  ;;  %5512 = vmatpush.msrb.mxu2 %v3717_v22 }
 0x630   : > { %v3585_v3 = vld [vmem:[%s11089_s3 + $0x638] sm:$0xff]  ;;  %5531 = vmatpush.msra.mxu3 %v3785_v23 }
 0x631   : > { %v3649_v28 = vld [vmem:[%s11089_s3 + $0x838] sm:$0xff]  ;;  %5473 = vmatpush.msrb.mxu0 %v3585_v3 }
 0x632   : > { %v3713_v26 = vld [vmem:[%s11089_s3 + $0xa38] sm:$0xff]  ;;  %5493 = vmatpush.msrb.mxu1 %v3649_v28 }
 0x633   : > { %v3781_v35 = vld [vmem:[%s11089_s3 + $0xc58] sm:$0xff]  ;;  %5513 = vmatpush.msrb.mxu2 %v3713_v26  ;;  %v10513_v26 = vpop.f32.mrf.mxu1 }
 0x634   : > { %v3581_v8 = vld [vmem:[%s11089_s3 + $0x618] sm:$0xff]  ;;  %5532 = vmatpush.msra.mxu3 %v3781_v35  ;;  %v10515_v35 = vpop.f32.mrf.mxu3 }
 0x635   : > { %v3645_v33 = vld [vmem:[%s11089_s3 + $0x818] sm:$0xff]  ;;  %5474 = vmatpush.msrb.mxu0 %v3581_v8 }
 0x636   : > { %v3709_v41 = vld [vmem:[%s11089_s3 + $0xa18] sm:$0xff]  ;;  %5494 = vmatpush.msrb.mxu1 %v3645_v33  ;;  %5475 = vmatmul.f32.vlgmr.msrb.gmra.mxu0 %v8077_v59 }
 0x637   : > { %v3777_v37 = vld [vmem:[%s11089_s3 + $0xc38] sm:$0xff]  ;;  %5514 = vmatpush.msrb.mxu2 %v3709_v41  ;;  %5495 = vmatmul.f32.vlgmr.msrb.gmra.mxu1 %v8097_v2 }
 0x638   : > { %v3897_v34 = vld [vmem:[%s11089_s3 + $0xff8] sm:$0xff]  ;;  %5533 = vmatpush.msra.mxu3 %v3777_v37  ;;  %5515 = vmatmul.f32.vlgmr.msrb.gmra.mxu2 %v8101_v6 }
 0x639   : > { %v3961_v39 = vld [vmem:[%s11089_s3 + $0x11f8] sm:$0xff]  ;;  %5539 = vmatpush.msra.mxu0 %v3897_v34 }
 0x63a   : > { %v4025_v46 = vld [vmem:[%s11089_s3 + $0x13f8] sm:$0xff]  ;;  %5559 = vmatpush.msra.mxu1 %v3961_v39  ;;  %v10542_v39 = vpop.f32.mrf.mxu0 }
 0x63b   : > { %v3773_v42 = vld [vmem:[%s11089_s3 + $0xc18] sm:$0xff]  ;;  %5579 = vmatpush.msra.mxu2 %v4025_v46  ;;  %v10544_v46 = vpop.f32.mrf.mxu2 }
 0x63c   : > { %v3893_v43 = vld [vmem:[%s11089_s3 + $0xfd8] sm:$0xff]  ;;  %5534 = vmatpush.msra.mxu3 %v3773_v42 }
 0x63d   : > { %v3957_v44 = vld [vmem:[%s11089_s3 + $0x11d8] sm:$0xff]  ;;  %5540 = vmatpush.msra.mxu0 %v3893_v43  ;;  %5535 = vmatmul.f32.vlgmr.msra.gmra.mxu3 %v8095_v4 }
 0x63e   : > { %v4021_v45 = vld [vmem:[%s11089_s3 + $0x13d8] sm:$0xff]  ;;  %5560 = vmatpush.msra.mxu1 %v3957_v44 }
 0x63f   : > { %v4089_v57 = vld [vmem:[%s11089_s3 + $0x15f8] sm:$0xff]  ;;  %5580 = vmatpush.msra.mxu2 %v4021_v45 }
 0x640   : > { %v3889_v58 = vld [vmem:[%s11089_s3 + $0xfb8] sm:$0xff]  ;;  %5599 = vmatpush.msrb.mxu3 %v4089_v57 }
 0x641   : > { %v3953_v38 = vld [vmem:[%s11089_s3 + $0x11b8] sm:$0xff]  ;;  %5541 = vmatpush.msra.mxu0 %v3889_v58 }
 0x642   : > { %v4017_v47 = vld [vmem:[%s11089_s3 + $0x13b8] sm:$0xff]  ;;  %5561 = vmatpush.msra.mxu1 %v3953_v38 }
 0x643   : > { %v4085_v30 = vld [vmem:[%s11089_s3 + $0x15d8] sm:$0xff]  ;;  %5581 = vmatpush.msra.mxu2 %v4017_v47 }
 0x644   : > { %v3885_v48 = vld [vmem:[%s11089_s3 + $0xf98] sm:$0xff]  ;;  %5600 = vmatpush.msrb.mxu3 %v4085_v30  ;;  %v10570_v30 = vpop.f32.mrf.mxu1 }
 0x645   : > { %v3949_v56 = vld [vmem:[%s11089_s3 + $0x1198] sm:$0xff]  ;;  %5542 = vmatpush.msra.mxu0 %v3885_v48  ;;  %v10572_v48 = vpop.f32.mrf.mxu3 }
 0x646   : > { %v4013_v13 = vld [vmem:[%s11089_s3 + $0x1398] sm:$0xff]  ;;  %5562 = vmatpush.msra.mxu1 %v3949_v56 }
 0x647   : > { %v4081_v20 = vld [vmem:[%s11089_s3 + $0x15b8] sm:$0xff]  ;;  %5582 = vmatpush.msra.mxu2 %v4013_v13 }
 0x648   : > { %v3881_v29 = vld [vmem:[%s11089_s3 + $0xf78] sm:$0xff]  ;;  %5601 = vmatpush.msrb.mxu3 %v4081_v20 }
 0x649   : > { %v3945_v50 = vld [vmem:[%s11089_s3 + $0x1178] sm:$0xff]  ;;  %5543 = vmatpush.msra.mxu0 %v3881_v29 }
 0x64a   : > { %v4009_v49 = vld [vmem:[%s11089_s3 + $0x1378] sm:$0xff]  ;;  %5563 = vmatpush.msra.mxu1 %v3945_v50 }
 0x64b   : > { %v4077_v51 = vld [vmem:[%s11089_s3 + $0x1598] sm:$0xff]  ;;  %5583 = vmatpush.msra.mxu2 %v4009_v49  ;;  %v10590_v49 = vpop.f32.mrf.mxu0 }
 0x64c   : > { %v3877_v15 = vld [vmem:[%s11089_s3 + $0xf58] sm:$0xff]  ;;  %5602 = vmatpush.msrb.mxu3 %v4077_v51  ;;  %v10592_v51 = vpop.f32.mrf.mxu2 }
 0x64d   : > { %v3941_v27 = vld [vmem:[%s11089_s3 + $0x1158] sm:$0xff]  ;;  %5544 = vmatpush.msra.mxu0 %v3877_v15  ;;  %v6051_v15 = vld.sshfl [vmem:[#allocation1 + $0x8] sm:$0xff pattern:$0x73625140] }
 0x64e   : > { %v4005_v52 = vld [vmem:[%s11089_s3 + $0x1358] sm:$0xff]  ;;  %5564 = vmatpush.msra.mxu1 %v3941_v27 }
 0x64f   : > { %v4073_v53 = vld [vmem:[%s11089_s3 + $0x1578] sm:$0xff]  ;;  %5584 = vmatpush.msra.mxu2 %v4005_v52 }
 0x650   : > { %v3873_v32 = vld [vmem:[%s11089_s3 + $0xf38] sm:$0xff]  ;;  %5603 = vmatpush.msrb.mxu3 %v4073_v53  ;;  %v10606_v53 = vld [vmem:[%s11090_s4] sm:$0xf] }
 0x651   : > { %v3937_v54 = vld [vmem:[%s11089_s3 + $0x1138] sm:$0xff]  ;;  %5545 = vmatpush.msra.mxu0 %v3873_v32  ;;  %v4389_v32 = vperm.slane %v10606_v53, 1 }
 0x652   : > { %v4001_v17 = vld [vmem:[%s11089_s3 + $0x1338] sm:$0xff]  ;;  %5565 = vmatpush.msra.mxu1 %v3937_v54  ;;  %v6053_v54 = vld.sshfl [vmem:[#allocation1] sm:$0xff pattern:$0x73625140] }
 0x653   : > { %v4069_v55 = vld [vmem:[%s11089_s3 + $0x1558] sm:$0xff]  ;;  %5585 = vmatpush.msra.mxu2 %v4001_v17 }
 0x654   : > { %v3869_v60 = vld [vmem:[%s11089_s3 + $0xf18] sm:$0xff]  ;;  %5604 = vmatpush.msrb.mxu3 %v4069_v55 }
 0x655   : > { %v3933_v25 = vld [vmem:[%s11089_s3 + $0x1118] sm:$0xff]  ;;  %5546 = vmatpush.msra.mxu0 %v3869_v60 }
 0x656   : > { %v3997_v62 = vld [vmem:[%s11089_s3 + $0x1318] sm:$0xff]  ;;  %5566 = vmatpush.msra.mxu1 %v3933_v25 }
 0x657   : > { %v4065_v61 = vld [vmem:[%s11089_s3 + $0x1538] sm:$0xff]  ;;  %5586 = vmatpush.msra.mxu2 %v3997_v62  ;;  %v10622_v62 = vpop.f32.mrf.mxu1 }
 0x658   : > { %v3865_v7 = vld [vmem:[%s11089_s3 + $0xef8] sm:$0xff]  ;;  %5605 = vmatpush.msrb.mxu3 %v4065_v61  ;;  %v10624_v61 = vpop.f32.mrf.mxu3 }
 0x659   : > { %v3929_v9 = vld [vmem:[%s11089_s3 + $0x10f8] sm:$0xff]  ;;  %5547 = vmatpush.msra.mxu0 %v3865_v7 }
 0x65a   : > { %v3993_v10 = vld [vmem:[%s11089_s3 + $0x12f8] sm:$0xff]  ;;  %5567 = vmatpush.msra.mxu1 %v3929_v9 }
 0x65b   : > { %v4061_v1 = vld [vmem:[%s11089_s3 + $0x1518] sm:$0xff]  ;;  %5587 = vmatpush.msra.mxu2 %v3993_v10 }
 0x65c   : > { %v3861_v11 = vld [vmem:[%s11089_s3 + $0xed8] sm:$0xff]  ;;  %5606 = vmatpush.msrb.mxu3 %v4061_v1  ;;  %v4777_v1 = vadd.f32 %v10456_v63, %v4389_v32 }
 0x65d   : > { %v3925_v12 = vld [vmem:[%s11089_s3 + $0x10d8] sm:$0xff]  ;;  %5548 = vmatpush.msra.mxu0 %v3861_v11 }
 0x65e   : > { %v3989_v21 = vld [vmem:[%s11089_s3 + $0x12d8] sm:$0xff]  ;;  %5568 = vmatpush.msra.mxu1 %v3925_v12 }
 0x65f   : > { %v4057_v14 = vld [vmem:[%s11089_s3 + $0x14f8] sm:$0xff]  ;;  %5588 = vmatpush.msra.mxu2 %v3989_v21  ;;  %v4390_v21 = vperm.slane %v10606_v53, 2 }
 0x660   : > { %v3857_v40 = vld [vmem:[%s11089_s3 + $0xeb8] sm:$0xff]  ;;  %5607 = vmatpush.msrb.mxu3 %v4057_v14 }
 0x661   : > { %v3921_v18 = vld [vmem:[%s11089_s3 + $0x10b8] sm:$0xff]  ;;  %5549 = vmatpush.msra.mxu0 %v3857_v40  ;;  %v10652_v40 = vpop.f32.mrf.mxu0 }
 0x662   : > { %v3985_v6 = vld [vmem:[%s11089_s3 + $0x12b8] sm:$0xff]  ;;  %5569 = vmatpush.msra.mxu1 %v3921_v18  ;;  %v5096_v18 = vpop.f32.mrf.mxu2 }
 0x663   : > { %v4053_v22 = vld [vmem:[%s11089_s3 + $0x14d8] sm:$0xff]  ;;  %5589 = vmatpush.msra.mxu2 %v3985_v6 }
 0x664   : > { %v3853_v23 = vld [vmem:[%s11089_s3 + $0xe98] sm:$0xff]  ;;  %5608 = vmatpush.msrb.mxu3 %v4053_v22 }
 0x665   : > { %v3917_v3 = vld [vmem:[%s11089_s3 + $0x1098] sm:$0xff]  ;;  %5550 = vmatpush.msra.mxu0 %v3853_v23 }
 0x666   : > { %v3981_v28 = vld [vmem:[%s11089_s3 + $0x1298] sm:$0xff]  ;;  %5570 = vmatpush.msra.mxu1 %v3917_v3 }
 0x667   : > { %v4049_v59 = vld [vmem:[%s11089_s3 + $0x14b8] sm:$0xff]  ;;  %5590 = vmatpush.msra.mxu2 %v3981_v28  ;;  %v4797_v28 = vadd.f32 %v10486_v36, %v4777_v1 }
 0x668   : > { %v3849_v4 = vld [vmem:[%s11089_s3 + $0xe78] sm:$0xff]  ;;  %5609 = vmatpush.msrb.mxu3 %v4049_v59 }
 0x669   : > { %v3913_v8 = vld [vmem:[%s11089_s3 + $0x1078] sm:$0xff]  ;;  %5551 = vmatpush.msra.mxu0 %v3849_v4 }
 0x66a   : > { %v3977_v33 = vld [vmem:[%s11089_s3 + $0x1278] sm:$0xff]  ;;  %5571 = vmatpush.msra.mxu1 %v3913_v8  ;;  %v5097_v8 = vadd.f32 %v5096_v18, %v4390_v21 }
 0x66b   : > { %v4045_v41 = vld [vmem:[%s11089_s3 + $0x1498] sm:$0xff]  ;;  %5591 = vmatpush.msra.mxu2 %v3977_v33 }
 0x66c   : > { %v3845_v37 = vld [vmem:[%s11089_s3 + $0xe58] sm:$0xff]  ;;  %5610 = vmatpush.msrb.mxu3 %v4045_v41  ;;  %v10679_v41 = vpop.f32.mrf.mxu1 }
 0x66d   : > { %v3909_v2 = vld [vmem:[%s11089_s3 + $0x1058] sm:$0xff]  ;;  %5552 = vmatpush.msra.mxu0 %v3845_v37  ;;  %v5116_v37 = vpop.f32.mrf.mxu3 }
 0x66e   : > { %v3973_v34 = vld [vmem:[%s11089_s3 + $0x1258] sm:$0xff]  ;;  %5572 = vmatpush.msra.mxu1 %v3909_v2 }
 0x66f   : > { %v4041_v42 = vld [vmem:[%s11089_s3 + $0x1478] sm:$0xff]  ;;  %5592 = vmatpush.msra.mxu2 %v3973_v34 }
 0x670   : > { %v3841_v43 = vld [vmem:[%s11089_s3 + $0xe38] sm:$0xff]  ;;  %5611 = vmatpush.msrb.mxu3 %v4041_v42 }
 0x671   : > { %v3905_v44 = vld [vmem:[%s11089_s3 + $0x1038] sm:$0xff]  ;;  %5553 = vmatpush.msra.mxu0 %v3841_v43 }
 0x672   : > { %v3969_v45 = vld [vmem:[%s11089_s3 + $0x1238] sm:$0xff]  ;;  %5573 = vmatpush.msra.mxu1 %v3905_v44  ;;  %v4817_v44 = vadd.f32 %v10513_v26, %v4797_v28 }
 0x673   : > { %v4037_v57 = vld [vmem:[%s11089_s3 + $0x1458] sm:$0xff]  ;;  %5593 = vmatpush.msra.mxu2 %v3969_v45 }
 0x674   : > { %v3837_v58 = vld [vmem:[%s11089_s3 + $0xe18] sm:$0xff]  ;;  %5612 = vmatpush.msrb.mxu3 %v4037_v57  ;;  %v5156_v32 = vpop.f32.mrf.mxu1 }
 0x675   : > { %v3901_v38 = vld [vmem:[%s11089_s3 + $0x1018] sm:$0xff]  ;;  %5554 = vmatpush.msra.mxu0 %v3837_v58  ;;  %v5117_v58 = vadd.f32 %v5116_v37, %v5097_v8  ;;  %v5196_v28 = vpop.f32.mrf.mxu3 }
 0x676   : > { %v3965_v47 = vld [vmem:[%s11089_s3 + $0x1218] sm:$0xff]  ;;  %5574 = vmatpush.msra.mxu1 %v3901_v38  ;;  %5555 = vmatmul.f32.vlgmr.msra.gmra.mxu0 %v8099_v5 }
 0x677   : > { %v4033_v56 = vld [vmem:[%s11089_s3 + $0x1438] sm:$0xff]  ;;  %5594 = vmatpush.msra.mxu2 %v3965_v47  ;;  %5575 = vmatmul.f32.vlgmr.msra.gmra.mxu1 %v6053_v54  ;;  %v5136_v47 = vpop.f32.mrf.mxu0 }
 0x678   : > { %v4153_v13 = vld [vmem:[%s11089_s3 + $0x17f8] sm:$0xff]  ;;  %5613 = vmatpush.msrb.mxu3 %v4033_v56  ;;  %5595 = vmatmul.f32.vlgmr.msra.gmra.mxu2 %v6051_v15 }
 0x679   : > { %v4217_v20 = vld [vmem:[%s11089_s3 + $0x19f8] sm:$0xff]  ;;  %5619 = vmatpush.msrb.mxu0 %v4153_v13 }
 0x67a   : > { %v4281_v29 = vld [vmem:[%s11089_s3 + $0x1bf8] sm:$0xff]  ;;  %5639 = vmatpush.msrb.mxu1 %v4217_v20 }
 0x67b   : > { %v4029_v50 = vld [vmem:[%s11089_s3 + $0x1418] sm:$0xff]  ;;  %5659 = vmatpush.msrb.mxu2 %v4281_v29 }
 0x67c   : > { %v4149_v27 = vld [vmem:[%s11089_s3 + $0x17d8] sm:$0xff]  ;;  %5614 = vmatpush.msrb.mxu3 %v4029_v50  ;;  %v4837_v50 = vadd.f32 %v10442_v31, %v4817_v44 }
 0x67d   : > { %v4213_v5 = vld [vmem:[%s11089_s3 + $0x19d8] sm:$0xff]  ;;  %5615 = vmatmul.f32.vlgmr.msrb.gmra.mxu3 %v9975_v0  ;;  %5620 = vmatpush.msrb.mxu0 %v4149_v27 }
 0x67e   : > { %v4277_v52 = vld [vmem:[%s11089_s3 + $0x1bd8] sm:$0xff]  ;;  %5640 = vmatpush.msrb.mxu1 %v4213_v5  ;;  %v5137_v5 = vadd.f32 %v5136_v47, %v5117_v58  ;;  %v6055_v58 = vld.sshfl [vmem:[#allocation1 + $0x28] sm:$0xff pattern:$0x73625140] }
 0x67f   : > { %v4345_v17 = vld [vmem:[%s11089_s3 + $0x1df8] sm:$0xff]  ;;  %5660 = vmatpush.msrb.mxu2 %v4277_v52 }
 0x680   : > { %v4145_v55 = vld [vmem:[%s11089_s3 + $0x17b8] sm:$0xff]  ;;  %5679 = vmatpush.msra.mxu3 %v4345_v17 }
 0x681   : > { %v4209_v60 = vld [vmem:[%s11089_s3 + $0x19b8] sm:$0xff]  ;;  %5621 = vmatpush.msrb.mxu0 %v4145_v55 }
 0x682   : > { %v4273_v25 = vld [vmem:[%s11089_s3 + $0x1bb8] sm:$0xff]  ;;  %5641 = vmatpush.msrb.mxu1 %v4209_v60 }
 0x683   : > { %v4341_v7 = vld [vmem:[%s11089_s3 + $0x1dd8] sm:$0xff]  ;;  %5661 = vmatpush.msrb.mxu2 %v4273_v25  ;;  %v4857_v25 = vadd.f32 %v10515_v35, %v4837_v50 }
 0x684   : > { %v4141_v0 = vld [vmem:[%s11089_s3 + $0x1798] sm:$0xff]  ;;  %5680 = vmatpush.msra.mxu3 %v4341_v7 }
 0x685   : > { %v4205_v9 = vld [vmem:[%s11089_s3 + $0x1998] sm:$0xff]  ;;  %5622 = vmatpush.msrb.mxu0 %v4141_v0  ;;  %v4877_v1 = vadd.f32 %v10542_v39, %v4857_v25  ;;  %v5749_v25 = vld [vmem:[%s11091_s5 + $0xd0] sm:$0xff] }
 0x686   : > { %v4269_v10 = vld [vmem:[%s11089_s3 + $0x1b98] sm:$0xff]  ;;  %5642 = vmatpush.msrb.mxu1 %v4205_v9  ;;  %v5157_v9 = vadd.f32 %v5156_v32, %v5137_v5 }
 0x687   : > { %v4337_v11 = vld [vmem:[%s11089_s3 + $0x1db8] sm:$0xff]  ;;  %5662 = vmatpush.msrb.mxu2 %v4269_v10 }
 0x688   : > { %v4137_v12 = vld [vmem:[%s11089_s3 + $0x1778] sm:$0xff]  ;;  %5681 = vmatpush.msra.mxu3 %v4337_v11  ;;  %v5176_v11 = vpop.f32.mrf.mxu2 }
 0x689   : > { %v4201_v14 = vld [vmem:[%s11089_s3 + $0x1978] sm:$0xff]  ;;  %5623 = vmatpush.msrb.mxu0 %v4137_v12 }
 0x68a   : > { %v4265_v63 = vld [vmem:[%s11089_s3 + $0x1b78] sm:$0xff]  ;;  %5643 = vmatpush.msrb.mxu1 %v4201_v14 }
 0x68b   : > { %v4333_v6 = vld [vmem:[%s11089_s3 + $0x1d98] sm:$0xff]  ;;  %5663 = vmatpush.msrb.mxu2 %v4265_v63 }
 0x68c   : > { %v4133_v22 = vld [vmem:[%s11089_s3 + $0x1758] sm:$0xff]  ;;  %5682 = vmatpush.msra.mxu3 %v4333_v6  ;;  %v5177_v6 = vadd.f32 %v5176_v11, %v5157_v9  ;;  %v5748_v9 = vld [vmem:[%s11091_s5 + $0xc8] sm:$0xff] }
 0x68d   : > { %v4197_v23 = vld [vmem:[%s11089_s3 + $0x1958] sm:$0xff]  ;;  %5624 = vmatpush.msrb.mxu0 %v4133_v22 }
 0x68e   : > { %v4261_v3 = vld [vmem:[%s11089_s3 + $0x1b58] sm:$0xff]  ;;  %5644 = vmatpush.msrb.mxu1 %v4197_v23  ;;  %v5197_v37 = vadd.f32 %v5196_v28, %v5177_v6  ;;  %v5763_v6 = vld [vmem:[%s11091_s5 + $0x140] sm:$0xff] }
 0x68f   : > { %v4329_v59 = vld [vmem:[%s11089_s3 + $0x1d78] sm:$0xff]  ;;  %5664 = vmatpush.msrb.mxu2 %v4261_v3  ;;  %v4897_v3 = vadd.f32 %v10570_v30, %v4877_v1 }
 0x690   : > { %v4129_v4 = vld [vmem:[%s11089_s3 + $0x1738] sm:$0xff]  ;;  %5683 = vmatpush.msra.mxu3 %v4329_v59 }
 0x691   : > { %v4193_v33 = vld [vmem:[%s11089_s3 + $0x1938] sm:$0xff]  ;;  %5625 = vmatpush.msrb.mxu0 %v4129_v4 }
 0x692   : > { %v4257_v36 = vld [vmem:[%s11089_s3 + $0x1b38] sm:$0xff]  ;;  %5645 = vmatpush.msrb.mxu1 %v4193_v33  ;;  %v5216_v33 = vpop.f32.mrf.mxu0 }
 0x693   : > { %v4325_v2 = vld [vmem:[%s11089_s3 + $0x1d58] sm:$0xff]  ;;  %5665 = vmatpush.msrb.mxu2 %v4257_v36  ;;  %v5217_v44 = vadd.f32 %v5216_v33, %v5197_v37  ;;  %v5761_v33 = vld [vmem:[%s11091_s5 + $0x130] sm:$0xff]  ;;  %v5743_v37 = vld [vmem:[%s11091_s5 + $0xa0] sm:$0xff] }
 0x694   : > { %v4125_v34 = vld [vmem:[%s11089_s3 + $0x1718] sm:$0xff]  ;;  %5684 = vmatpush.msra.mxu3 %v4325_v2 }
 0x695   : > { %v4189_v42 = vld [vmem:[%s11089_s3 + $0x1918] sm:$0xff]  ;;  %5626 = vmatpush.msrb.mxu0 %v4125_v34  ;;  %v4917_v34 = vadd.f32 %v10488_v16, %v4897_v3  ;;  %v5745_v3 = vld [vmem:[%s11091_s5 + $0xb0] sm:$0xff] }
 0x696   : > { %v4253_v43 = vld [vmem:[%s11089_s3 + $0x1b18] sm:$0xff]  ;;  %5646 = vmatpush.msrb.mxu1 %v4189_v42 }
 0x697   : > { %v4321_v45 = vld [vmem:[%s11089_s3 + $0x1d38] sm:$0xff]  ;;  %5666 = vmatpush.msrb.mxu2 %v4253_v43  ;;  %v4937_v47 = vadd.f32 %v10572_v48, %v4917_v34  ;;  %v5769_v48 = vld [vmem:[%s11091_s5 + $0x170] sm:$0xff]  ;;  %v5760_v34 = vld [vmem:[%s11091_s5 + $0x128] sm:$0xff] }
 0x698   : > { %v4121_v57 = vld [vmem:[%s11089_s3 + $0x16f8] sm:$0xff]  ;;  %5685 = vmatpush.msra.mxu3 %v4321_v45 }
 0x699   : > { %v4185_v38 = vld [vmem:[%s11089_s3 + $0x18f8] sm:$0xff]  ;;  %5627 = vmatpush.msrb.mxu0 %v4121_v57  ;;  %v5236_v57 = vpop.f32.mrf.mxu1 }
 0x69a   : > { %v4249_v26 = vld [vmem:[%s11089_s3 + $0x1af8] sm:$0xff]  ;;  %5647 = vmatpush.msrb.mxu1 %v4185_v38  ;;  %v5753_v38 = vld [vmem:[%s11091_s5 + $0xf0] sm:$0xff]  ;;  %v5237_v50 = vadd.f32 %v5236_v57, %v5217_v44  ;;  %v5759_v57 = vld [vmem:[%s11091_s5 + $0x120] sm:$0xff] }
 0x69b   : > { %v4317_v56 = vld [vmem:[%s11089_s3 + $0x1d18] sm:$0xff]  ;;  %5667 = vmatpush.msrb.mxu2 %v4249_v26 }
 0x69c   : > { %v4117_v13 = vld [vmem:[%s11089_s3 + $0x16d8] sm:$0xff]  ;;  %5686 = vmatpush.msra.mxu3 %v4317_v56  ;;  %v5256_v56 = vpop.f32.mrf.mxu2 }
 0x69d   : > { %v4181_v20 = vld [vmem:[%s11089_s3 + $0x18d8] sm:$0xff]  ;;  %5628 = vmatpush.msrb.mxu0 %v4117_v13  ;;  %v6056_v13 = vld.sshfl [vmem:[#allocation1 + $0x20] sm:$0xff pattern:$0x73625140]  ;;  %v5257_v5 = vadd.f32 %v5256_v56, %v5237_v50 }
 0x69e   : > { %v4245_v29 = vld [vmem:[%s11089_s3 + $0x1ad8] sm:$0xff]  ;;  %5648 = vmatpush.msrb.mxu1 %v4181_v20  ;;  %v5739_v50 = vld [vmem:[%s11091_s5 + $0x80] sm:$0xff] }
 0x69f   : > { %v4313_v15 = vld [vmem:[%s11089_s3 + $0x1cf8] sm:$0xff]  ;;  %5668 = vmatpush.msrb.mxu2 %v4245_v29  ;;  %v5752_v29 = vld [vmem:[%s11091_s5 + $0xe8] sm:$0xff] }
 0x6a0   : > { %v4113_v27 = vld [vmem:[%s11089_s3 + $0x16b8] sm:$0xff]  ;;  %5687 = vmatpush.msra.mxu3 %v4313_v15  ;;  %v4957_v15 = vadd.f32 %v10590_v49, %v4937_v47 }
 0x6a1   : > { %v4177_v52 = vld [vmem:[%s11089_s3 + $0x18b8] sm:$0xff]  ;;  %5629 = vmatpush.msrb.mxu0 %v4113_v27  ;;  %v5751_v27 = vld [vmem:[%s11091_s5 + $0xe0] sm:$0xff]  ;;  %v5316_v11 = vpop.f32.mrf.mxu1 }
 0x6a2   : > { %v4241_v31 = vld [vmem:[%s11089_s3 + $0x1ab8] sm:$0xff]  ;;  %5649 = vmatpush.msrb.mxu1 %v4177_v52  ;;  %v5768_v52 = vld [vmem:[%s11091_s5 + $0x168] sm:$0xff] }
 0x6a3   : > { %v4309_v54 = vld [vmem:[%s11089_s3 + $0x1cd8] sm:$0xff]  ;;  %5669 = vmatpush.msrb.mxu2 %v4241_v31  ;;  %v5276_v31 = vpop.f32.mrf.mxu3 }
 0x6a4   : > { %v4109_v17 = vld [vmem:[%s11089_s3 + $0x1698] sm:$0xff]  ;;  %5688 = vmatpush.msra.mxu3 %v4309_v54  ;;  %v5767_v54 = vld [vmem:[%s11091_s5 + $0x160] sm:$0xff] }
 0x6a5   : > { %v4173_v55 = vld [vmem:[%s11089_s3 + $0x1898] sm:$0xff]  ;;  %5630 = vmatpush.msrb.mxu0 %v4109_v17  ;;  %v4977_v17 = vadd.f32 %v10622_v62, %v4957_v15 }
 0x6a6   : > { %v4237_v60 = vld [vmem:[%s11089_s3 + $0x1a98] sm:$0xff]  ;;  %5650 = vmatpush.msrb.mxu1 %v4173_v55  ;;  %v5296_v55 = vpop.f32.mrf.mxu0 }
 0x6a7   : > { %v4305_v7 = vld [vmem:[%s11089_s3 + $0x1cb8] sm:$0xff]  ;;  %5670 = vmatpush.msrb.mxu2 %v4237_v60  ;;  %v4997_v1 = vadd.f32 %v10544_v46, %v4977_v17 }
 0x6a8   : > { %v4105_v0 = vld [vmem:[%s11089_s3 + $0x1678] sm:$0xff]  ;;  %5689 = vmatpush.msra.mxu3 %v4305_v7  ;;  %v5277_v7 = vadd.f32 %v5276_v31, %v5257_v5  ;;  %v5755_v5 = vld [vmem:[%s11091_s5 + $0x100] sm:$0xff] }
 0x6a9   : > { %v4169_v10 = vld [vmem:[%s11089_s3 + $0x1878] sm:$0xff]  ;;  %5631 = vmatpush.msrb.mxu0 %v4105_v0 }
 0x6aa   : > { %v4233_v35 = vld [vmem:[%s11089_s3 + $0x1a78] sm:$0xff]  ;;  %5651 = vmatpush.msrb.mxu1 %v4169_v10  ;;  %v5297_v10 = vadd.f32 %v5296_v55, %v5277_v7  ;;  %v5725_v55 = vld [vmem:[%s11091_s5 + $0x10] sm:$0xff]  ;;  %v5719_v7 = vmax.f32 %v9363_v19, 0.0  ;;  %v4391_v19 = vperm.slane %v10606_v53, 3  ;;  %v5779_v53 = vld [vmem:[%s11091_s5 + $0x1c0] sm:$0xff] }
 0x6ab   : > { %v4301_v12 = vld [vmem:[%s11089_s3 + $0x1c98] sm:$0xff]  ;;  %5671 = vmatpush.msrb.mxu2 %v4233_v35  ;;  %v5765_v35 = vld [vmem:[%s11091_s5 + $0x150] sm:$0xff] }
 0x6ac   : > { %v4101_v21 = vld [vmem:[%s11089_s3 + $0x1658] sm:$0xff]  ;;  %5690 = vmatpush.msra.mxu3 %v4301_v12 }
 0x6ad   : > { %v4165_v14 = vld [vmem:[%s11089_s3 + $0x1858] sm:$0xff]  ;;  %5632 = vmatpush.msrb.mxu0 %v4101_v21  ;;  %v5747_v21 = vld [vmem:[%s11091_s5 + $0xc0] sm:$0xff] }
 0x6ae   : > { %v4229_v39 = vld [vmem:[%s11089_s3 + $0x1a58] sm:$0xff]  ;;  %5652 = vmatpush.msrb.mxu1 %v4165_v14  ;;  %v5764_v14 = vld [vmem:[%s11091_s5 + $0x148] sm:$0xff] }
 0x6af   : > { %v4297_v63 = vld [vmem:[%s11089_s3 + $0x1c78] sm:$0xff]  ;;  %5672 = vmatpush.msrb.mxu2 %v4229_v39  ;;  %v5336_v39 = vpop.f32.mrf.mxu2 }
 0x6b0   : > { %v4097_v18 = vld [vmem:[%s11089_s3 + $0x1638] sm:$0xff]  ;;  %5691 = vmatpush.msra.mxu3 %v4297_v63 }
 0x6b1   : > { %v4161_v22 = vld [vmem:[%s11089_s3 + $0x1838] sm:$0xff]  ;;  %5633 = vmatpush.msrb.mxu0 %v4097_v18  ;;  %v5317_v18 = vadd.f32 %v5316_v11, %v5297_v10  ;;  %v5781_v11 = vld [vmem:[%s11091_s5 + $0x1d0] sm:$0xff] }
 0x6b2   : > { %v4225_v23 = vld [vmem:[%s11089_s3 + $0x1a38] sm:$0xff]  ;;  %5653 = vmatpush.msrb.mxu1 %v4161_v22  ;;  %v5017_v22 = vadd.f32 %v10624_v61, %v4997_v1 }
 0x6b3   : > { %v4293_v59 = vld [vmem:[%s11089_s3 + $0x1c58] sm:$0xff]  ;;  %5673 = vmatpush.msrb.mxu2 %v4225_v23  ;;  %v5337_v28 = vadd.f32 %v5336_v39, %v5317_v18 }
 0x6b4   : > { %v4093_v4 = vld [vmem:[%s11089_s3 + $0x1618] sm:$0xff]  ;;  %5692 = vmatpush.msra.mxu3 %v4293_v59 }
 0x6b5   : > { %v4157_v8 = vld [vmem:[%s11089_s3 + $0x1818] sm:$0xff]  ;;  %5634 = vmatpush.msrb.mxu0 %v4093_v4  ;;  %v5037_v4 = vadd.f32 %v10652_v40, %v5017_v22  ;;  %v5737_v40 = vld [vmem:[%s11091_s5 + $0x70] sm:$0xff] }
 0x6b6   : > { %v4221_v30 = vld [vmem:[%s11089_s3 + $0x1a18] sm:$0xff]  ;;  %5654 = vmatpush.msrb.mxu1 %v4157_v8  ;;  %v5356_v8 = vpop.f32.mrf.mxu3 }
 0x6b7   : > { %v4289_v36 = vld [vmem:[%s11089_s3 + $0x1c38] sm:$0xff]  ;;  %5674 = vmatpush.msrb.mxu2 %v4221_v30  ;;  %5655 = vmatmul.f32.vlgmr.msrb.gmra.mxu1 %v6056_v13  ;;  %v5744_v30 = vld [vmem:[%s11091_s5 + $0xa8] sm:$0xff] }
 0x6b8   : > { %v4385_v2 = vld [vmem:[%s11089_s3 + $0x1f38] sm:$0xff]  ;;  %5693 = vmatpush.msra.mxu3 %v4289_v36  ;;  %5675 = vmatmul.f32.vlgmr.msrb.gmra.mxu2 %v6055_v58  ;;  %v5740_v13 = vld [vmem:[%s11091_s5 + $0x88] sm:$0xff] }
 0x6b9   : > { %v5754_v42 = vld [vmem:[%s11091_s5 + $0xf8] sm:$0xff]  ;;  %5705 = vmatpush.msra.mxu0 %v4385_v2  ;;  %v5357_v2 = vadd.f32 %v5356_v8, %v5337_v28 }
 0x6ba   : > { %v4285_v43 = vld [vmem:[%s11089_s3 + $0x1c18] sm:$0xff]  ;;  %5817 = vmatpush.msra.mxu1 %v5754_v42  ;;  %v5057_v42 = vadd.f32 %v10679_v41, %v5037_v4  ;;  %v5735_v41 = vld [vmem:[%s11091_s5 + $0x60] sm:$0xff] }
 0x6bb   : > { %v6054_v45 = vld.sshfl [vmem:[#allocation1 + $0x18] sm:$0xff pattern:$0x73625140]  ;;  %5694 = vmatpush.msra.mxu3 %v4285_v43  ;;  %v5736_v43 = vld [vmem:[%s11091_s5 + $0x68] sm:$0xff] }
 0x6bc   : > { %5635 = vmatmul.f32.vlgmr.msrb.gmra.mxu0 %v6054_v45  ;;  %v4381_v16 = vld [vmem:[%s11089_s3 + $0x1f18] sm:$0xff]  ;;  %5695 = vmatmul.f32.vlgmr.msra.gmra.mxu3 %v10174_v24  ;;  %v5376_v45 = vpop.f32.mrf.mxu0  ;;  %v5077_v47 = vadd.f32 %v10592_v51, %v5057_v42  ;;  %v5733_v51 = vld [vmem:[%s11091_s5 + $0x50] sm:$0xff] }
 0x6bd   : > { %v5770_v26 = vld [vmem:[%s11091_s5 + $0x178] sm:$0xff]  ;;  %5706 = vmatpush.msra.mxu0 %v4381_v16  ;;  %5818 = vmatpush.msra.mxu1 %v5753_v38  ;;  %v5377_v58 = vadd.f32 %v5376_v45, %v5357_v2  ;;  %v5741_v16 = vld [vmem:[%s11091_s5 + $0x90] sm:$0xff]  ;;  %v5396_v38 = vpop.f32.mrf.mxu1 }
 0x6be   : > { %v4377_v20 = vld [vmem:[%s11089_s3 + $0x1ef8] sm:$0xff]  ;;  %5837 = vmatpush.msra.mxu2 %v5770_v26  ;;  %v5720_v15 = vmax.f32 %v5077_v47, 0.0  ;;  %v5456_v39 = vpop.f32.mrf.mxu3 }
 0x6bf   : > { %v4373_v24 = vld [vmem:[%s11089_s3 + $0x1ed8] sm:$0xff]  ;;  %5707 = vmatpush.msra.mxu0 %v4377_v20  ;;  %5819 = vmatpush.msra.mxu1 %v5752_v29  ;;  %v5397_v20 = vadd.f32 %v5396_v38, %v5377_v58  ;;  %v5757_v29 = vld [vmem:[%s11091_s5 + $0x110] sm:$0xff] }
 0x6c0   : > { %v4369_v49 = vld [vmem:[%s11089_s3 + $0x1eb8] sm:$0xff]  ;;  %5838 = vmatpush.msra.mxu2 %v5769_v48  ;;  %v5756_v48 = vld [vmem:[%s11091_s5 + $0x108] sm:$0xff] }
 0x6c1   : > { %v5750_v32 = vld [vmem:[%s11091_s5 + $0xd8] sm:$0xff]  ;;  %5708 = vmatpush.msra.mxu0 %v4373_v24  ;;  %5820 = vmatpush.msra.mxu1 %v5751_v27  ;;  %v5732_v24 = vld [vmem:[%s11091_s5 + $0x48] sm:$0xff]  ;;  %v5721_v27 = vmax.f32 %v5397_v20, 0.0 }
 0x6c2   : > { %v4365_v60 = vld [vmem:[%s11089_s3 + $0x1e98] sm:$0xff]  ;;  %5839 = vmatpush.msra.mxu2 %v5768_v52  ;;  %v5731_v52 = vld [vmem:[%s11091_s5 + $0x40] sm:$0xff] }
 0x6c3   : > { %5709 = vmatpush.msra.mxu0 %v4369_v49  ;;  %5821 = vmatpush.msra.mxu1 %v5750_v32  ;;  %v5766_v0 = vld [vmem:[%s11091_s5 + $0x158] sm:$0xff]  ;;  %v5729_v49 = vld [vmem:[%s11091_s5 + $0x30] sm:$0xff]  ;;  %v5728_v32 = vld [vmem:[%s11091_s5 + $0x28] sm:$0xff] }
 0x6c4   : > { %v4361_v62 = vld [vmem:[%s11089_s3 + $0x1e78] sm:$0xff]  ;;  %5840 = vmatpush.msra.mxu2 %v5767_v54  ;;  %v5727_v54 = vld [vmem:[%s11091_s5 + $0x20] sm:$0xff]  ;;  %v5476_v22 = vpop.f32.mrf.mxu0 }
 0x6c5   : > { %5710 = vmatpush.msra.mxu0 %v4365_v60  ;;  %5822 = vmatpush.msra.mxu1 %v5749_v25  ;;  %v4357_v12 = vld [vmem:[%s11089_s3 + $0x1e58] sm:$0xff]  ;;  %v5724_v60 = vld [vmem:[%s11091_s5 + $0x8] sm:$0xff]  ;;  %v5723_v25 = vld [vmem:[%s11091_s5] sm:$0xff]  ;;  %v5416_v10 = vpop.f32.mrf.mxu1 }
 0x6c6   : > { %5841 = vmatpush.msra.mxu2 %v5766_v0  ;;  %v4353_v46 = vld [vmem:[%s11089_s3 + $0x1e38] sm:$0xff]  ;;  %v5785_v0 = vld [vmem:[%s11091_s5 + $0x1f0] sm:$0xf]  ;;  %v5417_v1 = vadd.f32 %v5416_v10, %v4391_v19 }
 0x6c7   : > { %5711 = vmatpush.msra.mxu0 %v4361_v62  ;;  %5823 = vmatpush.msra.mxu1 %v5748_v9  ;;  %v5746_v63 = vld [vmem:[%s11091_s5 + $0xb8] sm:$0xff]  ;;  %v5784_v62 = vld [vmem:[%s11091_s5 + $0x1e8] sm:$0xff]  ;;  %v5783_v9 = vld [vmem:[%s11091_s5 + $0x1e0] sm:$0xff] }
 0x6c8   : > { %5842 = vmatpush.msra.mxu2 %v5765_v35  ;;  %v4349_v23 = vld [vmem:[%s11089_s3 + $0x1e18] sm:$0xff]  ;;  %5997 = vmatpush.msk.msrb.mxu3 %vm3294_vm9, %v5785_v0 }
 0x6c9   : > { %5712 = vmatpush.msra.mxu0 %v4357_v12  ;;  %5824 = vmatpush.msra.mxu1 %v5747_v21  ;;  %v5762_v59 = vld [vmem:[%s11091_s5 + $0x138] sm:$0xff]  ;;  %v5780_v12 = vld [vmem:[%s11091_s5 + $0x1c8] sm:$0xff]  ;;  %v5436_v21 = vpop.f32.mrf.mxu2 }
 0x6ca   : > { %5843 = vmatpush.msra.mxu2 %v5764_v14  ;;  %v5738_v61 = vld [vmem:[%s11091_s5 + $0x78] sm:$0xff]  ;;  %5859 = vmatpush.msrb.mxu3 %v5784_v62  ;;  %v5437_v14 = vadd.f32 %v5436_v21, %v5417_v1 }
 0x6cb   : > { %5713 = vmatpush.msra.mxu0 %v4353_v46  ;;  %5825 = vmatpush.msra.mxu1 %v5746_v63  ;;  %v6057_v36 = vld.sshfl [vmem:[#allocation1 + $0x38] sm:$0xff pattern:$0x73625140]  ;;  %v5777_v63 = vld [vmem:[%s11091_s5 + $0x1b0] sm:$0xff] }
 0x6cc   : > { %5844 = vmatpush.msra.mxu2 %v5763_v6  ;;  %v5742_v44 = vld [vmem:[%s11091_s5 + $0x98] sm:$0xff]  ;;  %5860 = vmatpush.msrb.mxu3 %v5783_v9  ;;  %v5457_v18 = vadd.f32 %v5456_v39, %v5437_v14  ;;  %v5776_v6 = vld [vmem:[%s11091_s5 + $0x1a8] sm:$0xff] }
 0x6cd   : > { %5714 = vmatpush.msra.mxu0 %v4349_v23  ;;  %5826 = vmatpush.msra.mxu1 %v5745_v3  ;;  %v5758_v26 = vld [vmem:[%s11091_s5 + $0x118] sm:$0xff]  ;;  %v5775_v23 = vld [vmem:[%s11091_s5 + $0x1a0] sm:$0xff] }
 0x6ce   : > { %5996 = vmatmul.msk.f32.vlgmr.msra.gmra.mxu0 %vm4436_vm15, %v6057_v36  ;;  %5845 = vmatpush.msra.mxu2 %v5762_v59  ;;  %v5734_v56 = vld [vmem:[%s11091_s5 + $0x58] sm:$0xff]  ;;  %v5477_v3 = vadd.f32 %v5476_v22, %v5457_v18  ;;  %v5496_v59 = vpop.f32.mrf.mxu1  ;;  %v5771_v36 = vld [vmem:[%s11091_s5 + $0x180] sm:$0xff] }
 0x6cf   : > { %5797 = vmatpush.msrb.mxu0 %v5738_v61  ;;  %5827 = vmatpush.msra.mxu1 %v5744_v30  ;;  %v5730_v31 = vld [vmem:[%s11091_s5 + $0x38] sm:$0xff]  ;;  %v5773_v61 = vld [vmem:[%s11091_s5 + $0x190] sm:$0xff]  ;;  %v5772_v30 = vld [vmem:[%s11091_s5 + $0x188] sm:$0xff] }
 0x6d0   : > { %5846 = vmatpush.msra.mxu2 %v5761_v33  ;;  %v5726_v17 = vld [vmem:[%s11091_s5 + $0x18] sm:$0xff]  ;;  %v5497_v4 = vadd.f32 %v5496_v59, %v5477_v3 }
 0x6d1   : > { %5798 = vmatpush.msrb.mxu0 %v5737_v40  ;;  %5828 = vmatpush.msra.mxu1 %v5743_v37  ;;  %v5782_v35 = vld [vmem:[%s11091_s5 + $0x1d8] sm:$0xff]  ;;  %v5516_v8 = vpop.f32.mrf.mxu2  ;;  %v5536_v40 = vpop.f32.mrf.mxu3 }
 0x6d2   : > { %5847 = vmatpush.msra.mxu2 %v5760_v34  ;;  %5861 = vmatpush.msrb.mxu3 %v5782_v35  ;;  %v5778_v46 = vld [vmem:[%s11091_s5 + $0x1b8] sm:$0xff]  ;;  %v5517_v33 = vadd.f32 %v5516_v8, %v5497_v4 }
 0x6d3   : > { %5799 = vmatpush.msrb.mxu0 %v5736_v43  ;;  %5829 = vmatpush.msra.mxu1 %v5742_v44  ;;  %v5774_v28 = vld [vmem:[%s11091_s5 + $0x198] sm:$0xff] }
 0x6d4   : > { %5848 = vmatpush.msra.mxu2 %v5759_v57  ;;  %5862 = vmatpush.msrb.mxu3 %v5781_v11  ;;  %v5537_v2 = vadd.f32 %v5536_v40, %v5517_v33 }
 0x6d5   : > { %5800 = vmatpush.msrb.mxu0 %v5735_v41  ;;  %5830 = vmatpush.msra.mxu1 %v5741_v16 }
 0x6d6   : > { %5849 = vmatpush.msra.mxu2 %v5758_v26  ;;  %5863 = vmatpush.msrb.mxu3 %v5780_v12  ;;  %v6038_v12 = vld [vmem:[%s11094_s8] ss:$0 sm:$0xff] }
 0x6d7   : > { %5801 = vmatpush.msrb.mxu0 %v5734_v56  ;;  %5831 = vmatpush.msra.mxu1 %v5740_v13 }
 0x6d8   : > { %5850 = vmatpush.msra.mxu2 %v5757_v29  ;;  %5864 = vmatpush.msrb.mxu3 %v5779_v53 }
 0x6d9   : > { %5802 = vmatpush.msrb.mxu0 %v5733_v51  ;;  %5832 = vmatpush.msra.mxu1 %v5739_v50 }
 0x6da   : > { %5833 = vmatmul.f32.vlgmr.msra.gmra.mxu1 %v5720_v15  ;;  %5851 = vmatpush.msra.mxu2 %v5756_v48  ;;  %v5890_v48 = vld [vmem:[%s11093_s7 + $0x60] sm:$0xf]  ;;  %v5889_v15 = vld [vmem:[%s11093_s7 + $0x58] sm:$0xff] }
 0x6db   : > { %5803 = vmatpush.msrb.mxu0 %v5732_v24  ;;  %5865 = vmatpush.msrb.mxu3 %v5778_v46  ;;  %v5888_v24 = vld [vmem:[%s11093_s7 + $0x50] sm:$0xff] }
 0x6dc   : > { %5852 = vmatpush.msra.mxu2 %v5755_v5  ;;  %v5886_v5 = vld [vmem:[%s11093_s7 + $0x40] sm:$0xff] }
 0x6dd   : > { %5804 = vmatpush.msrb.mxu0 %v5731_v52  ;;  %5853 = vmatmul.f32.vlgmr.msra.gmra.mxu2 %v5721_v27  ;;  %v5887_v27 = vld [vmem:[%s11093_s7 + $0x48] sm:$0xff]  ;;  %v5885_v52 = vld [vmem:[%s11093_s7 + $0x38] sm:$0xff] }
 0x6de   : > { %5866 = vmatpush.msrb.mxu3 %v5777_v63 }
 0x6df   : > { %5805 = vmatpush.msrb.mxu0 %v5730_v31  ;;  %v5884_v31 = vld [vmem:[%s11093_s7 + $0x30] sm:$0xff] }
 0x6e0   : > { %5867 = vmatpush.msrb.mxu3 %v5776_v6 }
 0x6e1   : > { %5806 = vmatpush.msrb.mxu0 %v5729_v49  ;;  %v5883_v49 = vld [vmem:[%s11093_s7 + $0x28] sm:$0xff] }
 0x6e2   : > { %5868 = vmatpush.msrb.mxu3 %v5775_v23 }
 0x6e3   : > { %5807 = vmatpush.msrb.mxu0 %v5728_v32  ;;  %v5882_v32 = vld [vmem:[%s11093_s7 + $0x20] sm:$0xff] }
 0x6e4   : > { %5869 = vmatpush.msrb.mxu3 %v5774_v28 }
 0x6e5   : > { %5808 = vmatpush.msrb.mxu0 %v5727_v54  ;;  %v5881_v54 = vld [vmem:[%s11093_s7 + $0x18] sm:$0xff] }
 0x6e6   : > { %5870 = vmatpush.msrb.mxu3 %v5773_v61 }
 0x6e7   : > { %5809 = vmatpush.msrb.mxu0 %v5726_v17  ;;  %v5880_v17 = vld [vmem:[%s11093_s7 + $0x10] sm:$0xff] }
 0x6e8   : > { %5871 = vmatpush.msrb.mxu3 %v5772_v30 }
 0x6e9   : > { %5810 = vmatpush.msrb.mxu0 %v5725_v55  ;;  %v5879_v55 = vld [vmem:[%s11093_s7 + $0x8] sm:$0xff] }
 0x6ea   : > { %5872 = vmatpush.msrb.mxu3 %v5771_v36 }
 0x6eb   : > { %5811 = vmatpush.msrb.mxu0 %v5724_v60  ;;  %v5878_v60 = vld [vmem:[%s11093_s7] sm:$0xff] }
 0x6ec   : > { %5999 = vmatpush.msk.msra.mxu3 %vm3294_vm9, %v5890_v48 }
 0x6ed   : > { %5812 = vmatpush.msrb.mxu0 %v5723_v25  ;;  %v6037_v25 = vld [vmem:[%s11092_s6] ss:$0 sm:$0xff] }
 0x6ee   : > { %5813 = vmatmul.f32.vlgmr.msrb.gmra.mxu0 %v5719_v7  ;;  %5906 = vmatpush.msra.mxu3 %v5889_v15 }
 0x6f0   : > { %5907 = vmatpush.msra.mxu3 %v5888_v24 }
 0x6f2   : > { %5908 = vmatpush.msra.mxu3 %v5887_v27 }
 0x6f3   : > { %v5556_v37 = vpop.f32.mrf.mxu0 }
 0x6f4   : > { %v5557_v34 = vadd.f32 %v5556_v37, %v5537_v2  ;;  %v5576_v42 = vpop.f32.mrf.mxu1  ;;  %5909 = vmatpush.msra.mxu3 %v5886_v5 }
 0x6f6   : > { %v5577_v44 = vadd.f32 %v5576_v42, %v5557_v34  ;;  %5910 = vmatpush.msra.mxu3 %v5885_v52 }
 0x6f8   : > { %5911 = vmatpush.msra.mxu3 %v5884_v31 }
 0x6fa   : > { %5912 = vmatpush.msra.mxu3 %v5883_v49 }
 0x6fb   : > { %v5596_v43 = vpop.f32.mrf.mxu2 }
 0x6fc   : > { %v5597_v45 = vadd.f32 %v5596_v43, %v5577_v44  ;;  %5913 = vmatpush.msra.mxu3 %v5882_v32 }
 0x6fe   : > { %5914 = vmatpush.msra.mxu3 %v5881_v54 }
 0x700   : > { %v5616_v57 = vpop.f32.mrf.mxu3  ;;  %5915 = vmatpush.msra.mxu3 %v5880_v17 }
 0x701   : > { %v5617_v41 = vadd.f32 %v5616_v57, %v5597_v45 }
 0x702   : > { %5916 = vmatpush.msra.mxu3 %v5879_v55 }
 0x704   : > { %5917 = vmatpush.msra.mxu3 %v5878_v60 }
 0x734   : > { %v5656_v38 = vpop.f32.mrf.mxu1 }
 0x739   : > { %v5636_v58 = vpop.f32.mrf.mxu0 }
 0x73a   : > { %v5637_v16 = vadd.f32 %v5636_v58, %v5617_v41 }
 0x73b   : > { %v5676_v26 = vpop.f32.mrf.mxu2 }
 0x73c   : > { %v5657_v47 = vadd.f32 %v5656_v38, %v5637_v16 }
 0x73e   : > { %v5677_v56 = vadd.f32 %v5676_v26, %v5657_v47 }
 0x73f   : > { %v5696_v13 = vpop.f32.mrf.mxu3 }
 0x740   : > { %v5697_v20 = vadd.f32 %v5696_v13, %v5677_v56 }
 0x74b   : > { %v5716_v29 = vpop.f32.mrf.mxu0 }
 0x74c   : > { %v5717_v51 = vadd.f32 %v5716_v29, %v5697_v20 }
 0x74e   : > { %v5722_v50 = vmax.f32 %v5717_v51, 0.0 }
 0x750   : > { %5998 = vmatmul.msk.f32.vlgmr.msrb.gmra.mxu3 %vm5790_vm0, %v5722_v50 }
 0x757   : > { %v5834_v62 = vpop.f32.mrf.mxu1 }
 0x760   : > { %v5854_v19 = vpop.f32.mrf.mxu2 }
 0x76b   : > { %v5814_v7 = vpop.f32.mrf.mxu0 }
 0x76c   : > { %v5815_v0 = vadd.f32 %v6037_v25, %v5814_v7 }
 0x76e   : > { %v5835_v9 = vadd.f32 %v5834_v62, %v5815_v0 }
 0x770   : > { %v5855_v10 = vadd.f32 %v5854_v19, %v5835_v9 }
 0x7d3   : > { %v5874_v35 = vpop.f32.mrf.mxu3 }
 0x7d4   : > { %v5875_v1 = vadd.f32 %v5874_v35, %v5855_v10 }
 0x7d6   : > { %v5877_v11 = vmax.f32 %v5875_v1, 0.0 }
 0x7d8   : > { %6000 = vmatmul.msk.f32.vlgmr.msra.gmra.mxu3 %vm5895_vm1, %v5877_v11 }
 0x85b   : > { %v5919_v21 = vpop.f32.mrf.mxu3 }
 0x85c   : > { %v5920_v14 = vadd.f32 %v6038_v12, %v5919_v21 }
 0x85e   : > { %5923 = vst.msk [vmem:[#allocation3] sm:$0x3] %vm5922_vm2, %v5920_v14 }
 0x85f PF: > { %p6010_p7 = scmp.eq.s32.totalorder %s6156_s10, 4  ;;  %s6099_s19 = smov [#allocation3]  }
 0x860   : > { %s5930_s20 = sshll.u32 %s6099_s19, 4  ;;  %s5932_s23 = sshll.u32 %s11095_s9, 4  ;;  %s5931_s20 = int_to_ptr.vmem [resolvable:$true] %s5930_s20  ;;  %s5933_s23 = int_to_ptr.hbm [resolvable:$true] %s5932_s23 }
 0x861   : > { %6007 = dma.vmem_to_hbm [thread:$0]  (%p6010_p7), %s5931_s20, 32, %s5933_s23, [#allocation4]  }
 0x862   : > { %6091 = dma.done.wait (%p6010_p7), [#allocation4], 32  }
 0x863   : > { %6093 = vsyncadd (%p6010_p7), [#allocation4], 4294967264 }
 0x864 PF: > { %s20_s30 = sadd.s32 1, %s6096_s30  }
 0x865   : > { %p17_p8 = scmp.ge.s32.totalorder %s20_s30, 7  }
 0x867   :  { %19 = sbr.rel (!%p17_p8) target bundleno = 1 (0x1), region = 96 }
 0x86c   :  { %5946 = vsyncpa [#allocation4], 1 }
 0x86d   :  { %5948 = vsyncpa [#allocation4 + $0x1], 1 }

</bundles_post_ra>
